<compile_context>
chip_gen: v7x
topology: tpu7x:2x2x1
jax: 0.10.0
libtpu: 0.0.40
codegen_flags: <defaults>
</compile_context>

<pallas_src>
import functools

import jax
import jax.numpy as jnp
from jax.experimental import pallas as pl
from jax.experimental.pallas import tpu as pltpu


# Architecture implied by the reference __init__ (x-transformers Decoder defaults).
DIM = 512                    # Decoder(dim=512)
DEPTH = 4                    # depth=4
HEADS = 4                    # heads=4
DIM_HEAD = 64                # x-transformers default attention head dim
INNER = HEADS * DIM_HEAD     # 256
FF_MULT = 4
FF_INNER = FF_MULT * DIM     # 2048
MAX_SEQ_LEN = 1024
OUT_PAD = 128                # lane-dense padded width for project_out
LN_EPS = 1e-5


# ----------------------------------------------------------------------------
# In-kernel helpers (pure jnp on VMEM-resident values)
# ----------------------------------------------------------------------------

def _layernorm(x, g, b):
    mean = jnp.mean(x, axis=-1, keepdims=True)
    xc = x - mean
    var = jnp.mean(xc * xc, axis=-1, keepdims=True)
    return xc * jax.lax.rsqrt(var + LN_EPS) * g + b


def _gelu_tanh(x):
    # TODO(synk): PyTorch nn.GELU defaults to exact erf; tanh approximation used here.
    return 0.5 * x * (1.0 + jnp.tanh(0.7978845608028654 * (x + 0.044715 * x * x * x)))


def _sdpa_heads(q2, k2, v2, *, batch, q_len, k_len, causal):
    """Scaled-dot-product attention on already-projected activations.

    q2: (batch*q_len, INNER) f32, k2/v2: (batch*k_len, INNER) f32 (head h in cols [h*64,(h+1)*64)).
    Returns concatenated head outputs, (batch*q_len, INNER) f32.  Only tiny activations are
    sliced per head; all weight matmuls stay fused & lane-dense outside this function.
    """
    scale = DIM_HEAD ** -0.5
    outs = []
    for hd in range(HEADS):
        sl = slice(hd * DIM_HEAD, (hd + 1) * DIM_HEAD)
        qh = q2[:, sl].reshape(batch, q_len, DIM_HEAD) * scale
        kh = k2[:, sl].reshape(batch, k_len, DIM_HEAD)
        vh = v2[:, sl].reshape(batch, k_len, DIM_HEAD)
        s = jnp.einsum("bqd,bkd->bqk", qh, kh, preferred_element_type=jnp.float32)
        if causal:
            qi = jax.lax.broadcasted_iota(jnp.int32, (q_len, k_len), 0)
            ki = jax.lax.broadcasted_iota(jnp.int32, (q_len, k_len), 1)
            s = jnp.where((ki <= qi)[None, :, :], s, -1e30)
        s = s - jnp.max(s, axis=-1, keepdims=True)
        p = jnp.exp(s)
        p = p * pl.reciprocal(jnp.sum(p, axis=-1, keepdims=True), approx=True)
        oh = jnp.einsum("bqk,bkd->bqd", p, vh, preferred_element_type=jnp.float32)
        outs.append(oh.reshape(batch * q_len, DIM_HEAD))
    return jnp.concatenate(outs, axis=-1)            # (batch*q_len, INNER)


# ----------------------------------------------------------------------------
# The fused decoder kernel body (grid = (DEPTH,), one iteration per layer)
# ----------------------------------------------------------------------------

def _decoder_body(r, out_ref, x_s, ctx_s, *, batch, q_len, ctx_len):
    layer = pl.program_id(0)
    single_ctx = ctx_len == 1          # trace-time decision (T_obs known statically)

    def mm(x_bf16, w_bf16):
        return jnp.dot(x_bf16, w_bf16, preferred_element_type=jnp.float32)

    # ---- layer 0 only: embed the observation (cross-attn context) and project-in the
    #      continuous latent actions + positional embedding; both stay in VMEM scratch.
    @pl.when(layer == 0)
    def _prologue():
        ctx_s[...] = (mm(r["o2"][...].astype(jnp.bfloat16), r["embed_w"][...])
                      + r["embed_b"][...])
        x0 = (mm(r["cla"][...].astype(jnp.bfloat16), r["proj_in_w"][...])
              + r["proj_in_b"][...])
        # pos is (q_len, DIM); broadcast across batch in-kernel (no wrapper-side tiling).
        x0 = x0.reshape(batch, q_len, DIM) + r["pos"][...][None, :, :]
        x_s[...] = x0.reshape(batch * q_len, DIM)

    x = x_s[...]

    # ---- causal self-attention (pre-LN, residual); ONE fused QKV matmul, ONE out-proj ----
    h = _layernorm(x, r["sa_ln_g"][...], r["sa_ln_b"][...]).astype(jnp.bfloat16)
    qkv = mm(h, r["sa_qkv_w"][...])                                   # (bk, 3*INNER) f32
    attn = _sdpa_heads(qkv[:, :INNER], qkv[:, INNER:2 * INNER], qkv[:, 2 * INNER:],
                       batch=batch, q_len=q_len, k_len=q_len, causal=True)
    x = x + mm(attn.astype(jnp.bfloat16), r["sa_o_w"][...]) + r["sa_o_b"][...]

    # ---- cross-attention over the embedded observation ----
    if single_ctx:
        # softmax over a single key == 1 -> attention == broadcast of the V projection.
        # Q/K weights and the cross-attn LayerNorm are never DMA'd (dead bytes removed).
        ctx_b = ctx_s[...].astype(jnp.bfloat16)                       # (batch, DIM)
        v = mm(ctx_b, r["ca_v_w"][...]).astype(jnp.bfloat16)          # (batch, INNER)
        cross = mm(v, r["ca_o_w"][...])                               # (batch, DIM) f32
        cross = jnp.broadcast_to(cross[:, None, :], (batch, q_len, DIM))
        x = x + cross.reshape(batch * q_len, DIM) + r["ca_o_b"][...]
    else:
        h = _layernorm(x, r["ca_ln_g"][...], r["ca_ln_b"][...]).astype(jnp.bfloat16)
        ctx_b = ctx_s[...].astype(jnp.bfloat16)
        q2 = mm(h, r["ca_q_w"][...])                                  # (bk, INNER)
        k2 = mm(ctx_b, r["ca_k_w"][...])                              # (bt, INNER)
        v2 = mm(ctx_b, r["ca_v_w"][...])                              # (bt, INNER)
        attn = _sdpa_heads(q2, k2, v2, batch=batch, q_len=q_len, k_len=ctx_len, causal=False)
        x = x + mm(attn.astype(jnp.bfloat16), r["ca_o_w"][...]) + r["ca_o_b"][...]

    # ---- feed-forward (GELU); int8 weights dequantized on the fly, per-output-channel
    #      scale folded into the f32 accumulator; the (bk, 2048) hidden never leaves VMEM ----
    h = _layernorm(x, r["ff_ln_g"][...], r["ff_ln_b"][...]).astype(jnp.bfloat16)
    w1 = r["ff_w1"][...].astype(jnp.bfloat16)                         # int8 -> bf16 (exact)
    hidden = mm(h, w1) * r["ff_s1"][...] + r["ff_b1"][...]
    hidden = _gelu_tanh(hidden).astype(jnp.bfloat16)
    w2 = r["ff_w2"][...].astype(jnp.bfloat16)
    x = x + mm(hidden, w2) * r["ff_s2"][...] + r["ff_b2"][...]

    x_s[...] = x

    # ---- last layer only: final LayerNorm + lane-dense (128-wide) project_out ----
    @pl.when(layer == pl.num_programs(0) - 1)
    def _epilogue():
        xn = _layernorm(x, r["fin_ln_g"][...], r["fin_ln_b"][...]).astype(jnp.bfloat16)
        out_ref[...] = (mm(xn, r["proj_out_w"][...]) + r["proj_out_b"][...]).astype(out_ref.dtype)


def _make_decoder_kernel(names, *, batch, q_len, ctx_len):
    n_in = len(names)

    def kernel(*args):
        refs = dict(zip(names, args[:n_in]))
        out_ref = args[n_in]
        x_s, ctx_s = args[n_in + 1], args[n_in + 2]
        _decoder_body(refs, out_ref, x_s, ctx_s, batch=batch, q_len=q_len, ctx_len=ctx_len)

    return kernel


def _decoder_pallas_call(o2, cla2, pos_k, p, *, batch, q_len, ctx_len):
    single_ctx = ctx_len == 1
    bk = batch * q_len
    bt = batch * ctx_len

    def const_spec(arr):                 # same block at every grid step -> DMA'd once
        nd = arr.ndim
        return pl.BlockSpec(arr.shape, lambda l, nd=nd: (0,) * nd)

    def layer_spec(arr):                 # leading layer axis selected by the grid index
        nd = arr.ndim - 1
        return pl.BlockSpec((None,) + arr.shape[1:], lambda l, nd=nd: (l,) + (0,) * nd)

    names, arrays, in_specs = [], [], []

    def add_const(name, arr):
        names.append(name); arrays.append(arr); in_specs.append(const_spec(arr))

    def add_layer(name, arr):
        names.append(name); arrays.append(arr); in_specs.append(layer_spec(arr))

    # prologue (layer-0) inputs
    add_const("o2", o2)
    add_const("embed_w", p["embed_w"]); add_const("embed_b", p["embed_b"])
    add_const("cla", cla2)
    add_const("proj_in_w", p["proj_in_w"]); add_const("proj_in_b", p["proj_in_b"])
    add_const("pos", pos_k)
    # per-layer weight slab (auto double-buffered over the layer axis)
    add_layer("sa_ln_g", p["sa_ln_g"]); add_layer("sa_ln_b", p["sa_ln_b"])
    add_layer("sa_qkv_w", p["sa_qkv_w"])
    add_layer("sa_o_w", p["sa_o_w"]); add_layer("sa_o_b", p["sa_o_b"])
    if not single_ctx:
        add_layer("ca_ln_g", p["ca_ln_g"]); add_layer("ca_ln_b", p["ca_ln_b"])
        add_layer("ca_q_w", p["ca_q_w"]); add_layer("ca_k_w", p["ca_k_w"])
    add_layer("ca_v_w", p["ca_v_w"])
    add_layer("ca_o_w", p["ca_o_w"]); add_layer("ca_o_b", p["ca_o_b"])
    add_layer("ff_ln_g", p["ff_ln_g"]); add_layer("ff_ln_b", p["ff_ln_b"])
    add_layer("ff_w1", p["ff_w1"]); add_layer("ff_s1", p["ff_s1"]); add_layer("ff_b1", p["ff_b1"])
    add_layer("ff_w2", p["ff_w2"]); add_layer("ff_s2", p["ff_s2"]); add_layer("ff_b2", p["ff_b2"])
    # epilogue inputs
    add_const("fin_ln_g", p["fin_ln_g"]); add_const("fin_ln_b", p["fin_ln_b"])
    add_const("proj_out_w", p["proj_out_w"]); add_const("proj_out_b", p["proj_out_b"])

    kernel = _make_decoder_kernel(tuple(names), batch=batch, q_len=q_len, ctx_len=ctx_len)

    # VMEM budget (single-ctx path, double-buffered per-layer slab):
    #   bf16 attn weights ~1.5 MB + int8 FF weights ~2 MB  => ~3.6 MB/layer, x2 buffers ~7.2 MB
    #   + small constants + (bk,2048) f32 FF hidden + scratch  -> well under the 32 MiB scoped
    #   limit (and under v7x's 64 MiB physical VMEM).
    return pl.pallas_call(
        kernel,
        out_shape=jax.ShapeDtypeStruct((bk, OUT_PAD), jnp.float32),
        grid=(DEPTH,),
        in_specs=in_specs,
        out_specs=pl.BlockSpec((bk, OUT_PAD), lambda l: (0, 0)),
        scratch_shapes=[
            pltpu.VMEM((bk, DIM), jnp.float32),     # decoder activations (resident)
            pltpu.VMEM((bt, DIM), jnp.float32),     # embedded observation / context
        ],
        compiler_params=pltpu.CompilerParams(
            dimension_semantics=("arbitrary",),     # layer axis is a sequential scan
            vmem_limit_bytes=32 * 1024 * 1024,
        ),
    )(*arrays)


# ----------------------------------------------------------------------------
# Parameters and forward wrapper
# ----------------------------------------------------------------------------

def init_params(key, input_dim, embedding_dim, output_dim):
    assert embedding_dim == DIM, "cross-attention requires cfg.embedding_dim == decoder dim (512)"
    assert output_dim <= OUT_PAD
    ks = iter(jax.random.split(key, 40))

    def wf(shape, scale=0.02):
        return scale * jax.random.normal(next(ks), shape, jnp.float32)

    def w(shape, scale=0.02):
        return wf(shape, scale).astype(jnp.bfloat16)

    def quant_i8(shape, scale=0.02):
        # per-output-channel symmetric int8 quantization over the contraction axis
        full = wf(shape, scale)
        absmax = jnp.max(jnp.abs(full), axis=-2, keepdims=True)
        s = jnp.maximum(absmax, 1e-6) / 127.0
        q = jnp.clip(jnp.round(full / s), -127, 127).astype(jnp.int8)
        return q, s.astype(jnp.float32)

    ones_d = jnp.ones((DEPTH, 1, DIM), jnp.float32)
    zeros_d = jnp.zeros((DEPTH, 1, DIM), jnp.float32)

    ff_w1, ff_s1 = quant_i8((DEPTH, DIM, FF_INNER))
    ff_w2, ff_s2 = quant_i8((DEPTH, FF_INNER, DIM))

    proj_out_w = jnp.zeros((DIM, OUT_PAD), jnp.float32)
    proj_out_w = proj_out_w.at[:, :output_dim].set(
        0.02 * jax.random.normal(next(ks), (DIM, output_dim), jnp.float32))

    return {
        # observation_embed (nn.Linear(input_dim, embedding_dim))
        "embed_w": w((input_dim, DIM)),
        "embed_b": jnp.zeros((1, DIM), jnp.float32),
        # ContinuousTransformerWrapper.project_in + absolute positional embedding
        "proj_in_w": w((embedding_dim, DIM)),
        "proj_in_b": jnp.zeros((1, DIM), jnp.float32),
        "pos_emb": wf((MAX_SEQ_LEN, DIM)),
        # per-layer stacks (leading axis = layer); lane-dense fused projection layouts
        "sa_ln_g": ones_d, "sa_ln_b": zeros_d,
        "sa_qkv_w": w((DEPTH, DIM, 3 * INNER)),          # fused QKV, 768-wide (lane dense)
        "sa_o_w": w((DEPTH, INNER, DIM)),
        "sa_o_b": zeros_d,
        "ca_ln_g": ones_d, "ca_ln_b": zeros_d,
        "ca_q_w": w((DEPTH, DIM, INNER)),                # not DMA'd when T_obs == 1
        "ca_k_w": w((DEPTH, DIM, INNER)),                # not DMA'd when T_obs == 1
        "ca_v_w": w((DEPTH, DIM, INNER)),
        "ca_o_w": w((DEPTH, INNER, DIM)),
        "ca_o_b": zeros_d,
        "ff_ln_g": ones_d, "ff_ln_b": zeros_d,
        "ff_w1": ff_w1, "ff_s1": ff_s1,                  # int8 weight + per-channel f32 scale
        "ff_b1": jnp.zeros((DEPTH, 1, FF_INNER), jnp.float32),
        "ff_w2": ff_w2, "ff_s2": ff_s2,
        "ff_b2": zeros_d,
        # final norm + project_out (padded to a lane-dense 128-wide output)
        "fin_ln_g": jnp.ones((1, DIM), jnp.float32),
        "fin_ln_b": jnp.zeros((1, DIM), jnp.float32),
        "proj_out_w": proj_out_w.astype(jnp.bfloat16),
        "proj_out_b": jnp.zeros((1, OUT_PAD), jnp.float32),
    }


def action_chunking_decoder_forward(o_t, continuous_latent_action, params, *, output_dim):
    """
    o_t:                      (B, T_obs, input_dim)
    continuous_latent_action: (B, K, embedding_dim)  -- decoder query tokens
    returns:                  (B, K, output_dim)     -- predicted action chunk a_t:t+k
    """
    B, T_obs, input_dim = o_t.shape
    _, K, emb_dim = continuous_latent_action.shape
    assert K <= MAX_SEQ_LEN, "action chunk length exceeds max_seq_len"
    assert emb_dim == DIM, "embedding_dim must equal decoder dim (512) for cross-attention"

    o2 = o_t.reshape(B * T_obs, input_dim)
    cla2 = continuous_latent_action.reshape(B * K, emb_dim)
    pos_k = params["pos_emb"][:K]                            # (K, DIM); broadcast in-kernel

    out = _decoder_pallas_call(o2, cla2, pos_k, params, batch=B, q_len=K, ctx_len=T_obs)
    return out[:, :output_dim].reshape(B, K, output_dim)


# ----------------------------------------------------------------------------
# Pure-jnp reference (mirrors the kernel math: bf16 matmuls, f32 accumulation,
# int8-dequantized FF weights with post-matmul per-channel scales)
# ----------------------------------------------------------------------------

def reference_forward(o_t, continuous_latent_action, params, *, output_dim):
    B, T_obs, input_dim = o_t.shape
    K = continuous_latent_action.shape[1]

    def mm(x, w):
        return jnp.dot(x.astype(jnp.bfloat16), w.astype(jnp.bfloat16),
                       preferred_element_type=jnp.float32)

    def ln(x, g, b):
        m = jnp.mean(x, axis=-1, keepdims=True)
        xc = x - m
        v = jnp.mean(xc * xc, axis=-1, keepdims=True)
        return xc * jax.lax.rsqrt(v + LN_EPS) * g + b

    def split_heads(t, T):      # (B*T, INNER) -> (B, HEADS, T, DIM_HEAD)
        return t.reshape(B, T, HEADS, DIM_HEAD).transpose(0, 2, 1, 3)

    def attn(q2, k2, v2, Tq, Tk, causal):
        q = split_heads(q2, Tq) * DIM_HEAD ** -0.5
        k = split_heads(k2, Tk)
        v = split_heads(v2, Tk)
        s = jnp.einsum("bhqd,bhkd->bhqk", q, k)
        if causal:
            mask = jnp.tril(jnp.ones((Tq, Tk), bool))
            s = jnp.where(mask[None, None], s, -1e30)
        p = jax.nn.softmax(s, axis=-1)
        o = jnp.einsum("bhqk,bhkd->bhqd", p, v)
        return o.transpose(0, 2, 1, 3).reshape(B * Tq, INNER)

    ctx = mm(o_t.reshape(B * T_obs, input_dim), params["embed_w"]) + params["embed_b"]
    x = mm(continuous_latent_action.reshape(B * K, -1), params["proj_in_w"]) + params["proj_in_b"]
    x = (x.reshape(B, K, DIM) + params["pos_emb"][:K][None]).reshape(B * K, DIM)

    for l in range(DEPTH):
        h = ln(x, params["sa_ln_g"][l], params["sa_ln_b"][l])
        qkv = mm(h, params["sa_qkv_w"][l])
        a = attn(qkv[:, :INNER], qkv[:, INNER:2 * INNER], qkv[:, 2 * INNER:], K, K, True)
        x = x + mm(a, params["sa_o_w"][l]) + params["sa_o_b"][l]

        h = ln(x, params["ca_ln_g"][l], params["ca_ln_b"][l])
        q2 = mm(h, params["ca_q_w"][l])
        k2 = mm(ctx, params["ca_k_w"][l])
        v2 = mm(ctx, params["ca_v_w"][l])
        a = attn(q2, k2, v2, K, T_obs, False)
        x = x + mm(a, params["ca_o_w"][l]) + params["ca_o_b"][l]

        h = ln(x, params["ff_ln_g"][l], params["ff_ln_b"][l])
        hidden = _gelu_tanh(mm(h, params["ff_w1"][l]) * params["ff_s1"][l] + params["ff_b1"][l])
        x = x + mm(hidden, params["ff_w2"][l]) * params["ff_s2"][l] + params["ff_b2"][l]

    x = ln(x, params["fin_ln_g"], params["fin_ln_b"])
    out = mm(x, params["proj_out_w"]) + params["proj_out_b"]
    return out[:, :output_dim].reshape(B, K, output_dim)


# ----------------------------------------------------------------------------
# Main
# ----------------------------------------------------------------------------

if __name__ == "__main__":
    # cfg: embedding_dim = 512 (== Decoder dim, required for cross-attention),
    #      input_dim = 32, output_dim = 8, action chunk length K = 8, one observation token.
    B, T_OBS, K_CHUNK = 2, 1, 8
    INPUT_DIM, EMBEDDING_DIM, OUTPUT_DIM = 32, DIM, 8

    key = jax.random.PRNGKey(0)
    k_param, k_obs, k_cla, k_dla = jax.random.split(key, 4)

    params = init_params(k_param, INPUT_DIM, EMBEDDING_DIM, OUTPUT_DIM)

    o_t = jax.random.normal(k_obs, (B, T_OBS, INPUT_DIM), jnp.float32)
    continuous_latent_action = jax.random.normal(k_cla, (B, K_CHUNK, EMBEDDING_DIM), jnp.float32)
    # discrete_latent_action is extracted but unused by the reference forward
    _ = jax.random.randint(k_dla, (B, K_CHUNK), 0, 16)

    fwd = jax.jit(functools.partial(action_chunking_decoder_forward, output_dim=OUTPUT_DIM))
    out = fwd(o_t, continuous_latent_action, params)
    jax.block_until_ready(out)

    assert out.shape == (B, K_CHUNK, OUTPUT_DIM), out.shape
    assert bool(jnp.all(jnp.isfinite(out)))

    ref = reference_forward(o_t, continuous_latent_action, params, output_dim=OUTPUT_DIM)
    max_err = float(jnp.max(jnp.abs(out - ref)))
    assert max_err < 2e-2, f"kernel/reference mismatch: {max_err}"

    print("KERNEL_OK")
</pallas_src>

<mosaic_0001>
module attributes {stable_mosaic.version = 11 : i64} {
  func.func @kernel(%arg0: i32, %arg1: memref<2x32xf32, #tpu.memory_space<vmem>>, %arg2: memref<32x512xbf16, #tpu.memory_space<vmem>>, %arg3: memref<1x512xf32, #tpu.memory_space<vmem>>, %arg4: memref<16x512xf32, #tpu.memory_space<vmem>>, %arg5: memref<512x512xbf16, #tpu.memory_space<vmem>>, %arg6: memref<1x512xf32, #tpu.memory_space<vmem>>, %arg7: memref<8x512xf32, #tpu.memory_space<vmem>>, %arg8: memref<1x1x512xf32, #tpu.memory_space<vmem>>, %arg9: memref<1x1x512xf32, #tpu.memory_space<vmem>>, %arg10: memref<1x512x768xbf16, #tpu.memory_space<vmem>>, %arg11: memref<1x256x512xbf16, #tpu.memory_space<vmem>>, %arg12: memref<1x1x512xf32, #tpu.memory_space<vmem>>, %arg13: memref<1x512x256xbf16, #tpu.memory_space<vmem>>, %arg14: memref<1x256x512xbf16, #tpu.memory_space<vmem>>, %arg15: memref<1x1x512xf32, #tpu.memory_space<vmem>>, %arg16: memref<1x1x512xf32, #tpu.memory_space<vmem>>, %arg17: memref<1x1x512xf32, #tpu.memory_space<vmem>>, %arg18: memref<1x512x2048xi8, #tpu.memory_space<vmem>>, %arg19: memref<1x1x2048xf32, #tpu.memory_space<vmem>>, %arg20: memref<1x1x2048xf32, #tpu.memory_space<vmem>>, %arg21: memref<1x2048x512xi8, #tpu.memory_space<vmem>>, %arg22: memref<1x1x512xf32, #tpu.memory_space<vmem>>, %arg23: memref<1x1x512xf32, #tpu.memory_space<vmem>>, %arg24: memref<1x512xf32, #tpu.memory_space<vmem>>, %arg25: memref<1x512xf32, #tpu.memory_space<vmem>>, %arg26: memref<512x128xbf16, #tpu.memory_space<vmem>>, %arg27: memref<1x128xf32, #tpu.memory_space<vmem>>, %arg28: memref<16x128xf32, #tpu.memory_space<vmem>>, %arg29: memref<16x512xf32, #tpu.memory_space<vmem>>, %arg30: memref<2x512xf32, #tpu.memory_space<vmem>>) attributes {dimension_semantics = [#tpu.dimension_semantics<arbitrary>], iteration_bounds = array<i64: 4>, scalar_prefetch = 0 : i64, scratch_operands = 2 : i64, tpu.core_type = #tpu.core_type<tc>, window_params = [{pipeline_mode = #tpu.pipeline_mode<synchronous>, transform_indices = @transform_0, window_bounds = array<i64: 2, 32>}, {pipeline_mode = #tpu.pipeline_mode<synchronous>, transform_indices = @transform_1, window_bounds = array<i64: 32, 512>}, {pipeline_mode = #tpu.pipeline_mode<synchronous>, transform_indices = @transform_2, window_bounds = array<i64: 1, 512>}, {pipeline_mode = #tpu.pipeline_mode<synchronous>, transform_indices = @transform_3, window_bounds = array<i64: 16, 512>}, {pipeline_mode = #tpu.pipeline_mode<synchronous>, transform_indices = @transform_4, window_bounds = array<i64: 512, 512>}, {pipeline_mode = #tpu.pipeline_mode<synchronous>, transform_indices = @transform_5, window_bounds = array<i64: 1, 512>}, {pipeline_mode = #tpu.pipeline_mode<synchronous>, transform_indices = @transform_6, window_bounds = array<i64: 8, 512>}, {transform_indices = @transform_7, window_bounds = array<i64: 1, 1, 512>}, {transform_indices = @transform_8, window_bounds = array<i64: 1, 1, 512>}, {transform_indices = @transform_9, window_bounds = array<i64: 1, 512, 768>}, {transform_indices = @transform_10, window_bounds = array<i64: 1, 256, 512>}, {transform_indices = @transform_11, window_bounds = array<i64: 1, 1, 512>}, {transform_indices = @transform_12, window_bounds = array<i64: 1, 512, 256>}, {transform_indices = @transform_13, window_bounds = array<i64: 1, 256, 512>}, {transform_indices = @transform_14, window_bounds = array<i64: 1, 1, 512>}, {transform_indices = @transform_15, window_bounds = array<i64: 1, 1, 512>}, {transform_indices = @transform_16, window_bounds = array<i64: 1, 1, 512>}, {transform_indices = @transform_17, window_bounds = array<i64: 1, 512, 2048>}, {transform_indices = @transform_18, window_bounds = array<i64: 1, 1, 2048>}, {transform_indices = @transform_19, window_bounds = array<i64: 1, 1, 2048>}, {transform_indices = @transform_20, window_bounds = array<i64: 1, 2048, 512>}, {transform_indices = @transform_21, window_bounds = array<i64: 1, 1, 512>}, {transform_indices = @transform_22, window_bounds = array<i64: 1, 1, 512>}, {pipeline_mode = #tpu.pipeline_mode<synchronous>, transform_indices = @transform_23, window_bounds = array<i64: 1, 512>}, {pipeline_mode = #tpu.pipeline_mode<synchronous>, transform_indices = @transform_24, window_bounds = array<i64: 1, 512>}, {pipeline_mode = #tpu.pipeline_mode<synchronous>, transform_indices = @transform_25, window_bounds = array<i64: 512, 128>}, {pipeline_mode = #tpu.pipeline_mode<synchronous>, transform_indices = @transform_26, window_bounds = array<i64: 1, 128>}, {pipeline_mode = #tpu.pipeline_mode<synchronous>, transform_indices = @transform_27, window_bounds = array<i64: 16, 128>}]} {
    %c0_i32 = arith.constant 0 : i32
    %0 = arith.cmpi eq, %arg0, %c0_i32 : i32
    %1 = arith.extui %0 : i1 to i32
    %c0_i32_0 = arith.constant 0 : i32
    %2 = arith.cmpi ne, %1, %c0_i32_0 : i32
    scf.if %2 {
      %c0_98 = arith.constant 0 : index
      %c0_99 = arith.constant 0 : index
      %247 = vector.load %arg1[%c0_98, %c0_99] : memref<2x32xf32, #tpu.memory_space<vmem>>, vector<2x32xf32>
      %248 = arith.truncf %247 : vector<2x32xf32> to vector<2x32xbf16>
      %c0_100 = arith.constant 0 : index
      %c0_101 = arith.constant 0 : index
      %249 = vector.load %arg2[%c0_100, %c0_101] : memref<32x512xbf16, #tpu.memory_space<vmem>>, vector<32x512xbf16>
      %cst_102 = arith.constant dense<0.000000e+00> : vector<2x512xf32>
      %250 = tpu.matmul %248, %249, %cst_102 {dimension_numbers = #tpu.dot_dimension_numbers<[1], [0], [0], [1], [0, 0, 1, 1], [], []>} : vector<2x32xbf16>, vector<32x512xbf16>, vector<2x512xf32> -> vector<2x512xf32>
      %c0_103 = arith.constant 0 : index
      %c0_104 = arith.constant 0 : index
      %251 = vector.load %arg3[%c0_103, %c0_104] : memref<1x512xf32, #tpu.memory_space<vmem>>, vector<1x512xf32>
      %252 = vector.broadcast %251 : vector<1x512xf32> to vector<2x512xf32>
      %253 = arith.addf %250, %252 : vector<2x512xf32>
      %c0_105 = arith.constant 0 : index
      %c0_106 = arith.constant 0 : index
      %254 = vector.load %arg30[%c0_105, %c0_106] : memref<2x512xf32, #tpu.memory_space<vmem>>, vector<2x512xf32>
      tpu.vector_store %arg30[%c0_105, %c0_106], %253 {strides = array<i32>} : memref<2x512xf32, #tpu.memory_space<vmem>>, vector<2x512xf32>,
      %c0_107 = arith.constant 0 : index
      %c0_108 = arith.constant 0 : index
      %255 = vector.load %arg4[%c0_107, %c0_108] : memref<16x512xf32, #tpu.memory_space<vmem>>, vector<16x512xf32>
      %256 = arith.truncf %255 : vector<16x512xf32> to vector<16x512xbf16>
      %c0_109 = arith.constant 0 : index
      %c0_110 = arith.constant 0 : index
      %257 = vector.load %arg5[%c0_109, %c0_110] : memref<512x512xbf16, #tpu.memory_space<vmem>>, vector<512x512xbf16>
      %cst_111 = arith.constant dense<0.000000e+00> : vector<16x512xf32>
      %258 = tpu.matmul %256, %257, %cst_111 {dimension_numbers = #tpu.dot_dimension_numbers<[1], [0], [0], [1], [0, 0, 1, 1], [], []>} : vector<16x512xbf16>, vector<512x512xbf16>, vector<16x512xf32> -> vector<16x512xf32>
      %c0_112 = arith.constant 0 : index
      %c0_113 = arith.constant 0 : index
      %259 = vector.load %arg6[%c0_112, %c0_113] : memref<1x512xf32, #tpu.memory_space<vmem>>, vector<1x512xf32>
      %260 = vector.broadcast %259 : vector<1x512xf32> to vector<16x512xf32>
      %261 = arith.addf %258, %260 : vector<16x512xf32>
      %262 = vector.shape_cast %261 : vector<16x512xf32> to vector<2x8x512xf32>
      %c0_114 = arith.constant 0 : index
      %c0_115 = arith.constant 0 : index
      %263 = vector.load %arg7[%c0_114, %c0_115] : memref<8x512xf32, #tpu.memory_space<vmem>>, vector<8x512xf32>
      %264 = vector.shape_cast %263 : vector<8x512xf32> to vector<1x8x512xf32>
      %265 = vector.broadcast %264 : vector<1x8x512xf32> to vector<2x8x512xf32>
      %266 = arith.addf %262, %265 : vector<2x8x512xf32>
      %267 = vector.shape_cast %266 : vector<2x8x512xf32> to vector<16x512xf32>
      %c0_116 = arith.constant 0 : index
      %c0_117 = arith.constant 0 : index
      %268 = vector.load %arg29[%c0_116, %c0_117] : memref<16x512xf32, #tpu.memory_space<vmem>>, vector<16x512xf32>
      tpu.vector_store %arg29[%c0_116, %c0_117], %267 {strides = array<i32>} : memref<16x512xf32, #tpu.memory_space<vmem>>, vector<16x512xf32>,
    } else {
    }
    %c0 = arith.constant 0 : index
    %c0_1 = arith.constant 0 : index
    %3 = vector.load %arg29[%c0, %c0_1] : memref<16x512xf32, #tpu.memory_space<vmem>>, vector<16x512xf32>
    %c0_2 = arith.constant 0 : index
    %c0_3 = arith.constant 0 : index
    %c0_4 = arith.constant 0 : index
    %4 = vector.load %arg8[%c0_2, %c0_3, %c0_4] : memref<1x1x512xf32, #tpu.memory_space<vmem>>, vector<1x1x512xf32>
    %5 = vector.shape_cast %4 : vector<1x1x512xf32> to vector<1x512xf32>
    %c0_5 = arith.constant 0 : index
    %c0_6 = arith.constant 0 : index
    %c0_7 = arith.constant 0 : index
    %6 = vector.load %arg9[%c0_5, %c0_6, %c0_7] : memref<1x1x512xf32, #tpu.memory_space<vmem>>, vector<1x1x512xf32>
    %7 = vector.shape_cast %6 : vector<1x1x512xf32> to vector<1x512xf32>
    %cst = arith.constant dense<0.000000e+00> : vector<16xf32>
    %8 = vector.multi_reduction <add>, %3, %cst [1] : vector<16x512xf32> to vector<16xf32>
    %9 = vector.shape_cast %8 : vector<16xf32> to vector<16x1xf32>
    %cst_8 = arith.constant 5.120000e+02 : f32
    %10 = vector.broadcast %cst_8 : f32 to vector<16x1xf32>
    %11 = arith.divf %9, %10 : vector<16x1xf32>
    %12 = vector.broadcast %11 : vector<16x1xf32> to vector<16x512xf32>
    %13 = arith.subf %3, %12 : vector<16x512xf32>
    %14 = arith.mulf %13, %13 : vector<16x512xf32>
    %cst_9 = arith.constant dense<0.000000e+00> : vector<16xf32>
    %15 = vector.multi_reduction <add>, %14, %cst_9 [1] : vector<16x512xf32> to vector<16xf32>
    %16 = vector.shape_cast %15 : vector<16xf32> to vector<16x1xf32>
    %cst_10 = arith.constant 5.120000e+02 : f32
    %17 = vector.broadcast %cst_10 : f32 to vector<16x1xf32>
    %18 = arith.divf %16, %17 : vector<16x1xf32>
    %cst_11 = arith.constant 9.99999974E-6 : f32
    %19 = vector.broadcast %cst_11 : f32 to vector<16x1xf32>
    %20 = arith.addf %18, %19 : vector<16x1xf32>
    %21 = math.rsqrt %20 : vector<16x1xf32>
    %22 = vector.broadcast %21 : vector<16x1xf32> to vector<16x512xf32>
    %23 = arith.mulf %13, %22 : vector<16x512xf32>
    %24 = vector.broadcast %5 : vector<1x512xf32> to vector<16x512xf32>
    %25 = arith.mulf %23, %24 : vector<16x512xf32>
    %26 = vector.broadcast %7 : vector<1x512xf32> to vector<16x512xf32>
    %27 = arith.addf %25, %26 : vector<16x512xf32>
    %28 = arith.truncf %27 : vector<16x512xf32> to vector<16x512xbf16>
    %c0_12 = arith.constant 0 : index
    %c0_13 = arith.constant 0 : index
    %c0_14 = arith.constant 0 : index
    %29 = vector.load %arg10[%c0_12, %c0_13, %c0_14] : memref<1x512x768xbf16, #tpu.memory_space<vmem>>, vector<1x512x768xbf16>
    %30 = vector.shape_cast %29 : vector<1x512x768xbf16> to vector<512x768xbf16>
    %cst_15 = arith.constant dense<0.000000e+00> : vector<16x768xf32>
    %31 = tpu.matmul %28, %30, %cst_15 {dimension_numbers = #tpu.dot_dimension_numbers<[1], [0], [0], [1], [0, 0, 1, 1], [], []>} : vector<16x512xbf16>, vector<512x768xbf16>, vector<16x768xf32> -> vector<16x768xf32>
    %32 = vector.extract_strided_slice %31 {offsets = [0, 0], sizes = [16, 256], strides = [1, 1]} : vector<16x768xf32> to vector<16x256xf32>
    %33 = vector.extract_strided_slice %31 {offsets = [0, 256], sizes = [16, 256], strides = [1, 1]} : vector<16x768xf32> to vector<16x256xf32>
    %34 = vector.extract_strided_slice %31 {offsets = [0, 512], sizes = [16, 256], strides = [1, 1]} : vector<16x768xf32> to vector<16x256xf32>
    %35 = vector.extract_strided_slice %32 {offsets = [0, 0], sizes = [16, 64], strides = [1, 1]} : vector<16x256xf32> to vector<16x64xf32>
    %36 = vector.shape_cast %35 : vector<16x64xf32> to vector<2x8x64xf32>
    %cst_16 = arith.constant 1.250000e-01 : f32
    %37 = vector.broadcast %cst_16 : f32 to vector<2x8x64xf32>
    %38 = arith.mulf %36, %37 : vector<2x8x64xf32>
    %39 = vector.extract_strided_slice %33 {offsets = [0, 0], sizes = [16, 64], strides = [1, 1]} : vector<16x256xf32> to vector<16x64xf32>
    %40 = vector.shape_cast %39 : vector<16x64xf32> to vector<2x8x64xf32>
    %41 = vector.extract_strided_slice %34 {offsets = [0, 0], sizes = [16, 64], strides = [1, 1]} : vector<16x256xf32> to vector<16x64xf32>
    %42 = vector.shape_cast %41 : vector<16x64xf32> to vector<2x8x64xf32>
    "tpu.trace_start"() <{level = 10 : i32, message = "bqd,bkd->bqk"}> : () -> ()
    %cst_17 = arith.constant dense<0.000000e+00> : vector<2x8x8xf32>
    %43 = tpu.matmul %38, %40, %cst_17 {dimension_numbers = #tpu.dot_dimension_numbers<[2], [2], [1], [1], [0, 0, 0, 1, 1, 1], [0], [0]>} : vector<2x8x64xf32>, vector<2x8x64xf32>, vector<2x8x8xf32> -> vector<2x8x8xf32>
    "tpu.trace_stop"() : () -> ()
    %44 = tpu.iota {dimensions = array<i32: 0>} : vector<8x8xi32>
    %45 = tpu.iota {dimensions = array<i32: 1>} : vector<8x8xi32>
    %46 = arith.cmpi sle, %45, %44 : vector<8x8xi32>
    %47 = vector.shape_cast %46 : vector<8x8xi1> to vector<1x8x8xi1>
    %cst_18 = arith.constant -1.000000e+30 : f32
    %48 = vector.shape_cast %47 : vector<1x8x8xi1> to vector<1x8x8xi1>
    %49 = vector.broadcast %48 : vector<1x8x8xi1> to vector<2x8x8xi1>
    %50 = vector.broadcast %cst_18 : f32 to vector<2x8x8xf32>
    %51 = arith.select %49, %43, %50 : vector<2x8x8xi1>, vector<2x8x8xf32>
    %cst_19 = arith.constant dense<0xFF800000> : vector<2x8xf32>
    %52 = vector.multi_reduction <maximumf>, %51, %cst_19 [2] : vector<2x8x8xf32> to vector<2x8xf32>
    %53 = vector.shape_cast %52 : vector<2x8xf32> to vector<2x8x1xf32>
    %54 = vector.broadcast %53 : vector<2x8x1xf32> to vector<2x8x8xf32>
    %55 = arith.subf %51, %54 : vector<2x8x8xf32>
    %56 = math.exp %55 : vector<2x8x8xf32>
    %cst_20 = arith.constant dense<0.000000e+00> : vector<2x8xf32>
    %57 = vector.multi_reduction <add>, %56, %cst_20 [2] : vector<2x8x8xf32> to vector<2x8xf32>
    %58 = vector.shape_cast %57 : vector<2x8xf32> to vector<2x8x1xf32>
    %59 = tpu.reciprocal %58 {approx = true} : vector<2x8x1xf32> -> vector<2x8x1xf32>
    %60 = vector.broadcast %59 : vector<2x8x1xf32> to vector<2x8x8xf32>
    %61 = arith.mulf %56, %60 : vector<2x8x8xf32>
    "tpu.trace_start"() <{level = 10 : i32, message = "bqk,bkd->bqd"}> : () -> ()
    %cst_21 = arith.constant dense<0.000000e+00> : vector<2x8x64xf32>
    %62 = tpu.matmul %61, %42, %cst_21 {dimension_numbers = #tpu.dot_dimension_numbers<[2], [1], [1], [2], [0, 0, 0, 1, 1, 2], [0], [0]>} : vector<2x8x8xf32>, vector<2x8x64xf32>, vector<2x8x64xf32> -> vector<2x8x64xf32>
    "tpu.trace_stop"() : () -> ()
    %63 = vector.shape_cast %62 : vector<2x8x64xf32> to vector<16x64xf32>
    %64 = vector.extract_strided_slice %32 {offsets = [0, 64], sizes = [16, 64], strides = [1, 1]} : vector<16x256xf32> to vector<16x64xf32>
    %65 = vector.shape_cast %64 : vector<16x64xf32> to vector<2x8x64xf32>
    %cst_22 = arith.constant 1.250000e-01 : f32
    %66 = vector.broadcast %cst_22 : f32 to vector<2x8x64xf32>
    %67 = arith.mulf %65, %66 : vector<2x8x64xf32>
    %68 = vector.extract_strided_slice %33 {offsets = [0, 64], sizes = [16, 64], strides = [1, 1]} : vector<16x256xf32> to vector<16x64xf32>
    %69 = vector.shape_cast %68 : vector<16x64xf32> to vector<2x8x64xf32>
    %70 = vector.extract_strided_slice %34 {offsets = [0, 64], sizes = [16, 64], strides = [1, 1]} : vector<16x256xf32> to vector<16x64xf32>
    %71 = vector.shape_cast %70 : vector<16x64xf32> to vector<2x8x64xf32>
    "tpu.trace_start"() <{level = 10 : i32, message = "bqd,bkd->bqk"}> : () -> ()
    %cst_23 = arith.constant dense<0.000000e+00> : vector<2x8x8xf32>
    %72 = tpu.matmul %67, %69, %cst_23 {dimension_numbers = #tpu.dot_dimension_numbers<[2], [2], [1], [1], [0, 0, 0, 1, 1, 1], [0], [0]>} : vector<2x8x64xf32>, vector<2x8x64xf32>, vector<2x8x8xf32> -> vector<2x8x8xf32>
    "tpu.trace_stop"() : () -> ()
    %73 = tpu.iota {dimensions = array<i32: 0>} : vector<8x8xi32>
    %74 = tpu.iota {dimensions = array<i32: 1>} : vector<8x8xi32>
    %75 = arith.cmpi sle, %74, %73 : vector<8x8xi32>
    %76 = vector.shape_cast %75 : vector<8x8xi1> to vector<1x8x8xi1>
    %cst_24 = arith.constant -1.000000e+30 : f32
    %77 = vector.shape_cast %76 : vector<1x8x8xi1> to vector<1x8x8xi1>
    %78 = vector.broadcast %77 : vector<1x8x8xi1> to vector<2x8x8xi1>
    %79 = vector.broadcast %cst_24 : f32 to vector<2x8x8xf32>
    %80 = arith.select %78, %72, %79 : vector<2x8x8xi1>, vector<2x8x8xf32>
    %cst_25 = arith.constant dense<0xFF800000> : vector<2x8xf32>
    %81 = vector.multi_reduction <maximumf>, %80, %cst_25 [2] : vector<2x8x8xf32> to vector<2x8xf32>
    %82 = vector.shape_cast %81 : vector<2x8xf32> to vector<2x8x1xf32>
    %83 = vector.broadcast %82 : vector<2x8x1xf32> to vector<2x8x8xf32>
    %84 = arith.subf %80, %83 : vector<2x8x8xf32>
    %85 = math.exp %84 : vector<2x8x8xf32>
    %cst_26 = arith.constant dense<0.000000e+00> : vector<2x8xf32>
    %86 = vector.multi_reduction <add>, %85, %cst_26 [2] : vector<2x8x8xf32> to vector<2x8xf32>
    %87 = vector.shape_cast %86 : vector<2x8xf32> to vector<2x8x1xf32>
    %88 = tpu.reciprocal %87 {approx = true} : vector<2x8x1xf32> -> vector<2x8x1xf32>
    %89 = vector.broadcast %88 : vector<2x8x1xf32> to vector<2x8x8xf32>
    %90 = arith.mulf %85, %89 : vector<2x8x8xf32>
    "tpu.trace_start"() <{level = 10 : i32, message = "bqk,bkd->bqd"}> : () -> ()
    %cst_27 = arith.constant dense<0.000000e+00> : vector<2x8x64xf32>
    %91 = tpu.matmul %90, %71, %cst_27 {dimension_numbers = #tpu.dot_dimension_numbers<[2], [1], [1], [2], [0, 0, 0, 1, 1, 2], [0], [0]>} : vector<2x8x8xf32>, vector<2x8x64xf32>, vector<2x8x64xf32> -> vector<2x8x64xf32>
    "tpu.trace_stop"() : () -> ()
    %92 = vector.shape_cast %91 : vector<2x8x64xf32> to vector<16x64xf32>
    %93 = vector.extract_strided_slice %32 {offsets = [0, 128], sizes = [16, 64], strides = [1, 1]} : vector<16x256xf32> to vector<16x64xf32>
    %94 = vector.shape_cast %93 : vector<16x64xf32> to vector<2x8x64xf32>
    %cst_28 = arith.constant 1.250000e-01 : f32
    %95 = vector.broadcast %cst_28 : f32 to vector<2x8x64xf32>
    %96 = arith.mulf %94, %95 : vector<2x8x64xf32>
    %97 = vector.extract_strided_slice %33 {offsets = [0, 128], sizes = [16, 64], strides = [1, 1]} : vector<16x256xf32> to vector<16x64xf32>
    %98 = vector.shape_cast %97 : vector<16x64xf32> to vector<2x8x64xf32>
    %99 = vector.extract_strided_slice %34 {offsets = [0, 128], sizes = [16, 64], strides = [1, 1]} : vector<16x256xf32> to vector<16x64xf32>
    %100 = vector.shape_cast %99 : vector<16x64xf32> to vector<2x8x64xf32>
    "tpu.trace_start"() <{level = 10 : i32, message = "bqd,bkd->bqk"}> : () -> ()
    %cst_29 = arith.constant dense<0.000000e+00> : vector<2x8x8xf32>
    %101 = tpu.matmul %96, %98, %cst_29 {dimension_numbers = #tpu.dot_dimension_numbers<[2], [2], [1], [1], [0, 0, 0, 1, 1, 1], [0], [0]>} : vector<2x8x64xf32>, vector<2x8x64xf32>, vector<2x8x8xf32> -> vector<2x8x8xf32>
    "tpu.trace_stop"() : () -> ()
    %102 = tpu.iota {dimensions = array<i32: 0>} : vector<8x8xi32>
    %103 = tpu.iota {dimensions = array<i32: 1>} : vector<8x8xi32>
    %104 = arith.cmpi sle, %103, %102 : vector<8x8xi32>
    %105 = vector.shape_cast %104 : vector<8x8xi1> to vector<1x8x8xi1>
    %cst_30 = arith.constant -1.000000e+30 : f32
    %106 = vector.shape_cast %105 : vector<1x8x8xi1> to vector<1x8x8xi1>
    %107 = vector.broadcast %106 : vector<1x8x8xi1> to vector<2x8x8xi1>
    %108 = vector.broadcast %cst_30 : f32 to vector<2x8x8xf32>
    %109 = arith.select %107, %101, %108 : vector<2x8x8xi1>, vector<2x8x8xf32>
    %cst_31 = arith.constant dense<0xFF800000> : vector<2x8xf32>
    %110 = vector.multi_reduction <maximumf>, %109, %cst_31 [2] : vector<2x8x8xf32> to vector<2x8xf32>
    %111 = vector.shape_cast %110 : vector<2x8xf32> to vector<2x8x1xf32>
    %112 = vector.broadcast %111 : vector<2x8x1xf32> to vector<2x8x8xf32>
    %113 = arith.subf %109, %112 : vector<2x8x8xf32>
    %114 = math.exp %113 : vector<2x8x8xf32>
    %cst_32 = arith.constant dense<0.000000e+00> : vector<2x8xf32>
    %115 = vector.multi_reduction <add>, %114, %cst_32 [2] : vector<2x8x8xf32> to vector<2x8xf32>
    %116 = vector.shape_cast %115 : vector<2x8xf32> to vector<2x8x1xf32>
    %117 = tpu.reciprocal %116 {approx = true} : vector<2x8x1xf32> -> vector<2x8x1xf32>
    %118 = vector.broadcast %117 : vector<2x8x1xf32> to vector<2x8x8xf32>
    %119 = arith.mulf %114, %118 : vector<2x8x8xf32>
    "tpu.trace_start"() <{level = 10 : i32, message = "bqk,bkd->bqd"}> : () -> ()
    %cst_33 = arith.constant dense<0.000000e+00> : vector<2x8x64xf32>
    %120 = tpu.matmul %119, %100, %cst_33 {dimension_numbers = #tpu.dot_dimension_numbers<[2], [1], [1], [2], [0, 0, 0, 1, 1, 2], [0], [0]>} : vector<2x8x8xf32>, vector<2x8x64xf32>, vector<2x8x64xf32> -> vector<2x8x64xf32>
    "tpu.trace_stop"() : () -> ()
    %121 = vector.shape_cast %120 : vector<2x8x64xf32> to vector<16x64xf32>
    %122 = vector.extract_strided_slice %32 {offsets = [0, 192], sizes = [16, 64], strides = [1, 1]} : vector<16x256xf32> to vector<16x64xf32>
    %123 = vector.shape_cast %122 : vector<16x64xf32> to vector<2x8x64xf32>
    %cst_34 = arith.constant 1.250000e-01 : f32
    %124 = vector.broadcast %cst_34 : f32 to vector<2x8x64xf32>
    %125 = arith.mulf %123, %124 : vector<2x8x64xf32>
    %126 = vector.extract_strided_slice %33 {offsets = [0, 192], sizes = [16, 64], strides = [1, 1]} : vector<16x256xf32> to vector<16x64xf32>
    %127 = vector.shape_cast %126 : vector<16x64xf32> to vector<2x8x64xf32>
    %128 = vector.extract_strided_slice %34 {offsets = [0, 192], sizes = [16, 64], strides = [1, 1]} : vector<16x256xf32> to vector<16x64xf32>
    %129 = vector.shape_cast %128 : vector<16x64xf32> to vector<2x8x64xf32>
    "tpu.trace_start"() <{level = 10 : i32, message = "bqd,bkd->bqk"}> : () -> ()
    %cst_35 = arith.constant dense<0.000000e+00> : vector<2x8x8xf32>
    %130 = tpu.matmul %125, %127, %cst_35 {dimension_numbers = #tpu.dot_dimension_numbers<[2], [2], [1], [1], [0, 0, 0, 1, 1, 1], [0], [0]>} : vector<2x8x64xf32>, vector<2x8x64xf32>, vector<2x8x8xf32> -> vector<2x8x8xf32>
    "tpu.trace_stop"() : () -> ()
    %131 = tpu.iota {dimensions = array<i32: 0>} : vector<8x8xi32>
    %132 = tpu.iota {dimensions = array<i32: 1>} : vector<8x8xi32>
    %133 = arith.cmpi sle, %132, %131 : vector<8x8xi32>
    %134 = vector.shape_cast %133 : vector<8x8xi1> to vector<1x8x8xi1>
    %cst_36 = arith.constant -1.000000e+30 : f32
    %135 = vector.shape_cast %134 : vector<1x8x8xi1> to vector<1x8x8xi1>
    %136 = vector.broadcast %135 : vector<1x8x8xi1> to vector<2x8x8xi1>
    %137 = vector.broadcast %cst_36 : f32 to vector<2x8x8xf32>
    %138 = arith.select %136, %130, %137 : vector<2x8x8xi1>, vector<2x8x8xf32>
    %cst_37 = arith.constant dense<0xFF800000> : vector<2x8xf32>
    %139 = vector.multi_reduction <maximumf>, %138, %cst_37 [2] : vector<2x8x8xf32> to vector<2x8xf32>
    %140 = vector.shape_cast %139 : vector<2x8xf32> to vector<2x8x1xf32>
    %141 = vector.broadcast %140 : vector<2x8x1xf32> to vector<2x8x8xf32>
    %142 = arith.subf %138, %141 : vector<2x8x8xf32>
    %143 = math.exp %142 : vector<2x8x8xf32>
    %cst_38 = arith.constant dense<0.000000e+00> : vector<2x8xf32>
    %144 = vector.multi_reduction <add>, %143, %cst_38 [2] : vector<2x8x8xf32> to vector<2x8xf32>
    %145 = vector.shape_cast %144 : vector<2x8xf32> to vector<2x8x1xf32>
    %146 = tpu.reciprocal %145 {approx = true} : vector<2x8x1xf32> -> vector<2x8x1xf32>
    %147 = vector.broadcast %146 : vector<2x8x1xf32> to vector<2x8x8xf32>
    %148 = arith.mulf %143, %147 : vector<2x8x8xf32>
    "tpu.trace_start"() <{level = 10 : i32, message = "bqk,bkd->bqd"}> : () -> ()
    %cst_39 = arith.constant dense<0.000000e+00> : vector<2x8x64xf32>
    %149 = tpu.matmul %148, %129, %cst_39 {dimension_numbers = #tpu.dot_dimension_numbers<[2], [1], [1], [2], [0, 0, 0, 1, 1, 2], [0], [0]>} : vector<2x8x8xf32>, vector<2x8x64xf32>, vector<2x8x64xf32> -> vector<2x8x64xf32>
    "tpu.trace_stop"() : () -> ()
    %150 = vector.shape_cast %149 : vector<2x8x64xf32> to vector<16x64xf32>
    %151 = tpu.concatenate %63, %92, %121, %150 in 1 : vector<16x64xf32>, vector<16x64xf32>, vector<16x64xf32>, vector<16x64xf32> -> vector<16x256xf32>
    %152 = arith.truncf %151 : vector<16x256xf32> to vector<16x256xbf16>
    %c0_40 = arith.constant 0 : index
    %c0_41 = arith.constant 0 : index
    %c0_42 = arith.constant 0 : index
    %153 = vector.load %arg11[%c0_40, %c0_41, %c0_42] : memref<1x256x512xbf16, #tpu.memory_space<vmem>>, vector<1x256x512xbf16>
    %154 = vector.shape_cast %153 : vector<1x256x512xbf16> to vector<256x512xbf16>
    %cst_43 = arith.constant dense<0.000000e+00> : vector<16x512xf32>
    %155 = tpu.matmul %152, %154, %cst_43 {dimension_numbers = #tpu.dot_dimension_numbers<[1], [0], [0], [1], [0, 0, 1, 1], [], []>} : vector<16x256xbf16>, vector<256x512xbf16>, vector<16x512xf32> -> vector<16x512xf32>
    %156 = arith.addf %3, %155 : vector<16x512xf32>
    %c0_44 = arith.constant 0 : index
    %c0_45 = arith.constant 0 : index
    %c0_46 = arith.constant 0 : index
    %157 = vector.load %arg12[%c0_44, %c0_45, %c0_46] : memref<1x1x512xf32, #tpu.memory_space<vmem>>, vector<1x1x512xf32>
    %158 = vector.shape_cast %157 : vector<1x1x512xf32> to vector<1x512xf32>
    %159 = vector.broadcast %158 : vector<1x512xf32> to vector<16x512xf32>
    %160 = arith.addf %156, %159 : vector<16x512xf32>
    %c0_47 = arith.constant 0 : index
    %c0_48 = arith.constant 0 : index
    %161 = vector.load %arg30[%c0_47, %c0_48] : memref<2x512xf32, #tpu.memory_space<vmem>>, vector<2x512xf32>
    %162 = arith.truncf %161 : vector<2x512xf32> to vector<2x512xbf16>
    %c0_49 = arith.constant 0 : index
    %c0_50 = arith.constant 0 : index
    %c0_51 = arith.constant 0 : index
    %163 = vector.load %arg13[%c0_49, %c0_50, %c0_51] : memref<1x512x256xbf16, #tpu.memory_space<vmem>>, vector<1x512x256xbf16>
    %164 = vector.shape_cast %163 : vector<1x512x256xbf16> to vector<512x256xbf16>
    %cst_52 = arith.constant dense<0.000000e+00> : vector<2x256xf32>
    %165 = tpu.matmul %162, %164, %cst_52 {dimension_numbers = #tpu.dot_dimension_numbers<[1], [0], [0], [1], [0, 0, 1, 1], [], []>} : vector<2x512xbf16>, vector<512x256xbf16>, vector<2x256xf32> -> vector<2x256xf32>
    %166 = arith.truncf %165 : vector<2x256xf32> to vector<2x256xbf16>
    %c0_53 = arith.constant 0 : index
    %c0_54 = arith.constant 0 : index
    %c0_55 = arith.constant 0 : index
    %167 = vector.load %arg14[%c0_53, %c0_54, %c0_55] : memref<1x256x512xbf16, #tpu.memory_space<vmem>>, vector<1x256x512xbf16>
    %168 = vector.shape_cast %167 : vector<1x256x512xbf16> to vector<256x512xbf16>
    %cst_56 = arith.constant dense<0.000000e+00> : vector<2x512xf32>
    %169 = tpu.matmul %166, %168, %cst_56 {dimension_numbers = #tpu.dot_dimension_numbers<[1], [0], [0], [1], [0, 0, 1, 1], [], []>} : vector<2x256xbf16>, vector<256x512xbf16>, vector<2x512xf32> -> vector<2x512xf32>
    %170 = vector.shape_cast %169 : vector<2x512xf32> to vector<2x1x512xf32>
    %171 = vector.shape_cast %170 : vector<2x1x512xf32> to vector<2x1x512xf32>
    %172 = vector.broadcast %171 : vector<2x1x512xf32> to vector<2x8x512xf32>
    %173 = vector.shape_cast %172 : vector<2x8x512xf32> to vector<16x512xf32>
    %174 = arith.addf %160, %173 : vector<16x512xf32>
    %c0_57 = arith.constant 0 : index
    %c0_58 = arith.constant 0 : index
    %c0_59 = arith.constant 0 : index
    %175 = vector.load %arg15[%c0_57, %c0_58, %c0_59] : memref<1x1x512xf32, #tpu.memory_space<vmem>>, vector<1x1x512xf32>
    %176 = vector.shape_cast %175 : vector<1x1x512xf32> to vector<1x512xf32>
    %177 = vector.broadcast %176 : vector<1x512xf32> to vector<16x512xf32>
    %178 = arith.addf %174, %177 : vector<16x512xf32>
    %c0_60 = arith.constant 0 : index
    %c0_61 = arith.constant 0 : index
    %c0_62 = arith.constant 0 : index
    %179 = vector.load %arg16[%c0_60, %c0_61, %c0_62] : memref<1x1x512xf32, #tpu.memory_space<vmem>>, vector<1x1x512xf32>
    %180 = vector.shape_cast %179 : vector<1x1x512xf32> to vector<1x512xf32>
    %c0_63 = arith.constant 0 : index
    %c0_64 = arith.constant 0 : index
    %c0_65 = arith.constant 0 : index
    %181 = vector.load %arg17[%c0_63, %c0_64, %c0_65] : memref<1x1x512xf32, #tpu.memory_space<vmem>>, vector<1x1x512xf32>
    %182 = vector.shape_cast %181 : vector<1x1x512xf32> to vector<1x512xf32>
    %cst_66 = arith.constant dense<0.000000e+00> : vector<16xf32>
    %183 = vector.multi_reduction <add>, %178, %cst_66 [1] : vector<16x512xf32> to vector<16xf32>
    %184 = vector.shape_cast %183 : vector<16xf32> to vector<16x1xf32>
    %cst_67 = arith.constant 5.120000e+02 : f32
    %185 = vector.broadcast %cst_67 : f32 to vector<16x1xf32>
    %186 = arith.divf %184, %185 : vector<16x1xf32>
    %187 = vector.broadcast %186 : vector<16x1xf32> to vector<16x512xf32>
    %188 = arith.subf %178, %187 : vector<16x512xf32>
    %189 = arith.mulf %188, %188 : vector<16x512xf32>
    %cst_68 = arith.constant dense<0.000000e+00> : vector<16xf32>
    %190 = vector.multi_reduction <add>, %189, %cst_68 [1] : vector<16x512xf32> to vector<16xf32>
    %191 = vector.shape_cast %190 : vector<16xf32> to vector<16x1xf32>
    %cst_69 = arith.constant 5.120000e+02 : f32
    %192 = vector.broadcast %cst_69 : f32 to vector<16x1xf32>
    %193 = arith.divf %191, %192 : vector<16x1xf32>
    %cst_70 = arith.constant 9.99999974E-6 : f32
    %194 = vector.broadcast %cst_70 : f32 to vector<16x1xf32>
    %195 = arith.addf %193, %194 : vector<16x1xf32>
    %196 = math.rsqrt %195 : vector<16x1xf32>
    %197 = vector.broadcast %196 : vector<16x1xf32> to vector<16x512xf32>
    %198 = arith.mulf %188, %197 : vector<16x512xf32>
    %199 = vector.broadcast %180 : vector<1x512xf32> to vector<16x512xf32>
    %200 = arith.mulf %198, %199 : vector<16x512xf32>
    %201 = vector.broadcast %182 : vector<1x512xf32> to vector<16x512xf32>
    %202 = arith.addf %200, %201 : vector<16x512xf32>
    %203 = arith.truncf %202 : vector<16x512xf32> to vector<16x512xbf16>
    %c0_71 = arith.constant 0 : index
    %c0_72 = arith.constant 0 : index
    %c0_73 = arith.constant 0 : index
    %204 = vector.load %arg18[%c0_71, %c0_72, %c0_73] : memref<1x512x2048xi8, #tpu.memory_space<vmem>>, vector<1x512x2048xi8>
    %205 = vector.shape_cast %204 : vector<1x512x2048xi8> to vector<512x2048xi8>
    %206 = arith.sitofp %205 : vector<512x2048xi8> to vector<512x2048xbf16>
    %cst_74 = arith.constant dense<0.000000e+00> : vector<16x2048xf32>
    %207 = tpu.matmul %203, %206, %cst_74 {dimension_numbers = #tpu.dot_dimension_numbers<[1], [0], [0], [1], [0, 0, 1, 1], [], []>} : vector<16x512xbf16>, vector<512x2048xbf16>, vector<16x2048xf32> -> vector<16x2048xf32>
    %c0_75 = arith.constant 0 : index
    %c0_76 = arith.constant 0 : index
    %c0_77 = arith.constant 0 : index
    %208 = vector.load %arg19[%c0_75, %c0_76, %c0_77] : memref<1x1x2048xf32, #tpu.memory_space<vmem>>, vector<1x1x2048xf32>
    %209 = vector.shape_cast %208 : vector<1x1x2048xf32> to vector<1x2048xf32>
    %210 = vector.broadcast %209 : vector<1x2048xf32> to vector<16x2048xf32>
    %211 = arith.mulf %207, %210 : vector<16x2048xf32>
    %c0_78 = arith.constant 0 : index
    %c0_79 = arith.constant 0 : index
    %c0_80 = arith.constant 0 : index
    %212 = vector.load %arg20[%c0_78, %c0_79, %c0_80] : memref<1x1x2048xf32, #tpu.memory_space<vmem>>, vector<1x1x2048xf32>
    %213 = vector.shape_cast %212 : vector<1x1x2048xf32> to vector<1x2048xf32>
    %214 = vector.broadcast %213 : vector<1x2048xf32> to vector<16x2048xf32>
    %215 = arith.addf %211, %214 : vector<16x2048xf32>
    %cst_81 = arith.constant 5.000000e-01 : f32
    %216 = vector.broadcast %cst_81 : f32 to vector<16x2048xf32>
    %217 = arith.mulf %216, %215 : vector<16x2048xf32>
    %cst_82 = arith.constant 4.471500e-02 : f32
    %218 = vector.broadcast %cst_82 : f32 to vector<16x2048xf32>
    %219 = arith.mulf %218, %215 : vector<16x2048xf32>
    %220 = arith.mulf %219, %215 : vector<16x2048xf32>
    %221 = arith.mulf %220, %215 : vector<16x2048xf32>
    %222 = arith.addf %215, %221 : vector<16x2048xf32>
    %cst_83 = arith.constant 0.797884583 : f32
    %223 = vector.broadcast %cst_83 : f32 to vector<16x2048xf32>
    %224 = arith.mulf %223, %222 : vector<16x2048xf32>
    %225 = math.tanh %224 : vector<16x2048xf32>
    %cst_84 = arith.constant 1.000000e+00 : f32
    %226 = vector.broadcast %cst_84 : f32 to vector<16x2048xf32>
    %227 = arith.addf %226, %225 : vector<16x2048xf32>
    %228 = arith.mulf %217, %227 : vector<16x2048xf32>
    %229 = arith.truncf %228 : vector<16x2048xf32> to vector<16x2048xbf16>
    %c0_85 = arith.constant 0 : index
    %c0_86 = arith.constant 0 : index
    %c0_87 = arith.constant 0 : index
    %230 = vector.load %arg21[%c0_85, %c0_86, %c0_87] : memref<1x2048x512xi8, #tpu.memory_space<vmem>>, vector<1x2048x512xi8>
    %231 = vector.shape_cast %230 : vector<1x2048x512xi8> to vector<2048x512xi8>
    %232 = arith.sitofp %231 : vector<2048x512xi8> to vector<2048x512xbf16>
    %cst_88 = arith.constant dense<0.000000e+00> : vector<16x512xf32>
    %233 = tpu.matmul %229, %232, %cst_88 {dimension_numbers = #tpu.dot_dimension_numbers<[1], [0], [0], [1], [0, 0, 1, 1], [], []>} : vector<16x2048xbf16>, vector<2048x512xbf16>, vector<16x512xf32> -> vector<16x512xf32>
    %c0_89 = arith.constant 0 : index
    %c0_90 = arith.constant 0 : index
    %c0_91 = arith.constant 0 : index
    %234 = vector.load %arg22[%c0_89, %c0_90, %c0_91] : memref<1x1x512xf32, #tpu.memory_space<vmem>>, vector<1x1x512xf32>
    %235 = vector.shape_cast %234 : vector<1x1x512xf32> to vector<1x512xf32>
    %236 = vector.broadcast %235 : vector<1x512xf32> to vector<16x512xf32>
    %237 = arith.mulf %233, %236 : vector<16x512xf32>
    %238 = arith.addf %178, %237 : vector<16x512xf32>
    %c0_92 = arith.constant 0 : index
    %c0_93 = arith.constant 0 : index
    %c0_94 = arith.constant 0 : index
    %239 = vector.load %arg23[%c0_92, %c0_93, %c0_94] : memref<1x1x512xf32, #tpu.memory_space<vmem>>, vector<1x1x512xf32>
    %240 = vector.shape_cast %239 : vector<1x1x512xf32> to vector<1x512xf32>
    %241 = vector.broadcast %240 : vector<1x512xf32> to vector<16x512xf32>
    %242 = arith.addf %238, %241 : vector<16x512xf32>
    %c0_95 = arith.constant 0 : index
    %c0_96 = arith.constant 0 : index
    %243 = vector.load %arg29[%c0_95, %c0_96] : memref<16x512xf32, #tpu.memory_space<vmem>>, vector<16x512xf32>
    tpu.vector_store %arg29[%c0_95, %c0_96], %242 {strides = array<i32>} : memref<16x512xf32, #tpu.memory_space<vmem>>, vector<16x512xf32>,
    %c3_i32 = arith.constant 3 : i32
    %244 = arith.cmpi eq, %arg0, %c3_i32 : i32
    %245 = arith.extui %244 : i1 to i32
    %c0_i32_97 = arith.constant 0 : i32
    %246 = arith.cmpi ne, %245, %c0_i32_97 : i32
    scf.if %246 {
      %c0_98 = arith.constant 0 : index
      %c0_99 = arith.constant 0 : index
      %247 = vector.load %arg24[%c0_98, %c0_99] : memref<1x512xf32, #tpu.memory_space<vmem>>, vector<1x512xf32>
      %c0_100 = arith.constant 0 : index
      %c0_101 = arith.constant 0 : index
      %248 = vector.load %arg25[%c0_100, %c0_101] : memref<1x512xf32, #tpu.memory_space<vmem>>, vector<1x512xf32>
      %cst_102 = arith.constant dense<0.000000e+00> : vector<16xf32>
      %249 = vector.multi_reduction <add>, %242, %cst_102 [1] : vector<16x512xf32> to vector<16xf32>
      %250 = vector.shape_cast %249 : vector<16xf32> to vector<16x1xf32>
      %cst_103 = arith.constant 5.120000e+02 : f32
      %251 = vector.broadcast %cst_103 : f32 to vector<16x1xf32>
      %252 = arith.divf %250, %251 : vector<16x1xf32>
      %253 = vector.broadcast %252 : vector<16x1xf32> to vector<16x512xf32>
      %254 = arith.subf %242, %253 : vector<16x512xf32>
      %255 = arith.mulf %254, %254 : vector<16x512xf32>
      %cst_104 = arith.constant dense<0.000000e+00> : vector<16xf32>
      %256 = vector.multi_reduction <add>, %255, %cst_104 [1] : vector<16x512xf32> to vector<16xf32>
      %257 = vector.shape_cast %256 : vector<16xf32> to vector<16x1xf32>
      %cst_105 = arith.constant 5.120000e+02 : f32
      %258 = vector.broadcast %cst_105 : f32 to vector<16x1xf32>
      %259 = arith.divf %257, %258 : vector<16x1xf32>
      %cst_106 = arith.constant 9.99999974E-6 : f32
      %260 = vector.broadcast %cst_106 : f32 to vector<16x1xf32>
      %261 = arith.addf %259, %260 : vector<16x1xf32>
      %262 = math.rsqrt %261 : vector<16x1xf32>
      %263 = vector.broadcast %262 : vector<16x1xf32> to vector<16x512xf32>
      %264 = arith.mulf %254, %263 : vector<16x512xf32>
      %265 = vector.broadcast %247 : vector<1x512xf32> to vector<16x512xf32>
      %266 = arith.mulf %264, %265 : vector<16x512xf32>
      %267 = vector.broadcast %248 : vector<1x512xf32> to vector<16x512xf32>
      %268 = arith.addf %266, %267 : vector<16x512xf32>
      %269 = arith.truncf %268 : vector<16x512xf32> to vector<16x512xbf16>
      %c0_107 = arith.constant 0 : index
      %c0_108 = arith.constant 0 : index
      %270 = vector.load %arg26[%c0_107, %c0_108] : memref<512x128xbf16, #tpu.memory_space<vmem>>, vector<512x128xbf16>
      %cst_109 = arith.constant dense<0.000000e+00> : vector<16x128xf32>
      %271 = tpu.matmul %269, %270, %cst_109 {dimension_numbers = #tpu.dot_dimension_numbers<[1], [0], [0], [1], [0, 0, 1, 1], [], []>} : vector<16x512xbf16>, vector<512x128xbf16>, vector<16x128xf32> -> vector<16x128xf32>
      %c0_110 = arith.constant 0 : index
      %c0_111 = arith.constant 0 : index
      %272 = vector.load %arg27[%c0_110, %c0_111] : memref<1x128xf32, #tpu.memory_space<vmem>>, vector<1x128xf32>
      %273 = vector.broadcast %272 : vector<1x128xf32> to vector<16x128xf32>
      %274 = arith.addf %271, %273 : vector<16x128xf32>
      %c0_112 = arith.constant 0 : index
      %c0_113 = arith.constant 0 : index
      %275 = vector.load %arg28[%c0_112, %c0_113] : memref<16x128xf32, #tpu.memory_space<vmem>>, vector<16x128xf32>
      tpu.vector_store %arg28[%c0_112, %c0_113], %274 {strides = array<i32>} : memref<16x128xf32, #tpu.memory_space<vmem>>, vector<16x128xf32>,
    } else {
    }
    return
  }
  func.func @transform_0(%arg0: i32) -> (i32, i32) {
    %c0_i32 = arith.constant 0 : i32
    %c0_i32_0 = arith.constant 0 : i32
    %c0_i32_1 = arith.constant 0 : i32
    return %c0_i32, %c0_i32_0 : i32, i32
  }
  func.func @transform_1(%arg0: i32) -> (i32, i32) {
    %c0_i32 = arith.constant 0 : i32
    %c0_i32_0 = arith.constant 0 : i32
    %c0_i32_1 = arith.constant 0 : i32
    return %c0_i32, %c0_i32_0 : i32, i32
  }
  func.func @transform_2(%arg0: i32) -> (i32, i32) {
    %c0_i32 = arith.constant 0 : i32
    %c0_i32_0 = arith.constant 0 : i32
    %c0_i32_1 = arith.constant 0 : i32
    return %c0_i32, %c0_i32_0 : i32, i32
  }
  func.func @transform_3(%arg0: i32) -> (i32, i32) {
    %c0_i32 = arith.constant 0 : i32
    %c0_i32_0 = arith.constant 0 : i32
    %c0_i32_1 = arith.constant 0 : i32
    return %c0_i32, %c0_i32_0 : i32, i32
  }
  func.func @transform_4(%arg0: i32) -> (i32, i32) {
    %c0_i32 = arith.constant 0 : i32
    %c0_i32_0 = arith.constant 0 : i32
    %c0_i32_1 = arith.constant 0 : i32
    return %c0_i32, %c0_i32_0 : i32, i32
  }
  func.func @transform_5(%arg0: i32) -> (i32, i32) {
    %c0_i32 = arith.constant 0 : i32
    %c0_i32_0 = arith.constant 0 : i32
    %c0_i32_1 = arith.constant 0 : i32
    return %c0_i32, %c0_i32_0 : i32, i32
  }
  func.func @transform_6(%arg0: i32) -> (i32, i32) {
    %c0_i32 = arith.constant 0 : i32
    %c0_i32_0 = arith.constant 0 : i32
    %c0_i32_1 = arith.constant 0 : i32
    return %c0_i32, %c0_i32_0 : i32, i32
  }
  func.func @transform_7(%arg0: i32) -> (i32, i32, i32) {
    %c0_i32 = arith.constant 0 : i32
    %c0_i32_0 = arith.constant 0 : i32
    %c0_i32_1 = arith.constant 0 : i32
    return %arg0, %c0_i32, %c0_i32_0 : i32, i32, i32
  }
  func.func @transform_8(%arg0: i32) -> (i32, i32, i32) {
    %c0_i32 = arith.constant 0 : i32
    %c0_i32_0 = arith.constant 0 : i32
    %c0_i32_1 = arith.constant 0 : i32
    return %arg0, %c0_i32, %c0_i32_0 : i32, i32, i32
  }
  func.func @transform_9(%arg0: i32) -> (i32, i32, i32) {
    %c0_i32 = arith.constant 0 : i32
    %c0_i32_0 = arith.constant 0 : i32
    %c0_i32_1 = arith.constant 0 : i32
    return %arg0, %c0_i32, %c0_i32_0 : i32, i32, i32
  }
  func.func @transform_10(%arg0: i32) -> (i32, i32, i32) {
    %c0_i32 = arith.constant 0 : i32
    %c0_i32_0 = arith.constant 0 : i32
    %c0_i32_1 = arith.constant 0 : i32
    return %arg0, %c0_i32, %c0_i32_0 : i32, i32, i32
  }
  func.func @transform_11(%arg0: i32) -> (i32, i32, i32) {
    %c0_i32 = arith.constant 0 : i32
    %c0_i32_0 = arith.constant 0 : i32
    %c0_i32_1 = arith.constant 0 : i32
    return %arg0, %c0_i32, %c0_i32_0 : i32, i32, i32
  }
  func.func @transform_12(%arg0: i32) -> (i32, i32, i32) {
    %c0_i32 = arith.constant 0 : i32
    %c0_i32_0 = arith.constant 0 : i32
    %c0_i32_1 = arith.constant 0 : i32
    return %arg0, %c0_i32, %c0_i32_0 : i32, i32, i32
  }
  func.func @transform_13(%arg0: i32) -> (i32, i32, i32) {
    %c0_i32 = arith.constant 0 : i32
    %c0_i32_0 = arith.constant 0 : i32
    %c0_i32_1 = arith.constant 0 : i32
    return %arg0, %c0_i32, %c0_i32_0 : i32, i32, i32
  }
  func.func @transform_14(%arg0: i32) -> (i32, i32, i32) {
    %c0_i32 = arith.constant 0 : i32
    %c0_i32_0 = arith.constant 0 : i32
    %c0_i32_1 = arith.constant 0 : i32
    return %arg0, %c0_i32, %c0_i32_0 : i32, i32, i32
  }
  func.func @transform_15(%arg0: i32) -> (i32, i32, i32) {
    %c0_i32 = arith.constant 0 : i32
    %c0_i32_0 = arith.constant 0 : i32
    %c0_i32_1 = arith.constant 0 : i32
    return %arg0, %c0_i32, %c0_i32_0 : i32, i32, i32
  }
  func.func @transform_16(%arg0: i32) -> (i32, i32, i32) {
    %c0_i32 = arith.constant 0 : i32
    %c0_i32_0 = arith.constant 0 : i32
    %c0_i32_1 = arith.constant 0 : i32
    return %arg0, %c0_i32, %c0_i32_0 : i32, i32, i32
  }
  func.func @transform_17(%arg0: i32) -> (i32, i32, i32) {
    %c0_i32 = arith.constant 0 : i32
    %c0_i32_0 = arith.constant 0 : i32
    %c0_i32_1 = arith.constant 0 : i32
    return %arg0, %c0_i32, %c0_i32_0 : i32, i32, i32
  }
  func.func @transform_18(%arg0: i32) -> (i32, i32, i32) {
    %c0_i32 = arith.constant 0 : i32
    %c0_i32_0 = arith.constant 0 : i32
    %c0_i32_1 = arith.constant 0 : i32
    return %arg0, %c0_i32, %c0_i32_0 : i32, i32, i32
  }
  func.func @transform_19(%arg0: i32) -> (i32, i32, i32) {
    %c0_i32 = arith.constant 0 : i32
    %c0_i32_0 = arith.constant 0 : i32
    %c0_i32_1 = arith.constant 0 : i32
    return %arg0, %c0_i32, %c0_i32_0 : i32, i32, i32
  }
  func.func @transform_20(%arg0: i32) -> (i32, i32, i32) {
    %c0_i32 = arith.constant 0 : i32
    %c0_i32_0 = arith.constant 0 : i32
    %c0_i32_1 = arith.constant 0 : i32
    return %arg0, %c0_i32, %c0_i32_0 : i32, i32, i32
  }
  func.func @transform_21(%arg0: i32) -> (i32, i32, i32) {
    %c0_i32 = arith.constant 0 : i32
    %c0_i32_0 = arith.constant 0 : i32
    %c0_i32_1 = arith.constant 0 : i32
    return %arg0, %c0_i32, %c0_i32_0 : i32, i32, i32
  }
  func.func @transform_22(%arg0: i32) -> (i32, i32, i32) {
    %c0_i32 = arith.constant 0 : i32
    %c0_i32_0 = arith.constant 0 : i32
    %c0_i32_1 = arith.constant 0 : i32
    return %arg0, %c0_i32, %c0_i32_0 : i32, i32, i32
  }
  func.func @transform_23(%arg0: i32) -> (i32, i32) {
    %c0_i32 = arith.constant 0 : i32
    %c0_i32_0 = arith.constant 0 : i32
    %c0_i32_1 = arith.constant 0 : i32
    return %c0_i32, %c0_i32_0 : i32, i32
  }
  func.func @transform_24(%arg0: i32) -> (i32, i32) {
    %c0_i32 = arith.constant 0 : i32
    %c0_i32_0 = arith.constant 0 : i32
    %c0_i32_1 = arith.constant 0 : i32
    return %c0_i32, %c0_i32_0 : i32, i32
  }
  func.func @transform_25(%arg0: i32) -> (i32, i32) {
    %c0_i32 = arith.constant 0 : i32
    %c0_i32_0 = arith.constant 0 : i32
    %c0_i32_1 = arith.constant 0 : i32
    return %c0_i32, %c0_i32_0 : i32, i32
  }
  func.func @transform_26(%arg0: i32) -> (i32, i32) {
    %c0_i32 = arith.constant 0 : i32
    %c0_i32_0 = arith.constant 0 : i32
    %c0_i32_1 = arith.constant 0 : i32
    return %c0_i32, %c0_i32_0 : i32, i32
  }
  func.func @transform_27(%arg0: i32) -> (i32, i32) {
    %c0_i32 = arith.constant 0 : i32
    %c0_i32_0 = arith.constant 0 : i32
    %c0_i32_1 = arith.constant 0 : i32
    return %c0_i32, %c0_i32_0 : i32, i32
  }
}

</mosaic_0001>

<bundles_post_ra>
// kernel: action_chunking_decoder_forward.1
= control target key start
LH: loop header
LB: loop body
LE: loop exit
PB: predicated region body
PF: predicated region fallthrough
CT: control target
= control target key end

     0   :  { %s17479_s0 = inlined_call_operand.hbm [shape: f32[2,32], index: 0, kind: input, shape index: {}]   ;;  %s17480_s1 = inlined_call_operand.hbm [shape: bf16[32,512], index: 1, kind: input, shape index: {}]   ;;  %s17481_s2 = inlined_call_operand.hbm [shape: f32[1,512], index: 2, kind: input, shape index: {}]   ;;  %s17482_s3 = inlined_call_operand.hbm [shape: f32[16,512], index: 3, kind: input, shape index: {}]   ;;  %s17483_s4 = inlined_call_operand.hbm [shape: bf16[512,512], index: 4, kind: input, shape index: {}]   ;;  %s17484_s5 = inlined_call_operand.hbm [shape: f32[1,512], index: 5, kind: input, shape index: {}]   ;;  %s17485_s6 = inlined_call_operand.vmem [shape: f32[8,512], index: 6, kind: input, shape index: {}]   ;;  %s17486_s7 = inlined_call_operand.hbm [shape: f32[4,1,512], index: 7, kind: input, shape index: {}]   ;;  %s17487_s8 = inlined_call_operand.hbm [shape: f32[4,1,512], index: 8, kind: input, shape index: {}]   ;;  %s17488_s9 = inlined_call_operand.hbm [shape: bf16[4,512,768], index: 9, kind: input, shape index: {}]   ;;  %s17489_s10 = inlined_call_operand.hbm [shape: bf16[4,256,512], index: 10, kind: input, shape index: {}]   ;;  %s17490_s11 = inlined_call_operand.hbm [shape: f32[4,1,512], index: 11, kind: input, shape index: {}]   ;;  %s17491_s12 = inlined_call_operand.hbm [shape: bf16[4,512,256], index: 12, kind: input, shape index: {}]   ;;  %s17492_s13 = inlined_call_operand.hbm [shape: bf16[4,256,512], index: 13, kind: input, shape index: {}]   ;;  %s17493_s14 = inlined_call_operand.hbm [shape: f32[4,1,512], index: 14, kind: input, shape index: {}]   ;;  %s17494_s15 = inlined_call_operand.hbm [shape: f32[4,1,512], index: 15, kind: input, shape index: {}]   ;;  %s17495_s16 = inlined_call_operand.hbm [shape: f32[4,1,512], index: 16, kind: input, shape index: {}]   ;;  %s17496_s17 = inlined_call_operand.hbm [shape: s8[4,512,2048], index: 17, kind: input, shape index: {}]   ;;  %s17497_s18 = inlined_call_operand.hbm [shape: f32[4,1,2048], index: 18, kind: input, shape index: {}]   ;;  %s17498_s19 = inlined_call_operand.hbm [shape: f32[4,1,2048], index: 19, kind: input, shape index: {}]   ;;  %s17499_s20 = inlined_call_operand.hbm [shape: s8[4,2048,512], index: 20, kind: input, shape index: {}]   ;;  %s17500_s21 = inlined_call_operand.hbm [shape: f32[4,1,512], index: 21, kind: input, shape index: {}]   ;;  %s17501_s22 = inlined_call_operand.hbm [shape: f32[4,1,512], index: 22, kind: input, shape index: {}]   ;;  %s17502_s23 = inlined_call_operand.hbm [shape: f32[1,512], index: 23, kind: input, shape index: {}]   ;;  %s17503_s24 = inlined_call_operand.hbm [shape: f32[1,512], index: 24, kind: input, shape index: {}]   ;;  %s17504_s25 = inlined_call_operand.hbm [shape: bf16[512,128], index: 25, kind: input, shape index: {}]   ;;  %s17505_s26 = inlined_call_operand.hbm [shape: f32[1,128], index: 26, kind: input, shape index: {}]   ;;  %s17506_s27 = inlined_call_operand.vmem [shape: f32[16,128], index: 27, kind: output, shape index: {}]  }
   0x1   :  { %17554 = sst [smem:[#allocation50_spill]] %s17479_s0 }
   0x2   :  { %17555 = sst [smem:[#allocation51_spill]] %s17480_s1 }
   0x3   :  { %17556 = sst [smem:[#allocation52_spill]] %s17481_s2 }
   0x4   :  { %17557 = sst [smem:[#allocation53_spill]] %s17482_s3 }
   0x5   :  { %17558 = sst [smem:[#allocation54_spill]] %s17483_s4 }
   0x6   :  { %17559 = sst [smem:[#allocation55_spill]] %s17484_s5 }
   0x7   :  { %17560 = sst [smem:[#allocation56_spill]] %s17485_s6 }
   0x8   :  { %17561 = sst [smem:[#allocation57_spill]] %s17486_s7 }
   0x9   :  { %17562 = sst [smem:[#allocation58_spill]] %s17487_s8 }
   0xa   :  { %17563 = sst [smem:[#allocation59_spill]] %s17488_s9 }
   0xb   :  { %17564 = sst [smem:[#allocation60_spill]] %s17489_s10 }
   0xc   :  { %17565 = sst [smem:[#allocation61_spill]] %s17490_s11 }
   0xd   :  { %17566 = sst [smem:[#allocation62_spill]] %s17491_s12 }
   0xe   :  { %17567 = sst [smem:[#allocation63_spill]] %s17492_s13 }
   0xf   :  { %17568 = sst [smem:[#allocation64_spill]] %s17493_s14 }
  0x10   :  { %17569 = sst [smem:[#allocation65_spill]] %s17496_s17 }
  0x11   :  { %17570 = sst [smem:[#allocation66_spill]] %s17497_s18 }
  0x12   :  { %17571 = sst [smem:[#allocation67_spill]] %s17498_s19 }
  0x13   :  { %17572 = sst [smem:[#allocation68_spill]] %s17499_s20 }
  0x14   :  { %17573 = sst [smem:[#allocation69_spill]] %s17500_s21 }
  0x15   :  { %17574 = sst [smem:[#allocation70_spill]] %s17501_s22 }
  0x16   :  { %17575 = sst [smem:[#allocation71_spill]] %s17502_s23 }
  0x17   :  { %17576 = sst [smem:[#allocation72_spill]] %s17506_s27 }
  0x18   :  { %32 = vsyncpa [#allocation5], 0 }
  0x19   :  { %33 = vsyncpa [#allocation7], 0 }
  0x1a   :  { %34 = vsyncpa [#allocation10], 0 }
  0x1b   :  { %35 = vsyncpa [#allocation13], 0 }
  0x1c   :  { %36 = vsyncpa [#allocation34], 0  ;;  %s14746_s7 = smov 0   ;;  %s14748_s4 = smov 0  }
  0x1d   :  { %s14750_s8 = smov 0   ;;  %s14752_s30 = smov 0  }
  0x1e LB: > { %17577 = sst [smem:[#allocation44_spill]] %s14548_s4  ;;  %s14765_s9 = sadd.s32 4294967295, %s14556_s30   ;;  %s14556_s30 = sphi %s14752_s30, %s17653_s30   ;;  %s14552_s8 = sphi %s14750_s8, %s17657_s8   ;;  %s14548_s4 = sphi %s14748_s4, %s17656_s4   ;;  %s14544_s7 = sphi %s14746_s7, %s17654_s7  }
  0x1f   : > { %17578 = sst [smem:[#allocation45_spill]] %s14765_s9  ;;  %s14768_s5 = sadd.s32 1, %s14556_s30  }
  0x20   : > { %17579 = sst [smem:[#allocation46_spill]] %s14768_s5  ;;  %s193_s28 = ssub.s32 %s14556_s30, %s14768_s5 }
  0x21   : > { %s196_s0 = sadd.s32 1, %s14552_s8  ;;  %p194_p0 = scmp.eq.s32.totalorder %s193_s28, 0 }
  0x22   : > { %p203_p1 = scmp.ne.s32.totalorder %s14552_s8, %s14548_s4  ;;  %p204_p2 = scmp.eq.s32.totalorder %s14556_s30, 0 }
  0x23   : > { %p209_p3 = scmp.ne.s32.totalorder %s14548_s4, %s14544_s7  ;;  %p17527_p5 = scmp.eq.s32.totalorder %s14765_s9, 0 }
  0x24   : > { %s14778_s10 = scalar_select %p194_p0, %s14552_s8, %s196_s0  }
  0x25   : > { %p14780_p4 = por %p204_p2, %p203_p1  ;;  %p11675_p6 = scmp.ge.s32.totalorder %s14556_s30, 1 }
  0x26   : > { %17580 = sst [smem:[#allocation47_spill]] %s14778_s10  ;;  %p715_p7 = scmp.lt.s32.totalorder %s14556_s30, 5 }
  0x27   : > { %s17581_s29 = scalar_select %p14780_p4, 1, 0 }
  0x28   : > { %p14789_p8 = por %p17527_p5, %p209_p3  ;;  %p14794_p10 = pnand %p11675_p6, %p715_p7 }
  0x29   : > { %s14558_s11 = smov [#allocation6]   ;;  %s14559_s7 = smov [#allocation9]  }
  0x2a   : > { %s17582_s1 = scalar_select %p14789_p8, 1, 0 }
  0x2b   : > { %s17584_s6 = scalar_select %p14794_p10, 1, 0 }
  0x2c   : > { %17583 = sst [smem:[#allocation48_spill]] %s17582_s1  ;;  %s738_s2 = sshll.u32 %s14558_s11, 4  ;;  %s739_s2 = int_to_ptr.vmem [resolvable:$true] %s738_s2 }
  0x2d   : > { %17585 = sst [smem:[#allocation49_spill]] %s17584_s6  ;;  %p12708_p11 = pneg %p14794_p10 }
  0x2e   : > { %s762_s28 = sshll.u32 %s14559_s7, 4  ;;  %s17587_s5 = sld [smem:[#allocation51_spill]]  ;;  %s14806_s28 = int_to_ptr.vmem [resolvable:$true] %s762_s28 }
  0x2f   : > { %p14802_p12 = pnand %p12708_p11, %p17527_p5 }
  0x31   : > { %p14816_p0 = pneg %p14802_p12 }
  0x34   : > { %s13762_s27 = scalar_lea.hbm %s17587_s5, 1024 }
  0x35   : > { %p13763_p13 = scmp.ne.s32.totalorder %s17587_s5, %s13762_s27  ;;  %p13769_p3 = scmp.lt.u32.totalorder %s13762_s27, %s17587_s5 }
  0x37   : > { %p13765_p1 = pnand %p14816_p0, %p13763_p13 }
  0x39   : > { %p13766_p2 = pneg %p13765_p1 }
  0x3b   : > { %p13771_p6 = pnand %p13769_p3, %p13766_p2 }
  0x3d   : > { %13774 = shalt.err (!%p13771_p6)
}
  0x3e   : > { %s13775_s10 = scalar_lea.vmem %s739_s2, 1024  ;;  %p13783_p5 = scmp.lt.s32.totalorder %s739_s2, %s739_s2 }
  0x3f   : > { %p13776_p7 = scmp.ne.s32.totalorder %s739_s2, %s13775_s10  ;;  %p13784_p8 = scmp.lt.s32.totalorder %s13775_s10, %s13775_s10 }
  0x41   : > { %p13778_p11 = pnand %p13776_p7, %p14816_p0  ;;  %p13785_p10 = por %p13784_p8, %p13783_p5 }
  0x43   : > { %p13779_p9 = pneg %p13778_p11 }
  0x45   : > { %p13786_p4 = pnand %p13785_p10, %p13779_p9 }
  0x47   : > { %13789 = shalt.err (!%p13786_p4)
}
  0x48   : > { %s17536_s4 = smov 256   ;;  %s17537_s1 = smov 16  }
  0x49   : > { %12714 = dma.hbm_to_vmem [thread:$0]  (!%p14802_p12), %s17587_s5, 1024, %s739_s2, [#allocation7], %s17536_s4, %s17536_s4, %s17537_s1  }
  0x4a   : > { %s17589_s6 = sld [smem:[#allocation53_spill]] }
  0x50   : > { %s13790_s22 = scalar_lea.hbm %s17589_s6, 1024 }
  0x51   : > { %p13791_p4 = scmp.ne.s32.totalorder %s17589_s6, %s13790_s22  ;;  %p13797_p9 = scmp.lt.u32.totalorder %s13790_s22, %s17589_s6 }
  0x53   : > { %p13793_p5 = pnand %p13791_p4, %p14816_p0 }
  0x55   : > { %p13794_p8 = pneg %p13793_p5 }
  0x57   : > { %p13799_p10 = pnand %p13797_p9, %p13794_p8 }
  0x59   : > { %13802 = shalt.err (!%p13799_p10)
}
  0x5a   : > { %s13803_s2 = scalar_lea.vmem %s14806_s28, 1024  ;;  %p13811_p3 = scmp.lt.s32.totalorder %s14806_s28, %s14806_s28 }
  0x5b   : > { %p13804_p13 = scmp.ne.s32.totalorder %s14806_s28, %s13803_s2  ;;  %p13812_p6 = scmp.lt.s32.totalorder %s13803_s2, %s13803_s2 }
  0x5d   : > { %p13806_p1 = pnand %p13804_p13, %p14816_p0  ;;  %p13813_p7 = por %p13812_p6, %p13811_p3 }
  0x5f   : > { %p13807_p2 = pneg %p13806_p1 }
  0x61   : > { %p13814_p11 = pnand %p13813_p7, %p13807_p2 }
  0x63   : > { %13817 = shalt.err (!%p13814_p11)
}
  0x64   : > { %s14562_s21 = smov 512   ;;  %s14563_s19 = smov 32  }
  0x65   : > { %12720 = dma.hbm_to_vmem [thread:$0]  (!%p14802_p12), %s17589_s6, 1024, %s14806_s28, [#allocation10], %s14562_s21, %s14562_s21, %s14563_s19  }
  0x66   : > { %s14564_s27 = smov [#allocation8]   ;;  %s14565_s0 = smov [#allocation11]  }
  0x67   : > { %s752_s9 = sshll.u32 %s14564_s27, 4  ;;  %s775_s7 = sshll.u32 %s14565_s0, 4  ;;  %s753_s9 = int_to_ptr.vmem [resolvable:$true] %s752_s9  ;;  %s14858_s7 = int_to_ptr.vmem [resolvable:$true] %s775_s7 }
  0x68   : > { %s17590_s4 = sld [smem:[#allocation52_spill]] }
  0x6e   : > { %s17591_s1 = smov %s17590_s4  ;;  %s13818_s5 = scalar_lea.hbm %s17590_s4, 64 }
  0x6f   : > { %p13819_p4 = scmp.ne.s32.totalorder %s17591_s1, %s13818_s5  ;;  %p13825_p9 = scmp.lt.u32.totalorder %s13818_s5, %s17591_s1 }
  0x71   : > { %p13821_p5 = pnand %p13819_p4, %p14816_p0 }
  0x73   : > { %p13822_p8 = pneg %p13821_p5 }
  0x75   : > { %p13827_p10 = pnand %p13825_p9, %p13822_p8 }
  0x77   : > { %13830 = shalt.err (!%p13827_p10)
}
  0x78   : > { %s13831_s21 = scalar_lea.vmem %s753_s9, 64  ;;  %p13839_p3 = scmp.lt.s32.totalorder %s753_s9, %s753_s9 }
  0x79   : > { %p13832_p13 = scmp.ne.s32.totalorder %s753_s9, %s13831_s21  ;;  %p13840_p6 = scmp.lt.s32.totalorder %s13831_s21, %s13831_s21 }
  0x7b   : > { %p13834_p1 = pnand %p13832_p13, %p14816_p0  ;;  %p13841_p7 = por %p13840_p6, %p13839_p3 }
  0x7d   : > { %p13835_p2 = pneg %p13834_p1 }
  0x7f   : > { %p13842_p11 = pnand %p13841_p7, %p13835_p2 }
  0x81   : > { %13845 = shalt.err (!%p13842_p11)
}
  0x82   : > { %12717 = dma.hbm_to_vmem [thread:$0]  (!%p14802_p12), %s17591_s1, 64, %s753_s9, [#allocation7]  }
  0x83   : > { %s17592_s19 = sld [smem:[#allocation54_spill]] }
  0x89   : > { %s13846_s22 = scalar_lea.hbm %s17592_s19, 16384 }
  0x8a   : > { %p13847_p4 = scmp.ne.s32.totalorder %s17592_s19, %s13846_s22  ;;  %p13853_p9 = scmp.lt.u32.totalorder %s13846_s22, %s17592_s19 }
  0x8c   : > { %p13849_p5 = pnand %p13847_p4, %p14816_p0 }
  0x8e   : > { %p13850_p8 = pneg %p13849_p5 }
  0x90   : > { %p13855_p10 = pnand %p13853_p9, %p13850_p8 }
  0x92   : > { %13858 = shalt.err (!%p13855_p10)
}
  0x93   : > { %s13859_s9 = scalar_lea.vmem %s14858_s7, 16384  ;;  %p13867_p3 = scmp.lt.s32.totalorder %s14858_s7, %s14858_s7 }
  0x94   : > { %p13860_p13 = scmp.ne.s32.totalorder %s14858_s7, %s13859_s9  ;;  %p13868_p6 = scmp.lt.s32.totalorder %s13859_s9, %s13859_s9 }
  0x96   : > { %p13862_p1 = pnand %p13860_p13, %p14816_p0  ;;  %p13869_p7 = por %p13868_p6, %p13867_p3 }
  0x98   : > { %p13863_p2 = pneg %p13862_p1 }
  0x9a   : > { %p13870_p11 = pnand %p13869_p7, %p13863_p2 }
  0x9c   : > { %13873 = shalt.err (!%p13870_p11)
}
  0x9d   : > { %s17593_s20 = smov 16   ;;  %s17594_s28 = smov 256  }
  0x9e   : > { %12723 = dma.hbm_to_vmem [thread:$0]  (!%p14802_p12), %s17592_s19, 16384, %s14858_s7, [#allocation10], %s17594_s28, %s17594_s28, %s17593_s20  }
  0x9f   : > { %s14566_s18 = smov [#allocation12]   ;;  %s14567_s4 = smov [#allocation4]  }
  0xa0   : > { %s789_s5 = sshll.u32 %s14566_s18, 4  ;;  %s728_s22 = sshll.u32 %s14567_s4, 4  ;;  %s790_s5 = int_to_ptr.vmem [resolvable:$true] %s789_s5  ;;  %s14904_s22 = int_to_ptr.vmem [resolvable:$true] %s728_s22 }
  0xa1   : > { %s17595_s10 = sld [smem:[#allocation55_spill]] }
  0xa7   : > { %s13874_s2 = scalar_lea.hbm %s17595_s10, 64 }
  0xa8   : > { %p13875_p4 = scmp.ne.s32.totalorder %s17595_s10, %s13874_s2  ;;  %p13881_p9 = scmp.lt.u32.totalorder %s13874_s2, %s17595_s10 }
  0xaa   : > { %p13877_p5 = pnand %p13875_p4, %p14816_p0 }
  0xac   : > { %p13878_p8 = pneg %p13877_p5 }
  0xae   : > { %p13883_p10 = pnand %p13881_p9, %p13878_p8 }
  0xb0   : > { %13886 = shalt.err (!%p13883_p10)
}
  0xb1   : > { %s13887_s20 = scalar_lea.vmem %s790_s5, 64  ;;  %p13895_p3 = scmp.lt.s32.totalorder %s790_s5, %s790_s5 }
  0xb2   : > { %p13888_p13 = scmp.ne.s32.totalorder %s790_s5, %s13887_s20  ;;  %p13896_p6 = scmp.lt.s32.totalorder %s13887_s20, %s13887_s20 }
  0xb4   : > { %p13890_p1 = pnand %p13888_p13, %p14816_p0  ;;  %p13897_p7 = por %p13896_p6, %p13895_p3 }
  0xb6   : > { %p13891_p2 = pneg %p13890_p1 }
  0xb8   : > { %p13898_p11 = pnand %p13897_p7, %p13891_p2 }
  0xba   : > { %13901 = shalt.err (!%p13898_p11)
}
  0xbb   : > { %12726 = dma.hbm_to_vmem [thread:$0]  (!%p14802_p12), %s17595_s10, 64, %s790_s5, [#allocation13]  }
  0xbc   : > { %s17596_s4 = sld [smem:[#allocation50_spill]] }
  0xc2   : > { %s17597_s27 = smov %s17596_s4  ;;  %s13902_s0 = scalar_lea.hbm %s17596_s4, 32 }
  0xc3   : > { %p13903_p4 = scmp.ne.s32.totalorder %s17597_s27, %s13902_s0  ;;  %p13909_p9 = scmp.lt.u32.totalorder %s13902_s0, %s17597_s27 }
  0xc5   : > { %p13905_p5 = pnand %p13903_p4, %p14816_p0 }
  0xc7   : > { %p13906_p8 = pneg %p13905_p5 }
  0xc9   : > { %p13911_p10 = pnand %p13909_p9, %p13906_p8 }
  0xcb   : > { %13914 = shalt.err (!%p13911_p10)
}
  0xcc   : > { %s13915_s5 = scalar_lea.vmem %s14904_s22, 32  ;;  %p13923_p3 = scmp.lt.s32.totalorder %s14904_s22, %s14904_s22 }
  0xcd   : > { %p13916_p13 = scmp.ne.s32.totalorder %s14904_s22, %s13915_s5  ;;  %p13924_p6 = scmp.lt.s32.totalorder %s13915_s5, %s13915_s5 }
  0xcf   : > { %p13918_p1 = pnand %p13916_p13, %p14816_p0  ;;  %p13925_p7 = por %p13924_p6, %p13923_p3 }
  0xd1   : > { %p13919_p2 = pneg %p13918_p1 }
  0xd3   : > { %p13926_p11 = pnand %p13925_p7, %p13919_p2 }
  0xd5   : > { %13929 = shalt.err (!%p13926_p11)
}
  0xd6   : > { %12711 = dma.hbm_to_vmem [thread:$0]  (!%p14802_p12), %s17597_s27, 32, %s14904_s22, [#allocation5]  }
  0xd7   : > { %s14568_s28 = smov [#allocation30]   ;;  %s14569_s18 = smov [#allocation31]  }
  0xd8   : > { %s803_s17 = sshll.u32 %s14568_s28, 4  ;;  %s814_s4 = sshll.u32 %s14569_s18, 4  ;;  %s804_s17 = int_to_ptr.vmem [resolvable:$true] %s803_s17  ;;  %s14947_s4 = int_to_ptr.vmem [resolvable:$true] %s814_s4 }
  0xd9   : > { %s17598_s23 = sld [smem:[#allocation71_spill]] }
  0xdf   : > { %s13930_s9 = scalar_lea.hbm %s17598_s23, 64 }
  0xe0   : > { %p13931_p4 = scmp.ne.s32.totalorder %s17598_s23, %s13930_s9  ;;  %p13937_p9 = scmp.lt.u32.totalorder %s13930_s9, %s17598_s23 }
  0xe2   : > { %p13933_p5 = pnand %p13931_p4, %p14816_p0 }
  0xe4   : > { %p13934_p8 = pneg %p13933_p5 }
  0xe6   : > { %p13939_p10 = pnand %p13937_p9, %p13934_p8 }
  0xe8   : > { %13942 = shalt.err (!%p13939_p10)
}
  0xe9   : > { %s13943_s20 = scalar_lea.vmem %s804_s17, 64  ;;  %p13951_p3 = scmp.lt.s32.totalorder %s804_s17, %s804_s17 }
  0xea   : > { %p13944_p13 = scmp.ne.s32.totalorder %s804_s17, %s13943_s20  ;;  %p13952_p6 = scmp.lt.s32.totalorder %s13943_s20, %s13943_s20 }
  0xec   : > { %p13946_p1 = pnand %p13944_p13, %p14816_p0  ;;  %p13953_p7 = por %p13952_p6, %p13951_p3 }
  0xee   : > { %p13947_p2 = pneg %p13946_p1 }
  0xf0   : > { %p13954_p11 = pnand %p13953_p7, %p13947_p2 }
  0xf2   : > { %13957 = shalt.err (!%p13954_p11)
}
  0xf3   : > { %12729 = dma.hbm_to_vmem [thread:$0]  (!%p14802_p12), %s17598_s23, 64, %s804_s17, [#allocation7]  }
  0xf4   : > { %s13958_s2 = scalar_lea.hbm %s17503_s24, 64 }
  0xf5   : > { %p13959_p4 = scmp.ne.s32.totalorder %s17503_s24, %s13958_s2  ;;  %p13965_p9 = scmp.lt.u32.totalorder %s13958_s2, %s17503_s24 }
  0xf7   : > { %p13961_p5 = pnand %p13959_p4, %p14816_p0 }
  0xf9   : > { %p13962_p8 = pneg %p13961_p5 }
  0xfb   : > { %p13967_p10 = pnand %p13965_p9, %p13962_p8 }
  0xfd   : > { %13970 = shalt.err (!%p13967_p10)
}
  0xfe   : > { %s13971_s17 = scalar_lea.vmem %s14947_s4, 64  ;;  %p13979_p3 = scmp.lt.s32.totalorder %s14947_s4, %s14947_s4 }
  0xff   : > { %p13972_p13 = scmp.ne.s32.totalorder %s14947_s4, %s13971_s17  ;;  %p13980_p6 = scmp.lt.s32.totalorder %s13971_s17, %s13971_s17 }
 0x101   : > { %p13974_p1 = pnand %p13972_p13, %p14816_p0  ;;  %p13981_p7 = por %p13980_p6, %p13979_p3 }
 0x103   : > { %p13975_p2 = pneg %p13974_p1 }
 0x105   : > { %p13982_p11 = pnand %p13981_p7, %p13975_p2 }
 0x107   : > { %13985 = shalt.err (!%p13982_p11)
}
 0x108   : > { %12732 = dma.hbm_to_vmem [thread:$0]  (!%p14802_p12), %s17503_s24, 64, %s14947_s4, [#allocation10]  }
 0x109   : > { %s14570_s1 = smov [#allocation32]   ;;  %s13986_s2 = scalar_lea.hbm %s17504_s25, 4096 }
 0x10a   : > { %s824_s28 = sshll.u32 %s14570_s1, 4  ;;  %p13987_p4 = scmp.ne.s32.totalorder %s17504_s25, %s13986_s2  ;;  %s825_s28 = int_to_ptr.vmem [resolvable:$true] %s824_s28 }
 0x10b   : > { %p13993_p9 = scmp.lt.u32.totalorder %s13986_s2, %s17504_s25 }
 0x10c   : > { %p13989_p5 = pnand %p13987_p4, %p14816_p0 }
 0x10e   : > { %p13990_p8 = pneg %p13989_p5 }
 0x110   : > { %p13995_p10 = pnand %p13993_p9, %p13990_p8 }
 0x112   : > { %13998 = shalt.err (!%p13995_p10)
}
 0x113   : > { %s13999_s4 = scalar_lea.vmem %s825_s28, 4096  ;;  %p14007_p3 = scmp.lt.s32.totalorder %s825_s28, %s825_s28 }
 0x114   : > { %p14000_p13 = scmp.ne.s32.totalorder %s825_s28, %s13999_s4  ;;  %p14008_p6 = scmp.lt.s32.totalorder %s13999_s4, %s13999_s4 }
 0x116   : > { %p14002_p1 = pnand %p14000_p13, %p14816_p0  ;;  %p14009_p7 = por %p14008_p6, %p14007_p3 }
 0x118   : > { %p14003_p2 = pneg %p14002_p1 }
 0x11a   : > { %p14010_p11 = pnand %p14009_p7, %p14003_p2 }
 0x11c   : > { %14013 = shalt.err (!%p14010_p11)
}
 0x11d   : > { %s14571_s17 = smov 64   ;;  %s14572_s22 = smov 4  }
 0x11e   : > { %12735 = dma.hbm_to_vmem [thread:$0]  (!%p14802_p12), %s17504_s25, 4096, %s825_s28, [#allocation13], %s14571_s17, %s14571_s17, %s14572_s22  }
 0x11f   : > { %s14573_s18 = smov [#allocation33]   ;;  %s14014_s21 = scalar_lea.hbm %s17505_s26, 16 }
 0x120   : > { %s838_s0 = sshll.u32 %s14573_s18, 4  ;;  %p14015_p4 = scmp.ne.s32.totalorder %s17505_s26, %s14014_s21  ;;  %s839_s0 = int_to_ptr.vmem [resolvable:$true] %s838_s0 }
 0x121   : > { %p14021_p9 = scmp.lt.u32.totalorder %s14014_s21, %s17505_s26 }
 0x122   : > { %p14017_p5 = pnand %p14015_p4, %p14816_p0 }
 0x124   : > { %p14018_p8 = pneg %p14017_p5 }
 0x126   : > { %p14023_p10 = pnand %p14021_p9, %p14018_p8 }
 0x128   : > { %14026 = shalt.err (!%p14023_p10)
}
 0x129   : > { %s14027_s28 = scalar_lea.vmem %s839_s0, 16  ;;  %s14034_s17 = scalar_lea.vmem %s839_s0, 32 }
 0x12a   : > { %p14028_p13 = scmp.ne.s32.totalorder %s839_s0, %s14027_s28  ;;  %p14035_p3 = scmp.lt.s32.totalorder %s839_s0, %s839_s0 }
 0x12b   : > { %p14036_p6 = scmp.lt.s32.totalorder %s14034_s17, %s14027_s28 }
 0x12c   : > { %p14030_p1 = pnand %p14028_p13, %p14816_p0 }
 0x12d   : > { %p14037_p7 = por %p14036_p6, %p14035_p3 }
 0x12e   : > { %p14031_p2 = pneg %p14030_p1 }
 0x130   : > { %p14038_p11 = pnand %p14037_p7, %p14031_p2 }
 0x132   : > { %14041 = shalt.err (!%p14038_p11)
}
 0x133   : > { %12738 = dma.hbm_to_vmem [thread:$0]  (!%p14802_p12), %s17505_s26, 16, %s839_s0, [#allocation34]  }
 0x134   : > { %p11686_p4 = scmp.ge.s32.totalorder %s14556_s30, 4 }
 0x135   : > { %s849_s6 = sand.u32 (!%p11686_p4), 1, %s14556_s30   ;;  %s15029_s11 = sand.u32 (!%p11686_p4), 1, %s14552_s8  }
 0x136   : > { %845 = sbr.rel (%p11686_p4) target bundleno = 744 (0x2e8), region = 60  ;;  %s15032_s1 = sshll.u32 (!%p11686_p4), %s15029_s11, 2 }
 0x137   : > { %s15035_s18 = sshll.u32 (!%p11686_p4), %s14556_s30, 6  ;;  %s17599_s0 = sld [smem:[#allocation57_spill]] (!%p11686_p4) }
 0x138   : > { %s853_s21 = scalar_lea.vmem (!%p11686_p4), [#allocation14], %s15032_s1  ;;  %s15044_s5 = scalar_lea.sflag (!%p11686_p4), [#allocation5], %s849_s6 }
 0x139   : > { %s861_s7 = sshll.u32 (!%p11686_p4), %s853_s21, 4  ;;  %p17600_p0 = scmp.ne.s32.totalorder (!%p11686_p4), %s17581_s29, 0  ;;  %s862_s7 = int_to_ptr.vmem [resolvable:$true] %s861_s7 }
 0x13d   : > { %s15041_s9 = scalar_lea.hbm %s17599_s0, %s15035_s18  ;;  %s14046_s22 = scalar_lea.hbm %s17599_s0, 256 }
 0x13e   : > { %s14042_s4 = scalar_lea.hbm %s15041_s9, 64  ;;  %p14047_p9 = scmp.lt.u32.totalorder %s15041_s9, %s17599_s0 }
 0x13f   : > { %p14043_p12 = scmp.ne.s32.totalorder %s15041_s9, %s14042_s4  ;;  %p14048_p10 = scmp.lt.u32.totalorder %s14046_s22, %s14042_s4 }
 0x140   : > { %p14050_p1 = scmp.lt.u32.totalorder %s14042_s4, %s15041_s9 }
 0x141   : > { %p14044_p5 = pnand %p14043_p12, %p17600_p0  ;;  %p14049_p13 = por %p14048_p10, %p14047_p9 }
 0x143   : > { %p14045_p8 = pneg %p14044_p5  ;;  %p14051_p2 = por %p14050_p1, %p14049_p13 }
 0x145   : > { %p14052_p3 = pnand %p14051_p2, %p14045_p8 }
 0x147   : > { %14055 = shalt.err (!%p14052_p3)
}
 0x148   : > { %s14056_s6 = scalar_lea.vmem %s862_s7, 64  ;;  %s14574_s2 = smov [#allocation14]  }
 0x149   : > { %p14057_p6 = scmp.ne.s32.totalorder %s862_s7, %s14056_s6  ;;  %s14060_s21 = sshll.u32 %s14574_s2, 4  ;;  %s14061_s21 = int_to_ptr.vmem [resolvable:$false] %s14060_s21 }
 0x14a   : > { %s14062_s28 = scalar_lea.vmem %s14061_s21, 128  ;;  %p14063_p4 = scmp.lt.s32.totalorder %s862_s7, %s14061_s21 }
 0x14b   : > { %p14058_p7 = pnand %p14057_p6, %p17600_p0  ;;  %p14064_p12 = scmp.lt.s32.totalorder %s14062_s28, %s14056_s6 }
 0x14d   : > { %p14059_p11 = pneg %p14058_p7  ;;  %p14065_p5 = por %p14064_p12, %p14063_p4 }
 0x14f   : > { %p14066_p9 = pnand %p14065_p5, %p14059_p11 }
 0x151   : > { %14069 = shalt.err (!%p14066_p9)
}
 0x152   : > { %12656 = dma.hbm_to_vmem [thread:$0]  (%p17600_p0), %s15041_s9, 64, %s862_s7, %s15044_s5  }
 0x153   : > { %s17601_s22 = sld [smem:[#allocation58_spill]]  ;;  %s872_s3 = scalar_lea.vmem [#allocation15], %s15032_s1 }
 0x154   : > { %s880_s6 = sshll.u32 %s872_s3, 4  ;;  %s12633_s2 = smul.u32 1536, %s15029_s11  ;;  %s881_s6 = int_to_ptr.vmem [resolvable:$true] %s880_s6 }
 0x159   : > { %s15068_s20 = scalar_lea.hbm %s17601_s22, %s15035_s18  ;;  %s14074_s7 = scalar_lea.hbm %s17601_s22, 256 }
 0x15a   : > { %s14070_s21 = scalar_lea.hbm %s15068_s20, 64  ;;  %p14075_p1 = scmp.lt.u32.totalorder %s15068_s20, %s17601_s22 }
 0x15b   : > { %p14071_p8 = scmp.ne.s32.totalorder %s15068_s20, %s14070_s21  ;;  %p14076_p2 = scmp.lt.u32.totalorder %s14074_s7, %s14070_s21 }
 0x15c   : > { %p14078_p6 = scmp.lt.u32.totalorder %s14070_s21, %s15068_s20 }
 0x15d   : > { %p14072_p10 = pnand %p14071_p8, %p17600_p0  ;;  %p14077_p3 = por %p14076_p2, %p14075_p1 }
 0x15f   : > { %p14073_p13 = pneg %p14072_p10  ;;  %p14079_p7 = por %p14078_p6, %p14077_p3 }
 0x161   : > { %p14080_p11 = pnand %p14079_p7, %p14073_p13 }
 0x163   : > { %14083 = shalt.err (!%p14080_p11)
}
 0x164   : > { %s14084_s3 = scalar_lea.vmem %s881_s6, 64  ;;  %s14575_s0 = smov [#allocation15]  }
 0x165   : > { %p14085_p4 = scmp.ne.s32.totalorder %s881_s6, %s14084_s3  ;;  %s14088_s10 = sshll.u32 %s14575_s0, 4  ;;  %s14089_s10 = int_to_ptr.vmem [resolvable:$false] %s14088_s10 }
 0x166   : > { %s14090_s28 = scalar_lea.vmem %s14089_s10, 128  ;;  %p14091_p9 = scmp.lt.s32.totalorder %s881_s6, %s14089_s10 }
 0x167   : > { %p14086_p12 = pnand %p14085_p4, %p17600_p0  ;;  %p14092_p8 = scmp.lt.s32.totalorder %s14090_s28, %s14084_s3 }
 0x169   : > { %p14087_p5 = pneg %p14086_p12  ;;  %p14093_p10 = por %p14092_p8, %p14091_p9 }
 0x16b   : > { %p14094_p1 = pnand %p14093_p10, %p14087_p5 }
 0x16d   : > { %14097 = shalt.err (!%p14094_p1)
}
 0x16e   : > { %12657 = dma.hbm_to_vmem [thread:$0]  (%p17600_p0), %s15068_s20, 64, %s881_s6, %s15044_s5  }
 0x16f   : > { %s12634_s21 = smul.u32 24576, %s14556_s30  ;;  %s891_s9 = scalar_lea.vmem [#allocation16], %s12633_s2 }
 0x170   : > { %s898_s7 = sshll.u32 %s891_s9, 4  ;;  %s17602_s17 = sld [smem:[#allocation59_spill]]  ;;  %s15096_s7 = int_to_ptr.vmem [resolvable:$true] %s898_s7 }
 0x171   : > { %s15099_s10 = sshll.u32 %s15029_s11, 9 }
 0x176   : > { %s15094_s19 = scalar_lea.hbm %s17602_s17, %s12634_s21  ;;  %s14102_s2 = scalar_lea.hbm %s17602_s17, 98304 }
 0x177   : > { %s14098_s3 = scalar_lea.hbm %s15094_s19, 24576  ;;  %p14103_p6 = scmp.lt.u32.totalorder %s15094_s19, %s17602_s17 }
 0x178   : > { %p14099_p13 = scmp.ne.s32.totalorder %s15094_s19, %s14098_s3  ;;  %p14104_p7 = scmp.lt.u32.totalorder %s14102_s2, %s14098_s3 }
 0x179   : > { %p14106_p4 = scmp.lt.u32.totalorder %s14098_s3, %s15094_s19 }
 0x17a   : > { %p14100_p2 = pnand %p14099_p13, %p17600_p0  ;;  %p14105_p11 = por %p14104_p7, %p14103_p6 }
 0x17c   : > { %p14101_p3 = pneg %p14100_p2  ;;  %p14107_p12 = por %p14106_p4, %p14105_p11 }
 0x17e   : > { %p14108_p5 = pnand %p14107_p12, %p14101_p3 }
 0x180   : > { %14111 = shalt.err (!%p14108_p5)
}
 0x181   : > { %s14112_s9 = scalar_lea.vmem %s15096_s7, 24576  ;;  %s14576_s4 = smov [#allocation16]  }
 0x182   : > { %p14113_p9 = scmp.ne.s32.totalorder %s15096_s7, %s14112_s9  ;;  %s14116_s0 = sshll.u32 %s14576_s4, 4  ;;  %s14117_s0 = int_to_ptr.vmem [resolvable:$false] %s14116_s0 }
 0x183   : > { %s14118_s20 = scalar_lea.vmem %s14117_s0, 49152  ;;  %p14119_p1 = scmp.lt.s32.totalorder %s15096_s7, %s14117_s0 }
 0x184   : > { %p14114_p8 = pnand %p14113_p9, %p17600_p0  ;;  %p14120_p13 = scmp.lt.s32.totalorder %s14118_s20, %s14112_s9 }
 0x186   : > { %p14115_p10 = pneg %p14114_p8  ;;  %p14121_p2 = por %p14120_p13, %p14119_p1 }
 0x188   : > { %p14122_p6 = pnand %p14121_p2, %p14115_p10 }
 0x18a   : > { %14125 = shalt.err (!%p14122_p6)
}
 0x18b   : > { %s14577_s3 = smov 384   ;;  %s14578_s6 = smov 24  }
 0x18c   : > { %12658 = dma.hbm_to_vmem [thread:$0]  (%p17600_p0), %s15094_s19, 24576, %s15096_s7, %s15044_s5, %s14577_s3, %s14577_s3, %s14578_s6  }
 0x18d   : > { %s15124_s2 = sshll.u32 %s14556_s30, 13  ;;  %s17603_s9 = sld [smem:[#allocation60_spill]] }
 0x18e   : > { %s912_s0 = scalar_lea.vmem [#allocation17], %s15099_s10 }
 0x18f   : > { %s919_s20 = sshll.u32 %s912_s0, 4  ;;  %s15133_s20 = int_to_ptr.vmem [resolvable:$true] %s919_s20 }
 0x193   : > { %s15130_s4 = scalar_lea.hbm %s17603_s9, %s15124_s2  ;;  %s14130_s3 = scalar_lea.hbm %s17603_s9, 32768 }
 0x194   : > { %s14126_s17 = scalar_lea.hbm %s15130_s4, 8192  ;;  %p14131_p4 = scmp.lt.u32.totalorder %s15130_s4, %s17603_s9 }
 0x195   : > { %p14127_p3 = scmp.ne.s32.totalorder %s15130_s4, %s14126_s17  ;;  %p14132_p12 = scmp.lt.u32.totalorder %s14130_s3, %s14126_s17 }
 0x196   : > { %p14134_p9 = scmp.lt.u32.totalorder %s14126_s17, %s15130_s4 }
 0x197   : > { %p14128_p7 = pnand %p14127_p3, %p17600_p0  ;;  %p14133_p5 = por %p14132_p12, %p14131_p4 }
 0x199   : > { %p14129_p11 = pneg %p14128_p7  ;;  %p14135_p8 = por %p14134_p9, %p14133_p5 }
 0x19b   : > { %p14136_p10 = pnand %p14135_p8, %p14129_p11 }
 0x19d   : > { %14139 = shalt.err (!%p14136_p10)
}
 0x19e   : > { %s14140_s21 = scalar_lea.vmem %s15133_s20, 8192  ;;  %s14579_s0 = smov [#allocation17]  }
 0x19f   : > { %p14141_p1 = scmp.ne.s32.totalorder %s15133_s20, %s14140_s21  ;;  %s14144_s19 = sshll.u32 %s14579_s0, 4  ;;  %s14145_s19 = int_to_ptr.vmem [resolvable:$false] %s14144_s19 }
 0x1a0   : > { %s14146_s7 = scalar_lea.vmem %s14145_s19, 16384  ;;  %p14147_p6 = scmp.lt.s32.totalorder %s15133_s20, %s14145_s19 }
 0x1a1   : > { %p14142_p13 = pnand %p14141_p1, %p17600_p0  ;;  %p14148_p3 = scmp.lt.s32.totalorder %s14146_s7, %s14140_s21 }
 0x1a3   : > { %p14143_p2 = pneg %p14142_p13  ;;  %p14149_p7 = por %p14148_p3, %p14147_p6 }
 0x1a5   : > { %p14150_p4 = pnand %p14149_p7, %p14143_p2 }
 0x1a7   : > { %14153 = shalt.err (!%p14150_p4)
}
 0x1a8   : > { %s17549_s17 = smov 256   ;;  %s14581_s3 = smov 16  }
 0x1a9   : > { %12659 = dma.hbm_to_vmem [thread:$0]  (%p17600_p0), %s15130_s4, 8192, %s15133_s20, %s15044_s5, %s17549_s17, %s17549_s17, %s14581_s3  }
 0x1aa   : > { %s17604_s21 = sld [smem:[#allocation61_spill]]  ;;  %s933_s19 = scalar_lea.vmem [#allocation18], %s15032_s1 }
 0x1ab   : > { %s941_s7 = sshll.u32 %s933_s19, 4  ;;  %s942_s7 = int_to_ptr.vmem [resolvable:$true] %s941_s7 }
 0x1b0   : > { %s15164_s0 = scalar_lea.hbm %s17604_s21, %s15035_s18  ;;  %s14158_s4 = scalar_lea.hbm %s17604_s21, 256 }
 0x1b1   : > { %s14154_s9 = scalar_lea.hbm %s15164_s0, 64  ;;  %p14159_p9 = scmp.lt.u32.totalorder %s15164_s0, %s17604_s21 }
 0x1b2   : > { %p14155_p11 = scmp.ne.s32.totalorder %s15164_s0, %s14154_s9  ;;  %p14160_p8 = scmp.lt.u32.totalorder %s14158_s4, %s14154_s9 }
 0x1b3   : > { %p14162_p1 = scmp.lt.u32.totalorder %s14154_s9, %s15164_s0 }
 0x1b4   : > { %p14156_p12 = pnand %p14155_p11, %p17600_p0  ;;  %p14161_p10 = por %p14160_p8, %p14159_p9 }
 0x1b6   : > { %p14157_p5 = pneg %p14156_p12  ;;  %p14163_p13 = por %p14162_p1, %p14161_p10 }
 0x1b8   : > { %p14164_p2 = pnand %p14163_p13, %p14157_p5 }
 0x1ba   : > { %14167 = shalt.err (!%p14164_p2)
}
 0x1bb   : > { %s14168_s28 = scalar_lea.vmem %s942_s7, 64  ;;  %s14582_s19 = smov [#allocation18]  }
 0x1bc   : > { %p14169_p6 = scmp.ne.s32.totalorder %s942_s7, %s14168_s28  ;;  %s14172_s17 = sshll.u32 %s14582_s19, 4  ;;  %s14173_s17 = int_to_ptr.vmem [resolvable:$false] %s14172_s17 }
 0x1bd   : > { %s14174_s23 = scalar_lea.vmem %s14173_s17, 128  ;;  %p14175_p4 = scmp.lt.s32.totalorder %s942_s7, %s14173_s17 }
 0x1be   : > { %p14170_p3 = pnand %p14169_p6, %p17600_p0  ;;  %p14176_p11 = scmp.lt.s32.totalorder %s14174_s23, %s14168_s28 }
 0x1c0   : > { %p14171_p7 = pneg %p14170_p3  ;;  %p14177_p12 = por %p14176_p11, %p14175_p4 }
 0x1c2   : > { %p14178_p8 = pnand %p14177_p12, %p14171_p7 }
 0x1c4   : > { %14181 = shalt.err (!%p14178_p8)
}
 0x1c5   : > { %12660 = dma.hbm_to_vmem [thread:$0]  (%p17600_p0), %s15164_s0, 64, %s942_s7, %s15044_s5  }
 0x1c6   : > { %s17605_s12 = sld [smem:[#allocation62_spill]]  ;;  %s952_s17 = scalar_lea.vmem [#allocation19], %s15099_s10 }
 0x1c7   : > { %s959_s20 = sshll.u32 %s952_s17, 4  ;;  %s15192_s20 = int_to_ptr.vmem [resolvable:$true] %s959_s20 }
 0x1cc   : > { %s15189_s4 = scalar_lea.hbm %s17605_s12, %s15124_s2  ;;  %s14186_s7 = scalar_lea.hbm %s17605_s12, 32768 }
 0x1cd   : > { %s14182_s6 = scalar_lea.hbm %s15189_s4, 8192  ;;  %p14187_p1 = scmp.lt.u32.totalorder %s15189_s4, %s17605_s12 }
 0x1ce   : > { %p14183_p5 = scmp.ne.s32.totalorder %s15189_s4, %s14182_s6  ;;  %p14188_p13 = scmp.lt.u32.totalorder %s14186_s7, %s14182_s6 }
 0x1cf   : > { %p14190_p6 = scmp.lt.u32.totalorder %s14182_s6, %s15189_s4 }
 0x1d0   : > { %p14184_p9 = pnand %p14183_p5, %p17600_p0  ;;  %p14189_p2 = por %p14188_p13, %p14187_p1 }
 0x1d2   : > { %p14185_p10 = pneg %p14184_p9  ;;  %p14191_p3 = por %p14190_p6, %p14189_p2 }
 0x1d4   : > { %p14192_p7 = pnand %p14191_p3, %p14185_p10 }
 0x1d6   : > { %14195 = shalt.err (!%p14192_p7)
}
 0x1d7   : > { %s14196_s22 = scalar_lea.vmem %s15192_s20, 8192  ;;  %s14583_s9 = smov [#allocation19]  }
 0x1d8   : > { %p14197_p4 = scmp.ne.s32.totalorder %s15192_s20, %s14196_s22  ;;  %s14200_s17 = sshll.u32 %s14583_s9, 4  ;;  %s14201_s17 = int_to_ptr.vmem [resolvable:$false] %s14200_s17 }
 0x1d9   : > { %s14202_s28 = scalar_lea.vmem %s14201_s17, 16384  ;;  %p14203_p8 = scmp.lt.s32.totalorder %s15192_s20, %s14201_s17 }
 0x1da   : > { %p14198_p11 = pnand %p14197_p4, %p17600_p0  ;;  %p14204_p5 = scmp.lt.s32.totalorder %s14202_s28, %s14196_s22 }
 0x1dc   : > { %p14199_p12 = pneg %p14198_p11  ;;  %p14205_p9 = por %p14204_p5, %p14203_p8 }
 0x1de   : > { %p14206_p1 = pnand %p14205_p9, %p14199_p12 }
 0x1e0   : > { %14209 = shalt.err (!%p14206_p1)
}
 0x1e1   : > { %s14584_s6 = smov 128   ;;  %s14585_s0 = smov 8  }
 0x1e2   : > { %12661 = dma.hbm_to_vmem [thread:$0]  (%p17600_p0), %s15189_s4, 8192, %s15192_s20, %s15044_s5, %s14584_s6, %s14584_s6, %s14585_s0  }
 0x1e3   : > { %s17606_s13 = sld [smem:[#allocation63_spill]]  ;;  %s973_s22 = scalar_lea.vmem [#allocation20], %s15099_s10 }
 0x1e4   : > { %s980_s9 = sshll.u32 %s973_s22, 4  ;;  %s15225_s9 = int_to_ptr.vmem [resolvable:$true] %s980_s9 }
 0x1e9   : > { %s15222_s23 = scalar_lea.hbm %s17606_s13, %s15124_s2  ;;  %s14214_s20 = scalar_lea.hbm %s17606_s13, 32768 }
 0x1ea   : > { %s14210_s17 = scalar_lea.hbm %s15222_s23, 8192  ;;  %p14215_p6 = scmp.lt.u32.totalorder %s15222_s23, %s17606_s13 }
 0x1eb   : > { %p14211_p10 = scmp.ne.s32.totalorder %s15222_s23, %s14210_s17  ;;  %p14216_p3 = scmp.lt.u32.totalorder %s14214_s20, %s14210_s17 }
 0x1ec   : > { %p14218_p4 = scmp.lt.u32.totalorder %s14210_s17, %s15222_s23 }
 0x1ed   : > { %p14212_p13 = pnand %p14211_p10, %p17600_p0  ;;  %p14217_p7 = por %p14216_p3, %p14215_p6 }
 0x1ef   : > { %p14213_p2 = pneg %p14212_p13  ;;  %p14219_p11 = por %p14218_p4, %p14217_p7 }
 0x1f1   : > { %p14220_p12 = pnand %p14219_p11, %p14213_p2 }
 0x1f3   : > { %14223 = shalt.err (!%p14220_p12)
}
 0x1f4   : > { %s14224_s10 = scalar_lea.vmem %s15225_s9, 8192  ;;  %s14586_s7 = smov [#allocation20]  }
 0x1f5   : > { %p14225_p8 = scmp.ne.s32.totalorder %s15225_s9, %s14224_s10  ;;  %s14228_s19 = sshll.u32 %s14586_s7, 4  ;;  %s14229_s19 = int_to_ptr.vmem [resolvable:$false] %s14228_s19 }
 0x1f6   : > { %s14230_s22 = scalar_lea.vmem %s14229_s19, 16384  ;;  %p14231_p1 = scmp.lt.s32.totalorder %s15225_s9, %s14229_s19 }
 0x1f7   : > { %p14226_p5 = pnand %p14225_p8, %p17600_p0  ;;  %p14232_p10 = scmp.lt.s32.totalorder %s14230_s22, %s14224_s10 }
 0x1f9   : > { %p14227_p9 = pneg %p14226_p5  ;;  %p14233_p13 = por %p14232_p10, %p14231_p1 }
 0x1fb   : > { %p14234_p6 = pnand %p14233_p13, %p14227_p9 }
 0x1fd   : > { %14237 = shalt.err (!%p14234_p6)
}
 0x1fe   : > { %s17607_s17 = smov 256   ;;  %s17608_s14 = sld [smem:[#allocation64_spill]] }
 0x1ff   : > { %12662 = dma.hbm_to_vmem [thread:$0]  (%p17600_p0), %s15222_s23, 8192, %s15225_s9, %s15044_s5, %s17607_s17, %s17607_s17, %s14581_s3  }
 0x200   : > { %s994_s0 = scalar_lea.vmem [#allocation21], %s15032_s1 }
 0x201   : > { %s1002_s2 = sshll.u32 %s994_s0, 4  ;;  %s1003_s2 = int_to_ptr.vmem [resolvable:$true] %s1002_s2 }
 0x204   : > { %s15256_s20 = scalar_lea.hbm %s17608_s14, %s15035_s18  ;;  %s14242_s3 = scalar_lea.hbm %s17608_s14, 256 }
 0x205   : > { %s14238_s10 = scalar_lea.hbm %s15256_s20, 64  ;;  %p14243_p4 = scmp.lt.u32.totalorder %s15256_s20, %s17608_s14 }
 0x206   : > { %p14239_p2 = scmp.ne.s32.totalorder %s15256_s20, %s14238_s10  ;;  %p14244_p11 = scmp.lt.u32.totalorder %s14242_s3, %s14238_s10 }
 0x207   : > { %p14246_p8 = scmp.lt.u32.totalorder %s14238_s10, %s15256_s20 }
 0x208   : > { %p14240_p3 = pnand %p14239_p2, %p17600_p0  ;;  %p14245_p12 = por %p14244_p11, %p14243_p4 }
 0x20a   : > { %p14241_p7 = pneg %p14240_p3  ;;  %p14247_p5 = por %p14246_p8, %p14245_p12 }
 0x20c   : > { %p14248_p9 = pnand %p14247_p5, %p14241_p7 }
 0x20e   : > { %14251 = shalt.err (!%p14248_p9)
}
 0x20f   : > { %s14252_s22 = scalar_lea.vmem %s1003_s2, 64  ;;  %s14587_s17 = smov [#allocation21]  }
 0x210   : > { %p14253_p1 = scmp.ne.s32.totalorder %s1003_s2, %s14252_s22  ;;  %s14256_s28 = sshll.u32 %s14587_s17, 4  ;;  %s14257_s28 = int_to_ptr.vmem [resolvable:$false] %s14256_s28 }
 0x211   : > { %s14258_s4 = scalar_lea.vmem %s14257_s28, 128  ;;  %p14259_p6 = scmp.lt.s32.totalorder %s1003_s2, %s14257_s28 }
 0x212   : > { %p14254_p10 = pnand %p14253_p1, %p17600_p0  ;;  %p14260_p2 = scmp.lt.s32.totalorder %s14258_s4, %s14252_s22 }
 0x214   : > { %p14255_p13 = pneg %p14254_p10  ;;  %p14261_p3 = por %p14260_p2, %p14259_p6 }
 0x216   : > { %p14262_p4 = pnand %p14261_p3, %p14255_p13 }
 0x218   : > { %14265 = shalt.err (!%p14262_p4)
}
 0x219   : > { %12663 = dma.hbm_to_vmem [thread:$0]  (%p17600_p0), %s15256_s20, 64, %s1003_s2, %s15044_s5  }
 0x21a   : > { %s15281_s7 = scalar_lea.hbm %s17494_s15, %s15035_s18  ;;  %s1013_s19 = scalar_lea.vmem [#allocation22], %s15032_s1 }
 0x21b   : > { %s1021_s3 = sshll.u32 %s1013_s19, 4  ;;  %s14266_s23 = scalar_lea.hbm %s15281_s7, 64  ;;  %s1022_s3 = int_to_ptr.vmem [resolvable:$true] %s1021_s3 }
 0x21c   : > { %p14267_p7 = scmp.ne.s32.totalorder %s15281_s7, %s14266_s23  ;;  %s14270_s20 = scalar_lea.hbm %s17494_s15, 256 }
 0x21d   : > { %p14271_p8 = scmp.lt.u32.totalorder %s15281_s7, %s17494_s15  ;;  %p14272_p5 = scmp.lt.u32.totalorder %s14270_s20, %s14266_s23 }
 0x21e   : > { %p14268_p11 = pnand %p14267_p7, %p17600_p0  ;;  %p14274_p1 = scmp.lt.u32.totalorder %s14266_s23, %s15281_s7 }
 0x21f   : > { %p14273_p9 = por %p14272_p5, %p14271_p8 }
 0x220   : > { %p14269_p12 = pneg %p14268_p11 }
 0x221   : > { %p14275_p10 = por %p14274_p1, %p14273_p9 }
 0x223   : > { %p14276_p13 = pnand %p14275_p10, %p14269_p12 }
 0x225   : > { %14279 = shalt.err (!%p14276_p13)
}
 0x226   : > { %s14280_s28 = scalar_lea.vmem %s1022_s3, 64  ;;  %s14588_s4 = smov [#allocation22]  }
 0x227   : > { %p14281_p6 = scmp.ne.s32.totalorder %s1022_s3, %s14280_s28  ;;  %s14284_s0 = sshll.u32 %s14588_s4, 4  ;;  %s14285_s0 = int_to_ptr.vmem [resolvable:$false] %s14284_s0 }
 0x228   : > { %s14286_s10 = scalar_lea.vmem %s14285_s0, 128  ;;  %p14287_p4 = scmp.lt.s32.totalorder %s1022_s3, %s14285_s0 }
 0x229   : > { %p14282_p2 = pnand %p14281_p6, %p17600_p0  ;;  %p14288_p7 = scmp.lt.s32.totalorder %s14286_s10, %s14280_s28 }
 0x22b   : > { %p14283_p3 = pneg %p14282_p2  ;;  %p14289_p11 = por %p14288_p7, %p14287_p4 }
 0x22d   : > { %p14290_p5 = pnand %p14289_p11, %p14283_p3 }
 0x22f   : > { %14293 = shalt.err (!%p14290_p5)
}
 0x230   : > { %12664 = dma.hbm_to_vmem [thread:$0]  (%p17600_p0), %s15281_s7, 64, %s1022_s3, %s15044_s5  }
 0x231   : > { %s15306_s9 = scalar_lea.hbm %s17495_s16, %s15035_s18  ;;  %s1032_s22 = scalar_lea.vmem [#allocation23], %s15032_s1 }
 0x232   : > { %s1040_s20 = sshll.u32 %s1032_s22, 4  ;;  %s17550_s2 = sshll.u32 %s15029_s11, 11  ;;  %s1041_s20 = int_to_ptr.vmem [resolvable:$true] %s1040_s20 }
 0x233   : > { %s14294_s17 = scalar_lea.hbm %s15306_s9, 64  ;;  %s14298_s3 = scalar_lea.hbm %s17495_s16, 256 }
 0x234   : > { %p14295_p12 = scmp.ne.s32.totalorder %s15306_s9, %s14294_s17  ;;  %p14299_p1 = scmp.lt.u32.totalorder %s15306_s9, %s17495_s16 }
 0x235   : > { %p14300_p10 = scmp.lt.u32.totalorder %s14298_s3, %s14294_s17  ;;  %p14302_p6 = scmp.lt.u32.totalorder %s14294_s17, %s15306_s9 }
 0x236   : > { %p14296_p8 = pnand %p14295_p12, %p17600_p0 }
 0x237   : > { %p14301_p13 = por %p14300_p10, %p14299_p1 }
 0x238   : > { %p14297_p9 = pneg %p14296_p8 }
 0x239   : > { %p14303_p2 = por %p14302_p6, %p14301_p13 }
 0x23b   : > { %p14304_p3 = pnand %p14303_p2, %p14297_p9 }
 0x23d   : > { %14307 = shalt.err (!%p14304_p3)
}
 0x23e   : > { %s14308_s10 = scalar_lea.vmem %s1041_s20, 64  ;;  %s14589_s19 = smov [#allocation23]  }
 0x23f   : > { %p14309_p4 = scmp.ne.s32.totalorder %s1041_s20, %s14308_s10  ;;  %s14312_s23 = sshll.u32 %s14589_s19, 4  ;;  %s14313_s23 = int_to_ptr.vmem [resolvable:$false] %s14312_s23 }
 0x240   : > { %s14314_s22 = scalar_lea.vmem %s14313_s23, 128  ;;  %p14315_p5 = scmp.lt.s32.totalorder %s1041_s20, %s14313_s23 }
 0x241   : > { %p14310_p7 = pnand %p14309_p4, %p17600_p0  ;;  %p14316_p12 = scmp.lt.s32.totalorder %s14314_s22, %s14308_s10 }
 0x243   : > { %p14311_p11 = pneg %p14310_p7  ;;  %p14317_p8 = por %p14316_p12, %p14315_p5 }
 0x245   : > { %p14318_p1 = pnand %p14317_p8, %p14311_p11 }
 0x247   : > { %14321 = shalt.err (!%p14318_p1)
}
 0x248   : > { %12665 = dma.hbm_to_vmem [thread:$0]  (%p17600_p0), %s15306_s9, 64, %s1041_s20, %s15044_s5  }
 0x249   : > { %s17551_s17 = sshll.u32 %s14556_s30, 15  ;;  %s17609_s3 = sld [smem:[#allocation65_spill]] }
 0x24a   : > { %s1051_s0 = scalar_lea.vmem [#allocation24], %s17550_s2 }
 0x24b   : > { %s1058_s10 = sshll.u32 %s1051_s0, 4  ;;  %s15338_s10 = int_to_ptr.vmem [resolvable:$true] %s1058_s10 }
 0x24f   : > { %s15334_s4 = scalar_lea.hbm %s17609_s3, %s17551_s17  ;;  %s14326_s23 = scalar_lea.hbm %s17609_s3, 131072 }
 0x250   : > { %s14322_s19 = scalar_lea.hbm %s15334_s4, 32768  ;;  %p14327_p6 = scmp.lt.u32.totalorder %s15334_s4, %s17609_s3 }
 0x251   : > { %p14323_p9 = scmp.ne.s32.totalorder %s15334_s4, %s14322_s19  ;;  %p14328_p2 = scmp.lt.u32.totalorder %s14326_s23, %s14322_s19 }
 0x252   : > { %p14330_p4 = scmp.lt.u32.totalorder %s14322_s19, %s15334_s4 }
 0x253   : > { %p14324_p10 = pnand %p14323_p9, %p17600_p0  ;;  %p14329_p3 = por %p14328_p2, %p14327_p6 }
 0x255   : > { %p14325_p13 = pneg %p14324_p10  ;;  %p14331_p7 = por %p14330_p4, %p14329_p3 }
 0x257   : > { %p14332_p11 = pnand %p14331_p7, %p14325_p13 }
 0x259   : > { %14335 = shalt.err (!%p14332_p11)
}
 0x25a   : > { %s14336_s7 = scalar_lea.vmem %s15338_s10, 32768  ;;  %s14590_s0 = smov [#allocation24]  }
 0x25b   : > { %p14337_p5 = scmp.ne.s32.totalorder %s15338_s10, %s14336_s7  ;;  %s14340_s9 = sshll.u32 %s14590_s0, 4  ;;  %s14341_s9 = int_to_ptr.vmem [resolvable:$false] %s14340_s9 }
 0x25c   : > { %s14342_s20 = scalar_lea.vmem %s14341_s9, 65536  ;;  %p14343_p1 = scmp.lt.s32.totalorder %s15338_s10, %s14341_s9 }
 0x25d   : > { %p14338_p12 = pnand %p14337_p5, %p17600_p0  ;;  %p14344_p9 = scmp.lt.s32.totalorder %s14342_s20, %s14336_s7 }
 0x25f   : > { %p14339_p8 = pneg %p14338_p12  ;;  %p14345_p10 = por %p14344_p9, %p14343_p1 }
 0x261   : > { %p14346_p6 = pnand %p14345_p10, %p14339_p8 }
 0x263   : > { %14349 = shalt.err (!%p14346_p6)
}
 0x264   : > { %s14591_s19 = smov 2048   ;;  %s11718_s23 = sshll.u32 %s15029_s11, 4 }
 0x265   : > { %12666 = dma.hbm_to_vmem [thread:$0]  (%p17600_p0), %s15334_s4, 32768, %s15338_s10, %s15044_s5, %s14591_s19, %s14591_s19, %s14584_s6  }
 0x266   : > { %s12352_s22 = sshll.u32 %s14556_s30, 8  ;;  %s17610_s7 = sld [smem:[#allocation66_spill]] }
 0x267   : > { %s1072_s2 = scalar_lea.vmem [#allocation25], %s11718_s23  ;;  %s17612_s13 = sld [smem:[#allocation67_spill]] }
 0x268   : > { %s1080_s17 = sshll.u32 %s1072_s2, 4  ;;  %s1081_s17 = int_to_ptr.vmem [resolvable:$true] %s1080_s17 }
 0x26c   : > { %s17611_s9 = smov %s17610_s7  ;;  %s15368_s20 = scalar_lea.hbm %s17610_s7, %s12352_s22 }
 0x26d   : > { %s15375_s14 = scalar_lea.hbm %s17612_s13, %s12352_s22  ;;  %s14350_s6 = scalar_lea.hbm %s15368_s20, 256 }
 0x26e   : > { %p14351_p13 = scmp.ne.s32.totalorder %s15368_s20, %s14350_s6  ;;  %s14354_s19 = scalar_lea.hbm %s17611_s9, 1024 }
 0x26f   : > { %p14355_p4 = scmp.lt.u32.totalorder %s15368_s20, %s17611_s9  ;;  %p14356_p7 = scmp.lt.u32.totalorder %s14354_s19, %s14350_s6 }
 0x270   : > { %p14352_p2 = pnand %p14351_p13, %p17600_p0  ;;  %p14358_p5 = scmp.lt.u32.totalorder %s14350_s6, %s15368_s20 }
 0x271   : > { %p14357_p11 = por %p14356_p7, %p14355_p4 }
 0x272   : > { %p14353_p3 = pneg %p14352_p2 }
 0x273   : > { %p14359_p12 = por %p14358_p5, %p14357_p11 }
 0x275   : > { %p14360_p8 = pnand %p14359_p12, %p14353_p3 }
 0x277   : > { %14363 = shalt.err (!%p14360_p8)
}
 0x278   : > { %s14364_s12 = scalar_lea.vmem %s1081_s17, 256  ;;  %s14592_s2 = smov [#allocation25]  }
 0x279   : > { %p14365_p1 = scmp.ne.s32.totalorder %s1081_s17, %s14364_s12  ;;  %s14368_s3 = sshll.u32 %s14592_s2, 4  ;;  %s14369_s3 = int_to_ptr.vmem [resolvable:$false] %s14368_s3 }
 0x27a   : > { %s14370_s22 = scalar_lea.vmem %s14369_s3, 512  ;;  %p14371_p6 = scmp.lt.s32.totalorder %s1081_s17, %s14369_s3 }
 0x27b   : > { %p14366_p9 = pnand %p14365_p1, %p17600_p0  ;;  %p14372_p13 = scmp.lt.s32.totalorder %s14370_s22, %s14364_s12 }
 0x27d   : > { %p14367_p10 = pneg %p14366_p9  ;;  %p14373_p2 = por %p14372_p13, %p14371_p6 }
 0x27f   : > { %p14374_p4 = pnand %p14373_p2, %p14367_p10 }
 0x281   : > { %14377 = shalt.err (!%p14374_p4)
}
 0x282   : > { %12667 = dma.hbm_to_vmem [thread:$0]  (%p17600_p0), %s15368_s20, 256, %s1081_s17, %s15044_s5  }
 0x283   : > { %s1091_s7 = scalar_lea.vmem [#allocation26], %s11718_s23  ;;  %s17613_s4 = sshll.u32 %s14556_s30, 15 }
 0x284   : > { %s1099_s6 = sshll.u32 %s1091_s7, 4  ;;  %s17614_s28 = sld [smem:[#allocation68_spill]]  ;;  %s1100_s6 = int_to_ptr.vmem [resolvable:$true] %s1099_s6 }
 0x285   : > { %s14378_s12 = scalar_lea.hbm %s15375_s14, 256  ;;  %s14382_s22 = scalar_lea.hbm %s17612_s13, 1024 }
 0x286   : > { %p14379_p3 = scmp.ne.s32.totalorder %s15375_s14, %s14378_s12  ;;  %p14383_p5 = scmp.lt.u32.totalorder %s15375_s14, %s17612_s13 }
 0x287   : > { %p14384_p12 = scmp.lt.u32.totalorder %s14382_s22, %s14378_s12  ;;  %p14386_p1 = scmp.lt.u32.totalorder %s14378_s12, %s15375_s14 }
 0x288   : > { %p14380_p7 = pnand %p14379_p3, %p17600_p0 }
 0x289   : > { %p14385_p8 = por %p14384_p12, %p14383_p5 }
 0x28a   : > { %s15402_s0 = scalar_lea.hbm %s17614_s28, %s17613_s4  ;;  %p14381_p11 = pneg %p14380_p7 }
 0x28b   : > { %p14387_p9 = por %p14386_p1, %p14385_p8 }
 0x28d   : > { %p14388_p10 = pnand %p14387_p9, %p14381_p11 }
 0x28f   : > { %14391 = shalt.err (!%p14388_p10)
}
 0x290   : > { %s14392_s30 = scalar_lea.vmem %s1100_s6, 256  ;;  %s14593_s23 = smov [#allocation26]  }
 0x291   : > { %p14393_p6 = scmp.ne.s32.totalorder %s1100_s6, %s14392_s30  ;;  %s14396_s7 = sshll.u32 %s14593_s23, 4  ;;  %s14397_s7 = int_to_ptr.vmem [resolvable:$false] %s14396_s7 }
 0x292   : > { %s14398_s4 = scalar_lea.vmem %s14397_s7, 512  ;;  %p14399_p4 = scmp.lt.s32.totalorder %s1100_s6, %s14397_s7 }
 0x293   : > { %p14394_p13 = pnand %p14393_p6, %p17600_p0  ;;  %p14400_p3 = scmp.lt.s32.totalorder %s14398_s4, %s14392_s30 }
 0x295   : > { %p14395_p2 = pneg %p14394_p13  ;;  %p14401_p7 = por %p14400_p3, %p14399_p4 }
 0x297   : > { %p14402_p5 = pnand %p14401_p7, %p14395_p2 }
 0x299   : > { %14405 = shalt.err (!%p14402_p5)
}
 0x29a   : > { %12668 = dma.hbm_to_vmem [thread:$0]  (%p17600_p0), %s15375_s14, 256, %s1100_s6, %s15044_s5  }
 0x29b   : > { %s17615_s10 = sshll.u32 %s15029_s11, 11  ;;  %s14406_s2 = scalar_lea.hbm %s15402_s0, 32768 }
 0x29c   : > { %s1110_s19 = scalar_lea.vmem [#allocation27], %s17615_s10  ;;  %p14407_p11 = scmp.ne.s32.totalorder %s15402_s0, %s14406_s2 }
 0x29d   : > { %s1117_s12 = sshll.u32 %s1110_s19, 4  ;;  %s14410_s17 = scalar_lea.hbm %s17614_s28, 131072  ;;  %s15424_s12 = int_to_ptr.vmem [resolvable:$true] %s1117_s12 }
 0x29e   : > { %p14408_p12 = pnand %p14407_p11, %p17600_p0  ;;  %p14411_p1 = scmp.lt.u32.totalorder %s15402_s0, %s17614_s28 }
 0x29f   : > { %p14412_p9 = scmp.lt.u32.totalorder %s14410_s17, %s14406_s2  ;;  %p14414_p6 = scmp.lt.u32.totalorder %s14406_s2, %s15402_s0 }
 0x2a0   : > { %p14409_p8 = pneg %p14408_p12 }
 0x2a1   : > { %p14413_p10 = por %p14412_p9, %p14411_p1 }
 0x2a3   : > { %p14415_p13 = por %p14414_p6, %p14413_p10 }
 0x2a5   : > { %p14416_p2 = pnand %p14415_p13, %p14409_p8 }
 0x2a7   : > { %14419 = shalt.err (!%p14416_p2)
}
 0x2a8   : > { %s14420_s14 = scalar_lea.vmem %s15424_s12, 32768  ;;  %s14594_s11 = smov [#allocation27]  }
 0x2a9   : > { %p14421_p4 = scmp.ne.s32.totalorder %s15424_s12, %s14420_s14  ;;  %s14424_s6 = sshll.u32 %s14594_s11, 4  ;;  %s14425_s6 = int_to_ptr.vmem [resolvable:$false] %s14424_s6 }
 0x2aa   : > { %s14426_s23 = scalar_lea.vmem %s14425_s6, 65536  ;;  %p14427_p5 = scmp.lt.s32.totalorder %s15424_s12, %s14425_s6 }
 0x2ab   : > { %p14422_p3 = pnand %p14421_p4, %p17600_p0  ;;  %p14428_p11 = scmp.lt.s32.totalorder %s14426_s23, %s14420_s14 }
 0x2ad   : > { %p14423_p7 = pneg %p14422_p3  ;;  %p14429_p12 = por %p14428_p11, %p14427_p5 }
 0x2af   : > { %p14430_p1 = pnand %p14429_p12, %p14423_p7 }
 0x2b1   : > { %14433 = shalt.err (!%p14430_p1)
}
 0x2b2   : > { %s14595_s7 = smov 512   ;;  %s14596_s4 = smov 32  }
 0x2b3   : > { %12669 = dma.hbm_to_vmem [thread:$0]  (%p17600_p0), %s15402_s0, 32768, %s15424_s12, %s15044_s5, %s14595_s7, %s14595_s7, %s14596_s4  }
 0x2b4   : > { %s17616_s2 = sld [smem:[#allocation69_spill]]  ;;  %s1131_s22 = scalar_lea.vmem [#allocation28], %s15032_s1 }
 0x2b5   : > { %s1139_s17 = sshll.u32 %s1131_s22, 4  ;;  %s17617_s14 = sld [smem:[#allocation70_spill]]  ;;  %s1140_s17 = int_to_ptr.vmem [resolvable:$true] %s1139_s17 }
 0x2ba   : > { %s15452_s3 = scalar_lea.hbm %s17616_s2, %s15035_s18  ;;  %s14438_s23 = scalar_lea.hbm %s17616_s2, 256 }
 0x2bb   : > { %s15459_s11 = scalar_lea.hbm %s17617_s14, %s15035_s18  ;;  %s14434_s6 = scalar_lea.hbm %s15452_s3, 64 }
 0x2bc   : > { %p14435_p8 = scmp.ne.s32.totalorder %s15452_s3, %s14434_s6  ;;  %p14439_p6 = scmp.lt.u32.totalorder %s15452_s3, %s17616_s2 }
 0x2bd   : > { %p14440_p13 = scmp.lt.u32.totalorder %s14438_s23, %s14434_s6  ;;  %p14442_p4 = scmp.lt.u32.totalorder %s14434_s6, %s15452_s3 }
 0x2be   : > { %p14436_p9 = pnand %p14435_p8, %p17600_p0 }
 0x2bf   : > { %p14441_p2 = por %p14440_p13, %p14439_p6 }
 0x2c0   : > { %p14437_p10 = pneg %p14436_p9 }
 0x2c1   : > { %p14443_p3 = por %p14442_p4, %p14441_p2 }
 0x2c3   : > { %p14444_p7 = pnand %p14443_p3, %p14437_p10 }
 0x2c5   : > { %14447 = shalt.err (!%p14444_p7)
}
 0x2c6   : > { %s14448_s18 = scalar_lea.vmem %s1140_s17, 64  ;;  %s14597_s10 = smov [#allocation28]  }
 0x2c7   : > { %p14449_p5 = scmp.ne.s32.totalorder %s1140_s17, %s14448_s18  ;;  %s14452_s19 = sshll.u32 %s14597_s10, 4  ;;  %s14453_s19 = int_to_ptr.vmem [resolvable:$false] %s14452_s19 }
 0x2c8   : > { %s14454_s22 = scalar_lea.vmem %s14453_s19, 128  ;;  %p14455_p1 = scmp.lt.s32.totalorder %s1140_s17, %s14453_s19 }
 0x2c9   : > { %p14450_p11 = pnand %p14449_p5, %p17600_p0  ;;  %p14456_p8 = scmp.lt.s32.totalorder %s14454_s22, %s14448_s18 }
 0x2cb   : > { %p14451_p12 = pneg %p14450_p11  ;;  %p14457_p9 = por %p14456_p8, %p14455_p1 }
 0x2cd   : > { %p14458_p6 = pnand %p14457_p9, %p14451_p12 }
 0x2cf   : > { %14461 = shalt.err (!%p14458_p6)
}
 0x2d0   : > { %12670 = dma.hbm_to_vmem [thread:$0]  (%p17600_p0), %s15452_s3, 64, %s1140_s17, %s15044_s5  }
 0x2d1   : > { %s1150_s20 = scalar_lea.vmem [#allocation29], %s15032_s1  ;;  %s14462_s6 = scalar_lea.hbm %s15459_s11, 64 }
 0x2d2   : > { %s1158_s30 = sshll.u32 %s1150_s20, 4  ;;  %p14463_p10 = scmp.ne.s32.totalorder %s15459_s11, %s14462_s6  ;;  %s1159_s30 = int_to_ptr.vmem [resolvable:$true] %s1158_s30 }
 0x2d3   : > { %s14466_s23 = scalar_lea.hbm %s17617_s14, 256  ;;  %p14467_p4 = scmp.lt.u32.totalorder %s15459_s11, %s17617_s14 }
 0x2d4   : > { %p14464_p13 = pnand %p14463_p10, %p17600_p0  ;;  %p14468_p3 = scmp.lt.u32.totalorder %s14466_s23, %s14462_s6 }
 0x2d5   : > { %p14470_p5 = scmp.lt.u32.totalorder %s14462_s6, %s15459_s11 }
 0x2d6   : > { %p14465_p2 = pneg %p14464_p13  ;;  %p14469_p7 = por %p14468_p3, %p14467_p4 }
 0x2d8   : > { %p14471_p11 = por %p14470_p5, %p14469_p7 }
 0x2da   : > { %p14472_p12 = pnand %p14471_p11, %p14465_p2 }
 0x2dc   : > { %14475 = shalt.err (!%p14472_p12)
}
 0x2dd   : > { %s14476_s1 = scalar_lea.vmem %s1159_s30, 64  ;;  %s14598_s3 = smov [#allocation29]  }
 0x2de   : > { %p14477_p1 = scmp.ne.s32.totalorder %s1159_s30, %s14476_s1  ;;  %s14480_s17 = sshll.u32 %s14598_s3, 4  ;;  %s14481_s17 = int_to_ptr.vmem [resolvable:$false] %s14480_s17 }
 0x2df   : > { %s14482_s18 = scalar_lea.vmem %s14481_s17, 128  ;;  %p14483_p6 = scmp.lt.s32.totalorder %s1159_s30, %s14481_s17 }
 0x2e0   : > { %p14478_p8 = pnand %p14477_p1, %p17600_p0  ;;  %p14484_p10 = scmp.lt.s32.totalorder %s14482_s18, %s14476_s1 }
 0x2e2   : > { %p14479_p9 = pneg %p14478_p8  ;;  %p14485_p13 = por %p14484_p10, %p14483_p6 }
 0x2e4   : > { %p14486_p3 = pnand %p14485_p13, %p14479_p9 }
 0x2e6   : > { %14489 = shalt.err (!%p14486_p3)
}
 0x2e7   : > { %12671 = dma.hbm_to_vmem [thread:$0]  (%p17600_p0), %s15459_s11, 64, %s1159_s30, %s15044_s5  }
 0x2e8 PF: > { %s17618_s10 = sld [smem:[#allocation49_spill]] }
 0x2ee   : > { %p17619_p2 = scmp.ne.s32.totalorder %s17618_s10, 0 }
 0x2ef   : > { %s17620_s19 = sld [smem:[#allocation45_spill]] (!%p17619_p2) }
 0x2f0   : > { %1167 = sbr.rel (%p17619_p2) target bundleno = 6949 (0x1b25), region = 128 }
 0x2f5   : > { %p17621_p4 = scmp.eq.s32.totalorder (!%p17619_p2), %s17620_s19, 0 }
 0x2f7   : > { %14507 = dma.done.wait (%p17621_p4), [#allocation5], 32   ;;  %p17622_p7 = pmov %p17621_p4 }
 0x2f8   : > { %p17623_p5 = pmov %p17621_p4 }
 0x2f9   : > { %14509 = vsyncadd (%p17622_p7), [#allocation5], 4294967264 }
 0x2fa   : > { %14511 = dma.done.wait (%p17623_p5), [#allocation7], 1088   ;;  %p17624_p11 = pmov %p17621_p4 }
 0x2fb   : > { %p17625_p12 = pmov %p17621_p4 }
 0x2fc   : > { %14513 = vsyncadd (%p17624_p11), [#allocation7], 4294966208 }
 0x2fd   : > { %14515 = dma.done.wait (%p17625_p12), [#allocation10], 17408   ;;  %p17626_p0 = pmov %p17621_p4 }
 0x2ff   : > { %14517 = vsyncadd (%p17626_p0), [#allocation10], 4294949888  ;;  %p17627_p1 = pmov %p17626_p0 }
 0x300   : > { %p17628_p8 = pmov %p17626_p0 }
 0x301   : > { %14519 = dma.done.wait (%p17627_p1), [#allocation13], 64  }
 0x302   : > { %14521 = vsyncadd (%p17628_p8), [#allocation13], 4294967232  ;;  %s17629_s29 = sld [smem:[#allocation44_spill]]  ;;  %s17630_s5 = sld [smem:[#allocation48_spill]] }
 0x303   : > { %s1193_s11 = sand.u32 1, %s17620_s19  }
 0x304   : > { %s1194_s30 = scalar_lea.sflag [#allocation5], %s1193_s11 }
 0x308   : > { %s1195_s22 = sand.u32 1, %s17629_s29   ;;  %p17631_p9 = scmp.ne.s32.totalorder %s17630_s5, 0 }
 0x309   : > { %s15518_s20 = sshll.u32 %s1195_s22, 2 }
 0x30a   : > { %14523 = dma.done.wait (%p17631_p9), %s1194_s30, 115712  }
 0x30b   : > { %14525 = vsyncadd (%p17631_p9), %s1194_s30, 4294851584  ;;  %s12635_s0 = smul.u32 1536, %s1195_s22  ;;  %s11742_s12 = sshll.u32 %s1195_s22, 9 }
 0x30c   : > { %s11749_s23 = sshll.u32 %s1195_s22, 11  ;;  %s11750_s7 = sshll.u32 %s1195_s22, 4 }
 0x30d   : > { %s15526_s1 = scalar_lea.vmem [#allocation16], %s12635_s0  ;;  %s15528_s3 = scalar_lea.vmem [#allocation17], %s11742_s12 }
 0x30e   : > { %s1233_s17 = scalar_lea.vmem [#allocation18], %s15518_s20  ;;  %s15531_s18 = scalar_lea.vmem [#allocation19], %s11742_s12 }
 0x30f   : > { %s15533_s10 = scalar_lea.vmem [#allocation20], %s11742_s12  ;;  %s15538_s30 = scalar_lea.vmem [#allocation24], %s11749_s23 }
 0x310   : > { %s15540_s6 = scalar_lea.vmem [#allocation25], %s11750_s7  ;;  %s15542_s2 = scalar_lea.vmem [#allocation26], %s11750_s7 }
 0x311   : > { %s15544_s22 = scalar_lea.vmem [#allocation27], %s11749_s23  ;;  %p17632_p6 = pmov %p17626_p0 }
 0x312   : > { %p17633_p10 = pmov %p17626_p0 }
 0x313   : > { %14527 = dma.done.wait (%p17632_p6), [#allocation7], 64  }
 0x314   : > { %14529 = vsyncadd (%p17633_p10), [#allocation7], 4294967232  ;;  %p17634_p13 = pmov %p17626_p0 }
 0x315   : > { %p17635_p3 = pmov %p17626_p0 }
 0x316   : > { %14531 = dma.done.wait (%p17634_p13), [#allocation10], 64  }
 0x317   : > { %14533 = vsyncadd (%p17635_p3), [#allocation10], 4294967232  ;;  %p17636_p2 = pmov %p17626_p0 }
 0x318   : > { %p17637_p4 = pmov %p17626_p0 }
 0x319   : > { %14535 = dma.done.wait (%p17636_p2), [#allocation13], 4096  }
 0x31a   : > { %14537 = vsyncadd (%p17637_p4), [#allocation13], 4294963200  ;;  %p17638_p7 = pmov %p17626_p0 }
 0x31b   : > { %p17639_p5 = pmov %p17626_p0 }
 0x31c   : > { %14539 = dma.done.wait (%p17638_p7), [#allocation34], 16  }
 0x31d   : > { %14541 = vsyncadd (%p17639_p5), [#allocation34], 4294967280  ;;  %p17640_p11 = scmp.ne.s32.totalorder %s17620_s19, 0 }
 0x31e   : > { %v12823_v0 = vld [vmem:[#allocation6 + $0x4] ss:$16 sps:$4 sm:$0xff] (!%p17640_p11)   ;;  %v12825_v1 = vld [vmem:[#allocation6 + $0xc] ss:$16 sps:$4 sm:$0xff] (!%p17640_p11)   ;;  %v14599_v2 = vmov (!%p17640_p11), 0   ;;  %vm1566_vm0 = vcmask (!%p17640_p11), 261120  }
 0x31f   : > { %1493 = sbr.rel (%p17640_p11) target bundleno = 1156 (0x484), region = 236  ;;  %1602 = vmatprep.mubr.bf16.mxu0 (!%p17640_p11), %v14599_v2  ;;  %1643 = vmatprep.mubr.bf16.mxu1 (!%p17640_p11), %v14599_v2  ;;  %v12827_v3 = vld [vmem:[#allocation6] ss:$16 sps:$4 sm:$0xff] (!%p17640_p11)   ;;  %v12828_v4 = vld [vmem:[#allocation6 + $0x8] ss:$16 sps:$4 sm:$0xff] (!%p17640_p11)   ;;  %s17641_s23 = sld [smem:[#allocation56_spill]] (!%p17640_p11) }
 0x320   : > { %1570 = vmatprep.subr.bf16.mxu0 (!%p17640_p11), %v12823_v0  ;;  %1611 = vmatprep.subr.bf16.mxu1 (!%p17640_p11), %v12825_v1  ;;  %v12829_v5 = vld [vmem:[#allocation6 + $0x24] ss:$16 sps:$4 sm:$0xff] (!%p17640_p11)   ;;  %v12831_v6 = vld [vmem:[#allocation6 + $0x2c] ss:$16 sps:$4 sm:$0xff] (!%p17640_p11)   ;;  %v12833_v7 = vld [vmem:[#allocation6 + $0x20] ss:$16 sps:$4 sm:$0xff] (!%p17640_p11)  }
 0x321   : > { %1571 = vmatpush1.bf16.msra.mxu0 (!%p17640_p11), %v12827_v3  ;;  %1612 = vmatpush1.bf16.msra.mxu1 (!%p17640_p11), %v12828_v4  ;;  %v12834_v8 = vld [vmem:[#allocation6 + $0x28] ss:$16 sps:$4 sm:$0xff] (!%p17640_p11)   ;;  %v1494_v9 = vld [vmem:[#allocation4] sm:$0x3] (!%p17640_p11)  ;;  %v12835_v10 = vld [vmem:[#allocation11] ss:$16 sps:$4 sm:$0xff] (!%p17640_p11)  }
 0x322   : > { %1572 = vmatprep.subr.bf16.mxu0 (!%p17640_p11), %v12829_v5  ;;  %1613 = vmatprep.subr.bf16.mxu1 (!%p17640_p11), %v12831_v6  ;;  %v12837_v11 = vld [vmem:[#allocation11 + $0x4] ss:$16 sps:$4 sm:$0xff] (!%p17640_p11)   ;;  %v1495_v12 = vpack.c.bf16 (!%p17640_p11), %v1494_v9, %v1494_v9  ;;  %v12838_v13 = vld [vmem:[#allocation11 + $0x8] ss:$16 sps:$4 sm:$0xff] (!%p17640_p11)   ;;  %v12840_v14 = vld [vmem:[#allocation11 + $0xc] ss:$16 sps:$4 sm:$0xff] (!%p17640_p11)  }
 0x323   : > { %v12843_v15 = vld [vmem:[#allocation11 + $0x24] ss:$16 sps:$4 sm:$0xff] (!%p17640_p11)   ;;  %v12846_v16 = vld [vmem:[#allocation11 + $0x2c] ss:$16 sps:$4 sm:$0xff] (!%p17640_p11)   ;;  %v12841_v17 = vld [vmem:[#allocation11 + $0x20] ss:$16 sps:$4 sm:$0xff] (!%p17640_p11)  }
 0x324   : > { %v12844_v18 = vld [vmem:[#allocation11 + $0x28] ss:$16 sps:$4 sm:$0xff] (!%p17640_p11)   ;;  %v12849_v19 = vld [vmem:[#allocation11 + $0x44] ss:$16 sps:$4 sm:$0xff] (!%p17640_p11)   ;;  %v12852_v20 = vld [vmem:[#allocation11 + $0x4c] ss:$16 sps:$4 sm:$0xff] (!%p17640_p11)  }
 0x325   : > { %1573 = vmatpush1.bf16.msra.mxu0 (!%p17640_p11), %v12833_v7  ;;  %1614 = vmatpush1.bf16.msra.mxu1 (!%p17640_p11), %v12834_v8  ;;  %v12847_v21 = vld [vmem:[#allocation11 + $0x40] ss:$16 sps:$4 sm:$0xff] (!%p17640_p11)   ;;  %v12850_v22 = vld [vmem:[#allocation11 + $0x48] ss:$16 sps:$4 sm:$0xff] (!%p17640_p11)   ;;  %v12855_v23 = vld [vmem:[#allocation11 + $0x64] ss:$16 sps:$4 sm:$0xff] (!%p17640_p11)  }
 0x326   : > { %2477 = vmatprep.subr.bf16.mxu0 %v12837_v11  ;;  %2563 = vmatprep.subr.bf16.mxu1 %v12840_v14  ;;  %v12858_v24 = vld [vmem:[#allocation11 + $0x6c] ss:$16 sps:$4 sm:$0xff]   ;;  %v12853_v25 = vld [vmem:[#allocation11 + $0x60] ss:$16 sps:$4 sm:$0xff]   ;;  %v12856_v26 = vld [vmem:[#allocation11 + $0x68] ss:$16 sps:$4 sm:$0xff]  }
 0x327   : > { %v12861_v27 = vld [vmem:[#allocation11 + $0x84] ss:$16 sps:$4 sm:$0xff]   ;;  %v12864_v28 = vld [vmem:[#allocation11 + $0x8c] ss:$16 sps:$4 sm:$0xff]   ;;  %v12859_v29 = vld [vmem:[#allocation11 + $0x80] ss:$16 sps:$4 sm:$0xff]  }
 0x328   : > { %11768 = vmatmul.mubr.msk.bf16.vlgmr.msra.gmra.mrb[0].mxu0 %vm1566_vm0, %v1495_v12  ;;  %11769 = vmatmul.mubr.msk.bf16.vlgmr.msra.gmra.mrb[0].mxu1 %vm1566_vm0, %v1495_v12  ;;  %v12862_v30 = vld [vmem:[#allocation11 + $0x88] ss:$16 sps:$4 sm:$0xff]   ;;  %v12867_v31 = vld [vmem:[#allocation11 + $0xa4] ss:$16 sps:$4 sm:$0xff]   ;;  %v12870_v32 = vld [vmem:[#allocation11 + $0xac] ss:$16 sps:$4 sm:$0xff]  }
 0x329   : > { %2478 = vmatpush1.bf16.msra.mxu0 %v12835_v10  ;;  %2564 = vmatpush1.bf16.msra.mxu1 %v12838_v13  ;;  %v12865_v33 = vld [vmem:[#allocation11 + $0xa0] ss:$16 sps:$4 sm:$0xff]   ;;  %v12868_v34 = vld [vmem:[#allocation11 + $0xa8] ss:$16 sps:$4 sm:$0xff]   ;;  %v12873_v35 = vld [vmem:[#allocation11 + $0xc4] ss:$16 sps:$4 sm:$0xff]  }
 0x32a   : > { %2479 = vmatprep.subr.bf16.mxu0 %v12843_v15  ;;  %2565 = vmatprep.subr.bf16.mxu1 %v12846_v16  ;;  %v12876_v36 = vld [vmem:[#allocation11 + $0xcc] ss:$16 sps:$4 sm:$0xff]   ;;  %v12871_v37 = vld [vmem:[#allocation11 + $0xc0] ss:$16 sps:$4 sm:$0xff]   ;;  %v12874_v38 = vld [vmem:[#allocation11 + $0xc8] ss:$16 sps:$4 sm:$0xff]  }
 0x32b   : > { %v12879_v39 = vld [vmem:[#allocation11 + $0xe4] ss:$16 sps:$4 sm:$0xff]   ;;  %v12882_v40 = vld [vmem:[#allocation11 + $0xec] ss:$16 sps:$4 sm:$0xff]   ;;  %v12877_v41 = vld [vmem:[#allocation11 + $0xe0] ss:$16 sps:$4 sm:$0xff]  }
 0x32c   : > { %v12880_v42 = vld [vmem:[#allocation11 + $0xe8] ss:$16 sps:$4 sm:$0xff]   ;;  %v12885_v43 = vld [vmem:[#allocation11 + $0x104] ss:$16 sps:$4 sm:$0xff]   ;;  %v12888_v44 = vld [vmem:[#allocation11 + $0x10c] ss:$16 sps:$4 sm:$0xff]  }
 0x32d   : > { %2480 = vmatpush1.bf16.msra.mxu0 %v12841_v17  ;;  %2566 = vmatpush1.bf16.msra.mxu1 %v12844_v18  ;;  %v12883_v45 = vld [vmem:[#allocation11 + $0x100] ss:$16 sps:$4 sm:$0xff]   ;;  %v12886_v46 = vld [vmem:[#allocation11 + $0x108] ss:$16 sps:$4 sm:$0xff]   ;;  %v12891_v47 = vld [vmem:[#allocation11 + $0x124] ss:$16 sps:$4 sm:$0xff]  }
 0x32e   : > { %2481 = vmatprep.subr.bf16.mxu0 %v12849_v19  ;;  %2567 = vmatprep.subr.bf16.mxu1 %v12852_v20  ;;  %v12894_v48 = vld [vmem:[#allocation11 + $0x12c] ss:$16 sps:$4 sm:$0xff]   ;;  %v12889_v49 = vld [vmem:[#allocation11 + $0x120] ss:$16 sps:$4 sm:$0xff]   ;;  %v12892_v50 = vld [vmem:[#allocation11 + $0x128] ss:$16 sps:$4 sm:$0xff]  }
 0x32f   : > { %v12897_v51 = vld [vmem:[#allocation11 + $0x144] ss:$16 sps:$4 sm:$0xff]   ;;  %v12900_v52 = vld [vmem:[#allocation11 + $0x14c] ss:$16 sps:$4 sm:$0xff]   ;;  %v12895_v53 = vld [vmem:[#allocation11 + $0x140] ss:$16 sps:$4 sm:$0xff]  }
 0x330   : > { %v12898_v54 = vld [vmem:[#allocation11 + $0x148] ss:$16 sps:$4 sm:$0xff]   ;;  %v12903_v55 = vld [vmem:[#allocation11 + $0x164] ss:$16 sps:$4 sm:$0xff]   ;;  %v12906_v58 = vld [vmem:[#allocation11 + $0x16c] ss:$16 sps:$4 sm:$0xff]  }
 0x331   : > { %2482 = vmatpush1.bf16.msra.mxu0 %v12847_v21  ;;  %2568 = vmatpush1.bf16.msra.mxu1 %v12850_v22  ;;  %v1676_v56 = vld [vmem:[#allocation9 + $0x8] sm:$0xff]  ;;  %v12901_v60 = vld [vmem:[#allocation11 + $0x160] ss:$16 sps:$4 sm:$0xff]   ;;  %v12909_v62 = vld [vmem:[#allocation11 + $0x184] ss:$16 sps:$4 sm:$0xff]  }
 0x332   : > { %2483 = vmatprep.subr.bf16.mxu0 %v12855_v23  ;;  %2569 = vmatprep.subr.bf16.mxu1 %v12858_v24  ;;  %v1680_v57 = vld [vmem:[#allocation9 + $0x28] sm:$0xff]  ;;  %v12907_v0 = vld [vmem:[#allocation11 + $0x180] ss:$16 sps:$4 sm:$0xff]   ;;  %v12915_v2 = vld [vmem:[#allocation11 + $0x1a4] ss:$16 sps:$4 sm:$0xff]  }
 0x333   : > { %v1684_v59 = vpack.c.bf16 %v1680_v57, %v1676_v56  ;;  %v12904_v61 = vld [vmem:[#allocation11 + $0x168] ss:$16 sps:$4 sm:$0xff]   ;;  %v12912_v63 = vld [vmem:[#allocation11 + $0x18c] ss:$16 sps:$4 sm:$0xff]   ;;  %v12913_v4 = vld [vmem:[#allocation11 + $0x1a0] ss:$16 sps:$4 sm:$0xff]  }
 0x334   : > { %v12910_v1 = vld [vmem:[#allocation11 + $0x188] ss:$16 sps:$4 sm:$0xff]   ;;  %v12918_v3 = vld [vmem:[#allocation11 + $0x1ac] ss:$16 sps:$4 sm:$0xff]   ;;  %v12921_v6 = vld [vmem:[#allocation11 + $0x1c4] ss:$16 sps:$4 sm:$0xff]  }
 0x335   : > { %2484 = vmatpush1.bf16.msra.mxu0 %v12853_v25  ;;  %2570 = vmatpush1.bf16.msra.mxu1 %v12856_v26  ;;  %v12916_v5 = vld [vmem:[#allocation11 + $0x1a8] ss:$16 sps:$4 sm:$0xff]   ;;  %v12924_v7 = vld [vmem:[#allocation11 + $0x1cc] ss:$16 sps:$4 sm:$0xff]   ;;  %v12919_v8 = vld [vmem:[#allocation11 + $0x1c0] ss:$16 sps:$4 sm:$0xff]  }
 0x336   : > { %2485 = vmatprep.subr.bf16.mxu0 %v12861_v27  ;;  %2571 = vmatprep.subr.bf16.mxu1 %v12864_v28  ;;  %v12922_v9 = vld [vmem:[#allocation11 + $0x1c8] ss:$16 sps:$4 sm:$0xff]   ;;  %v12927_v10 = vld [vmem:[#allocation11 + $0x1e4] ss:$16 sps:$4 sm:$0xff]   ;;  %v12930_v11 = vld [vmem:[#allocation11 + $0x1ec] ss:$16 sps:$4 sm:$0xff]  }
 0x337   : > { %2509 = vmatprep.mubr.bf16.mxu0 %v1684_v59  ;;  %2595 = vmatprep.mubr.bf16.mxu1 %v1684_v59  ;;  %v12925_v12 = vld [vmem:[#allocation11 + $0x1e0] ss:$16 sps:$4 sm:$0xff]   ;;  %v12928_v13 = vld [vmem:[#allocation11 + $0x1e8] ss:$16 sps:$4 sm:$0xff]   ;;  %v12933_v16 = vld [vmem:[#allocation11 + $0x204] ss:$16 sps:$4 sm:$0xff]  }
 0x338   : > { %v1675_v14 = vld [vmem:[#allocation9] sm:$0xff]  ;;  %v12936_v17 = vld [vmem:[#allocation11 + $0x20c] ss:$16 sps:$4 sm:$0xff]   ;;  %v12934_v20 = vld [vmem:[#allocation11 + $0x208] ss:$16 sps:$4 sm:$0xff]  }
 0x339   : > { %2486 = vmatpush1.bf16.msra.mxu0 %v12859_v29  ;;  %2572 = vmatpush1.bf16.msra.mxu1 %v12862_v30  ;;  %v1679_v15 = vld [vmem:[#allocation9 + $0x20] sm:$0xff]  ;;  %v12942_v22 = vld [vmem:[#allocation11 + $0x22c] ss:$16 sps:$4 sm:$0xff]   ;;  %v12940_v24 = vld [vmem:[#allocation11 + $0x228] ss:$16 sps:$4 sm:$0xff]  }
 0x33a   : > { %2487 = vmatprep.subr.bf16.mxu0 %v12867_v31  ;;  %2573 = vmatprep.subr.bf16.mxu1 %v12870_v32  ;;  %v12931_v18 = vld [vmem:[#allocation11 + $0x200] ss:$16 sps:$4 sm:$0xff]   ;;  %v1683_v19 = vpack.c.bf16 %v1679_v15, %v1675_v14  ;;  %v12939_v21 = vld [vmem:[#allocation11 + $0x224] ss:$16 sps:$4 sm:$0xff]   ;;  %v12948_v26 = vld [vmem:[#allocation11 + $0x24c] ss:$16 sps:$4 sm:$0xff]  }
 0x33b   : > { %v12937_v23 = vld [vmem:[#allocation11 + $0x220] ss:$16 sps:$4 sm:$0xff]   ;;  %v12945_v25 = vld [vmem:[#allocation11 + $0x244] ss:$16 sps:$4 sm:$0xff]   ;;  %v12946_v28 = vld [vmem:[#allocation11 + $0x248] ss:$16 sps:$4 sm:$0xff]  }
 0x33c   : > { %v12943_v27 = vld [vmem:[#allocation11 + $0x240] ss:$16 sps:$4 sm:$0xff]   ;;  %v12951_v29 = vld [vmem:[#allocation11 + $0x264] ss:$16 sps:$4 sm:$0xff]   ;;  %v12954_v30 = vld [vmem:[#allocation11 + $0x26c] ss:$16 sps:$4 sm:$0xff]  }
 0x33d   : > { %2488 = vmatpush1.bf16.msra.mxu0 %v12865_v33  ;;  %2574 = vmatpush1.bf16.msra.mxu1 %v12868_v34  ;;  %v12949_v31 = vld [vmem:[#allocation11 + $0x260] ss:$16 sps:$4 sm:$0xff]   ;;  %v12952_v32 = vld [vmem:[#allocation11 + $0x268] ss:$16 sps:$4 sm:$0xff]   ;;  %v12957_v33 = vld [vmem:[#allocation11 + $0x284] ss:$16 sps:$4 sm:$0xff]  }
 0x33e   : > { %2489 = vmatprep.subr.bf16.mxu0 %v12873_v35  ;;  %2575 = vmatprep.subr.bf16.mxu1 %v12876_v36  ;;  %v12960_v34 = vld [vmem:[#allocation11 + $0x28c] ss:$16 sps:$4 sm:$0xff]   ;;  %v12955_v35 = vld [vmem:[#allocation11 + $0x280] ss:$16 sps:$4 sm:$0xff]   ;;  %v12958_v36 = vld [vmem:[#allocation11 + $0x288] ss:$16 sps:$4 sm:$0xff]  }
 0x33f   : > { %v12987_v56 = vld [vmem:[#allocation11 + $0x324] ss:$16 sps:$4 sm:$0xff]   ;;  %v12990_v57 = vld [vmem:[#allocation11 + $0x32c] ss:$16 sps:$4 sm:$0xff]   ;;  %v12988_v59 = vld [vmem:[#allocation11 + $0x328] ss:$16 sps:$4 sm:$0xff]  }
 0x340   : > { %v13015_v14 = vld [vmem:[#allocation11 + $0x3c0] ss:$16 sps:$4 sm:$0xff]   ;;  %v13018_v15 = vld [vmem:[#allocation11 + $0x3c8] ss:$16 sps:$4 sm:$0xff]  }
 0x341   : > { %2490 = vmatpush1.bf16.msra.mxu0 %v12871_v37  ;;  %2576 = vmatpush1.bf16.msra.mxu1 %v12874_v38  ;;  %v12963_v37 = vld [vmem:[#allocation11 + $0x2a4] ss:$16 sps:$4 sm:$0xff]   ;;  %v12966_v38 = vld [vmem:[#allocation11 + $0x2ac] ss:$16 sps:$4 sm:$0xff]  }
 0x342   : > { %2491 = vmatprep.subr.bf16.mxu0 %v12879_v39  ;;  %2577 = vmatprep.subr.bf16.mxu1 %v12882_v40  ;;  %v12961_v39 = vld [vmem:[#allocation11 + $0x2a0] ss:$16 sps:$4 sm:$0xff]   ;;  %v12964_v40 = vld [vmem:[#allocation11 + $0x2a8] ss:$16 sps:$4 sm:$0xff]  }
 0x345   : > { %2492 = vmatpush1.bf16.msra.mxu0 %v12877_v41  ;;  %2578 = vmatpush1.bf16.msra.mxu1 %v12880_v42  ;;  %v1678_v41 = vld [vmem:[#allocation9 + $0x18] sm:$0xff] }
 0x346   : > { %2493 = vmatprep.subr.bf16.mxu0 %v12885_v43  ;;  %2579 = vmatprep.subr.bf16.mxu1 %v12888_v44  ;;  %v1682_v42 = vld [vmem:[#allocation9 + $0x38] sm:$0xff]  ;;  %v12969_v43 = vld [vmem:[#allocation11 + $0x2c4] ss:$16 sps:$4 sm:$0xff]  }
 0x347   : > { %v12972_v44 = vld [vmem:[#allocation11 + $0x2cc] ss:$16 sps:$4 sm:$0xff]  }
 0x349   : > { %2494 = vmatpush1.bf16.msra.mxu0 %v12883_v45  ;;  %2580 = vmatpush1.bf16.msra.mxu1 %v12886_v46  ;;  %v1686_v45 = vpack.c.bf16 %v1682_v42, %v1678_v41  ;;  %v12967_v46 = vld [vmem:[#allocation11 + $0x2c0] ss:$16 sps:$4 sm:$0xff]  }
 0x34a   : > { %2495 = vmatprep.subr.bf16.mxu0 %v12891_v47  ;;  %2581 = vmatprep.subr.bf16.mxu1 %v12894_v48  ;;  %v12970_v47 = vld [vmem:[#allocation11 + $0x2c8] ss:$16 sps:$4 sm:$0xff]   ;;  %v12975_v48 = vld [vmem:[#allocation11 + $0x2e4] ss:$16 sps:$4 sm:$0xff]  }
 0x34d   : > { %2496 = vmatpush1.bf16.msra.mxu0 %v12889_v49  ;;  %2582 = vmatpush1.bf16.msra.mxu1 %v12892_v50  ;;  %v12978_v49 = vld [vmem:[#allocation11 + $0x2ec] ss:$16 sps:$4 sm:$0xff]   ;;  %v12973_v50 = vld [vmem:[#allocation11 + $0x2e0] ss:$16 sps:$4 sm:$0xff]  }
 0x34e   : > { %2497 = vmatprep.subr.bf16.mxu0 %v12897_v51  ;;  %2583 = vmatprep.subr.bf16.mxu1 %v12900_v52  ;;  %v12976_v51 = vld [vmem:[#allocation11 + $0x2e8] ss:$16 sps:$4 sm:$0xff]   ;;  %v12981_v52 = vld [vmem:[#allocation11 + $0x304] ss:$16 sps:$4 sm:$0xff]  }
 0x351   : > { %2498 = vmatpush1.bf16.msra.mxu0 %v12895_v53  ;;  %2584 = vmatpush1.bf16.msra.mxu1 %v12898_v54  ;;  %v12984_v53 = vld [vmem:[#allocation11 + $0x30c] ss:$16 sps:$4 sm:$0xff]   ;;  %v12979_v54 = vld [vmem:[#allocation11 + $0x300] ss:$16 sps:$4 sm:$0xff]  }
 0x352   : > { %2499 = vmatprep.subr.bf16.mxu0 %v12903_v55  ;;  %2585 = vmatprep.subr.bf16.mxu1 %v12906_v58  ;;  %v12982_v55 = vld [vmem:[#allocation11 + $0x308] ss:$16 sps:$4 sm:$0xff]   ;;  %v12985_v58 = vld [vmem:[#allocation11 + $0x320] ss:$16 sps:$4 sm:$0xff]  }
 0x355   : > { %2500 = vmatpush1.bf16.msra.mxu0 %v12901_v60  ;;  %2586 = vmatpush1.bf16.msra.mxu1 %v12904_v61  ;;  %v12993_v60 = vld [vmem:[#allocation11 + $0x344] ss:$16 sps:$4 sm:$0xff]   ;;  %v12996_v61 = vld [vmem:[#allocation11 + $0x34c] ss:$16 sps:$4 sm:$0xff]  }
 0x356   : > { %2501 = vmatprep.subr.bf16.mxu0 %v12909_v62  ;;  %2587 = vmatprep.subr.bf16.mxu1 %v12912_v63  ;;  %v12991_v62 = vld [vmem:[#allocation11 + $0x340] ss:$16 sps:$4 sm:$0xff]   ;;  %v12994_v63 = vld [vmem:[#allocation11 + $0x348] ss:$16 sps:$4 sm:$0xff]  }
 0x359   : > { %2502 = vmatpush1.bf16.msra.mxu0 %v12907_v0  ;;  %2588 = vmatpush1.bf16.msra.mxu1 %v12910_v1  ;;  %v12999_v0 = vld [vmem:[#allocation11 + $0x364] ss:$16 sps:$4 sm:$0xff]   ;;  %v13002_v1 = vld [vmem:[#allocation11 + $0x36c] ss:$16 sps:$4 sm:$0xff]  }
 0x35a   : > { %2503 = vmatprep.subr.bf16.mxu0 %v12915_v2  ;;  %2589 = vmatprep.subr.bf16.mxu1 %v12918_v3  ;;  %v12997_v2 = vld [vmem:[#allocation11 + $0x360] ss:$16 sps:$4 sm:$0xff]   ;;  %v13000_v3 = vld [vmem:[#allocation11 + $0x368] ss:$16 sps:$4 sm:$0xff]  }
 0x35d   : > { %2504 = vmatpush1.bf16.msra.mxu0 %v12913_v4  ;;  %2590 = vmatpush1.bf16.msra.mxu1 %v12916_v5  ;;  %v13005_v4 = vld [vmem:[#allocation11 + $0x384] ss:$16 sps:$4 sm:$0xff]   ;;  %v13008_v5 = vld [vmem:[#allocation11 + $0x38c] ss:$16 sps:$4 sm:$0xff]  }
 0x35e   : > { %2505 = vmatprep.subr.bf16.mxu0 %v12921_v6  ;;  %2591 = vmatprep.subr.bf16.mxu1 %v12924_v7  ;;  %v13003_v6 = vld [vmem:[#allocation11 + $0x380] ss:$16 sps:$4 sm:$0xff]   ;;  %v13006_v7 = vld [vmem:[#allocation11 + $0x388] ss:$16 sps:$4 sm:$0xff]  }
 0x361   : > { %2506 = vmatpush1.bf16.msra.mxu0 %v12919_v8  ;;  %2592 = vmatpush1.bf16.msra.mxu1 %v12922_v9  ;;  %v13011_v8 = vld [vmem:[#allocation11 + $0x3a4] ss:$16 sps:$4 sm:$0xff]   ;;  %v13014_v9 = vld [vmem:[#allocation11 + $0x3ac] ss:$16 sps:$4 sm:$0xff]  }
 0x362   : > { %2507 = vmatprep.subr.bf16.mxu0 %v12927_v10  ;;  %2593 = vmatprep.subr.bf16.mxu1 %v12930_v11  ;;  %v13009_v10 = vld [vmem:[#allocation11 + $0x3a0] ss:$16 sps:$4 sm:$0xff]   ;;  %v13012_v11 = vld [vmem:[#allocation11 + $0x3a8] ss:$16 sps:$4 sm:$0xff]  }
 0x365   : > { %2508 = vmatpush1.bf16.msra.mxu0 %v12925_v12  ;;  %2594 = vmatpush1.bf16.msra.mxu1 %v12928_v13  ;;  %v13017_v12 = vld [vmem:[#allocation11 + $0x3c4] ss:$16 sps:$4 sm:$0xff]   ;;  %v13020_v13 = vld [vmem:[#allocation11 + $0x3cc] ss:$16 sps:$4 sm:$0xff]  }
 0x366   : > { %2520 = vmatprep.subr.bf16.mxu0 %v12933_v16  ;;  %2606 = vmatprep.subr.bf16.mxu1 %v12936_v17  ;;  %v13023_v16 = vld [vmem:[#allocation11 + $0x3e4] ss:$16 sps:$4 sm:$0xff]   ;;  %v13026_v17 = vld [vmem:[#allocation11 + $0x3ec] ss:$16 sps:$4 sm:$0xff]  }
 0x368   : > { %2510 = vmatmul.mubr.bf16.vlgmr.msra.gmra.mrb[4].mxu0 %v1683_v19  ;;  %2596 = vmatmul.mubr.bf16.vlgmr.msra.gmra.mrb[4].mxu1 %v1683_v19  ;;  %v13024_v19 = vld [vmem:[#allocation11 + $0x3e8] ss:$16 sps:$4 sm:$0xff]  }
 0x369   : > { %2521 = vmatpush1.bf16.msra.mxu0 %v12931_v18  ;;  %2607 = vmatpush1.bf16.msra.mxu1 %v12934_v20  ;;  %v13021_v18 = vld [vmem:[#allocation11 + $0x3e0] ss:$16 sps:$4 sm:$0xff]  }
 0x36a   : > { %2522 = vmatprep.subr.bf16.mxu0 %v12939_v21  ;;  %2608 = vmatprep.subr.bf16.mxu1 %v12942_v22  ;;  %v1677_v20 = vld [vmem:[#allocation9 + $0x10] sm:$0xff] }
 0x36b   : > { %2552 = vmatprep.mubr.bf16.mxu0 %v1686_v45  ;;  %2638 = vmatprep.mubr.bf16.mxu1 %v1686_v45  ;;  %v1681_v21 = vld [vmem:[#allocation9 + $0x30] sm:$0xff] }
 0x36c   : > { %v1685_v22 = vpack.c.bf16 %v1681_v21, %v1677_v20 }
 0x36d   : > { %2523 = vmatpush1.bf16.msra.mxu0 %v12937_v23  ;;  %2609 = vmatpush1.bf16.msra.mxu1 %v12940_v24  ;;  %v1506_v23 = vlaneseq }
 0x36e   : > { %2524 = vmatprep.subr.bf16.mxu0 %v12945_v25  ;;  %2610 = vmatprep.subr.bf16.mxu1 %v12948_v26 }
 0x36f   : > { %v1507_v24 = vshrl.u32 %v1506_v23, 7 }
 0x371   : > { %2525 = vmatpush1.bf16.msra.mxu0 %v12943_v27  ;;  %2611 = vmatpush1.bf16.msra.mxu1 %v12946_v28  ;;  %v1508_v25 = vsub.s32 0, %v1507_v24  ;;  %v1516_v26 = vsub.s32 2, %v1507_v24  ;;  %v1504_v27 = vld [vmem:[#allocation8] sm:$0xf]  ;;  %v1512_v28 = vsub.s32 1, %v1507_v24 }
 0x372   : > { %2526 = vmatprep.subr.bf16.mxu0 %v12951_v29  ;;  %2612 = vmatprep.subr.bf16.mxu1 %v12954_v30  ;;  %v14600_v29 = vmov 1983009808  }
 0x373   : > { %v1659_v30 = vunpack.c.l.s4 %v14600_v29 }
 0x375   : > { %2527 = vmatpush1.bf16.msra.mxu0 %v12949_v31  ;;  %2613 = vmatpush1.bf16.msra.mxu1 %v12952_v32  ;;  %v1520_v31 = vsub.s32 3, %v1507_v24  ;;  %v1509_v32 = vrot.slane %v1504_v27, %v1508_v25 }
 0x376   : > { %2528 = vmatprep.subr.bf16.mxu0 %v12957_v33  ;;  %2614 = vmatprep.subr.bf16.mxu1 %v12960_v34  ;;  %v1517_v33 = vrot.slane %v1504_v27, %v1516_v26  ;;  %v1513_v34 = vrot.slane %v1504_v27, %v1512_v28 }
 0x379   : > { %2529 = vmatpush1.bf16.msra.mxu0 %v12955_v35  ;;  %2615 = vmatpush1.bf16.msra.mxu1 %v12958_v36  ;;  %v1660_v35 = vunpack.c.0.s8 %v1659_v30  ;;  %v1521_v36 = vrot.slane %v1504_v27, %v1520_v31 }
 0x37a   : > { %2530 = vmatprep.subr.bf16.mxu0 %v12963_v37  ;;  %2616 = vmatprep.subr.bf16.mxu1 %v12966_v38 }
 0x37d   : > { %2531 = vmatpush1.bf16.msra.mxu0 %v12961_v39  ;;  %2617 = vmatpush1.bf16.msra.mxu1 %v12964_v40 }
 0x37e   : > { %2532 = vmatprep.subr.bf16.mxu0 %v12969_v43  ;;  %2618 = vmatprep.subr.bf16.mxu1 %v12972_v44  ;;  %v1663_v44 = vsub.s32 %v1660_v35, %v1507_v24 }
 0x381   : > { %2533 = vmatpush1.bf16.msra.mxu0 %v12967_v46  ;;  %2619 = vmatpush1.bf16.msra.mxu1 %v12970_v47 }
 0x382   : > { %2534 = vmatprep.subr.bf16.mxu0 %v12975_v48  ;;  %2620 = vmatprep.subr.bf16.mxu1 %v12978_v49 }
 0x385   : > { %2535 = vmatpush1.bf16.msra.mxu0 %v12973_v50  ;;  %2621 = vmatpush1.bf16.msra.mxu1 %v12976_v51 }
 0x386   : > { %2536 = vmatprep.subr.bf16.mxu0 %v12981_v52  ;;  %2622 = vmatprep.subr.bf16.mxu1 %v12984_v53 }
 0x389   : > { %2537 = vmatpush1.bf16.msra.mxu0 %v12979_v54  ;;  %2623 = vmatpush1.bf16.msra.mxu1 %v12982_v55  ;;  %v1815_v55 = vld [vmem:[#allocation12] sm:$0xf] }
 0x38a   : > { %2538 = vmatprep.subr.bf16.mxu0 %v12987_v56  ;;  %2624 = vmatprep.subr.bf16.mxu1 %v12990_v57  ;;  %v1820_v56 = vrot.slane %v1815_v55, %v1508_v25  ;;  %v1828_v57 = vrot.slane %v1815_v55, %v1516_v26 }
 0x38d   : > { %2539 = vmatpush1.bf16.msra.mxu0 %v12985_v58  ;;  %2625 = vmatpush1.bf16.msra.mxu1 %v12988_v59  ;;  %v1824_v58 = vrot.slane %v1815_v55, %v1512_v28  ;;  %v1832_v59 = vrot.slane %v1815_v55, %v1520_v31 }
 0x38e   : > { %2540 = vmatprep.subr.bf16.mxu0 %v12993_v60  ;;  %2626 = vmatprep.subr.bf16.mxu1 %v12996_v61  ;;  %v2649_v61 = vld [vmem:[%s17641_s23] sm:$0xff] }
 0x391   : > { %2541 = vmatpush1.bf16.msra.mxu0 %v12991_v62  ;;  %2627 = vmatpush1.bf16.msra.mxu1 %v12994_v63  ;;  %v2651_v63 = vld [vmem:[%s17641_s23 + $0x10] sm:$0xff] }
 0x392   : > { %2542 = vmatprep.subr.bf16.mxu0 %v12999_v0  ;;  %2628 = vmatprep.subr.bf16.mxu1 %v13002_v1 }
 0x395   : > { %2543 = vmatpush1.bf16.msra.mxu0 %v12997_v2  ;;  %2629 = vmatpush1.bf16.msra.mxu1 %v13000_v3  ;;  %v2650_v3 = vld [vmem:[%s17641_s23 + $0x8] sm:$0xff] }
 0x396   : > { %2544 = vmatprep.subr.bf16.mxu0 %v13005_v4  ;;  %2630 = vmatprep.subr.bf16.mxu1 %v13008_v5  ;;  %v2652_v5 = vld [vmem:[%s17641_s23 + $0x18] sm:$0xff] }
 0x399   : > { %2545 = vmatpush1.bf16.msra.mxu0 %v13003_v6  ;;  %2631 = vmatpush1.bf16.msra.mxu1 %v13006_v7 }
 0x39a   : > { %2546 = vmatprep.subr.bf16.mxu0 %v13011_v8  ;;  %2632 = vmatprep.subr.bf16.mxu1 %v13014_v9 }
 0x39d   : > { %2547 = vmatpush1.bf16.msra.mxu0 %v13009_v10  ;;  %2633 = vmatpush1.bf16.msra.mxu1 %v13012_v11 }
 0x39e   : > { %2548 = vmatprep.subr.bf16.mxu0 %v13017_v12  ;;  %2634 = vmatprep.subr.bf16.mxu1 %v13020_v13 }
 0x3a1   : > { %2549 = vmatpush1.bf16.msra.mxu0 %v13015_v14  ;;  %2635 = vmatpush1.bf16.msra.mxu1 %v13018_v15 }
 0x3a2   : > { %2550 = vmatprep.subr.bf16.mxu0 %v13023_v16  ;;  %2636 = vmatprep.subr.bf16.mxu1 %v13026_v17 }
 0x3a5   : > { %2551 = vmatpush1.bf16.msra.mxu0 %v13021_v18  ;;  %2637 = vmatpush1.bf16.msra.mxu1 %v13024_v19 }
 0x3a8   : > { %2553 = vmatmul.mubr.bf16.vlgmr.msra.gmra.mrb[4].mxu0 %v1685_v22  ;;  %2639 = vmatmul.mubr.bf16.vlgmr.msra.gmra.mrb[4].mxu1 %v1685_v22 }
 0x3fb   : > { %v1604_v37 = vpop.f32.mrb[0].mxu0  ;;  %v1645_v38 = vpop.f32.mrb[0].mxu1 }
 0x3fc   : > { %v1605_v39 = vadd.f32 %v1604_v37, %v1509_v32  ;;  %v1646_v40 = vadd.f32 %v1645_v38, %v1517_v33  ;;  %v1606_v41 = vpop.f32.mrb[1].mxu0  ;;  %v1647_v42 = vpop.f32.mrb[1].mxu1 }
 0x3fd   : > { %v1607_v43 = vadd.f32 %v1606_v41, %v1513_v34  ;;  %v1648_v45 = vadd.f32 %v1647_v42, %v1521_v36  ;;  %v1608_v46 = vpop.f32.mrb[2].mxu0  ;;  %v1649_v47 = vpop.f32.mrb[2].mxu1 }
 0x3fe   : > { %v1609_v48 = vpop.f32.mrb[3].mxu0  ;;  %v1650_v49 = vpop.f32.mrb[3].mxu1 }
 0x3ff   : > { %v1656_v50 = vcombine.low %v1605_v39, %v1607_v43  ;;  %v1657_v51 = vcombine.low %v1646_v40, %v1648_v45 }
 0x401   : > { %v1664_v52 = vrot.slane %v1656_v50, %v1663_v44  ;;  %v1671_v53 = vrot.slane %v1657_v51, %v1663_v44 }
 0x403   : > { %v1672_v54 = vcombine.low %v1664_v52, %v1671_v53 }
 0x405   : > { %1674 = vst [vmem:[#allocation3] sm:$0xff] %v1672_v54 }
 0x47b   : > { %v2554_v60 = vpop.f32.mrb[4].mxu0  ;;  %v2640_v62 = vpop.f32.mrb[4].mxu1 }
 0x47c   : > { %v12513_v0 = vadd.f32 %v2554_v60, %v1820_v56  ;;  %v12517_v1 = vadd.f32 %v2640_v62, %v1828_v57  ;;  %v2556_v2 = vpop.f32.mrb[5].mxu0  ;;  %v2642_v4 = vpop.f32.mrb[5].mxu1 }
 0x47d   : > { %v12514_v6 = vadd.f32 %v2556_v2, %v1824_v58  ;;  %v12518_v7 = vadd.f32 %v2642_v4, %v1832_v59  ;;  %v2558_v8 = vpop.f32.mrb[6].mxu0  ;;  %v2644_v9 = vpop.f32.mrb[6].mxu1 }
 0x47e   : > { %v2653_v10 = vadd.f32 %v12513_v0, %v2649_v61  ;;  %v2655_v11 = vadd.f32 %v12517_v1, %v2651_v63  ;;  %v12515_v12 = vadd.f32 %v2558_v8, %v1820_v56  ;;  %v12519_v13 = vadd.f32 %v2644_v9, %v1828_v57  ;;  %v2560_v14 = vpop.f32.mrb[7].mxu0  ;;  %v2646_v15 = vpop.f32.mrb[7].mxu1 }
 0x47f   : > { %v2654_v16 = vadd.f32 %v12514_v6, %v2650_v3  ;;  %v2656_v17 = vadd.f32 %v12518_v7, %v2652_v5  ;;  %v12516_v18 = vadd.f32 %v2560_v14, %v1824_v58  ;;  %v12520_v19 = vadd.f32 %v2646_v15, %v1832_v59 }
 0x480   : > { %2661 = vst [vmem:[#allocation2] sm:$0xff] %v2653_v10  ;;  %2663 = vst [vmem:[#allocation2 + $0x10] sm:$0xff] %v2655_v11  ;;  %v2657_v20 = vadd.f32 %v12515_v12, %v2649_v61  ;;  %v2659_v21 = vadd.f32 %v12519_v13, %v2651_v63 }
 0x481   : > { %2662 = vst [vmem:[#allocation2 + $0x8] sm:$0xff] %v2654_v16  ;;  %2664 = vst [vmem:[#allocation2 + $0x18] sm:$0xff] %v2656_v17  ;;  %v2658_v22 = vadd.f32 %v12516_v18, %v2650_v3  ;;  %v2660_v23 = vadd.f32 %v12520_v19, %v2652_v5 }
 0x482   : > { %2665 = vst [vmem:[#allocation2 + $0x20] sm:$0xff] %v2657_v20  ;;  %2667 = vst [vmem:[#allocation2 + $0x30] sm:$0xff] %v2659_v21 }
 0x483   : > { %2666 = vst [vmem:[#allocation2 + $0x28] sm:$0xff] %v2658_v22  ;;  %2668 = vst [vmem:[#allocation2 + $0x38] sm:$0xff] %v2660_v23 }
 0x484 PF: > { %v13037_v38 = vld [vmem:[%s15526_s1 + $0x4] ss:$24 sps:$4 sm:$0xff]   ;;  %v13041_v40 = vld [vmem:[%s15526_s1] ss:$24 sps:$4 sm:$0xff]   ;;  %v13043_v42 = vld [vmem:[%s15526_s1 + $0x34] ss:$24 sps:$4 sm:$0xff]  }
 0x485   : > { %v13039_v39 = vld [vmem:[%s15526_s1 + $0xc] ss:$24 sps:$4 sm:$0xff]   ;;  %v13042_v41 = vld [vmem:[%s15526_s1 + $0x8] ss:$24 sps:$4 sm:$0xff]   ;;  %v13045_v43 = vld [vmem:[%s15526_s1 + $0x3c] ss:$24 sps:$4 sm:$0xff]   ;;  %3946 = vmatprep.subr.bf16.mxu0 %v13037_v38 }
 0x486   : > { %4032 = vmatprep.subr.bf16.mxu1 %v13039_v39  ;;  %3947 = vmatpush1.bf16.msra.mxu0 %v13041_v40  ;;  %v13047_v44 = vld [vmem:[%s15526_s1 + $0x30] ss:$24 sps:$4 sm:$0xff]   ;;  %v13049_v46 = vld [vmem:[%s15526_s1 + $0x64] ss:$24 sps:$4 sm:$0xff]   ;;  %v13053_v48 = vld [vmem:[%s15526_s1 + $0x60] ss:$24 sps:$4 sm:$0xff]  }
 0x487   : > { %v15578_v24 = vld [vmem:[#allocation2] sm:$0xff]  ;;  %v15582_v26 = vld [vmem:[#allocation2 + $0x10] sm:$0xff]  ;;  %4033 = vmatpush1.bf16.msra.mxu1 %v13042_v41  ;;  %3948 = vmatprep.subr.bf16.mxu0 %v13043_v42  ;;  %s17642_s4 = scalar_lea.vmem [#allocation14], %s15518_s20  ;;  %s17643_s29 = scalar_lea.vmem [#allocation15], %s15518_s20  ;;  %vm14602_vm1 = vmmov 0   ;;  %vm4206_vm2 = vcmask 523264  }
 0x488   : > { %v15580_v25 = vld [vmem:[#allocation2 + $0x8] sm:$0xff]  ;;  %v15584_v27 = vld [vmem:[#allocation2 + $0x18] sm:$0xff]  ;;  %4034 = vmatprep.subr.bf16.mxu1 %v13045_v43  ;;  %vm4368_vm4 = vcmask 64512  }
 0x489   : > { %v2679_v28 = vadd.f32 %v15580_v25, %v15578_v24  ;;  %v15588_v29 = vld [vmem:[#allocation2 + $0x20] sm:$0xff]  ;;  %v15592_v31 = vld [vmem:[#allocation2 + $0x30] sm:$0xff] }
 0x48a   : > { %v15590_v30 = vld [vmem:[#allocation2 + $0x28] sm:$0xff]  ;;  %v15594_v32 = vld [vmem:[#allocation2 + $0x38] sm:$0xff]  ;;  %3949 = vmatpush1.bf16.msra.mxu0 %v13047_v44 }
 0x48b   : > { %v2684_v33 = vadd.f32 %v15590_v30, %v15588_v29  ;;  %v2680_v34 = vadd.f32 %v2679_v28, %v15582_v26  ;;  %v13048_v45 = vld [vmem:[%s15526_s1 + $0x38] ss:$24 sps:$4 sm:$0xff]   ;;  %v13051_v47 = vld [vmem:[%s15526_s1 + $0x6c] ss:$24 sps:$4 sm:$0xff]   ;;  %v13054_v49 = vld [vmem:[%s15526_s1 + $0x68] ss:$24 sps:$4 sm:$0xff]   ;;  %3950 = vmatprep.subr.bf16.mxu0 %v13049_v46 }
 0x48c   : > { %4035 = vmatpush1.bf16.msra.mxu1 %v13048_v45  ;;  %v13055_v50 = vld [vmem:[%s15526_s1 + $0x94] ss:$24 sps:$4 sm:$0xff]   ;;  %v13059_v52 = vld [vmem:[%s15526_s1 + $0x90] ss:$24 sps:$4 sm:$0xff]   ;;  %v13061_v54 = vld [vmem:[%s15526_s1 + $0xc4] ss:$24 sps:$4 sm:$0xff]  }
 0x48d   : > { %v2685_v35 = vadd.f32 %v2684_v33, %v15592_v31  ;;  %v2681_v36 = vadd.f32 %v2680_v34, %v15584_v27  ;;  %4036 = vmatprep.subr.bf16.mxu1 %v13051_v47  ;;  %v13057_v51 = vld [vmem:[%s15526_s1 + $0x9c] ss:$24 sps:$4 sm:$0xff]   ;;  %v13060_v53 = vld [vmem:[%s15526_s1 + $0x98] ss:$24 sps:$4 sm:$0xff]   ;;  %v13063_v55 = vld [vmem:[%s15526_s1 + $0xcc] ss:$24 sps:$4 sm:$0xff]  }
 0x48e   : > { %3951 = vmatpush1.bf16.msra.mxu0 %v13053_v48  ;;  %v13065_v56 = vld [vmem:[%s15526_s1 + $0xc0] ss:$24 sps:$4 sm:$0xff]   ;;  %v13067_v58 = vld [vmem:[%s15526_s1 + $0xf4] ss:$24 sps:$4 sm:$0xff]   ;;  %v13071_v60 = vld [vmem:[%s15526_s1 + $0xf0] ss:$24 sps:$4 sm:$0xff]  }
 0x48f   : > { %2682 = vadd.xlane.f32.xlu0 %v2681_v36  ;;  %v2686_v37 = vadd.f32 %v2685_v35, %v15594_v32  ;;  %3952 = vmatprep.subr.bf16.mxu0 %v13055_v50  ;;  %v13066_v57 = vld [vmem:[%s15526_s1 + $0xc8] ss:$24 sps:$4 sm:$0xff]   ;;  %v13069_v59 = vld [vmem:[%s15526_s1 + $0xfc] ss:$24 sps:$4 sm:$0xff]   ;;  %v13072_v61 = vld [vmem:[%s15526_s1 + $0xf8] ss:$24 sps:$4 sm:$0xff]  }
 0x490   : > { %4037 = vmatpush1.bf16.msra.mxu1 %v13054_v49  ;;  %v13073_v62 = vld [vmem:[%s15526_s1 + $0x124] ss:$24 sps:$4 sm:$0xff]   ;;  %v13077_v0 = vld [vmem:[%s15526_s1 + $0x120] ss:$24 sps:$4 sm:$0xff]   ;;  %v13079_v2 = vld [vmem:[%s15526_s1 + $0x154] ss:$24 sps:$4 sm:$0xff]  }
 0x491   : > { %4038 = vmatprep.subr.bf16.mxu1 %v13057_v51  ;;  %v13075_v63 = vld [vmem:[%s15526_s1 + $0x12c] ss:$24 sps:$4 sm:$0xff]   ;;  %v13078_v1 = vld [vmem:[%s15526_s1 + $0x128] ss:$24 sps:$4 sm:$0xff]   ;;  %v13081_v3 = vld [vmem:[%s15526_s1 + $0x15c] ss:$24 sps:$4 sm:$0xff]  }
 0x492   : > { %3953 = vmatpush1.bf16.msra.mxu0 %v13059_v52  ;;  %v13083_v4 = vld [vmem:[%s15526_s1 + $0x150] ss:$24 sps:$4 sm:$0xff]   ;;  %v13085_v6 = vld [vmem:[%s15526_s1 + $0x184] ss:$24 sps:$4 sm:$0xff]   ;;  %v13089_v8 = vld [vmem:[%s15526_s1 + $0x180] ss:$24 sps:$4 sm:$0xff]  }
 0x493   : > { %2687 = vadd.xlane.f32.xlu0 %v2686_v37  ;;  %3954 = vmatprep.subr.bf16.mxu0 %v13061_v54  ;;  %v13084_v5 = vld [vmem:[%s15526_s1 + $0x158] ss:$24 sps:$4 sm:$0xff]   ;;  %v13087_v7 = vld [vmem:[%s15526_s1 + $0x18c] ss:$24 sps:$4 sm:$0xff]   ;;  %v13090_v9 = vld [vmem:[%s15526_s1 + $0x188] ss:$24 sps:$4 sm:$0xff]  }
 0x494   : > { %4039 = vmatpush1.bf16.msra.mxu1 %v13060_v53  ;;  %v13091_v10 = vld [vmem:[%s15526_s1 + $0x1b4] ss:$24 sps:$4 sm:$0xff]   ;;  %v13095_v38 = vld [vmem:[%s15526_s1 + $0x1b0] ss:$24 sps:$4 sm:$0xff]   ;;  %v13097_v40 = vld [vmem:[%s15526_s1 + $0x1e4] ss:$24 sps:$4 sm:$0xff]  }
 0x495   : > { %4040 = vmatprep.subr.bf16.mxu1 %v13063_v55  ;;  %v13093_v11 = vld [vmem:[%s15526_s1 + $0x1bc] ss:$24 sps:$4 sm:$0xff]   ;;  %v13096_v39 = vld [vmem:[%s15526_s1 + $0x1b8] ss:$24 sps:$4 sm:$0xff]   ;;  %v13099_v41 = vld [vmem:[%s15526_s1 + $0x1ec] ss:$24 sps:$4 sm:$0xff]  }
 0x496   : > { %3955 = vmatpush1.bf16.msra.mxu0 %v13065_v56  ;;  %v13101_v42 = vld [vmem:[%s15526_s1 + $0x1e0] ss:$24 sps:$4 sm:$0xff]   ;;  %v13103_v44 = vld [vmem:[%s15526_s1 + $0x214] ss:$24 sps:$4 sm:$0xff]   ;;  %v13107_v46 = vld [vmem:[%s15526_s1 + $0x210] ss:$24 sps:$4 sm:$0xff]  }
 0x497   : > { %3956 = vmatprep.subr.bf16.mxu0 %v13067_v58  ;;  %v13102_v43 = vld [vmem:[%s15526_s1 + $0x1e8] ss:$24 sps:$4 sm:$0xff]   ;;  %v13105_v45 = vld [vmem:[%s15526_s1 + $0x21c] ss:$24 sps:$4 sm:$0xff]   ;;  %v13108_v47 = vld [vmem:[%s15526_s1 + $0x218] ss:$24 sps:$4 sm:$0xff]  }
 0x498   : > { %4041 = vmatpush1.bf16.msra.mxu1 %v13066_v57  ;;  %v13109_v48 = vld [vmem:[%s15526_s1 + $0x244] ss:$24 sps:$4 sm:$0xff]   ;;  %v13113_v50 = vld [vmem:[%s15526_s1 + $0x240] ss:$24 sps:$4 sm:$0xff]   ;;  %v13115_v52 = vld [vmem:[%s15526_s1 + $0x274] ss:$24 sps:$4 sm:$0xff]  }
 0x499   : > { %4042 = vmatprep.subr.bf16.mxu1 %v13069_v59  ;;  %v13111_v49 = vld [vmem:[%s15526_s1 + $0x24c] ss:$24 sps:$4 sm:$0xff]   ;;  %v13114_v51 = vld [vmem:[%s15526_s1 + $0x248] ss:$24 sps:$4 sm:$0xff]   ;;  %v13117_v53 = vld [vmem:[%s15526_s1 + $0x27c] ss:$24 sps:$4 sm:$0xff]  }
 0x49a   : > { %3957 = vmatpush1.bf16.msra.mxu0 %v13071_v60  ;;  %v13119_v54 = vld [vmem:[%s15526_s1 + $0x270] ss:$24 sps:$4 sm:$0xff]   ;;  %v13121_v56 = vld [vmem:[%s15526_s1 + $0x2a4] ss:$24 sps:$4 sm:$0xff]   ;;  %v13125_v58 = vld [vmem:[%s15526_s1 + $0x2a0] ss:$24 sps:$4 sm:$0xff]  }
 0x49b   : > { %3958 = vmatprep.subr.bf16.mxu0 %v13073_v62  ;;  %v13120_v55 = vld [vmem:[%s15526_s1 + $0x278] ss:$24 sps:$4 sm:$0xff]   ;;  %v13123_v57 = vld [vmem:[%s15526_s1 + $0x2ac] ss:$24 sps:$4 sm:$0xff]   ;;  %v13126_v59 = vld [vmem:[%s15526_s1 + $0x2a8] ss:$24 sps:$4 sm:$0xff]  }
 0x49c   : > { %4043 = vmatpush1.bf16.msra.mxu1 %v13072_v61  ;;  %v13127_v60 = vld [vmem:[%s15526_s1 + $0x2d4] ss:$24 sps:$4 sm:$0xff]   ;;  %v13131_v62 = vld [vmem:[%s15526_s1 + $0x2d0] ss:$24 sps:$4 sm:$0xff]  }
 0x49d   : > { %4044 = vmatprep.subr.bf16.mxu1 %v13075_v63  ;;  %v13129_v61 = vld [vmem:[%s15526_s1 + $0x2dc] ss:$24 sps:$4 sm:$0xff]   ;;  %v13132_v63 = vld [vmem:[%s15526_s1 + $0x2d8] ss:$24 sps:$4 sm:$0xff]  }
 0x49e   : > { %3959 = vmatpush1.bf16.msra.mxu0 %v13077_v0  ;;  %v13135_v0 = vld [vmem:[%s15526_s1 + $0x304] ss:$24 sps:$4 sm:$0xff]  }
 0x49f   : > { %3960 = vmatprep.subr.bf16.mxu0 %v13079_v2 }
 0x4a0   : > { %4045 = vmatpush1.bf16.msra.mxu1 %v13078_v1  ;;  %v13138_v1 = vld [vmem:[%s15526_s1 + $0x30c] ss:$24 sps:$4 sm:$0xff]  }
 0x4a1   : > { %4046 = vmatprep.subr.bf16.mxu1 %v13081_v3 }
 0x4a2   : > { %3961 = vmatpush1.bf16.msra.mxu0 %v13083_v4  ;;  %v2733_v4 = vlaneseq }
 0x4a3   : > { %3962 = vmatprep.subr.bf16.mxu0 %v13085_v6 }
 0x4a4   : > { %4047 = vmatpush1.bf16.msra.mxu1 %v13084_v5 }
 0x4a5   : > { %4048 = vmatprep.subr.bf16.mxu1 %v13087_v7 }
 0x4a6   : > { %3963 = vmatpush1.bf16.msra.mxu0 %v13089_v8  ;;  %v15709_v8 = vshrl.u32 %v2733_v4, 7 }
 0x4a7   : > { %3964 = vmatprep.subr.bf16.mxu0 %v13091_v10 }
 0x4a8   : > { %4049 = vmatpush1.bf16.msra.mxu1 %v13090_v9  ;;  %v15712_v10 = vsub.s32 2, %v15709_v8 }
 0x4a9   : > { %4050 = vmatprep.subr.bf16.mxu1 %v13093_v11  ;;  %v2677_v11 = vld [vmem:[%s17642_s4] sm:$0xf] }
 0x4aa   : > { %3965 = vmatpush1.bf16.msra.mxu0 %v13095_v38 }
 0x4ab   : > { %3966 = vmatprep.subr.bf16.mxu0 %v13097_v40 }
 0x4ac   : > { %4051 = vmatpush1.bf16.msra.mxu1 %v13096_v39 }
 0x4ad   : > { %4052 = vmatprep.subr.bf16.mxu1 %v13099_v41 }
 0x4ae   : > { %3967 = vmatpush1.bf16.msra.mxu0 %v13101_v42 }
 0x4af   : > { %3968 = vmatprep.subr.bf16.mxu0 %v13103_v44 }
 0x4b0   : > { %4053 = vmatpush1.bf16.msra.mxu1 %v13102_v43 }
 0x4b1   : > { %4054 = vmatprep.subr.bf16.mxu1 %v13105_v45 }
 0x4b2   : > { %3969 = vmatpush1.bf16.msra.mxu0 %v13107_v46 }
 0x4b3   : > { %3970 = vmatprep.subr.bf16.mxu0 %v13109_v48 }
 0x4b4   : > { %4055 = vmatpush1.bf16.msra.mxu1 %v13108_v47 }
 0x4b5   : > { %4056 = vmatprep.subr.bf16.mxu1 %v13111_v49 }
 0x4b6   : > { %3971 = vmatpush1.bf16.msra.mxu0 %v13113_v50 }
 0x4b7   : > { %3972 = vmatprep.subr.bf16.mxu0 %v13115_v52 }
 0x4b8   : > { %4057 = vmatpush1.bf16.msra.mxu1 %v13114_v51  ;;  %v13136_v51 = vld [vmem:[%s15526_s1 + $0x308] ss:$24 sps:$4 sm:$0xff]  }
 0x4b9   : > { %4058 = vmatprep.subr.bf16.mxu1 %v13117_v53 }
 0x4ba   : > { %3973 = vmatpush1.bf16.msra.mxu0 %v13119_v54 }
 0x4bb   : > { %3974 = vmatprep.subr.bf16.mxu0 %v13121_v56  ;;  %v13144_v56 = vld [vmem:[%s15526_s1 + $0x33c] ss:$24 sps:$4 sm:$0xff]  }
 0x4bc   : > { %4059 = vmatpush1.bf16.msra.mxu1 %v13120_v55  ;;  %v13141_v55 = vld [vmem:[%s15526_s1 + $0x334] ss:$24 sps:$4 sm:$0xff]  }
 0x4bd   : > { %4060 = vmatprep.subr.bf16.mxu1 %v13123_v57 }
 0x4be   : > { %3975 = vmatpush1.bf16.msra.mxu0 %v13125_v58  ;;  %v13139_v58 = vld [vmem:[%s15526_s1 + $0x330] ss:$24 sps:$4 sm:$0xff]  }
 0x4bf   : > { %3976 = vmatprep.subr.bf16.mxu0 %v13127_v60  ;;  %v13147_v60 = vld [vmem:[%s15526_s1 + $0x364] ss:$24 sps:$4 sm:$0xff]  }
 0x4c0   : > { %4061 = vmatpush1.bf16.msra.mxu1 %v13126_v59  ;;  %v13142_v59 = vld [vmem:[%s15526_s1 + $0x338] ss:$24 sps:$4 sm:$0xff]  }
 0x4c1   : > { %4062 = vmatprep.subr.bf16.mxu1 %v13129_v61  ;;  %v13150_v61 = vld [vmem:[%s15526_s1 + $0x36c] ss:$24 sps:$4 sm:$0xff]  }
 0x4c2   : > { %3977 = vmatpush1.bf16.msra.mxu0 %v13131_v62  ;;  %v13145_v62 = vld [vmem:[%s15526_s1 + $0x360] ss:$24 sps:$4 sm:$0xff]  }
 0x4c3   : > { %3989 = vmatprep.subr.bf16.mxu0 %v13135_v0  ;;  %v13153_v0 = vld [vmem:[%s15526_s1 + $0x394] ss:$24 sps:$4 sm:$0xff]  }
 0x4c4   : > { %4063 = vmatpush1.bf16.msra.mxu1 %v13132_v63  ;;  %v13148_v63 = vld [vmem:[%s15526_s1 + $0x368] ss:$24 sps:$4 sm:$0xff]  }
 0x4c5   : > { %4075 = vmatprep.subr.bf16.mxu1 %v13138_v1  ;;  %v13156_v1 = vld [vmem:[%s15526_s1 + $0x39c] ss:$24 sps:$4 sm:$0xff]  }
 0x51c   : > { %v2683_v12 = vpop.xlane.xlu0 %2682 }
 0x51d   : > { %v2690_v13 = vmul.f32 0.001953125, %v2683_v12  ;;  %v15717_v12 = vsub.s32 1, %v15709_v8 }
 0x51f   : > { %v15641_v14 = vsub.f32 %v15578_v24, %v2690_v13  ;;  %v15644_v15 = vsub.f32 %v15580_v25, %v2690_v13  ;;  %v15647_v16 = vsub.f32 %v15582_v26, %v2690_v13  ;;  %v15650_v18 = vsub.f32 %v15584_v27, %v2690_v13 }
 0x520   : > { %v2688_v17 = vpop.xlane.xlu0 %2687  ;;  %v15720_v13 = vsub.s32 0, %v15709_v8 }
 0x521   : > { %v2691_v19 = vmul.f32 0.001953125, %v2688_v17  ;;  %v2700_v20 = vmul.f32 %v15641_v14, %v15641_v14  ;;  %v2701_v21 = vmul.f32 %v15644_v15, %v15644_v15  ;;  %v2702_v22 = vmul.f32 %v15647_v16, %v15647_v16  ;;  %v2678_v17 = vld [vmem:[%s17643_s29] sm:$0xf] }
 0x522   : > { %v2703_v27 = vmul.f32 %v15650_v18, %v15650_v18 }
 0x523   : > { %v15659_v23 = vsub.f32 %v15588_v29, %v2691_v19  ;;  %v15662_v24 = vsub.f32 %v15590_v30, %v2691_v19  ;;  %v2708_v25 = vadd.f32 %v2701_v21, %v2700_v20  ;;  %v15665_v26 = vsub.f32 %v15592_v31, %v2691_v19 }
 0x524   : > { %v15670_v33 = vsub.f32 %v15594_v32, %v2691_v19  ;;  %v2744_v19 = vrot.slane %v2677_v11, %v15712_v10  ;;  %v2740_v21 = vrot.slane %v2677_v11, %v15717_v12 }
 0x525   : > { %v2709_v28 = vadd.f32 %v2708_v25, %v2702_v22  ;;  %v2704_v29 = vmul.f32 %v15659_v23, %v15659_v23  ;;  %v2705_v30 = vmul.f32 %v15662_v24, %v15662_v24  ;;  %v2706_v31 = vmul.f32 %v15665_v26, %v15665_v26 }
 0x526   : > { %v2707_v36 = vmul.f32 %v15670_v33, %v15670_v33  ;;  %v15727_v22 = vsub.s32 3, %v15709_v8 }
 0x527   : > { %v2710_v34 = vadd.f32 %v2709_v28, %v2703_v27  ;;  %v2713_v35 = vadd.f32 %v2705_v30, %v2704_v29  ;;  %v2736_v28 = vrot.slane %v2677_v11, %v15720_v13  ;;  %v2773_v30 = vrot.slane %v2678_v17, %v15712_v10 }
 0x529   : > { %2711 = vadd.xlane.f32.xlu1 %v2710_v34  ;;  %v2714_v32 = vadd.f32 %v2713_v35, %v2706_v31  ;;  %v2769_v35 = vrot.slane %v2678_v17, %v15717_v12 }
 0x52b   : > { %v2715_v37 = vadd.f32 %v2714_v32, %v2707_v36  ;;  %v2765_v36 = vrot.slane %v2678_v17, %v15720_v13 }
 0x52d   : > { %2716 = vadd.xlane.f32.xlu1 %v2715_v37  ;;  %v2748_v37 = vrot.slane %v2677_v11, %v15727_v22  ;;  %v13165_v11 = vld [vmem:[%s15526_s1 + $0x3f4] ss:$24 sps:$4 sm:$0xff]  }
 0x5b6   : > { %v2712_v2 = vpop.xlane.xlu1 %2711 }
 0x5b7   : > { %v2718_v3 = vmul.f32 0.001953125, %v2712_v2  ;;  %v13151_v2 = vld [vmem:[%s15526_s1 + $0x390] ss:$24 sps:$4 sm:$0xff]  }
 0x5b9   : > { %v2720_v5 = vadd.f32 1e-05, %v2718_v3  ;;  %v13154_v3 = vld [vmem:[%s15526_s1 + $0x398] ss:$24 sps:$4 sm:$0xff]  }
 0x5ba   : > { %v2717_v6 = vpop.xlane.xlu1 %2716 }
 0x5bb   : > { %13614 = vrsqrt.f32 %v2720_v5  ;;  %v2719_v7 = vmul.f32 0.001953125, %v2717_v6  ;;  %v13159_v5 = vld [vmem:[%s15526_s1 + $0x3c4] ss:$24 sps:$4 sm:$0xff]  }
 0x5bc   : > { %v13162_v6 = vld [vmem:[%s15526_s1 + $0x3cc] ss:$24 sps:$4 sm:$0xff]  }
 0x5bd   : > { %v2721_v9 = vadd.f32 1e-05, %v2719_v7  ;;  %v13157_v7 = vld [vmem:[%s15526_s1 + $0x3c0] ss:$24 sps:$4 sm:$0xff]  }
 0x5bf   : > { %13616 = vrsqrt.f32 %v2721_v9  ;;  %v13160_v9 = vld [vmem:[%s15526_s1 + $0x3c8] ss:$24 sps:$4 sm:$0xff]  }
 0x5c5   : > { %v13615_v20 = vpop.eup %13614 }
 0x5c6   : > { %v2725_v25 = vmul.f32 %v13615_v20, %v15644_v15  ;;  %v2724_v27 = vmul.f32 %v13615_v20, %v15641_v14  ;;  %v2726_v29 = vmul.f32 %v13615_v20, %v15647_v16  ;;  %v2727_v32 = vmul.f32 %v13615_v20, %v15650_v18  ;;  %v13166_v20 = vld [vmem:[%s15526_s1 + $0x3f8] ss:$24 sps:$4 sm:$0xff]  }
 0x5c7   : > { %v2777_v18 = vrot.slane %v2678_v17, %v15727_v22  ;;  %v13168_v17 = vld [vmem:[%s15526_s1 + $0x3fc] ss:$24 sps:$4 sm:$0xff]  }
 0x5c8   : > { %v2755_v34 = vmul.f32 %v2744_v19, %v2726_v29  ;;  %v2754_v38 = vmul.f32 %v2740_v21, %v2725_v25  ;;  %v2753_v39 = vmul.f32 %v2736_v28, %v2724_v27  ;;  %v2756_v44 = vmul.f32 %v2748_v37, %v2727_v32  ;;  %v13174_v25 = vld [vmem:[%s15526_s1 + $0x42c] ss:$24 sps:$4 sm:$0xff]   ;;  %v13169_v27 = vld [vmem:[%s15526_s1 + $0x420] ss:$24 sps:$4 sm:$0xff]  }
 0x5c9   : > { %v13617_v31 = vpop.eup %13616  ;;  %v13177_v29 = vld [vmem:[%s15526_s1 + $0x454] ss:$24 sps:$4 sm:$0xff]   ;;  %v13181_v32 = vld [vmem:[%s15526_s1 + $0x480] ss:$24 sps:$4 sm:$0xff]  }
 0x5ca   : > { %v2729_v15 = vmul.f32 %v13617_v31, %v15662_v24  ;;  %v2728_v14 = vmul.f32 %v13617_v31, %v15659_v23  ;;  %v2731_v16 = vmul.f32 %v13617_v31, %v15670_v33  ;;  %v2730_v40 = vmul.f32 %v13617_v31, %v15665_v26  ;;  %v13133_v26 = vld [vmem:[%s15526_s1 + $0x300] ss:$24 sps:$4 sm:$0xff]  }
 0x5cb   : > { %v2784_v41 = vadd.f32 %v2773_v30, %v2755_v34  ;;  %v2783_v24 = vadd.f32 %v2769_v35, %v2754_v38  ;;  %v2782_v23 = vadd.f32 %v2765_v36, %v2753_v39  ;;  %v2785_v53 = vadd.f32 %v2777_v18, %v2756_v44  ;;  %v13175_v34 = vld [vmem:[%s15526_s1 + $0x450] ss:$24 sps:$4 sm:$0xff]   ;;  %v13192_v38 = vld [vmem:[%s15526_s1 + $0x4bc] ss:$24 sps:$4 sm:$0xff]  }
 0x5cc   : > { %v2758_v42 = vmul.f32 %v2740_v21, %v2729_v15  ;;  %v2757_v43 = vmul.f32 %v2736_v28, %v2728_v14  ;;  %v2760_v45 = vmul.f32 %v2748_v37, %v2731_v16  ;;  %v2759_v46 = vmul.f32 %v2744_v19, %v2730_v40  ;;  %v13163_v19 = vld [vmem:[%s15526_s1 + $0x3f0] ss:$24 sps:$4 sm:$0xff]   ;;  %v13171_v21 = vld [vmem:[%s15526_s1 + $0x424] ss:$24 sps:$4 sm:$0xff]   ;;  %v13189_v15 = vld [vmem:[%s15526_s1 + $0x4b4] ss:$24 sps:$4 sm:$0xff]  }
 0x5cd   : > { %v13172_v28 = vld [vmem:[%s15526_s1 + $0x428] ss:$24 sps:$4 sm:$0xff]   ;;  %v13178_v31 = vld [vmem:[%s15526_s1 + $0x458] ss:$24 sps:$4 sm:$0xff]   ;;  %v13195_v16 = vld [vmem:[%s15526_s1 + $0x4e4] ss:$24 sps:$4 sm:$0xff]  }
 0x5ce   : > { %v2787_v47 = vadd.f32 %v2769_v35, %v2758_v42  ;;  %v2786_v48 = vadd.f32 %v2765_v36, %v2757_v43  ;;  %v2789_v49 = vadd.f32 %v2777_v18, %v2760_v45  ;;  %v2788_v33 = vadd.f32 %v2773_v30, %v2759_v46  ;;  %v13180_v30 = vld [vmem:[%s15526_s1 + $0x45c] ss:$24 sps:$4 sm:$0xff]   ;;  %v13186_v36 = vld [vmem:[%s15526_s1 + $0x48c] ss:$24 sps:$4 sm:$0xff]   ;;  %v13184_v37 = vld [vmem:[%s15526_s1 + $0x488] ss:$24 sps:$4 sm:$0xff]  }
 0x5cf   : > { %v13183_v35 = vld [vmem:[%s15526_s1 + $0x484] ss:$24 sps:$4 sm:$0xff]   ;;  %v13187_v14 = vld [vmem:[%s15526_s1 + $0x4b0] ss:$24 sps:$4 sm:$0xff]   ;;  %v13201_v43 = vld [vmem:[%s15526_s1 + $0x514] ss:$24 sps:$4 sm:$0xff]  }
 0x5d0   : > { %v15743_v50 = vpack.c.bf16 %v2787_v47, %v2783_v24  ;;  %v15747_v52 = vpack.c.bf16 %v2786_v48, %v2782_v23  ;;  %v15749_v54 = vpack.c.bf16 %v2788_v33, %v2784_v41  ;;  %v15757_v57 = vpack.c.bf16 %v2789_v49, %v2785_v53  ;;  %v13190_v39 = vld [vmem:[%s15526_s1 + $0x4b8] ss:$24 sps:$4 sm:$0xff]   ;;  %v13198_v40 = vld [vmem:[%s15526_s1 + $0x4ec] ss:$24 sps:$4 sm:$0xff]   ;;  %v13196_v42 = vld [vmem:[%s15526_s1 + $0x4e8] ss:$24 sps:$4 sm:$0xff]  }
 0x5d1   : > { %v13193_v41 = vld [vmem:[%s15526_s1 + $0x4e0] ss:$24 sps:$4 sm:$0xff]   ;;  %v13204_v44 = vld [vmem:[%s15526_s1 + $0x51c] ss:$24 sps:$4 sm:$0xff]   ;;  %v13199_v45 = vld [vmem:[%s15526_s1 + $0x510] ss:$24 sps:$4 sm:$0xff]  }
 0x5d2   : > { %3978 = vmatprep.mubr.bf16.mxu0 %v15743_v50  ;;  %4064 = vmatprep.mubr.bf16.mxu1 %v15743_v50  ;;  %v13202_v18 = vld [vmem:[%s15526_s1 + $0x518] ss:$24 sps:$4 sm:$0xff]   ;;  %v13207_v46 = vld [vmem:[%s15526_s1 + $0x544] ss:$24 sps:$4 sm:$0xff]   ;;  %v13208_v23 = vld [vmem:[%s15526_s1 + $0x548] ss:$24 sps:$4 sm:$0xff]  }
 0x5d3   : > { %3979 = vmatmul.mubr.bf16.vlgmr.msra.gmra.mrb[0].mxu0 %v15747_v52  ;;  %4065 = vmatmul.mubr.bf16.vlgmr.msra.gmra.mrb[0].mxu1 %v15747_v52  ;;  %v13210_v24 = vld [vmem:[%s15526_s1 + $0x54c] ss:$24 sps:$4 sm:$0xff]   ;;  %v13205_v47 = vld [vmem:[%s15526_s1 + $0x540] ss:$24 sps:$4 sm:$0xff]   ;;  %v13216_v49 = vld [vmem:[%s15526_s1 + $0x57c] ss:$24 sps:$4 sm:$0xff]  }
 0x5d4   : > { %3990 = vmatpush1.bf16.msra.mxu0 %v13133_v26  ;;  %4076 = vmatpush1.bf16.msra.mxu1 %v13136_v51  ;;  %v13213_v48 = vld [vmem:[%s15526_s1 + $0x574] ss:$24 sps:$4 sm:$0xff]   ;;  %v13211_v33 = vld [vmem:[%s15526_s1 + $0x570] ss:$24 sps:$4 sm:$0xff]   ;;  %v13219_v51 = vld [vmem:[%s15526_s1 + $0x5a4] ss:$24 sps:$4 sm:$0xff]  }
 0x5d5   : > { %4021 = vmatprep.mubr.bf16.mxu0 %v15757_v57  ;;  %4107 = vmatprep.mubr.bf16.mxu1 %v15757_v57  ;;  %v13214_v26 = vld [vmem:[%s15526_s1 + $0x578] ss:$24 sps:$4 sm:$0xff]   ;;  %v13222_v53 = vld [vmem:[%s15526_s1 + $0x5ac] ss:$24 sps:$4 sm:$0xff]  }
 0x5d6   : > { %3991 = vmatprep.subr.bf16.mxu0 %v13141_v55  ;;  %4077 = vmatprep.subr.bf16.mxu1 %v13144_v56  ;;  %v13217_v55 = vld [vmem:[%s15526_s1 + $0x5a0] ss:$24 sps:$4 sm:$0xff]  }
 0x5d7   : > { %v13220_v56 = vld [vmem:[%s15526_s1 + $0x5a8] ss:$24 sps:$4 sm:$0xff]  }
 0x5d8   : > { %3992 = vmatpush1.bf16.msra.mxu0 %v13139_v58  ;;  %4078 = vmatpush1.bf16.msra.mxu1 %v13142_v59  ;;  %v13225_v58 = vld [vmem:[%s15526_s1 + $0x5d4] ss:$24 sps:$4 sm:$0xff]  }
 0x5d9   : > { %3993 = vmatprep.subr.bf16.mxu0 %v13147_v60  ;;  %4079 = vmatprep.subr.bf16.mxu1 %v13150_v61  ;;  %v13228_v59 = vld [vmem:[%s15526_s1 + $0x5dc] ss:$24 sps:$4 sm:$0xff]   ;;  %v13223_v60 = vld [vmem:[%s15526_s1 + $0x5d0] ss:$24 sps:$4 sm:$0xff]  }
 0x5da   : > { %v13226_v61 = vld [vmem:[%s15526_s1 + $0x5d8] ss:$24 sps:$4 sm:$0xff]  }
 0x5dc   : > { %3994 = vmatpush1.bf16.msra.mxu0 %v13145_v62  ;;  %4080 = vmatpush1.bf16.msra.mxu1 %v13148_v63  ;;  %v13231_v62 = vld [vmem:[%s15526_s1 + $0x14] ss:$24 sps:$4 sm:$0xff]   ;;  %v13229_v63 = vld [vmem:[%s15526_s1 + $0x10] ss:$24 sps:$4 sm:$0xff]  }
 0x5dd   : > { %3995 = vmatprep.subr.bf16.mxu0 %v13153_v0  ;;  %4081 = vmatprep.subr.bf16.mxu1 %v13156_v1  ;;  %v13234_v0 = vld [vmem:[%s15526_s1 + $0x44] ss:$24 sps:$4 sm:$0xff]   ;;  %v13232_v1 = vld [vmem:[%s15526_s1 + $0x40] ss:$24 sps:$4 sm:$0xff]  }
 0x5e0   : > { %3996 = vmatpush1.bf16.msra.mxu0 %v13151_v2  ;;  %4082 = vmatpush1.bf16.msra.mxu1 %v13154_v3  ;;  %v13237_v2 = vld [vmem:[%s15526_s1 + $0x74] ss:$24 sps:$4 sm:$0xff]   ;;  %v13235_v3 = vld [vmem:[%s15526_s1 + $0x70] ss:$24 sps:$4 sm:$0xff]  }
 0x5e1   : > { %3997 = vmatprep.subr.bf16.mxu0 %v13159_v5  ;;  %4083 = vmatprep.subr.bf16.mxu1 %v13162_v6  ;;  %v13240_v5 = vld [vmem:[%s15526_s1 + $0xa4] ss:$24 sps:$4 sm:$0xff]   ;;  %v13238_v6 = vld [vmem:[%s15526_s1 + $0xa0] ss:$24 sps:$4 sm:$0xff]  }
 0x5e4   : > { %3998 = vmatpush1.bf16.msra.mxu0 %v13157_v7  ;;  %4084 = vmatpush1.bf16.msra.mxu1 %v13160_v9  ;;  %v13243_v7 = vld [vmem:[%s15526_s1 + $0xd4] ss:$24 sps:$4 sm:$0xff]   ;;  %v13241_v9 = vld [vmem:[%s15526_s1 + $0xd0] ss:$24 sps:$4 sm:$0xff]  }
 0x5e5   : > { %3999 = vmatprep.subr.bf16.mxu0 %v13165_v11  ;;  %4085 = vmatprep.subr.bf16.mxu1 %v13168_v17  ;;  %v13244_v11 = vld [vmem:[%s15526_s1 + $0x100] ss:$24 sps:$4 sm:$0xff]   ;;  %v13249_v17 = vld [vmem:[%s15526_s1 + $0x134] ss:$24 sps:$4 sm:$0xff]  }
 0x5e8   : > { %4000 = vmatpush1.bf16.msra.mxu0 %v13163_v19  ;;  %4086 = vmatpush1.bf16.msra.mxu1 %v13166_v20  ;;  %v13247_v19 = vld [vmem:[%s15526_s1 + $0x130] ss:$24 sps:$4 sm:$0xff]   ;;  %v13252_v20 = vld [vmem:[%s15526_s1 + $0x164] ss:$24 sps:$4 sm:$0xff]  }
 0x5e9   : > { %4001 = vmatprep.subr.bf16.mxu0 %v13171_v21  ;;  %4087 = vmatprep.subr.bf16.mxu1 %v13174_v25  ;;  %v13250_v21 = vld [vmem:[%s15526_s1 + $0x160] ss:$24 sps:$4 sm:$0xff]   ;;  %v13255_v25 = vld [vmem:[%s15526_s1 + $0x194] ss:$24 sps:$4 sm:$0xff]  }
 0x5ec   : > { %4002 = vmatpush1.bf16.msra.mxu0 %v13169_v27  ;;  %4088 = vmatpush1.bf16.msra.mxu1 %v13172_v28  ;;  %v13253_v27 = vld [vmem:[%s15526_s1 + $0x190] ss:$24 sps:$4 sm:$0xff]   ;;  %v13258_v28 = vld [vmem:[%s15526_s1 + $0x1c4] ss:$24 sps:$4 sm:$0xff]  }
 0x5ed   : > { %4003 = vmatprep.subr.bf16.mxu0 %v13177_v29  ;;  %4089 = vmatprep.subr.bf16.mxu1 %v13180_v30  ;;  %v13256_v29 = vld [vmem:[%s15526_s1 + $0x1c0] ss:$24 sps:$4 sm:$0xff]   ;;  %v13261_v30 = vld [vmem:[%s15526_s1 + $0x1f4] ss:$24 sps:$4 sm:$0xff]  }
 0x5f0   : > { %4004 = vmatpush1.bf16.msra.mxu0 %v13175_v34  ;;  %4090 = vmatpush1.bf16.msra.mxu1 %v13178_v31  ;;  %v13259_v34 = vld [vmem:[%s15526_s1 + $0x1f0] ss:$24 sps:$4 sm:$0xff]   ;;  %v13264_v31 = vld [vmem:[%s15526_s1 + $0x224] ss:$24 sps:$4 sm:$0xff]  }
 0x5f1   : > { %4005 = vmatprep.subr.bf16.mxu0 %v13183_v35  ;;  %4091 = vmatprep.subr.bf16.mxu1 %v13186_v36  ;;  %v13262_v35 = vld [vmem:[%s15526_s1 + $0x220] ss:$24 sps:$4 sm:$0xff]   ;;  %v13267_v36 = vld [vmem:[%s15526_s1 + $0x254] ss:$24 sps:$4 sm:$0xff]  }
 0x5f4   : > { %4006 = vmatpush1.bf16.msra.mxu0 %v13181_v32  ;;  %4092 = vmatpush1.bf16.msra.mxu1 %v13184_v37  ;;  %v13265_v32 = vld [vmem:[%s15526_s1 + $0x250] ss:$24 sps:$4 sm:$0xff]   ;;  %v13270_v37 = vld [vmem:[%s15526_s1 + $0x284] ss:$24 sps:$4 sm:$0xff]  }
 0x5f5   : > { %4007 = vmatprep.subr.bf16.mxu0 %v13189_v15  ;;  %4093 = vmatprep.subr.bf16.mxu1 %v13192_v38  ;;  %v13268_v15 = vld [vmem:[%s15526_s1 + $0x280] ss:$24 sps:$4 sm:$0xff]   ;;  %v13273_v38 = vld [vmem:[%s15526_s1 + $0x2b4] ss:$24 sps:$4 sm:$0xff]  }
 0x5f8   : > { %4008 = vmatpush1.bf16.msra.mxu0 %v13187_v14  ;;  %4094 = vmatpush1.bf16.msra.mxu1 %v13190_v39  ;;  %v13271_v14 = vld [vmem:[%s15526_s1 + $0x2b0] ss:$24 sps:$4 sm:$0xff]   ;;  %v13276_v39 = vld [vmem:[%s15526_s1 + $0x2e4] ss:$24 sps:$4 sm:$0xff]  }
 0x5f9   : > { %4009 = vmatprep.subr.bf16.mxu0 %v13195_v16  ;;  %4095 = vmatprep.subr.bf16.mxu1 %v13198_v40  ;;  %v13274_v16 = vld [vmem:[%s15526_s1 + $0x2e0] ss:$24 sps:$4 sm:$0xff]   ;;  %v13279_v40 = vld [vmem:[%s15526_s1 + $0x314] ss:$24 sps:$4 sm:$0xff]  }
 0x5fc   : > { %4010 = vmatpush1.bf16.msra.mxu0 %v13193_v41  ;;  %4096 = vmatpush1.bf16.msra.mxu1 %v13196_v42  ;;  %v13277_v41 = vld [vmem:[%s15526_s1 + $0x310] ss:$24 sps:$4 sm:$0xff]   ;;  %v13282_v42 = vld [vmem:[%s15526_s1 + $0x344] ss:$24 sps:$4 sm:$0xff]  }
 0x5fd   : > { %4011 = vmatprep.subr.bf16.mxu0 %v13201_v43  ;;  %4097 = vmatprep.subr.bf16.mxu1 %v13204_v44  ;;  %v13280_v43 = vld [vmem:[%s15526_s1 + $0x340] ss:$24 sps:$4 sm:$0xff]   ;;  %v13285_v44 = vld [vmem:[%s15526_s1 + $0x374] ss:$24 sps:$4 sm:$0xff]  }
 0x600   : > { %4012 = vmatpush1.bf16.msra.mxu0 %v13199_v45  ;;  %4098 = vmatpush1.bf16.msra.mxu1 %v13202_v18  ;;  %v13283_v45 = vld [vmem:[%s15526_s1 + $0x370] ss:$24 sps:$4 sm:$0xff]   ;;  %v13288_v18 = vld [vmem:[%s15526_s1 + $0x3a4] ss:$24 sps:$4 sm:$0xff]  }
 0x601   : > { %4013 = vmatprep.subr.bf16.mxu0 %v13207_v46  ;;  %4099 = vmatprep.subr.bf16.mxu1 %v13210_v24  ;;  %v13286_v46 = vld [vmem:[%s15526_s1 + $0x3a0] ss:$24 sps:$4 sm:$0xff]   ;;  %v13291_v24 = vld [vmem:[%s15526_s1 + $0x3d4] ss:$24 sps:$4 sm:$0xff]  }
 0x604   : > { %4014 = vmatpush1.bf16.msra.mxu0 %v13205_v47  ;;  %4100 = vmatpush1.bf16.msra.mxu1 %v13208_v23  ;;  %v13292_v47 = vld [vmem:[%s15526_s1 + $0x400] ss:$24 sps:$4 sm:$0xff]   ;;  %v13297_v23 = vld [vmem:[%s15526_s1 + $0x434] ss:$24 sps:$4 sm:$0xff]  }
 0x605   : > { %4015 = vmatprep.subr.bf16.mxu0 %v13213_v48  ;;  %4101 = vmatprep.subr.bf16.mxu1 %v13216_v49  ;;  %v14601_v48 = vmov 0.0   ;;  %v13295_v49 = vld [vmem:[%s15526_s1 + $0x430] ss:$24 sps:$4 sm:$0xff]  }
 0x608   : > { %4016 = vmatpush1.bf16.msra.mxu0 %v13211_v33  ;;  %4102 = vmatpush1.bf16.msra.mxu1 %v13214_v26  ;;  %v13300_v33 = vld [vmem:[%s15526_s1 + $0x464] ss:$24 sps:$4 sm:$0xff]   ;;  %v13298_v26 = vld [vmem:[%s15526_s1 + $0x460] ss:$24 sps:$4 sm:$0xff]  }
 0x609   : > { %4017 = vmatprep.subr.bf16.mxu0 %v13219_v51  ;;  %4103 = vmatprep.subr.bf16.mxu1 %v13222_v53  ;;  %v13303_v51 = vld [vmem:[%s15526_s1 + $0x494] ss:$24 sps:$4 sm:$0xff]   ;;  %v13301_v53 = vld [vmem:[%s15526_s1 + $0x490] ss:$24 sps:$4 sm:$0xff]  }
 0x60c   : > { %4018 = vmatpush1.bf16.msra.mxu0 %v13217_v55  ;;  %4104 = vmatpush1.bf16.msra.mxu1 %v13220_v56  ;;  %v13306_v55 = vld [vmem:[%s15526_s1 + $0x4c4] ss:$24 sps:$4 sm:$0xff]   ;;  %v13304_v56 = vld [vmem:[%s15526_s1 + $0x4c0] ss:$24 sps:$4 sm:$0xff]  }
 0x60d   : > { %4019 = vmatprep.subr.bf16.mxu0 %v13225_v58  ;;  %4105 = vmatprep.subr.bf16.mxu1 %v13228_v59  ;;  %v13309_v58 = vld [vmem:[%s15526_s1 + $0x4f4] ss:$24 sps:$4 sm:$0xff]   ;;  %v13307_v59 = vld [vmem:[%s15526_s1 + $0x4f0] ss:$24 sps:$4 sm:$0xff]  }
 0x610   : > { %4020 = vmatpush1.bf16.msra.mxu0 %v13223_v60  ;;  %4106 = vmatpush1.bf16.msra.mxu1 %v13226_v61  ;;  %v13312_v60 = vld [vmem:[%s15526_s1 + $0x524] ss:$24 sps:$4 sm:$0xff]   ;;  %v13310_v61 = vld [vmem:[%s15526_s1 + $0x520] ss:$24 sps:$4 sm:$0xff]  }
 0x611   : > { %4118 = vmatprep.subr.bf16.mxu0 %v13231_v62  ;;  %12433 = vmatprep.subr.mxu1 %v14601_v48  ;;  %v13315_v62 = vld [vmem:[%s15526_s1 + $0x554] ss:$24 sps:$4 sm:$0xff]  }
 0x613   : > { %4022 = vmatmul.mubr.bf16.vlgmr.msra.gmra.mrb[0].mxu0 %v15749_v54  ;;  %4108 = vmatmul.mubr.bf16.vlgmr.msra.gmra.mrb[0].mxu1 %v15749_v54 }
 0x614   : > { %4119 = vmatpush1.bf16.msra.mxu0 %v13229_v63  ;;  %4150 = vmatprep.mubr.bf16.mxu0 %v15743_v50  ;;  %v13246_v50 = vld [vmem:[%s15526_s1 + $0x104] ss:$24 sps:$4 sm:$0xff]   ;;  %v13313_v63 = vld [vmem:[%s15526_s1 + $0x550] ss:$24 sps:$4 sm:$0xff]  }
 0x615   : > { %4120 = vmatprep.subr.bf16.mxu0 %v13234_v0  ;;  %12435 = vmatprep.mubr.msk.f32.mxu1 %vm14602_vm1, %v14601_v48  ;;  %v13318_v0 = vld [vmem:[%s15526_s1 + $0x584] ss:$24 sps:$4 sm:$0xff]  }
 0x618   : > { %4121 = vmatpush1.bf16.msra.mxu0 %v13232_v1  ;;  %v13316_v1 = vld [vmem:[%s15526_s1 + $0x580] ss:$24 sps:$4 sm:$0xff]  }
 0x619   : > { %4122 = vmatprep.subr.bf16.mxu0 %v13237_v2  ;;  %v13321_v2 = vld [vmem:[%s15526_s1 + $0x5b4] ss:$24 sps:$4 sm:$0xff]  }
 0x61c   : > { %4123 = vmatpush1.bf16.msra.mxu0 %v13235_v3  ;;  %v13319_v3 = vld [vmem:[%s15526_s1 + $0x5b0] ss:$24 sps:$4 sm:$0xff]  }
 0x61d   : > { %4124 = vmatprep.subr.bf16.mxu0 %v13240_v5  ;;  %v13324_v5 = vld [vmem:[%s15526_s1 + $0x5e4] ss:$24 sps:$4 sm:$0xff]  }
 0x620   : > { %4125 = vmatpush1.bf16.msra.mxu0 %v13238_v6  ;;  %v13322_v6 = vld [vmem:[%s15526_s1 + $0x5e0] ss:$24 sps:$4 sm:$0xff]  }
 0x621   : > { %4126 = vmatprep.subr.bf16.mxu0 %v13243_v7 }
 0x624   : > { %4127 = vmatpush1.bf16.msra.mxu0 %v13241_v9 }
 0x625   : > { %4128 = vmatprep.subr.bf16.mxu0 %v13246_v50 }
 0x628   : > { %4129 = vmatpush1.bf16.msra.mxu0 %v13244_v11 }
 0x629   : > { %4130 = vmatprep.subr.bf16.mxu0 %v13249_v17 }
 0x62c   : > { %4131 = vmatpush1.bf16.msra.mxu0 %v13247_v19 }
 0x62d   : > { %4132 = vmatprep.subr.bf16.mxu0 %v13252_v20 }
 0x630   : > { %4133 = vmatpush1.bf16.msra.mxu0 %v13250_v21 }
 0x631   : > { %4134 = vmatprep.subr.bf16.mxu0 %v13255_v25 }
 0x634   : > { %4135 = vmatpush1.bf16.msra.mxu0 %v13253_v27 }
 0x635   : > { %4136 = vmatprep.subr.bf16.mxu0 %v13258_v28 }
 0x638   : > { %4137 = vmatpush1.bf16.msra.mxu0 %v13256_v29 }
 0x639   : > { %4138 = vmatprep.subr.bf16.mxu0 %v13261_v30 }
 0x63c   : > { %4139 = vmatpush1.bf16.msra.mxu0 %v13259_v34  ;;  %v4362_v34 = vand.u32 127, %v2733_v4 }
 0x63d   : > { %4140 = vmatprep.subr.bf16.mxu0 %v13264_v31 }
 0x63e   : > { %vm15922_vm3 = vcmp.le.s32.totalorder %v4362_v34, %v15709_v8 }
 0x640   : > { %4141 = vmatpush1.bf16.msra.mxu0 %v13262_v35 }
 0x641   : > { %4142 = vmatprep.subr.bf16.mxu0 %v13267_v36 }
 0x644   : > { %4143 = vmatpush1.bf16.msra.mxu0 %v13265_v32 }
 0x645   : > { %4144 = vmatprep.subr.bf16.mxu0 %v13270_v37 }
 0x648   : > { %4145 = vmatpush1.bf16.msra.mxu0 %v13268_v15 }
 0x649   : > { %4146 = vmatprep.subr.bf16.mxu0 %v13273_v38 }
 0x64c   : > { %4147 = vmatpush1.bf16.msra.mxu0 %v13271_v14 }
 0x64d   : > { %4148 = vmatprep.subr.bf16.mxu0 %v13276_v39 }
 0x650   : > { %4149 = vmatpush1.bf16.msra.mxu0 %v13274_v16 }
 0x651   : > { %4161 = vmatprep.subr.bf16.mxu0 %v13279_v40 }
 0x653   : > { %4151 = vmatmul.mubr.bf16.vlgmr.msra.gmra.mrb[4].mxu0 %v15747_v52  ;;  %v13289_v52 = vld [vmem:[%s15526_s1 + $0x3d0] ss:$24 sps:$4 sm:$0xff]  }
 0x654   : > { %4162 = vmatpush1.bf16.msra.mxu0 %v13277_v41  ;;  %4193 = vmatprep.mubr.bf16.mxu0 %v15757_v57  ;;  %v13294_v57 = vld [vmem:[%s15526_s1 + $0x404] ss:$24 sps:$4 sm:$0xff]   ;;  %s14603_s1 = smov 64  }
 0x655   : > { %4163 = vmatprep.subr.bf16.mxu0 %v13282_v42 }
 0x658   : > { %4164 = vmatpush1.bf16.msra.mxu0 %v13280_v43 }
 0x659   : > { %4165 = vmatprep.subr.bf16.mxu0 %v13285_v44 }
 0x65c   : > { %4166 = vmatpush1.bf16.msra.mxu0 %v13283_v45 }
 0x65d   : > { %4167 = vmatprep.subr.bf16.mxu0 %v13288_v18 }
 0x660   : > { %4168 = vmatpush1.bf16.msra.mxu0 %v13286_v46 }
 0x661   : > { %4169 = vmatprep.subr.bf16.mxu0 %v13291_v24 }
 0x664   : > { %4170 = vmatpush1.bf16.msra.mxu0 %v13289_v52 }
 0x665   : > { %4171 = vmatprep.subr.bf16.mxu0 %v13294_v57 }
 0x668   : > { %4172 = vmatpush1.bf16.msra.mxu0 %v13292_v47 }
 0x669   : > { %4173 = vmatprep.subr.bf16.mxu0 %v13297_v23 }
 0x66c   : > { %4174 = vmatpush1.bf16.msra.mxu0 %v13295_v49 }
 0x66d   : > { %4175 = vmatprep.subr.bf16.mxu0 %v13300_v33 }
 0x670   : > { %4176 = vmatpush1.bf16.msra.mxu0 %v13298_v26 }
 0x671   : > { %4177 = vmatprep.subr.bf16.mxu0 %v13303_v51 }
 0x674   : > { %4178 = vmatpush1.bf16.msra.mxu0 %v13301_v53 }
 0x675   : > { %4179 = vmatprep.subr.bf16.mxu0 %v13306_v55 }
 0x678   : > { %4180 = vmatpush1.bf16.msra.mxu0 %v13304_v56 }
 0x679   : > { %4181 = vmatprep.subr.bf16.mxu0 %v13309_v58 }
 0x67c   : > { %4182 = vmatpush1.bf16.msra.mxu0 %v13307_v59 }
 0x67d   : > { %4183 = vmatprep.subr.bf16.mxu0 %v13312_v60 }
 0x680   : > { %4184 = vmatpush1.bf16.msra.mxu0 %v13310_v61 }
 0x681   : > { %4185 = vmatprep.subr.bf16.mxu0 %v13315_v62 }
 0x684   : > { %4186 = vmatpush1.bf16.msra.mxu0 %v13313_v63 }
 0x685   : > { %4187 = vmatprep.subr.bf16.mxu0 %v13318_v0 }
 0x688   : > { %4188 = vmatpush1.bf16.msra.mxu0 %v13316_v1 }
 0x689   : > { %4189 = vmatprep.subr.bf16.mxu0 %v13321_v2 }
 0x68c   : > { %4190 = vmatpush1.bf16.msra.mxu0 %v13319_v3 }
 0x68d   : > { %4191 = vmatprep.subr.bf16.mxu0 %v13324_v5 }
 0x690   : > { %4192 = vmatpush1.bf16.msra.mxu0 %v13322_v6 }
 0x693   : > { %4194 = vmatmul.mubr.bf16.vlgmr.msra.gmra.mrb[4].mxu0 %v15749_v54 }
 0x6e6   : > { %v4023_v7 = vpop.f32.mrb[0].mxu0  ;;  %v4109_v9 = vpop.f32.mrb[0].mxu1 }
 0x6e7   : > { %v4204_v50 = vmul.f32 0.125, %v4023_v7  ;;  %v15892_v11 = vpop.f32.mrb[1].mxu0  ;;  %v15894_v17 = vpop.f32.mrb[1].mxu1  ;;  %12434 = vmatpush3.xpose.msk.msra.mxu1 %vm4206_vm2, %v4109_v9 }
 0x6e8   : > { %v4027_v19 = vpop.f32.mrb[2].mxu0  ;;  %v4113_v20 = vpop.f32.mrb[2].mxu1  ;;  %12438 = vmatprep.subr.mxu1 %v14601_v48 }
 0x6e9   : > { %v15898_v21 = vpop.f32.mrb[3].mxu0  ;;  %v15900_v25 = vpop.f32.mrb[3].mxu1  ;;  %v4205_v54 = vmul.f32 0.125, %v4027_v19 }
 0x6ea   : > { %12436 = vmatmul.mubr.msk.f32.vlgmr.msra.gmra.mrb[4].mxu1 %vm4206_vm2, %v4204_v50 }
 0x6eb   : > { %12439 = vmatpush3.xpose.msk.msra.mxu1 %vm4206_vm2, %v4113_v20  ;;  %12440 = vmatprep.mubr.msk.f32.mxu1 %vm14602_vm1, %v14601_v48 }
 0x6ec   : > { %12443 = vmatprep.subr.mxu1 %v14601_v48 }
 0x6ee   : > { %12441 = vmatmul.mubr.msk.f32.vlgmr.msra.gmra.mrb[6].mxu1 %vm4206_vm2, %v4205_v54 }
 0x6ef   : > { %12445 = vmatprep.mubr.msk.f32.mxu1 %vm14602_vm1, %v14601_v48 }
 0x766   : > { %v15910_v27 = vpop.f32.mrb[4].mxu0 }
 0x767   : > { %v15912_v28 = vpop.f32.mrb[5].mxu0  ;;  %12444 = vmatpush3.msra.mxu1 %v15910_v27 }
 0x768   : > { %v15915_v29 = vpop.f32.mrb[6].mxu0  ;;  %12448 = vmatprep.subr.mxu1 %v14601_v48 }
 0x769   : > { %v15918_v30 = vpop.f32.mrb[7].mxu0 }
 0x7bd   : > { %v4279_v35 = vpop.f32.mrb[4].mxu1 }
 0x7be   : > { %v4366_v36 = vsel %vm15922_vm3, %v4279_v35, -1e+30  ;;  %v12437_v32 = vpop.f32.mrb[5].mxu1 }
 0x7bf   : > { %v4369_v37 = vsel %vm4368_vm4, %v4366_v36, -inf }
 0x7c0   : > { %4370 = vmax.xlane.f32.xlu0 %v4369_v37 }
 0x7c1   : > { %v4355_v15 = vpop.f32.mrb[6].mxu1 }
 0x7c2   : > { %v4367_v38 = vsel %vm15922_vm3, %v4355_v15, -1e+30  ;;  %v12442_v14 = vpop.f32.mrb[7].mxu1 }
 0x7c3   : > { %v4372_v4 = vsel %vm4368_vm4, %v4367_v38, -inf }
 0x7c4   : > { %4373 = vmax.xlane.f32.xlu1 %v4372_v4 }
 0x7d5   : > { %4537 = vrot.lane.b32.xlu1 %v4204_v50, %s14603_s1 }
 0x84d   : > { %v4371_v39 = vpop.xlane.xlu0 %4370 }
 0x84e   : > { %v4375_v16 = vsub.f32 %v4366_v36, %v4371_v39  ;;  %v4872_v39 = vmul.f32 0.125, %v15898_v21 }
 0x850   : > { %v4377_v40 = vmul.f32 1.442695, %v4375_v16 }
 0x851   : > { %v4374_v41 = vpop.xlane.xlu1 %4373 }
 0x852   : > { %13618 = vpow2.f32 %v4377_v40  ;;  %v4376_v42 = vsub.f32 %v4367_v38, %v4374_v41 }
 0x854   : > { %v4379_v43 = vmul.f32 1.442695, %v4376_v42 }
 0x855   : > { %v4538_v24 = vpop.permute.xlu1 %4537 }
 0x856   : > { %13620 = vpow2.f32 %v4379_v43 }
 0x85c   : > { %v13619_v44 = vpop.eup %13618 }
 0x85d   : > { %v4381_v45 = vsel %vm4368_vm4, %v13619_v44, 0.0 }
 0x85e   : > { %4382 = vadd.xlane.f32.xlu0 %v4381_v45 }
 0x860   : > { %v13621_v18 = vpop.eup %13620 }
 0x861   : > { %v4384_v46 = vsel %vm4368_vm4, %v13621_v18, 0.0 }
 0x862   : > { %4385 = vadd.xlane.f32.xlu1 %v4384_v46 }
 0x873   : > { %4617 = vrot.lane.b32.xlu1 %v4113_v20, %s14603_s1 }
 0x874   : > { %4539 = vrot.lane.b32.xlu0 %v4109_v9, %s14603_s1 }
 0x877   : > { %4615 = vrot.lane.b32.xlu1 %v4205_v54, %s14603_s1 }
 0x8eb   : > { %v4383_v52 = vpop.xlane.xlu0 %4382 }
 0x8ec   : > { %13622 = vrcp.f32 %v4383_v52 }
 0x8ef   : > { %v4386_v57 = vpop.xlane.xlu1 %4385  ;;  %v4540_v26 = vpop.permute.xlu0 %4539 }
 0x8f0   : > { %13624 = vrcp.f32 %v4386_v57 }
 0x8f3   : > { %v4618_v51 = vpop.permute.xlu1 %4617 }
 0x8f6   : > { %v13623_v47 = vpop.eup %13622 }
 0x8f7   : > { %v4389_v23 = vmul.f32 %v13623_v47, %v13619_v44  ;;  %v4616_v53 = vpop.permute.xlu1 %4615 }
 0x8f9   : > { %12446 = vmatmul.mubr.msk.f32.vlgmr.msra.gmra.mrb[8].mxu1 %vm4368_vm4, %v4389_v23 }
 0x8fa   : > { %v13625_v49 = vpop.eup %13624  ;;  %12449 = vmatpush3.msra.mxu1 %v15915_v29  ;;  %12450 = vmatprep.mubr.msk.f32.mxu1 %vm14602_vm1, %v14601_v48 }
 0x8fb   : > { %v4390_v33 = vmul.f32 %v13625_v49, %v13621_v18  ;;  %12453 = vmatprep.subr.mxu1 %v14601_v48 }
 0x8fd   : > { %12451 = vmatmul.mubr.msk.f32.vlgmr.msra.gmra.mrb[10].mxu1 %vm4368_vm4, %v4390_v33 }
 0x8fe   : > { %12455 = vmatprep.mubr.msk.f32.mxu1 %vm14602_vm1, %v14601_v48 }
 0x901   : > { %12454 = vmatpush3.xpose.msk.msra.mxu1 %vm4206_vm2, %v4540_v26 }
 0x902   : > { %12458 = vmatprep.subr.mxu1 %v14601_v48 }
 0x904   : > { %12456 = vmatmul.mubr.msk.f32.vlgmr.msra.gmra.mrb[12].mxu1 %vm4206_vm2, %v4538_v24 }
 0x905   : > { %12459 = vmatpush3.xpose.msk.msra.mxu1 %vm4206_vm2, %v4618_v51  ;;  %12460 = vmatprep.mubr.msk.f32.mxu1 %vm14602_vm1, %v14601_v48 }
 0x906   : > { %12463 = vmatprep.subr.mxu1 %v14601_v48 }
 0x908   : > { %12461 = vmatmul.mubr.msk.f32.vlgmr.msra.gmra.mrb[14].mxu1 %vm4206_vm2, %v4616_v53 }
 0x909   : > { %12465 = vmatprep.mubr.msk.f32.mxu1 %vm14602_vm1, %v14601_v48 }
 0x9cc   : > { %v15956_v55 = vpop.f32.mrb[8].mxu1 }
 0x9cd   : > { %v12447_v56 = vpop.f32.mrb[9].mxu1 }
 0x9d0   : > { %v15958_v58 = vpop.f32.mrb[10].mxu1 }
 0x9d1   : > { %v12452_v59 = vpop.f32.mrb[11].mxu1 }
 0x9d7   : > { %v4611_v60 = vpop.f32.mrb[12].mxu1 }
 0x9d8   : > { %v4693_v61 = vsel %vm15922_vm3, %v4611_v60, -1e+30  ;;  %v12457_v62 = vpop.f32.mrb[13].mxu1 }
 0x9d9   : > { %v4695_v63 = vsel %vm4368_vm4, %v4693_v61, -inf }
 0x9da   : > { %4696 = vmax.xlane.f32.xlu0 %v4695_v63 }
 0x9db   : > { %v4689_v0 = vpop.f32.mrb[14].mxu1 }
 0x9dc   : > { %v4694_v1 = vsel %vm15922_vm3, %v4689_v0, -1e+30  ;;  %v12462_v2 = vpop.f32.mrb[15].mxu1 }
 0x9dd   : > { %v4698_v3 = vsel %vm4368_vm4, %v4694_v1, -inf }
 0x9de   : > { %4699 = vmax.xlane.f32.xlu1 %v4698_v3 }
 0x9ef   : > { %4795 = vrot.lane.b32.xlu1 %v15915_v29, %s14603_s1 }
 0xa67   : > { %v4697_v5 = vpop.xlane.xlu0 %4696 }
 0xa68   : > { %v4701_v6 = vsub.f32 %v4693_v61, %v4697_v5 }
 0xa6a   : > { %v4703_v7 = vmul.f32 1.442695, %v4701_v6 }
 0xa6b   : > { %v4700_v9 = vpop.xlane.xlu1 %4699 }
 0xa6c   : > { %13626 = vpow2.f32 %v4703_v7  ;;  %v4702_v50 = vsub.f32 %v4694_v1, %v4700_v9 }
 0xa6e   : > { %v4705_v19 = vmul.f32 1.442695, %v4702_v50 }
 0xa6f   : > { %v4796_v38 = vpop.permute.xlu1 %4795 }
 0xa70   : > { %13628 = vpow2.f32 %v4705_v19 }
 0xa76   : > { %v13627_v20 = vpop.eup %13626 }
 0xa77   : > { %v4707_v54 = vsel %vm4368_vm4, %v13627_v20, 0.0 }
 0xa78   : > { %4708 = vadd.xlane.f32.xlu0 %v4707_v54 }
 0xa7a   : > { %v13629_v34 = vpop.eup %13628 }
 0xa7b   : > { %v4710_v35 = vsel %vm4368_vm4, %v13629_v34, 0.0 }
 0xa7c   : > { %4711 = vadd.xlane.f32.xlu0 %v4710_v35 }
 0xa92   : > { %4718 = vrot.lane.b32.xlu0 %v15910_v27, %s14603_s1  ;;  %v4871_v27 = vmul.f32 0.125, %v15892_v11 }
 0xb05   : > { %v4709_v29 = vpop.xlane.xlu0 %4708 }
 0xb06   : > { %13630 = vrcp.f32 %v4709_v29 }
 0xb09   : > { %v4712_v36 = vpop.xlane.xlu0 %4711 }
 0xb0a   : > { %13632 = vrcp.f32 %v4712_v36 }
 0xb0d   : > { %v4719_v32 = vpop.permute.xlu0 %4718 }
 0xb0e   : > { %12464 = vmatpush3.msra.mxu1 %v4719_v32 }
 0xb0f   : > { %12468 = vmatprep.subr.mxu1 %v14601_v48 }
 0xb10   : > { %v13631_v37 = vpop.eup %13630 }
 0xb11   : > { %v4715_v15 = vmul.f32 %v13631_v37, %v13627_v20 }
 0xb13   : > { %12466 = vmatmul.mubr.msk.f32.vlgmr.msra.gmra.mrb[16].mxu1 %vm4368_vm4, %v4715_v15 }
 0xb14   : > { %v13633_v14 = vpop.eup %13632  ;;  %12469 = vmatpush3.msra.mxu1 %v4796_v38  ;;  %12470 = vmatprep.mubr.msk.f32.mxu1 %vm14602_vm1, %v14601_v48 }
 0xb15   : > { %v4716_v4 = vmul.f32 %v13633_v14, %v13629_v34  ;;  %12473 = vmatprep.subr.mxu1 %v14601_v48 }
 0xb17   : > { %12471 = vmatmul.mubr.msk.f32.vlgmr.msra.gmra.mrb[18].mxu1 %vm4368_vm4, %v4716_v4 }
 0xb18   : > { %12475 = vmatprep.mubr.msk.f32.mxu1 %vm14602_vm1, %v14601_v48 }
 0xb1b   : > { %12474 = vmatpush3.xpose.msk.msra.mxu1 %vm4206_vm2, %v15894_v17 }
 0xb1c   : > { %12478 = vmatprep.subr.mxu1 %v14601_v48 }
 0xb1e   : > { %12476 = vmatmul.mubr.msk.f32.vlgmr.msra.gmra.mrb[20].mxu1 %vm4206_vm2, %v4871_v27 }
 0xb1f   : > { %12479 = vmatpush3.xpose.msk.msra.mxu1 %vm4206_vm2, %v15900_v25  ;;  %12480 = vmatprep.mubr.msk.f32.mxu1 %vm14602_vm1, %v14601_v48 }
 0xb20   : > { %12483 = vmatprep.subr.mxu1 %v14601_v48 }
 0xb22   : > { %12481 = vmatmul.mubr.msk.f32.vlgmr.msra.gmra.mrb[22].mxu1 %vm4206_vm2, %v4872_v39 }
 0xb23   : > { %12484 = vmatpush3.msra.mxu1 %v15912_v28  ;;  %12485 = vmatprep.mubr.msk.f32.mxu1 %vm14602_vm1, %v14601_v48 }
 0xb24   : > { %12488 = vmatprep.subr.mxu1 %v14601_v48 }
 0xbe6   : > { %v15996_v11 = vpop.f32.mrb[16].mxu1 }
 0xbe7   : > { %v12467_v16 = vpop.f32.mrb[17].mxu1 }
 0xbea   : > { %v15998_v40 = vpop.f32.mrb[18].mxu1 }
 0xbeb   : > { %v13032_v41 = vpack.i.bf16 %v15998_v40, %v15996_v11  ;;  %v12472_v21 = vpop.f32.mrb[19].mxu1 }
 0xbf1   : > { %v4945_v42 = vpop.f32.mrb[20].mxu1 }
 0xbf2   : > { %v5025_v43 = vsel %vm15922_vm3, %v4945_v42, -1e+30  ;;  %v12477_v44 = vpop.f32.mrb[21].mxu1 }
 0xbf3   : > { %v5027_v45 = vsel %vm4368_vm4, %v5025_v43, -inf }
 0xbf4   : > { %5028 = vmax.xlane.f32.xlu1 %v5027_v45 }
 0xbf5   : > { %v5021_v18 = vpop.f32.mrb[22].mxu1 }
 0xbf6   : > { %v5026_v46 = vsel %vm15922_vm3, %v5021_v18, -1e+30  ;;  %v12482_v24 = vpop.f32.mrb[23].mxu1 }
 0xbf7   : > { %v5030_v52 = vsel %vm4368_vm4, %v5026_v46, -inf  ;;  %v13327_v24 = vld [vmem:[%s15528_s3 + $0x4] ss:$16 sps:$4 sm:$0xff]  }
 0xbf8   : > { %5031 = vmax.xlane.f32.xlu0 %v5030_v52  ;;  %v13328_v52 = vld [vmem:[%s15528_s3 + $0x8] ss:$16 sps:$4 sm:$0xff]  }
 0xc05   : > { %5195 = vrot.lane.b32.xlu1 %v4871_v27, %s14603_s1 }
 0xc09   : > { %5275 = vrot.lane.b32.xlu1 %v15900_v25, %s14603_s1 }
 0xc81   : > { %v5029_v57 = vpop.xlane.xlu1 %5028 }
 0xc82   : > { %v5033_v47 = vsub.f32 %v5025_v43, %v5029_v57  ;;  %v13330_v57 = vld [vmem:[%s15528_s3 + $0xc] ss:$16 sps:$4 sm:$0xff]  }
 0xc83   : > { %5978 = vmatprep.subr.bf16.mxu0 %v13330_v57  ;;  %v13406_v57 = vld [vmem:[%s15528_s3 + $0x1a8] ss:$16 sps:$4 sm:$0xff]  }
 0xc84   : > { %v5035_v23 = vmul.f32 1.442695, %v5033_v47  ;;  %v13333_v47 = vld [vmem:[%s15528_s3 + $0x24] ss:$16 sps:$4 sm:$0xff]   ;;  %5979 = vmatpush1.bf16.msra.mxu0 %v13328_v52  ;;  %v13403_v52 = vld [vmem:[%s15528_s3 + $0x1a0] ss:$16 sps:$4 sm:$0xff]  }
 0xc85   : > { %v5032_v49 = vpop.xlane.xlu0 %5031  ;;  %v5196_v25 = vpop.permute.xlu1 %5195 }
 0xc86   : > { %13634 = vpow2.f32 %v5035_v23  ;;  %v5034_v33 = vsub.f32 %v5026_v46, %v5032_v49  ;;  %v13325_v46 = vld [vmem:[%s15528_s3] ss:$16 sps:$4 sm:$0xff]   ;;  %v13336_v23 = vld [vmem:[%s15528_s3 + $0x2c] ss:$16 sps:$4 sm:$0xff]  }
 0xc87   : > { %v13331_v49 = vld [vmem:[%s15528_s3 + $0x20] ss:$16 sps:$4 sm:$0xff]   ;;  %5980 = vmatprep.subr.bf16.mxu0 %v13336_v23 }
 0xc88   : > { %v5037_v26 = vmul.f32 1.442695, %v5034_v33  ;;  %v13339_v33 = vld [vmem:[%s15528_s3 + $0x44] ss:$16 sps:$4 sm:$0xff]   ;;  %v13409_v23 = vld [vmem:[%s15528_s3 + $0x1c0] ss:$16 sps:$4 sm:$0xff]  }
 0xc89   : > { %v5276_v60 = vpop.permute.xlu1 %5275 }
 0xc8a   : > { %13636 = vpow2.f32 %v5037_v26  ;;  %v13342_v26 = vld [vmem:[%s15528_s3 + $0x4c] ss:$16 sps:$4 sm:$0xff]  }
 0xc90   : > { %v13635_v51 = vpop.eup %13634 }
 0xc91   : > { %v5039_v53 = vsel %vm4368_vm4, %v13635_v51, 0.0 }
 0xc92   : > { %5040 = vadd.xlane.f32.xlu0 %v5039_v53  ;;  %v13340_v53 = vld [vmem:[%s15528_s3 + $0x48] ss:$16 sps:$4 sm:$0xff]  }
 0xc94   : > { %v13637_v56 = vpop.eup %13636 }
 0xc95   : > { %v5042_v59 = vsel %vm4368_vm4, %v13637_v56, 0.0 }
 0xc96   : > { %5043 = vadd.xlane.f32.xlu1 %v5042_v59  ;;  %v13348_v59 = vld [vmem:[%s15528_s3 + $0x6c] ss:$16 sps:$4 sm:$0xff]  }
 0xca7   : > { %5273 = vrot.lane.b32.xlu1 %v4872_v39, %s14603_s1 }
 0xca8   : > { %5197 = vrot.lane.b32.xlu0 %v15894_v17, %s14603_s1 }
 0xd1f   : > { %v5041_v61 = vpop.xlane.xlu0 %5040 }
 0xd20   : > { %13638 = vrcp.f32 %v5041_v61  ;;  %v13351_v61 = vld [vmem:[%s15528_s3 + $0x84] ss:$16 sps:$4 sm:$0xff]  }
 0xd23   : > { %v5044_v62 = vpop.xlane.xlu1 %5043  ;;  %v5198_v17 = vpop.permute.xlu0 %5197 }
 0xd24   : > { %13640 = vrcp.f32 %v5044_v62  ;;  %v13354_v62 = vld [vmem:[%s15528_s3 + $0x8c] ss:$16 sps:$4 sm:$0xff]  }
 0xd27   : > { %v5274_v3 = vpop.permute.xlu1 %5273 }
 0xd2a   : > { %v13639_v63 = vpop.eup %13638 }
 0xd2b   : > { %v5047_v0 = vmul.f32 %v13639_v63, %v13635_v51  ;;  %v13337_v51 = vld [vmem:[%s15528_s3 + $0x40] ss:$16 sps:$4 sm:$0xff]  }
 0xd2c   : > { %v13349_v63 = vld [vmem:[%s15528_s3 + $0x80] ss:$16 sps:$4 sm:$0xff]  }
 0xd2d   : > { %12486 = vmatmul.mubr.msk.f32.vlgmr.msra.gmra.mrb[24].mxu1 %vm4368_vm4, %v5047_v0  ;;  %v13352_v0 = vld [vmem:[%s15528_s3 + $0x88] ss:$16 sps:$4 sm:$0xff]  }
 0xd2e   : > { %v13641_v1 = vpop.eup %13640  ;;  %12489 = vmatpush3.msra.mxu1 %v15918_v30  ;;  %12490 = vmatprep.mubr.msk.f32.mxu1 %vm14602_vm1, %v14601_v48 }
 0xd2f   : > { %v5048_v2 = vmul.f32 %v13641_v1, %v13637_v56  ;;  %12493 = vmatprep.subr.mxu1 %v14601_v48  ;;  %v13345_v56 = vld [vmem:[%s15528_s3 + $0x64] ss:$16 sps:$4 sm:$0xff]  }
 0xd30   : > { %v13357_v1 = vld [vmem:[%s15528_s3 + $0xa4] ss:$16 sps:$4 sm:$0xff]  }
 0xd31   : > { %12491 = vmatmul.mubr.msk.f32.vlgmr.msra.gmra.mrb[26].mxu1 %vm4368_vm4, %v5048_v2  ;;  %v13360_v2 = vld [vmem:[%s15528_s3 + $0xac] ss:$16 sps:$4 sm:$0xff]  }
 0xd32   : > { %12495 = vmatprep.mubr.msk.f32.mxu1 %vm14602_vm1, %v14601_v48 }
 0xd35   : > { %12494 = vmatpush3.xpose.msk.msra.mxu1 %vm4206_vm2, %v5198_v17  ;;  %v13355_v17 = vld [vmem:[%s15528_s3 + $0xa0] ss:$16 sps:$4 sm:$0xff]  }
 0xd36   : > { %12498 = vmatprep.subr.mxu1 %v14601_v48 }
 0xd38   : > { %12496 = vmatmul.mubr.msk.f32.vlgmr.msra.gmra.mrb[28].mxu1 %vm4206_vm2, %v5196_v25  ;;  %v13343_v25 = vld [vmem:[%s15528_s3 + $0x60] ss:$16 sps:$4 sm:$0xff]  }
 0xd39   : > { %12499 = vmatpush3.xpose.msk.msra.mxu1 %vm4206_vm2, %v5276_v60  ;;  %12500 = vmatprep.mubr.msk.f32.mxu1 %vm14602_vm1, %v14601_v48  ;;  %v13346_v60 = vld [vmem:[%s15528_s3 + $0x68] ss:$16 sps:$4 sm:$0xff]  }
 0xd3a   : > { %12503 = vmatprep.subr.mxu1 %v14601_v48 }
 0xd3c   : > { %12501 = vmatmul.mubr.msk.f32.vlgmr.msra.gmra.mrb[30].mxu1 %vm4206_vm2, %v5274_v3  ;;  %v13358_v3 = vld [vmem:[%s15528_s3 + $0xa8] ss:$16 sps:$4 sm:$0xff]  }
 0xd3d   : > { %12505 = vmatprep.mubr.msk.f32.mxu1 %vm14602_vm1, %v14601_v48 }
 0xe00   : > { %v16034_v5 = vpop.f32.mrb[24].mxu1 }
 0xe01   : > { %v12487_v6 = vpop.f32.mrb[25].mxu1 }
 0xe02   : > { %v13363_v6 = vld [vmem:[%s15528_s3 + $0xc4] ss:$16 sps:$4 sm:$0xff]  }
 0xe04   : > { %v16036_v7 = vpop.f32.mrb[26].mxu1 }
 0xe05   : > { %v12492_v9 = vpop.f32.mrb[27].mxu1 }
 0xe06   : > { %v13366_v9 = vld [vmem:[%s15528_s3 + $0xcc] ss:$16 sps:$4 sm:$0xff]  }
 0xe0b   : > { %v5269_v50 = vpop.f32.mrb[28].mxu1 }
 0xe0c   : > { %v5351_v19 = vsel %vm15922_vm3, %v5269_v50, -1e+30  ;;  %v12497_v20 = vpop.f32.mrb[29].mxu1  ;;  %v13361_v50 = vld [vmem:[%s15528_s3 + $0xc0] ss:$16 sps:$4 sm:$0xff]  }
 0xe0d   : > { %v5353_v54 = vsel %vm4368_vm4, %v5351_v19, -inf  ;;  %v13369_v20 = vld [vmem:[%s15528_s3 + $0xe4] ss:$16 sps:$4 sm:$0xff]  }
 0xe0e   : > { %5354 = vmax.xlane.f32.xlu0 %v5353_v54  ;;  %v13372_v54 = vld [vmem:[%s15528_s3 + $0xec] ss:$16 sps:$4 sm:$0xff]  }
 0xe0f   : > { %v5347_v34 = vpop.f32.mrb[30].mxu1 }
 0xe10   : > { %v5352_v35 = vsel %vm15922_vm3, %v5347_v34, -1e+30  ;;  %v12502_v29 = vpop.f32.mrb[31].mxu1  ;;  %v13367_v34 = vld [vmem:[%s15528_s3 + $0xe0] ss:$16 sps:$4 sm:$0xff]  }
 0xe11   : > { %v5356_v36 = vsel %vm4368_vm4, %v5352_v35, -inf  ;;  %v13375_v29 = vld [vmem:[%s15528_s3 + $0x104] ss:$16 sps:$4 sm:$0xff]  }
 0xe12   : > { %5357 = vmax.xlane.f32.xlu1 %v5356_v36  ;;  %v13378_v36 = vld [vmem:[%s15528_s3 + $0x10c] ss:$16 sps:$4 sm:$0xff]  }
 0xe23   : > { %5453 = vrot.lane.b32.xlu1 %v15918_v30, %s14603_s1 }
 0xe9b   : > { %v5355_v32 = vpop.xlane.xlu0 %5354 }
 0xe9c   : > { %v5359_v37 = vsub.f32 %v5351_v19, %v5355_v32  ;;  %v13364_v19 = vld [vmem:[%s15528_s3 + $0xc8] ss:$16 sps:$4 sm:$0xff]   ;;  %v13373_v32 = vld [vmem:[%s15528_s3 + $0x100] ss:$16 sps:$4 sm:$0xff]  }
 0xe9e   : > { %v5361_v15 = vmul.f32 1.442695, %v5359_v37  ;;  %v13376_v37 = vld [vmem:[%s15528_s3 + $0x108] ss:$16 sps:$4 sm:$0xff]  }
 0xe9f   : > { %v5358_v38 = vpop.xlane.xlu1 %5357 }
 0xea0   : > { %13642 = vpow2.f32 %v5361_v15  ;;  %v5360_v14 = vsub.f32 %v5352_v35, %v5358_v38  ;;  %v13370_v35 = vld [vmem:[%s15528_s3 + $0xe8] ss:$16 sps:$4 sm:$0xff]   ;;  %v13381_v15 = vld [vmem:[%s15528_s3 + $0x124] ss:$16 sps:$4 sm:$0xff]   ;;  %v13384_v38 = vld [vmem:[%s15528_s3 + $0x12c] ss:$16 sps:$4 sm:$0xff]  }
 0xea2   : > { %v5363_v4 = vmul.f32 1.442695, %v5360_v14  ;;  %v13379_v14 = vld [vmem:[%s15528_s3 + $0x120] ss:$16 sps:$4 sm:$0xff]  }
 0xea3   : > { %v5454_v45 = vpop.permute.xlu1 %5453 }
 0xea4   : > { %13644 = vpow2.f32 %v5363_v4  ;;  %v13382_v4 = vld [vmem:[%s15528_s3 + $0x128] ss:$16 sps:$4 sm:$0xff]  }
 0xeaa   : > { %v13643_v27 = vpop.eup %13642 }
 0xeab   : > { %v5365_v39 = vsel %vm4368_vm4, %v13643_v27, 0.0 }
 0xeac   : > { %5366 = vadd.xlane.f32.xlu0 %v5365_v39  ;;  %v13390_v39 = vld [vmem:[%s15528_s3 + $0x14c] ss:$16 sps:$4 sm:$0xff]  }
 0xeae   : > { %v13645_v31 = vpop.eup %13644 }
 0xeaf   : > { %v5368_v16 = vsel %vm4368_vm4, %v13645_v31, 0.0 }
 0xeb0   : > { %5369 = vadd.xlane.f32.xlu0 %v5368_v16  ;;  %v13388_v16 = vld [vmem:[%s15528_s3 + $0x148] ss:$16 sps:$4 sm:$0xff]  }
 0xec6   : > { %5376 = vrot.lane.b32.xlu0 %v15912_v28, %s14603_s1 }
 0xf39   : > { %v5367_v30 = vpop.xlane.xlu0 %5366 }
 0xf3a   : > { %13646 = vrcp.f32 %v5367_v30  ;;  %v13393_v30 = vld [vmem:[%s15528_s3 + $0x164] ss:$16 sps:$4 sm:$0xff]  }
 0xf3d   : > { %v5370_v21 = vpop.xlane.xlu0 %5369 }
 0xf3e   : > { %13648 = vrcp.f32 %v5370_v21  ;;  %v13396_v21 = vld [vmem:[%s15528_s3 + $0x16c] ss:$16 sps:$4 sm:$0xff]  }
 0xf41   : > { %v5377_v42 = vpop.permute.xlu0 %5376 }
 0xf42   : > { %12504 = vmatpush3.msra.mxu1 %v5377_v42  ;;  %v13391_v42 = vld [vmem:[%s15528_s3 + $0x160] ss:$16 sps:$4 sm:$0xff]  }
 0xf43   : > { %12508 = vmatprep.subr.mxu1 %v14601_v48 }
 0xf44   : > { %v13647_v43 = vpop.eup %13646 }
 0xf45   : > { %v5373_v44 = vmul.f32 %v13647_v43, %v13643_v27  ;;  %v13387_v27 = vld [vmem:[%s15528_s3 + $0x144] ss:$16 sps:$4 sm:$0xff]   ;;  %v13394_v43 = vld [vmem:[%s15528_s3 + $0x168] ss:$16 sps:$4 sm:$0xff]  }
 0xf47   : > { %12506 = vmatmul.mubr.msk.f32.vlgmr.msra.gmra.mrb[32].mxu1 %vm4368_vm4, %v5373_v44  ;;  %v13399_v44 = vld [vmem:[%s15528_s3 + $0x184] ss:$16 sps:$4 sm:$0xff]  }
 0xf48   : > { %v13649_v28 = vpop.eup %13648  ;;  %12509 = vmatpush3.msra.mxu1 %v5454_v45  ;;  %12510 = vmatprep.mubr.msk.f32.mxu1 %vm14602_vm1, %v14601_v48  ;;  %v13334_v48 = vld [vmem:[%s15528_s3 + $0x28] ss:$16 sps:$4 sm:$0xff]   ;;  %v13402_v45 = vld [vmem:[%s15528_s3 + $0x18c] ss:$16 sps:$4 sm:$0xff]  }
 0xf49   : > { %v5374_v18 = vmul.f32 %v13649_v28, %v13645_v31  ;;  %5935 = vmatprep.subr.bf16.mxu1 %v13327_v24  ;;  %5981 = vmatpush1.bf16.msra.mxu0 %v13334_v48  ;;  %v13385_v31 = vld [vmem:[%s15528_s3 + $0x140] ss:$16 sps:$4 sm:$0xff]   ;;  %v13408_v24 = vld [vmem:[%s15528_s3 + $0x1ac] ss:$16 sps:$4 sm:$0xff]  }
 0xf4a   : > { %5982 = vmatprep.subr.bf16.mxu0 %v13342_v26  ;;  %v13397_v28 = vld [vmem:[%s15528_s3 + $0x180] ss:$16 sps:$4 sm:$0xff]   ;;  %v13414_v48 = vld [vmem:[%s15528_s3 + $0x1cc] ss:$16 sps:$4 sm:$0xff]  }
 0xf4b   : > { %12511 = vmatmul.mubr.msk.f32.vlgmr.msra.gmra.mrb[34].mxu1 %vm4368_vm4, %v5374_v18  ;;  %v13400_v18 = vld [vmem:[%s15528_s3 + $0x188] ss:$16 sps:$4 sm:$0xff]   ;;  %v13415_v26 = vld [vmem:[%s15528_s3 + $0x1e0] ss:$16 sps:$4 sm:$0xff]  }
 0xf4c   : > { %5936 = vmatpush1.bf16.msra.mxu1 %v13325_v46  ;;  %v13405_v46 = vld [vmem:[%s15528_s3 + $0x1a4] ss:$16 sps:$4 sm:$0xff]  }
 0xf4d   : > { %5937 = vmatprep.subr.bf16.mxu1 %v13333_v47  ;;  %5983 = vmatpush1.bf16.msra.mxu0 %v13340_v53  ;;  %v13411_v47 = vld [vmem:[%s15528_s3 + $0x1c4] ss:$16 sps:$4 sm:$0xff]   ;;  %v13418_v53 = vld [vmem:[%s15528_s3 + $0x1e8] ss:$16 sps:$4 sm:$0xff]  }
 0xf4e   : > { %5984 = vmatprep.subr.bf16.mxu0 %v13348_v59 }
 0xf50   : > { %5938 = vmatpush1.bf16.msra.mxu1 %v13331_v49  ;;  %v13412_v49 = vld [vmem:[%s15528_s3 + $0x1c8] ss:$16 sps:$4 sm:$0xff]  }
 0xf51   : > { %5939 = vmatprep.subr.bf16.mxu1 %v13339_v33  ;;  %5985 = vmatpush1.bf16.msra.mxu0 %v13346_v60  ;;  %v13417_v33 = vld [vmem:[%s15528_s3 + $0x1e4] ss:$16 sps:$4 sm:$0xff]  }
 0xf52   : > { %5986 = vmatprep.subr.bf16.mxu0 %v13354_v62 }
 0xf54   : > { %5940 = vmatpush1.bf16.msra.mxu1 %v13337_v51  ;;  %v13420_v51 = vld [vmem:[%s15528_s3 + $0x1ec] ss:$16 sps:$4 sm:$0xff]   ;;  %s17646_s3 = scalar_lea.vmem [#allocation21], %s15518_s20 }
 0xf55   : > { %5941 = vmatprep.subr.bf16.mxu1 %v13345_v56  ;;  %5987 = vmatpush1.bf16.msra.mxu0 %v13352_v0 }
 0xf56   : > { %5988 = vmatprep.subr.bf16.mxu0 %v13360_v2 }
 0xf58   : > { %5942 = vmatpush1.bf16.msra.mxu1 %v13343_v25  ;;  %v13423_v25 = vld [vmem:[%s15531_s18 + $0x4] ss:$8 sps:$4 sm:$0xff]  }
 0xf59   : > { %5943 = vmatprep.subr.bf16.mxu1 %v13351_v61  ;;  %5989 = vmatpush1.bf16.msra.mxu0 %v13358_v3 }
 0xf5a   : > { %5990 = vmatprep.subr.bf16.mxu0 %v13366_v9 }
 0xf5c   : > { %5944 = vmatpush1.bf16.msra.mxu1 %v13349_v63  ;;  %v14604_v63 = vmov 1983009808  }
 0xf5d   : > { %5945 = vmatprep.subr.bf16.mxu1 %v13357_v1  ;;  %5991 = vmatpush1.bf16.msra.mxu0 %v13364_v19  ;;  %v6063_v0 = vunpack.c.l.s4 %v14604_v63  ;;  %v13472_v63 = vld [vmem:[%s15531_s18 + $0x110] ss:$8 sps:$4 sm:$0xff]  }
 0xf5e   : > { %5992 = vmatprep.subr.bf16.mxu0 %v13372_v54 }
 0xf5f   : > { %v6064_v1 = vunpack.c.0.s8 %v6063_v0  ;;  %v13477_v0 = vld [vmem:[%s15531_s18 + $0x124] ss:$8 sps:$4 sm:$0xff]  }
 0xf60   : > { %5946 = vmatpush1.bf16.msra.mxu1 %v13355_v17  ;;  %v16128_v17 = vld [vmem:[#allocation3] sm:$0xff] }
 0xf61   : > { %5947 = vmatprep.subr.bf16.mxu1 %v13363_v6  ;;  %5993 = vmatpush1.bf16.msra.mxu0 %v13370_v35  ;;  %v16126_v2 = vsub.s32 %v6064_v1, %v15709_v8  ;;  %v13475_v1 = vld [vmem:[%s15531_s18 + $0x120] ss:$8 sps:$4 sm:$0xff]  }
 0xf62   : > { %5994 = vmatprep.subr.bf16.mxu0 %v13378_v36 }
 0xf63   : > { %v16132_v3 = vrot.slane %v16128_v17, %v16126_v2 }
 0xf64   : > { %5948 = vmatpush1.bf16.msra.mxu1 %v13361_v50 }
 0xf65   : > { %5949 = vmatprep.subr.bf16.mxu1 %v13369_v20  ;;  %5995 = vmatpush1.bf16.msra.mxu0 %v13376_v37  ;;  %v13424_v37 = vld [vmem:[%s15531_s18 + $0x10] ss:$8 sps:$4 sm:$0xff]  }
 0xf66   : > { %5996 = vmatprep.subr.bf16.mxu0 %v13384_v38  ;;  %v13430_v38 = vld [vmem:[%s15531_s18 + $0x30] ss:$8 sps:$4 sm:$0xff]  }
 0xf68   : > { %5950 = vmatpush1.bf16.msra.mxu1 %v13367_v34 }
 0xf69   : > { %5951 = vmatprep.subr.bf16.mxu1 %v13375_v29  ;;  %5997 = vmatpush1.bf16.msra.mxu0 %v13382_v4  ;;  %v13433_v4 = vld [vmem:[%s15531_s18 + $0x40] ss:$8 sps:$4 sm:$0xff]  }
 0xf6a   : > { %5998 = vmatprep.subr.bf16.mxu0 %v13390_v39  ;;  %v13436_v39 = vld [vmem:[%s15531_s18 + $0x50] ss:$8 sps:$4 sm:$0xff]  }
 0xf6c   : > { %5952 = vmatpush1.bf16.msra.mxu1 %v13373_v32  ;;  %v13426_v32 = vld [vmem:[%s15531_s18 + $0x14] ss:$8 sps:$4 sm:$0xff]  }
 0xf6d   : > { %5953 = vmatprep.subr.bf16.mxu1 %v13381_v15  ;;  %5999 = vmatpush1.bf16.msra.mxu0 %v13388_v16  ;;  %v13427_v15 = vld [vmem:[%s15531_s18 + $0x20] ss:$8 sps:$4 sm:$0xff]  }
 0xf6e   : > { %6000 = vmatprep.subr.bf16.mxu0 %v13396_v21  ;;  %v13439_v16 = vld [vmem:[%s15531_s18 + $0x60] ss:$8 sps:$4 sm:$0xff]   ;;  %v13442_v21 = vld [vmem:[%s15531_s18 + $0x70] ss:$8 sps:$4 sm:$0xff]  }
 0xf70   : > { %5954 = vmatpush1.bf16.msra.mxu1 %v13379_v14  ;;  %v13435_v14 = vld [vmem:[%s15531_s18 + $0x44] ss:$8 sps:$4 sm:$0xff]  }
 0xf71   : > { %5955 = vmatprep.subr.bf16.mxu1 %v13387_v27  ;;  %6001 = vmatpush1.bf16.msra.mxu0 %v13394_v43  ;;  %v13438_v27 = vld [vmem:[%s15531_s18 + $0x54] ss:$8 sps:$4 sm:$0xff]   ;;  %v13445_v43 = vld [vmem:[%s15531_s18 + $0x80] ss:$8 sps:$4 sm:$0xff]  }
 0xf72   : > { %6002 = vmatprep.subr.bf16.mxu0 %v13402_v45  ;;  %v13448_v45 = vld [vmem:[%s15531_s18 + $0x90] ss:$8 sps:$4 sm:$0xff]  }
 0xf74   : > { %5956 = vmatpush1.bf16.msra.mxu1 %v13385_v31  ;;  %v13441_v31 = vld [vmem:[%s15531_s18 + $0x64] ss:$8 sps:$4 sm:$0xff]  }
 0xf75   : > { %5957 = vmatprep.subr.bf16.mxu1 %v13393_v30  ;;  %6003 = vmatpush1.bf16.msra.mxu0 %v13400_v18  ;;  %v13444_v30 = vld [vmem:[%s15531_s18 + $0x74] ss:$8 sps:$4 sm:$0xff]   ;;  %v13451_v18 = vld [vmem:[%s15531_s18 + $0xa0] ss:$8 sps:$4 sm:$0xff]  }
 0xf76   : > { %6004 = vmatprep.subr.bf16.mxu0 %v13408_v24  ;;  %v13454_v24 = vld [vmem:[%s15531_s18 + $0xb0] ss:$8 sps:$4 sm:$0xff]  }
 0xf78   : > { %5958 = vmatpush1.bf16.msra.mxu1 %v13391_v42  ;;  %v13447_v42 = vld [vmem:[%s15531_s18 + $0x84] ss:$8 sps:$4 sm:$0xff]  }
 0xf79   : > { %5959 = vmatprep.subr.bf16.mxu1 %v13399_v44  ;;  %6005 = vmatpush1.bf16.msra.mxu0 %v13406_v57  ;;  %v13450_v44 = vld [vmem:[%s15531_s18 + $0x94] ss:$8 sps:$4 sm:$0xff]   ;;  %v13457_v57 = vld [vmem:[%s15531_s18 + $0xc0] ss:$8 sps:$4 sm:$0xff]  }
 0xf7a   : > { %6006 = vmatprep.subr.bf16.mxu0 %v13414_v48  ;;  %v13465_v48 = vld [vmem:[%s15531_s18 + $0xe4] ss:$8 sps:$4 sm:$0xff]  }
 0xf7c   : > { %5960 = vmatpush1.bf16.msra.mxu1 %v13397_v28  ;;  %v13453_v28 = vld [vmem:[%s15531_s18 + $0xa4] ss:$8 sps:$4 sm:$0xff]  }
 0xf7d   : > { %5961 = vmatprep.subr.bf16.mxu1 %v13405_v46  ;;  %6007 = vmatpush1.bf16.msra.mxu0 %v13412_v49  ;;  %v13456_v46 = vld [vmem:[%s15531_s18 + $0xb4] ss:$8 sps:$4 sm:$0xff]   ;;  %v6061_v49 = vcombine.high %v16128_v17, %v16128_v17  ;;  %v13478_v17 = vld [vmem:[%s15531_s18 + $0x130] ss:$8 sps:$4 sm:$0xff]  }
 0xf7e   : > { %6008 = vmatprep.subr.bf16.mxu0 %v13420_v51  ;;  %v13468_v51 = vld [vmem:[%s15531_s18 + $0xf4] ss:$8 sps:$4 sm:$0xff]  }
 0xf80   : > { %5962 = vmatpush1.bf16.msra.mxu1 %v13403_v52  ;;  %v13459_v52 = vld [vmem:[%s15531_s18 + $0xc4] ss:$8 sps:$4 sm:$0xff]  }
 0xf81   : > { %5963 = vmatprep.subr.bf16.mxu1 %v13411_v47  ;;  %6009 = vmatpush1.bf16.msra.mxu0 %v13418_v53  ;;  %v13462_v47 = vld [vmem:[%s15531_s18 + $0xd4] ss:$8 sps:$4 sm:$0xff]   ;;  %v13466_v53 = vld [vmem:[%s15531_s18 + $0xf0] ss:$8 sps:$4 sm:$0xff]  }
 0xf84   : > { %5964 = vmatpush1.bf16.msra.mxu1 %v13409_v23  ;;  %v13460_v23 = vld [vmem:[%s15531_s18 + $0xd0] ss:$8 sps:$4 sm:$0xff]  }
 0xf85   : > { %5965 = vmatprep.subr.bf16.mxu1 %v13417_v33  ;;  %v13463_v33 = vld [vmem:[%s15531_s18 + $0xe0] ss:$8 sps:$4 sm:$0xff]  }
 0xf88   : > { %5966 = vmatpush1.bf16.msra.mxu1 %v13415_v26  ;;  %v16176_v26 = vrot.slane %v6061_v49, %v16126_v2  ;;  %v13480_v2 = vld [vmem:[%s15531_s18 + $0x134] ss:$8 sps:$4 sm:$0xff]  }
 0xf89   : > { %6470 = vmatprep.subr.bf16.mxu1 %v13423_v25  ;;  %v6082_v25 = vpack.c.bf16 %v16132_v3, %v16132_v3  ;;  %v13547_v49 = vld [vmem:[%s15533_s10 + $0x124] ss:$16 sps:$4 sm:$0xff]  }
0x101a   : > { %v5448_v56 = vpop.f32.mrb[32].mxu1 }
0x101b   : > { %v12507_v59 = vpop.f32.mrb[33].mxu1 }
0x101c   : > { %v13471_v59 = vld [vmem:[%s15531_s18 + $0x104] ss:$8 sps:$4 sm:$0xff]  }
0x101e   : > { %v5525_v60 = vpop.f32.mrb[34].mxu1 }
0x101f   : > { %v13027_v61 = vpack.i.bf16 %v5525_v60, %v5448_v56  ;;  %v12512_v62 = vpop.f32.mrb[35].mxu1  ;;  %v6077_v56 = vcombine.high %v16176_v26, %v16176_v26  ;;  %v13469_v60 = vld [vmem:[%s15531_s18 + $0x100] ss:$8 sps:$4 sm:$0xff]  }
0x1020   : > { %v13474_v62 = vld [vmem:[%s15531_s18 + $0x114] ss:$8 sps:$4 sm:$0xff]  }
0x1021   : > { %13028 = vrot.lane.b32.xlu1 %v13027_v61, %s14603_s1  ;;  %v6085_v61 = vpack.c.bf16 %v6077_v56, %v6077_v56  ;;  %v13553_v56 = vld [vmem:[%s15533_s10 + $0x164] ss:$16 sps:$4 sm:$0xff]  }
0x1025   : > { %13033 = vrot.lane.b32.xlu1 %v13032_v41, %s14603_s1  ;;  %v6076_v41 = vcombine.high %v16132_v3, %v16132_v3  ;;  %v13483_v3 = vld [vmem:[%s15531_s18 + $0x144] ss:$8 sps:$4 sm:$0xff]  }
0x1027   : > { %v6083_v29 = vpack.c.bf16 %v6076_v41, %v6076_v41  ;;  %v13492_v41 = vld [vmem:[%s15531_s18 + $0x174] ss:$8 sps:$4 sm:$0xff]  }
0x1093   : > { %v13029_v6 = vpop.permute.xlu1 %13028 }
0x1094   : > { %v13031_v9 = vunpack.i.h.bf16 %v13029_v6  ;;  %v13030_v50 = vunpack.i.l.bf16 %v13029_v6  ;;  %v13481_v6 = vld [vmem:[%s15531_s18 + $0x140] ss:$8 sps:$4 sm:$0xff]  }
0x1096   : > { %v5547_v11 = vsel %vm4206_vm2, %v16034_v5, %v13030_v50  ;;  %v5548_v40 = vsel %vm4206_vm2, %v16036_v7, %v13031_v9  ;;  %v13421_v7 = vld [vmem:[%s15531_s18] ss:$8 sps:$4 sm:$0xff]   ;;  %v13486_v9 = vld [vmem:[%s15531_s18 + $0x154] ss:$8 sps:$4 sm:$0xff]   ;;  %v13484_v50 = vld [vmem:[%s15531_s18 + $0x150] ss:$8 sps:$4 sm:$0xff]  }
0x1097   : > { %v13034_v19 = vpop.permute.xlu1 %13033  ;;  %v5550_v20 = vpack.c.bf16 %v5548_v40, %v5547_v11  ;;  %v13489_v11 = vld [vmem:[%s15531_s18 + $0x164] ss:$8 sps:$4 sm:$0xff]   ;;  %v13487_v40 = vld [vmem:[%s15531_s18 + $0x160] ss:$8 sps:$4 sm:$0xff]  }
0x1098   : > { %v13036_v54 = vunpack.i.h.bf16 %v13034_v19  ;;  %v13035_v34 = vunpack.i.l.bf16 %v13034_v19  ;;  %v13490_v19 = vld [vmem:[%s15531_s18 + $0x170] ss:$8 sps:$4 sm:$0xff]  }
0x1099   : > { %5967 = vmatprep.mubr.bf16.mxu1 %v5550_v20  ;;  %6010 = vmatprep.mubr.bf16.mxu0 %v5550_v20  ;;  %v13518_v20 = vld [vmem:[%s15533_s10] ss:$16 sps:$4 sm:$0xff]  }
0x109a   : > { %v5546_v35 = vsel %vm4206_vm2, %v15958_v58, %v13036_v54  ;;  %v5545_v5 = vsel %vm4206_vm2, %v15956_v55, %v13035_v34  ;;  %v13429_v58 = vld [vmem:[%s15531_s18 + $0x24] ss:$8 sps:$4 sm:$0xff]   ;;  %v13432_v55 = vld [vmem:[%s15531_s18 + $0x34] ss:$8 sps:$4 sm:$0xff]  }
0x109b   : > { %v5549_v36 = vpack.c.bf16 %v5546_v35, %v5545_v5  ;;  %v13520_v54 = vld [vmem:[%s15533_s10 + $0x4] ss:$16 sps:$4 sm:$0xff]   ;;  %v13521_v5 = vld [vmem:[%s15533_s10 + $0x20] ss:$16 sps:$4 sm:$0xff]  }
0x109c   : > { %v13495_v34 = vld [vmem:[%s15531_s18 + $0x184] ss:$8 sps:$4 sm:$0xff]   ;;  %6938 = vmatprep.subr.bf16.mxu0 %v13520_v54 }
0x109d   : > { %5968 = vmatmul.mubr.bf16.vlgmr.msra.gmra.mrb[36].mxu1 %v5549_v36  ;;  %6011 = vmatmul.mubr.bf16.vlgmr.msra.gmra.mrb[8].mxu0 %v5549_v36  ;;  %v13523_v35 = vld [vmem:[%s15533_s10 + $0x24] ss:$16 sps:$4 sm:$0xff]  }
0x109e   : > { %6471 = vmatpush1.bf16.msra.mxu1 %v13421_v7  ;;  %6502 = vmatprep.mubr.bf16.mxu1 %v6083_v29  ;;  %v13493_v7 = vld [vmem:[%s15531_s18 + $0x180] ss:$8 sps:$4 sm:$0xff]   ;;  %v13526_v29 = vld [vmem:[%s15533_s10 + $0x44] ss:$16 sps:$4 sm:$0xff]  }
0x109f   : > { %6472 = vmatprep.subr.bf16.mxu1 %v13426_v32  ;;  %6939 = vmatpush1.bf16.msra.mxu0 %v13518_v20  ;;  %v13498_v36 = vld [vmem:[%s15531_s18 + $0x194] ss:$8 sps:$4 sm:$0xff]   ;;  %v13524_v32 = vld [vmem:[%s15533_s10 + $0x40] ss:$16 sps:$4 sm:$0xff]  }
0x10a0   : > { %6940 = vmatprep.subr.bf16.mxu0 %v13523_v35  ;;  %v13566_v35 = vld [vmem:[%s15533_s10 + $0x8] ss:$16 sps:$4 sm:$0xff]  }
0x10a2   : > { %6473 = vmatpush1.bf16.msra.mxu1 %v13424_v37  ;;  %v13496_v37 = vld [vmem:[%s15531_s18 + $0x190] ss:$8 sps:$4 sm:$0xff]  }
0x10a3   : > { %6474 = vmatprep.subr.bf16.mxu1 %v13429_v58  ;;  %6941 = vmatpush1.bf16.msra.mxu0 %v13521_v5  ;;  %v13529_v58 = vld [vmem:[%s15533_s10 + $0x64] ss:$16 sps:$4 sm:$0xff]  }
0x10a4   : > { %6942 = vmatprep.subr.bf16.mxu0 %v13526_v29  ;;  %v13571_v29 = vld [vmem:[%s15533_s10 + $0x2c] ss:$16 sps:$4 sm:$0xff]  }
0x10a6   : > { %6475 = vmatpush1.bf16.msra.mxu1 %v13427_v15  ;;  %v13501_v15 = vld [vmem:[%s15531_s18 + $0x1a4] ss:$8 sps:$4 sm:$0xff]  }
0x10a7   : > { %6476 = vmatprep.subr.bf16.mxu1 %v13432_v55  ;;  %6943 = vmatpush1.bf16.msra.mxu0 %v13524_v32  ;;  %v13527_v55 = vld [vmem:[%s15533_s10 + $0x60] ss:$16 sps:$4 sm:$0xff]   ;;  %v13574_v32 = vld [vmem:[%s15533_s10 + $0x4c] ss:$16 sps:$4 sm:$0xff]  }
0x10a8   : > { %6944 = vmatprep.subr.bf16.mxu0 %v13529_v58  ;;  %v13577_v58 = vld [vmem:[%s15533_s10 + $0x6c] ss:$16 sps:$4 sm:$0xff]  }
0x10aa   : > { %6477 = vmatpush1.bf16.msra.mxu1 %v13430_v38  ;;  %v13499_v38 = vld [vmem:[%s15531_s18 + $0x1a0] ss:$8 sps:$4 sm:$0xff]  }
0x10ab   : > { %6478 = vmatprep.subr.bf16.mxu1 %v13435_v14  ;;  %v13532_v14 = vld [vmem:[%s15533_s10 + $0x84] ss:$16 sps:$4 sm:$0xff]   ;;  %6945 = vmatpush1.bf16.msra.mxu0 %v13527_v55  ;;  %v13580_v55 = vld [vmem:[%s15533_s10 + $0x8c] ss:$16 sps:$4 sm:$0xff]  }
0x10ac   : > { %6946 = vmatprep.subr.bf16.mxu0 %v13532_v14  ;;  %v13583_v14 = vld [vmem:[%s15533_s10 + $0xac] ss:$16 sps:$4 sm:$0xff]  }
0x10ae   : > { %6479 = vmatpush1.bf16.msra.mxu1 %v13433_v4  ;;  %v13504_v4 = vld [vmem:[%s15531_s18 + $0x1b4] ss:$8 sps:$4 sm:$0xff]  }
0x10af   : > { %6480 = vmatprep.subr.bf16.mxu1 %v13438_v27  ;;  %v13530_v27 = vld [vmem:[%s15533_s10 + $0x80] ss:$16 sps:$4 sm:$0xff]  }
0x10b0   : > { %6947 = vmatpush1.bf16.msra.mxu0 %v13530_v27  ;;  %v13586_v27 = vld [vmem:[%s15533_s10 + $0xcc] ss:$16 sps:$4 sm:$0xff]  }
0x10b2   : > { %6481 = vmatpush1.bf16.msra.mxu1 %v13436_v39  ;;  %v13502_v39 = vld [vmem:[%s15531_s18 + $0x1b0] ss:$8 sps:$4 sm:$0xff]  }
0x10b3   : > { %6482 = vmatprep.subr.bf16.mxu1 %v13441_v31  ;;  %v13535_v31 = vld [vmem:[%s15533_s10 + $0xa4] ss:$16 sps:$4 sm:$0xff]  }
0x10b4   : > { %6948 = vmatprep.subr.bf16.mxu0 %v13535_v31  ;;  %v13589_v31 = vld [vmem:[%s15533_s10 + $0xec] ss:$16 sps:$4 sm:$0xff]  }
0x10b6   : > { %6483 = vmatpush1.bf16.msra.mxu1 %v13439_v16  ;;  %v13507_v16 = vld [vmem:[%s15531_s18 + $0x1c4] ss:$8 sps:$4 sm:$0xff]  }
0x10b7   : > { %6484 = vmatprep.subr.bf16.mxu1 %v13444_v30  ;;  %v13533_v30 = vld [vmem:[%s15533_s10 + $0xa0] ss:$16 sps:$4 sm:$0xff]  }
0x10b8   : > { %6949 = vmatpush1.bf16.msra.mxu0 %v13533_v30  ;;  %v13592_v30 = vld [vmem:[%s15533_s10 + $0x10c] ss:$16 sps:$4 sm:$0xff]  }
0x10ba   : > { %6485 = vmatpush1.bf16.msra.mxu1 %v13442_v21  ;;  %v13505_v21 = vld [vmem:[%s15531_s18 + $0x1c0] ss:$8 sps:$4 sm:$0xff]  }
0x10bb   : > { %6486 = vmatprep.subr.bf16.mxu1 %v13447_v42  ;;  %v13538_v42 = vld [vmem:[%s15533_s10 + $0xc4] ss:$16 sps:$4 sm:$0xff]  }
0x10bc   : > { %6950 = vmatprep.subr.bf16.mxu0 %v13538_v42  ;;  %v13595_v42 = vld [vmem:[%s15533_s10 + $0x12c] ss:$16 sps:$4 sm:$0xff]  }
0x10be   : > { %6487 = vmatpush1.bf16.msra.mxu1 %v13445_v43  ;;  %v13510_v43 = vld [vmem:[%s15531_s18 + $0x1d4] ss:$8 sps:$4 sm:$0xff]  }
0x10bf   : > { %6488 = vmatprep.subr.bf16.mxu1 %v13450_v44  ;;  %v13536_v44 = vld [vmem:[%s15533_s10 + $0xc0] ss:$16 sps:$4 sm:$0xff]  }
0x10c0   : > { %6951 = vmatpush1.bf16.msra.mxu0 %v13536_v44  ;;  %v13598_v44 = vld [vmem:[%s15533_s10 + $0x14c] ss:$16 sps:$4 sm:$0xff]  }
0x10c2   : > { %6489 = vmatpush1.bf16.msra.mxu1 %v13448_v45  ;;  %v13508_v45 = vld [vmem:[%s15531_s18 + $0x1d0] ss:$8 sps:$4 sm:$0xff]  }
0x10c3   : > { %6490 = vmatprep.subr.bf16.mxu1 %v13453_v28  ;;  %v13541_v28 = vld [vmem:[%s15533_s10 + $0xe4] ss:$16 sps:$4 sm:$0xff]  }
0x10c4   : > { %6952 = vmatprep.subr.bf16.mxu0 %v13541_v28  ;;  %v13601_v28 = vld [vmem:[%s15533_s10 + $0x16c] ss:$16 sps:$4 sm:$0xff]  }
0x10c6   : > { %6491 = vmatpush1.bf16.msra.mxu1 %v13451_v18  ;;  %v13513_v18 = vld [vmem:[%s15531_s18 + $0x1e4] ss:$8 sps:$4 sm:$0xff]  }
0x10c7   : > { %6492 = vmatprep.subr.bf16.mxu1 %v13456_v46  ;;  %v13539_v46 = vld [vmem:[%s15533_s10 + $0xe0] ss:$16 sps:$4 sm:$0xff]  }
0x10c8   : > { %6953 = vmatpush1.bf16.msra.mxu0 %v13539_v46  ;;  %v13604_v46 = vld [vmem:[%s15533_s10 + $0x18c] ss:$16 sps:$4 sm:$0xff]  }
0x10ca   : > { %6493 = vmatpush1.bf16.msra.mxu1 %v13454_v24  ;;  %v13511_v24 = vld [vmem:[%s15531_s18 + $0x1e0] ss:$8 sps:$4 sm:$0xff]  }
0x10cb   : > { %6494 = vmatprep.subr.bf16.mxu1 %v13459_v52  ;;  %v13544_v52 = vld [vmem:[%s15533_s10 + $0x104] ss:$16 sps:$4 sm:$0xff]  }
0x10cc   : > { %6954 = vmatprep.subr.bf16.mxu0 %v13544_v52  ;;  %v13607_v52 = vld [vmem:[%s15533_s10 + $0x1ac] ss:$16 sps:$4 sm:$0xff]  }
0x10ce   : > { %6495 = vmatpush1.bf16.msra.mxu1 %v13457_v57  ;;  %v13516_v57 = vld [vmem:[%s15531_s18 + $0x1f4] ss:$8 sps:$4 sm:$0xff]  }
0x10cf   : > { %6496 = vmatprep.subr.bf16.mxu1 %v13462_v47  ;;  %v13542_v47 = vld [vmem:[%s15533_s10 + $0x100] ss:$16 sps:$4 sm:$0xff]  }
0x10d0   : > { %6955 = vmatpush1.bf16.msra.mxu0 %v13542_v47  ;;  %v13610_v47 = vld [vmem:[%s15533_s10 + $0x1cc] ss:$16 sps:$4 sm:$0xff]  }
0x10d1   : > { %6956 = vmatprep.subr.bf16.mxu0 %v13547_v49  ;;  %v13613_v49 = vld [vmem:[%s15533_s10 + $0x1ec] ss:$16 sps:$4 sm:$0xff]  }
0x10d2   : > { %6497 = vmatpush1.bf16.msra.mxu1 %v13460_v23  ;;  %v13514_v23 = vld [vmem:[%s15531_s18 + $0x1f0] ss:$8 sps:$4 sm:$0xff]   ;;  %s17648_s18 = scalar_lea.vmem [#allocation23], %s15518_s20 }
0x10d3   : > { %6498 = vmatprep.subr.bf16.mxu1 %v13465_v48  ;;  %v6084_v48 = vpack.c.bf16 %v16176_v26, %v16176_v26  ;;  %v13556_v26 = vld [vmem:[%s15533_s10 + $0x184] ss:$16 sps:$4 sm:$0xff]  }
0x10d6   : > { %6499 = vmatpush1.bf16.msra.mxu1 %v13463_v33  ;;  %v13545_v33 = vld [vmem:[%s15533_s10 + $0x120] ss:$16 sps:$4 sm:$0xff]  }
0x10d7   : > { %6500 = vmatprep.subr.bf16.mxu1 %v13468_v51  ;;  %v13550_v51 = vld [vmem:[%s15533_s10 + $0x144] ss:$16 sps:$4 sm:$0xff]   ;;  %6957 = vmatpush1.bf16.msra.mxu0 %v13545_v33 }
0x10d8   : > { %6958 = vmatprep.subr.bf16.mxu0 %v13550_v51 }
0x10da   : > { %6501 = vmatpush1.bf16.msra.mxu1 %v13466_v53  ;;  %v13548_v53 = vld [vmem:[%s15533_s10 + $0x140] ss:$16 sps:$4 sm:$0xff]  }
0x10db   : > { %6511 = vmatprep.subr.bf16.mxu1 %v13471_v59  ;;  %6959 = vmatpush1.bf16.msra.mxu0 %v13548_v53  ;;  %v13551_v59 = vld [vmem:[%s15533_s10 + $0x160] ss:$16 sps:$4 sm:$0xff]  }
0x10dc   : > { %6960 = vmatprep.subr.bf16.mxu0 %v13553_v56 }
0x10dd   : > { %6503 = vmatmul.mubr.bf16.vlgmr.msra.gmra.mrb[40].mxu1 %v6082_v25  ;;  %v13554_v25 = vld [vmem:[%s15533_s10 + $0x180] ss:$16 sps:$4 sm:$0xff]  }
0x10de   : > { %6512 = vmatpush1.bf16.msra.mxu1 %v13469_v60  ;;  %6543 = vmatprep.mubr.bf16.mxu1 %v6085_v61  ;;  %v13559_v60 = vld [vmem:[%s15533_s10 + $0x1a4] ss:$16 sps:$4 sm:$0xff]   ;;  %v13557_v61 = vld [vmem:[%s15533_s10 + $0x1a0] ss:$16 sps:$4 sm:$0xff]  }
0x10df   : > { %6513 = vmatprep.subr.bf16.mxu1 %v13474_v62  ;;  %6961 = vmatpush1.bf16.msra.mxu0 %v13551_v59  ;;  %v13562_v62 = vld [vmem:[%s15533_s10 + $0x1c4] ss:$16 sps:$4 sm:$0xff]  }
0x10e0   : > { %6962 = vmatprep.subr.bf16.mxu0 %v13556_v26  ;;  %v14605_v26 = vmov 1966171168  }
0x10e2   : > { %6514 = vmatpush1.bf16.msra.mxu1 %v13472_v63  ;;  %v13560_v63 = vld [vmem:[%s15533_s10 + $0x1c0] ss:$16 sps:$4 sm:$0xff]  }
0x10e3   : > { %6515 = vmatprep.subr.bf16.mxu1 %v13477_v0  ;;  %6963 = vmatpush1.bf16.msra.mxu0 %v13554_v25  ;;  %v13565_v0 = vld [vmem:[%s15533_s10 + $0x1e4] ss:$16 sps:$4 sm:$0xff]   ;;  %v7027_v25 = vunpack.c.l.s4 %v14605_v26 }
0x10e4   : > { %6964 = vmatprep.subr.bf16.mxu0 %v13559_v60 }
0x10e5   : > { %v7028_v60 = vunpack.c.0.s8 %v7027_v25 }
0x10e6   : > { %6516 = vmatpush1.bf16.msra.mxu1 %v13475_v1  ;;  %v13563_v1 = vld [vmem:[%s15533_s10 + $0x1e0] ss:$16 sps:$4 sm:$0xff]  }
0x10e7   : > { %6517 = vmatprep.subr.bf16.mxu1 %v13480_v2  ;;  %6965 = vmatpush1.bf16.msra.mxu0 %v13557_v61  ;;  %v6029_v61 = vld [vmem:[%s1233_s17] sm:$0xf]  ;;  %s17647_s17 = scalar_lea.vmem [#allocation22], %s15518_s20 }
0x10e8   : > { %6966 = vmatprep.subr.bf16.mxu0 %v13562_v62  ;;  %v7031_v62 = vsub.s32 %v7028_v60, %v15709_v8 }
0x10ea   : > { %6518 = vmatpush1.bf16.msra.mxu1 %v13478_v17 }
0x10eb   : > { %6519 = vmatprep.subr.bf16.mxu1 %v13483_v3  ;;  %6967 = vmatpush1.bf16.msra.mxu0 %v13560_v63 }
0x10ec   : > { %6968 = vmatprep.subr.bf16.mxu0 %v13565_v0  ;;  %v6034_v0 = vrot.slane %v6029_v61, %v15720_v13 }
0x10ee   : > { %6520 = vmatpush1.bf16.msra.mxu1 %v13481_v6 }
0x10ef   : > { %6521 = vmatprep.subr.bf16.mxu1 %v13486_v9  ;;  %6969 = vmatpush1.bf16.msra.mxu0 %v13563_v1  ;;  %v6042_v1 = vrot.slane %v6029_v61, %v15712_v10 }
0x10f2   : > { %6522 = vmatpush1.bf16.msra.mxu1 %v13484_v50 }
0x10f3   : > { %6523 = vmatprep.subr.bf16.mxu1 %v13489_v11  ;;  %v13568_v11 = vld [vmem:[%s15533_s10 + $0xc] ss:$16 sps:$4 sm:$0xff]  }
0x10f4   : > { %6979 = vmatprep.subr.bf16.mxu0 %v13568_v11 }
0x10f6   : > { %6524 = vmatpush1.bf16.msra.mxu1 %v13487_v40 }
0x10f7   : > { %6525 = vmatprep.subr.bf16.mxu1 %v13492_v41 }
0x10fa   : > { %6526 = vmatpush1.bf16.msra.mxu1 %v13490_v19 }
0x10fb   : > { %6527 = vmatprep.subr.bf16.mxu1 %v13495_v34 }
0x10fe   : > { %6528 = vmatpush1.bf16.msra.mxu1 %v13493_v7 }
0x10ff   : > { %6529 = vmatprep.subr.bf16.mxu1 %v13498_v36  ;;  %v13569_v36 = vld [vmem:[%s15533_s10 + $0x28] ss:$16 sps:$4 sm:$0xff]  }
0x1102   : > { %6530 = vmatpush1.bf16.msra.mxu1 %v13496_v37  ;;  %v13572_v37 = vld [vmem:[%s15533_s10 + $0x48] ss:$16 sps:$4 sm:$0xff]  }
0x1103   : > { %6531 = vmatprep.subr.bf16.mxu1 %v13501_v15  ;;  %v13575_v15 = vld [vmem:[%s15533_s10 + $0x68] ss:$16 sps:$4 sm:$0xff]  }
0x1106   : > { %6532 = vmatpush1.bf16.msra.mxu1 %v13499_v38  ;;  %v13578_v38 = vld [vmem:[%s15533_s10 + $0x88] ss:$16 sps:$4 sm:$0xff]  }
0x1107   : > { %6533 = vmatprep.subr.bf16.mxu1 %v13504_v4  ;;  %v13581_v4 = vld [vmem:[%s15533_s10 + $0xa8] ss:$16 sps:$4 sm:$0xff]  }
0x110a   : > { %6534 = vmatpush1.bf16.msra.mxu1 %v13502_v39  ;;  %v13584_v39 = vld [vmem:[%s15533_s10 + $0xc8] ss:$16 sps:$4 sm:$0xff]  }
0x110b   : > { %6535 = vmatprep.subr.bf16.mxu1 %v13507_v16  ;;  %v13587_v16 = vld [vmem:[%s15533_s10 + $0xe8] ss:$16 sps:$4 sm:$0xff]  }
0x110e   : > { %6536 = vmatpush1.bf16.msra.mxu1 %v13505_v21  ;;  %v13590_v21 = vld [vmem:[%s15533_s10 + $0x108] ss:$16 sps:$4 sm:$0xff]  }
0x110f   : > { %6537 = vmatprep.subr.bf16.mxu1 %v13510_v43  ;;  %v13593_v43 = vld [vmem:[%s15533_s10 + $0x128] ss:$16 sps:$4 sm:$0xff]  }
0x1112   : > { %6538 = vmatpush1.bf16.msra.mxu1 %v13508_v45  ;;  %v13596_v45 = vld [vmem:[%s15533_s10 + $0x148] ss:$16 sps:$4 sm:$0xff]  }
0x1113   : > { %6539 = vmatprep.subr.bf16.mxu1 %v13513_v18  ;;  %v13599_v18 = vld [vmem:[%s15533_s10 + $0x168] ss:$16 sps:$4 sm:$0xff]  }
0x1116   : > { %6540 = vmatpush1.bf16.msra.mxu1 %v13511_v24  ;;  %v13602_v24 = vld [vmem:[%s15533_s10 + $0x188] ss:$16 sps:$4 sm:$0xff]  }
0x1117   : > { %6541 = vmatprep.subr.bf16.mxu1 %v13516_v57  ;;  %v13605_v57 = vld [vmem:[%s15533_s10 + $0x1a8] ss:$16 sps:$4 sm:$0xff]  }
0x111a   : > { %6542 = vmatpush1.bf16.msra.mxu1 %v13514_v23  ;;  %v13608_v23 = vld [vmem:[%s15533_s10 + $0x1c8] ss:$16 sps:$4 sm:$0xff]  }
0x111d   : > { %6544 = vmatmul.mubr.bf16.vlgmr.msra.gmra.mrb[40].mxu1 %v6084_v48  ;;  %v13611_v48 = vld [vmem:[%s15533_s10 + $0x1e8] ss:$16 sps:$4 sm:$0xff]  }
0x1170   : > { %v16250_v2 = vpop.f32.mrb[36].mxu1  ;;  %v16252_v17 = vpop.f32.mrb[8].mxu0 }
0x1171   : > { %v16254_v3 = vpop.f32.mrb[37].mxu1  ;;  %v16256_v6 = vpop.f32.mrb[9].mxu0 }
0x1172   : > { %v16258_v9 = vpop.f32.mrb[38].mxu1  ;;  %v16260_v50 = vpop.f32.mrb[10].mxu0 }
0x1173   : > { %v16263_v40 = vpop.f32.mrb[39].mxu1  ;;  %v16265_v41 = vpop.f32.mrb[11].mxu0 }
0x11f0   : > { %v6545_v19 = vpop.f32.mrb[40].mxu1 }
0x11f1   : > { %v6547_v20 = vpop.f32.mrb[41].mxu1  ;;  %v16268_v5 = vpack.c.bf16 %v6545_v19, %v6545_v19  ;;  %v13718_v19 = vld [vmem:[#allocation2] sm:$0xff] }
0x11f2   : > { %v6553_v54 = vpack.c.bf16 %v6547_v20, %v6547_v20  ;;  %v6549_v34 = vpop.f32.mrb[42].mxu1  ;;  %v6021_v20 = vadd.f32 %v13718_v19, %v16250_v2 }
0x11f3   : > { %v6550_v7 = vpop.f32.mrb[43].mxu1  ;;  %v6046_v34 = vrot.slane %v6029_v61, %v15727_v22 }
0x11f4   : > { %6970 = vmatprep.mubr.bf16.mxu0 %v6553_v54  ;;  %v13719_v7 = vld [vmem:[#allocation2 + $0x10] sm:$0xff] }
0x11f5   : > { %6971 = vmatmul.mubr.bf16.vlgmr.msra.gmra.mrb[12].mxu0 %v16268_v5 }
0x11f6   : > { %6980 = vmatpush1.bf16.msra.mxu0 %v13566_v35  ;;  %7011 = vmatprep.mubr.bf16.mxu0 %v6553_v54  ;;  %v6038_v54 = vrot.slane %v6029_v61, %v15717_v12 }
0x11f7   : > { %6981 = vmatprep.subr.bf16.mxu0 %v13571_v29  ;;  %v6023_v29 = vadd.f32 %v13719_v7, %v16252_v17  ;;  %v13725_v17 = vld [vmem:[#allocation2 + $0x38] sm:$0xff] }
0x11fa   : > { %6982 = vmatpush1.bf16.msra.mxu0 %v13569_v36  ;;  %v13720_v36 = vld [vmem:[#allocation2 + $0x8] sm:$0xff] }
0x11fb   : > { %6983 = vmatprep.subr.bf16.mxu0 %v13574_v32  ;;  %v6022_v32 = vadd.f32 %v13720_v36, %v16254_v3  ;;  %v6051_v3 = vadd.f32 %v6034_v0, %v6021_v20 }
0x11fe   : > { %6984 = vmatpush1.bf16.msra.mxu0 %v13572_v37  ;;  %v13721_v37 = vld [vmem:[#allocation2 + $0x18] sm:$0xff] }
0x11ff   : > { %6985 = vmatprep.subr.bf16.mxu0 %v13577_v58  ;;  %v6024_v58 = vadd.f32 %v13721_v37, %v16256_v6  ;;  %v7104_v6 = vld [vmem:[%s17646_s3] sm:$0xf] }
0x1202   : > { %6986 = vmatpush1.bf16.msra.mxu0 %v13575_v15  ;;  %v13722_v15 = vld [vmem:[#allocation2 + $0x20] sm:$0xff] }
0x1203   : > { %6987 = vmatprep.subr.bf16.mxu0 %v13580_v55  ;;  %v6025_v55 = vadd.f32 %v13722_v15, %v16258_v9  ;;  %v6054_v9 = vadd.f32 %v6046_v34, %v6024_v58  ;;  %v7251_v58 = vld [vmem:[%s15538_s30 + $0x8] sm:$0xff]  ;;  %v7253_v15 = vld [vmem:[%s15538_s30 + $0x18] sm:$0xff] }
0x1206   : > { %6988 = vmatpush1.bf16.msra.mxu0 %v13578_v38  ;;  %v13723_v38 = vld [vmem:[#allocation2 + $0x30] sm:$0xff] }
0x1207   : > { %6989 = vmatprep.subr.bf16.mxu0 %v13583_v14  ;;  %v6027_v14 = vadd.f32 %v13723_v38, %v16260_v50  ;;  %v7509_v38 = vunpack.c.l.s8.bf16 %v7253_v15 }
0x120a   : > { %6990 = vmatpush1.bf16.msra.mxu0 %v13581_v4  ;;  %v13724_v4 = vld [vmem:[#allocation2 + $0x28] sm:$0xff] }
0x120b   : > { %6991 = vmatprep.subr.bf16.mxu0 %v13586_v27  ;;  %v6026_v27 = vadd.f32 %v13724_v4, %v16263_v40  ;;  %v7109_v40 = vrot.slane %v7104_v6, %v15720_v13  ;;  %v7252_v4 = vld [vmem:[%s15538_s30 + $0x10] sm:$0xff] }
0x120e   : > { %6992 = vmatpush1.bf16.msra.mxu0 %v13584_v39 }
0x120f   : > { %6993 = vmatprep.subr.bf16.mxu0 %v13589_v31 }
0x1212   : > { %6994 = vmatpush1.bf16.msra.mxu0 %v13587_v16  ;;  %v6028_v16 = vadd.f32 %v13725_v17, %v16265_v41  ;;  %v7117_v41 = vrot.slane %v7104_v6, %v15712_v10  ;;  %v7267_v17 = vld [vmem:[%s15538_s30 + $0x88] sm:$0xff] }
0x1213   : > { %6995 = vmatprep.subr.bf16.mxu0 %v13592_v30 }
0x1216   : > { %6996 = vmatpush1.bf16.msra.mxu0 %v13590_v21 }
0x1217   : > { %6997 = vmatprep.subr.bf16.mxu0 %v13595_v42  ;;  %v6053_v42 = vadd.f32 %v6042_v1, %v6023_v29 }
0x121a   : > { %6998 = vmatpush1.bf16.msra.mxu0 %v13593_v43  ;;  %v6052_v43 = vadd.f32 %v6038_v54, %v6022_v32 }
0x121b   : > { %6999 = vmatprep.subr.bf16.mxu0 %v13598_v44  ;;  %v6055_v44 = vadd.f32 %v6034_v0, %v6025_v55  ;;  %v7250_v55 = vld [vmem:[%s15538_s30] sm:$0xff] }
0x121e   : > { %7000 = vmatpush1.bf16.msra.mxu0 %v13596_v45  ;;  %v6057_v45 = vadd.f32 %v6042_v1, %v6027_v14  ;;  %v7506_v14 = vunpack.c.l.s8.bf16 %v7250_v55 }
0x121f   : > { %7001 = vmatprep.subr.bf16.mxu0 %v13601_v28  ;;  %v6056_v28 = vadd.f32 %v6038_v54, %v6026_v27  ;;  %v7523_v27 = vunpack.c.h.s8.bf16 %v7251_v58 }
0x1222   : > { %7002 = vmatpush1.bf16.msra.mxu0 %v13599_v18 }
0x1223   : > { %7003 = vmatprep.subr.bf16.mxu0 %v13604_v46  ;;  %v6058_v46 = vadd.f32 %v6046_v34, %v6028_v16  ;;  %v7269_v16 = vld [vmem:[%s15538_s30 + $0x98] sm:$0xff] }
0x1226   : > { %7004 = vmatpush1.bf16.msra.mxu0 %v13602_v24  ;;  %v7113_v24 = vrot.slane %v7104_v6, %v15717_v12 }
0x1227   : > { %7005 = vmatprep.subr.bf16.mxu0 %v13607_v52 }
0x122a   : > { %7006 = vmatpush1.bf16.msra.mxu0 %v13605_v57 }
0x122b   : > { %7007 = vmatprep.subr.bf16.mxu0 %v13610_v47 }
0x122e   : > { %7008 = vmatpush1.bf16.msra.mxu0 %v13608_v23 }
0x122f   : > { %7009 = vmatprep.subr.bf16.mxu0 %v13613_v49 }
0x1232   : > { %7010 = vmatpush1.bf16.msra.mxu0 %v13611_v48 }
0x1233   : > { %8104 = vmatprep.subr.bf16.mxu0 %v7509_v38 }
0x1235   : > { %7012 = vmatmul.mubr.bf16.vlgmr.msra.gmra.mrb[16].mxu0 %v16268_v5 }
0x12c8   : > { %v6972_v33 = vpop.f32.mrb[12].mxu0 }
0x12c9   : > { %v6974_v51 = vpop.f32.mrb[13].mxu0 }
0x12ca   : > { %v7024_v53 = vcombine.low %v6972_v33, %v6974_v51  ;;  %v6976_v56 = vpop.f32.mrb[14].mxu0 }
0x12cb   : > { %v6977_v59 = vpop.f32.mrb[15].mxu0 }
0x12cc   : > { %v7032_v39 = vrot.slane %v7024_v53, %v7031_v62 }
0x1308   : > { %v7013_v63 = vpop.f32.mrb[16].mxu0 }
0x1309   : > { %v7015_v11 = vpop.f32.mrb[17].mxu0 }
0x130a   : > { %v7025_v35 = vcombine.low %v7013_v63, %v7015_v11  ;;  %v7017_v5 = vpop.f32.mrb[18].mxu0  ;;  %v7121_v63 = vrot.slane %v7104_v6, %v15727_v22  ;;  %v7541_v6 = vunpack.c.l.s8.bf16 %v7269_v16 }
0x130b   : > { %v7018_v2 = vpop.f32.mrb[19].mxu0 }
0x130c   : > { %v7039_v31 = vrot.slane %v7025_v35, %v7031_v62  ;;  %v7507_v2 = vunpack.c.l.s8.bf16 %v7251_v58 }
0x130e   : > { %v7040_v30 = vcombine.low %v7032_v39, %v7039_v31  ;;  %v7041_v21 = vcombine.high %v7032_v39, %v7039_v31  ;;  %v7508_v39 = vunpack.c.l.s8.bf16 %v7252_v4  ;;  %v7525_v31 = vunpack.c.h.s8.bf16 %v7253_v15  ;;  %8018 = vmatprep.subr.bf16.mxu1 %v7507_v2  ;;  %v7314_v15 = vld [vmem:[%s15538_s30 + $0x200] sm:$0xff] }
0x130f   : > { %8019 = vmatpush1.bf16.msra.mxu1 %v7506_v14  ;;  %v7634_v2 = vunpack.c.l.s8.bf16 %v7314_v15 }
0x1310   : > { %v7048_v50 = vrot.slane %v7040_v30, %v7031_v62  ;;  %v7055_v18 = vrot.slane %v7041_v21, %v7031_v62  ;;  %8105 = vmatpush1.bf16.msra.mxu0 %v7508_v39  ;;  %v7524_v30 = vunpack.c.h.s8.bf16 %v7252_v4  ;;  %8020 = vmatprep.subr.bf16.mxu1 %v7523_v27  ;;  %v7539_v21 = vunpack.c.l.s8.bf16 %v7267_v17 }
0x1311   : > { %8106 = vmatprep.subr.bf16.mxu0 %v7525_v31 }
0x1312   : > { %v7059_v52 = vrot.slane %v7048_v50, %v15720_v13  ;;  %v7063_v57 = vrot.slane %v7048_v50, %v15717_v12  ;;  %v7067_v47 = vrot.slane %v7048_v50, %v15712_v10  ;;  %v7071_v23 = vrot.slane %v7048_v50, %v15727_v22  ;;  %v7283_v50 = vld [vmem:[%s15538_s30 + $0x108] sm:$0xff] }
0x1313   : > { %v7075_v49 = vrot.slane %v7055_v18, %v15720_v13  ;;  %v7079_v48 = vrot.slane %v7055_v18, %v15717_v12  ;;  %v7083_v33 = vrot.slane %v7055_v18, %v15712_v10  ;;  %v7087_v51 = vrot.slane %v7055_v18, %v15727_v22  ;;  %v7285_v18 = vld [vmem:[%s15538_s30 + $0x118] sm:$0xff] }
0x1314   : > { %v7096_v53 = vadd.f32 %v7059_v52, %v6051_v3  ;;  %v7097_v56 = vadd.f32 %v7063_v57, %v6052_v43  ;;  %v7098_v59 = vadd.f32 %v7067_v47, %v6053_v42  ;;  %v7099_v26 = vadd.f32 %v7071_v23, %v6054_v9  ;;  %v7266_v42 = vld [vmem:[%s15538_s30 + $0x80] sm:$0xff]  ;;  %v7268_v43 = vld [vmem:[%s15538_s30 + $0x90] sm:$0xff]  ;;  %8107 = vmatpush1.bf16.msra.mxu0 %v7524_v30 }
0x1315   : > { %v7100_v25 = vadd.f32 %v7075_v49, %v6055_v44  ;;  %v7101_v60 = vadd.f32 %v7079_v48, %v6056_v28  ;;  %v7102_v61 = vadd.f32 %v7083_v33, %v6057_v45  ;;  %v7103_v62 = vadd.f32 %v7087_v51, %v6058_v46  ;;  %8108 = vmatprep.subr.bf16.mxu0 %v7541_v6  ;;  %v7282_v52 = vld [vmem:[%s15538_s30 + $0x100] sm:$0xff]  ;;  %v7284_v57 = vld [vmem:[%s15538_s30 + $0x110] sm:$0xff]  ;;  %v7299_v33 = vld [vmem:[%s15538_s30 + $0x188] sm:$0xff] }
0x1316   : > { %v16331_v0 = vadd.f32 %v7109_v40, %v7096_v53  ;;  %v16333_v1 = vadd.f32 %v7113_v24, %v7097_v56  ;;  %v16339_v20 = vadd.f32 %v7117_v41, %v7098_v59  ;;  %v16347_v5 = vadd.f32 %v7121_v63, %v7099_v26  ;;  %v7301_v51 = vld [vmem:[%s15538_s30 + $0x198] sm:$0xff] }
0x1317   : > { %v16335_v11 = vadd.f32 %v7109_v40, %v7100_v25  ;;  %v16337_v19 = vadd.f32 %v7113_v24, %v7101_v60  ;;  %v16343_v34 = vadd.f32 %v7117_v41, %v7102_v61  ;;  %v16350_v29 = vadd.f32 %v7121_v63, %v7103_v62  ;;  %v7298_v25 = vld [vmem:[%s15538_s30 + $0x180] sm:$0xff]  ;;  %v7300_v60 = vld [vmem:[%s15538_s30 + $0x190] sm:$0xff] }
0x1318   : > { %v7136_v54 = vadd.f32 %v16333_v1, %v16331_v0  ;;  %v7522_v3 = vunpack.c.h.s8.bf16 %v7250_v55  ;;  %v7538_v9 = vunpack.c.l.s8.bf16 %v7266_v42  ;;  %v7540_v44 = vunpack.c.l.s8.bf16 %v7268_v43  ;;  %v7316_v55 = vld [vmem:[%s15538_s30 + $0x210] sm:$0xff] }
0x1319   : > { %v7141_v35 = vadd.f32 %v16337_v19, %v16335_v11  ;;  %v7555_v45 = vunpack.c.h.s8.bf16 %v7267_v17  ;;  %v7557_v28 = vunpack.c.h.s8.bf16 %v7269_v16  ;;  %v7554_v46 = vunpack.c.h.s8.bf16 %v7266_v42 }
0x131a   : > { %v7137_v7 = vadd.f32 %v7136_v54, %v16339_v20  ;;  %8021 = vmatpush1.bf16.msra.mxu1 %v7522_v3  ;;  %8109 = vmatpush1.bf16.msra.mxu0 %v7540_v44  ;;  %v7556_v40 = vunpack.c.h.s8.bf16 %v7268_v43  ;;  %v7571_v24 = vunpack.c.l.s8.bf16 %v7283_v50  ;;  %v7573_v41 = vunpack.c.l.s8.bf16 %v7285_v18 }
0x131b   : > { %v7142_v36 = vadd.f32 %v7141_v35, %v16343_v34  ;;  %8022 = vmatprep.subr.bf16.mxu1 %v7539_v21  ;;  %8110 = vmatprep.subr.bf16.mxu0 %v7557_v28  ;;  %v7570_v47 = vunpack.c.l.s8.bf16 %v7282_v52  ;;  %v7572_v23 = vunpack.c.l.s8.bf16 %v7284_v57  ;;  %v7587_v49 = vunpack.c.h.s8.bf16 %v7283_v50  ;;  %v7315_v35 = vld [vmem:[%s15538_s30 + $0x208] sm:$0xff] }
0x131c   : > { %v7138_v32 = vadd.f32 %v7137_v7, %v16347_v5  ;;  %v7589_v48 = vunpack.c.h.s8.bf16 %v7285_v18  ;;  %v7586_v53 = vunpack.c.h.s8.bf16 %v7282_v52  ;;  %v7588_v56 = vunpack.c.h.s8.bf16 %v7284_v57  ;;  %v7317_v7 = vld [vmem:[%s15538_s30 + $0x218] sm:$0xff] }
0x131d   : > { %v7143_v37 = vadd.f32 %v7142_v36, %v16350_v29  ;;  %v7603_v59 = vunpack.c.l.s8.bf16 %v7299_v33  ;;  %v7605_v26 = vunpack.c.l.s8.bf16 %v7301_v51  ;;  %v7602_v61 = vunpack.c.l.s8.bf16 %v7298_v25 }
0x131e   : > { %7139 = vadd.xlane.f32.xlu0 %v7138_v32  ;;  %8023 = vmatpush1.bf16.msra.mxu1 %v7538_v9  ;;  %v7604_v62 = vunpack.c.l.s8.bf16 %v7300_v60  ;;  %v7619_v63 = vunpack.c.h.s8.bf16 %v7299_v33  ;;  %v7621_v54 = vunpack.c.h.s8.bf16 %v7301_v51  ;;  %v7618_v36 = vunpack.c.h.s8.bf16 %v7298_v25  ;;  %v7331_v51 = vld [vmem:[%s15538_s30 + $0x288] sm:$0xff]  ;;  %v7332_v25 = vld [vmem:[%s15538_s30 + $0x290] sm:$0xff] }
0x131f   : > { %7144 = vadd.xlane.f32.xlu1 %v7143_v37  ;;  %8024 = vmatprep.subr.bf16.mxu1 %v7555_v45  ;;  %v7620_v32 = vunpack.c.h.s8.bf16 %v7300_v60  ;;  %v7635_v37 = vunpack.c.l.s8.bf16 %v7315_v35  ;;  %v7637_v58 = vunpack.c.l.s8.bf16 %v7317_v7  ;;  %v7636_v38 = vunpack.c.l.s8.bf16 %v7316_v55 }
0x1320   : > { %8111 = vmatpush1.bf16.msra.mxu0 %v7556_v40  ;;  %v7651_v14 = vunpack.c.h.s8.bf16 %v7315_v35  ;;  %v7653_v4 = vunpack.c.h.s8.bf16 %v7317_v7  ;;  %v7652_v33 = vunpack.c.h.s8.bf16 %v7316_v55  ;;  %v7684_v35 = vunpack.c.h.s8.bf16 %v7332_v25  ;;  %v7347_v7 = vld [vmem:[%s15538_s30 + $0x308] sm:$0xff]  ;;  %v7348_v55 = vld [vmem:[%s15538_s30 + $0x310] sm:$0xff] }
0x1321   : > { %8112 = vmatprep.subr.bf16.mxu0 %v7573_v41 }
0x1322   : > { %8025 = vmatpush1.bf16.msra.mxu1 %v7554_v46 }
0x1323   : > { %8026 = vmatprep.subr.bf16.mxu1 %v7571_v24 }
0x1324   : > { %8113 = vmatpush1.bf16.msra.mxu0 %v7572_v23 }
0x1325   : > { %8114 = vmatprep.subr.bf16.mxu0 %v7589_v48  ;;  %v7650_v48 = vunpack.c.h.s8.bf16 %v7314_v15 }
0x1326   : > { %8027 = vmatpush1.bf16.msra.mxu1 %v7570_v47 }
0x1327   : > { %8028 = vmatprep.subr.bf16.mxu1 %v7587_v49 }
0x1328   : > { %8115 = vmatpush1.bf16.msra.mxu0 %v7588_v56  ;;  %v7667_v56 = vunpack.c.l.s8.bf16 %v7331_v51 }
0x1329   : > { %8116 = vmatprep.subr.bf16.mxu0 %v7605_v26  ;;  %v7330_v26 = vld [vmem:[%s15538_s30 + $0x280] sm:$0xff] }
0x132a   : > { %8029 = vmatpush1.bf16.msra.mxu1 %v7586_v53  ;;  %v7333_v53 = vld [vmem:[%s15538_s30 + $0x298] sm:$0xff]  ;;  %v7666_v60 = vunpack.c.l.s8.bf16 %v7330_v26 }
0x132b   : > { %8030 = vmatprep.subr.bf16.mxu1 %v7603_v59  ;;  %v7669_v59 = vunpack.c.l.s8.bf16 %v7333_v53 }
0x132c   : > { %8117 = vmatpush1.bf16.msra.mxu0 %v7604_v62  ;;  %v7683_v62 = vunpack.c.h.s8.bf16 %v7331_v51 }
0x132d   : > { %8118 = vmatprep.subr.bf16.mxu0 %v7621_v54  ;;  %v7682_v54 = vunpack.c.h.s8.bf16 %v7330_v26  ;;  %v7135_v26 = vld [vmem:[%s17648_s18] sm:$0xf] }
0x132e   : > { %8031 = vmatpush1.bf16.msra.mxu1 %v7602_v61  ;;  %v7668_v61 = vunpack.c.l.s8.bf16 %v7332_v25 }
0x132f   : > { %8032 = vmatprep.subr.bf16.mxu1 %v7619_v63  ;;  %v7685_v63 = vunpack.c.h.s8.bf16 %v7333_v53 }
0x1330   : > { %8119 = vmatpush1.bf16.msra.mxu0 %v7620_v32  ;;  %v7346_v32 = vld [vmem:[%s15538_s30 + $0x300] sm:$0xff] }
0x1331   : > { %8120 = vmatprep.subr.bf16.mxu0 %v7637_v58  ;;  %v7698_v15 = vunpack.c.l.s8.bf16 %v7346_v32 }
0x1332   : > { %8033 = vmatpush1.bf16.msra.mxu1 %v7618_v36  ;;  %v7349_v36 = vld [vmem:[%s15538_s30 + $0x318] sm:$0xff] }
0x1333   : > { %8034 = vmatprep.subr.bf16.mxu1 %v7635_v37  ;;  %v7699_v37 = vunpack.c.l.s8.bf16 %v7347_v7  ;;  %v7701_v58 = vunpack.c.l.s8.bf16 %v7349_v36 }
0x1334   : > { %8121 = vmatpush1.bf16.msra.mxu0 %v7636_v38  ;;  %v7715_v38 = vunpack.c.h.s8.bf16 %v7347_v7  ;;  %v7229_v7 = vrot.slane %v7135_v26, %v15712_v10 }
0x1335   : > { %8122 = vmatprep.subr.bf16.mxu0 %v7653_v4  ;;  %v7363_v4 = vld [vmem:[%s15538_s30 + $0x388] sm:$0xff] }
0x1336   : > { %8035 = vmatpush1.bf16.msra.mxu1 %v7634_v2  ;;  %v7700_v2 = vunpack.c.l.s8.bf16 %v7348_v55 }
0x1337   : > { %8036 = vmatprep.subr.bf16.mxu1 %v7651_v14  ;;  %v7717_v14 = vunpack.c.h.s8.bf16 %v7349_v36 }
0x1338   : > { %8123 = vmatpush1.bf16.msra.mxu0 %v7652_v33 }
0x1339   : > { %8124 = vmatprep.subr.bf16.mxu0 %v7669_v59  ;;  %v7134_v59 = vld [vmem:[%s17647_s17] sm:$0xf] }
0x133a   : > { %8037 = vmatpush1.bf16.msra.mxu1 %v7650_v48  ;;  %v7200_v25 = vrot.slane %v7134_v59, %v15712_v10 }
0x133b   : > { %8038 = vmatprep.subr.bf16.mxu1 %v7667_v56 }
0x133c   : > { %8125 = vmatpush1.bf16.msra.mxu0 %v7668_v61  ;;  %v7196_v61 = vrot.slane %v7134_v59, %v15717_v12 }
0x133d   : > { %8126 = vmatprep.subr.bf16.mxu0 %v7685_v63 }
0x133e   : > { %8039 = vmatpush1.bf16.msra.mxu1 %v7666_v60 }
0x133f   : > { %8040 = vmatprep.subr.bf16.mxu1 %v7683_v62 }
0x1340   : > { %8127 = vmatpush1.bf16.msra.mxu0 %v7684_v35 }
0x1341   : > { %8128 = vmatprep.subr.bf16.mxu0 %v7701_v58  ;;  %v7221_v58 = vrot.slane %v7135_v26, %v15720_v13 }
0x1342   : > { %8041 = vmatpush1.bf16.msra.mxu1 %v7682_v54  ;;  %v7192_v54 = vrot.slane %v7134_v59, %v15720_v13 }
0x1343   : > { %8042 = vmatprep.subr.bf16.mxu1 %v7699_v37  ;;  %v7225_v37 = vrot.slane %v7135_v26, %v15717_v12 }
0x1344   : > { %8129 = vmatpush1.bf16.msra.mxu0 %v7700_v2 }
0x1345   : > { %8130 = vmatprep.subr.bf16.mxu0 %v7717_v14 }
0x1346   : > { %8043 = vmatpush1.bf16.msra.mxu1 %v7698_v15 }
0x1347   : > { %8044 = vmatprep.subr.bf16.mxu1 %v7715_v38 }
0x13ab   : > { %v7140_v27 = vpop.xlane.xlu0 %7139 }
0x13ac   : > { %v7146_v39 = vmul.f32 0.001953125, %v7140_v27  ;;  %v7145_v31 = vpop.xlane.xlu1 %7144  ;;  %v7365_v27 = vld [vmem:[%s15538_s30 + $0x398] sm:$0xff] }
0x13ad   : > { %v7147_v17 = vmul.f32 0.001953125, %v7145_v31  ;;  %v7716_v31 = vunpack.c.h.s8.bf16 %v7348_v55 }
0x13ae   : > { %v16376_v16 = vsub.f32 %v16331_v0, %v7146_v39  ;;  %v16379_v3 = vsub.f32 %v16333_v1, %v7146_v39  ;;  %v16382_v30 = vsub.f32 %v16339_v20, %v7146_v39  ;;  %v16391_v42 = vsub.f32 %v16347_v5, %v7146_v39 }
0x13af   : > { %v16385_v21 = vsub.f32 %v16335_v11, %v7147_v17  ;;  %v16388_v6 = vsub.f32 %v16337_v19, %v7147_v17  ;;  %v16398_v44 = vsub.f32 %v16343_v34, %v7147_v17  ;;  %v16409_v41 = vsub.f32 %v16350_v29, %v7147_v17  ;;  %8131 = vmatpush1.bf16.msra.mxu0 %v7716_v31  ;;  %v7378_v31 = vld [vmem:[%s15538_s30 + $0x400] sm:$0xff] }
0x13b0   : > { %v7156_v43 = vmul.f32 %v16376_v16, %v16376_v16  ;;  %v7157_v9 = vmul.f32 %v16379_v3, %v16379_v3  ;;  %v7158_v50 = vmul.f32 %v16382_v30, %v16382_v30  ;;  %v7159_v40 = vmul.f32 %v16391_v42, %v16391_v42 }
0x13b1   : > { %v7160_v45 = vmul.f32 %v16385_v21, %v16385_v21  ;;  %v7161_v28 = vmul.f32 %v16388_v6, %v16388_v6  ;;  %v7162_v52 = vmul.f32 %v16398_v44, %v16398_v44  ;;  %v7163_v23 = vmul.f32 %v16409_v41, %v16409_v41 }
0x13b2   : > { %v7164_v18 = vadd.f32 %v7157_v9, %v7156_v43  ;;  %v7714_v39 = vunpack.c.h.s8.bf16 %v7346_v32  ;;  %v7731_v17 = vunpack.c.l.s8.bf16 %v7363_v4  ;;  %v7733_v43 = vunpack.c.l.s8.bf16 %v7365_v27  ;;  %v7362_v9 = vld [vmem:[%s15538_s30 + $0x380] sm:$0xff] }
0x13b3   : > { %v7169_v46 = vadd.f32 %v7161_v28, %v7160_v45  ;;  %v7364_v45 = vld [vmem:[%s15538_s30 + $0x390] sm:$0xff]  ;;  %v7730_v28 = vunpack.c.l.s8.bf16 %v7362_v9 }
0x13b4   : > { %v7165_v24 = vadd.f32 %v7164_v18, %v7158_v50  ;;  %8045 = vmatpush1.bf16.msra.mxu1 %v7714_v39  ;;  %v7732_v50 = vunpack.c.l.s8.bf16 %v7364_v45  ;;  %8132 = vmatprep.subr.bf16.mxu0 %v7733_v43  ;;  %v7747_v18 = vunpack.c.h.s8.bf16 %v7363_v4 }
0x13b5   : > { %v7170_v47 = vadd.f32 %v7169_v46, %v7162_v52  ;;  %8046 = vmatprep.subr.bf16.mxu1 %v7731_v17  ;;  %v7749_v46 = vunpack.c.h.s8.bf16 %v7365_v27  ;;  %v16428_v52 = vld [vmem:[%s15538_s30 + $0x408] sm:$0xff]  ;;  %v7380_v17 = vld [vmem:[%s15538_s30 + $0x410] sm:$0xff] }
0x13b6   : > { %v7166_v57 = vadd.f32 %v7165_v24, %v7159_v40  ;;  %8133 = vmatpush1.bf16.msra.mxu0 %v7732_v50  ;;  %v7746_v40 = vunpack.c.h.s8.bf16 %v7362_v9  ;;  %v7748_v24 = vunpack.c.h.s8.bf16 %v7364_v45 }
0x13b7   : > { %v7171_v49 = vadd.f32 %v7170_v47, %v7163_v23  ;;  %8134 = vmatprep.subr.bf16.mxu0 %v7749_v46  ;;  %v7763_v47 = vunpack.c.l.s8.bf16 %v16428_v52 }
0x13b8   : > { %7167 = vadd.xlane.f32.xlu0 %v7166_v57  ;;  %8047 = vmatpush1.bf16.msra.mxu1 %v7730_v28  ;;  %v16431_v57 = vld [vmem:[%s15538_s30 + $0x418] sm:$0xff] }
0x13b9   : > { %8048 = vmatprep.subr.bf16.mxu1 %v7747_v18  ;;  %v7765_v23 = vunpack.c.l.s8.bf16 %v16431_v57 }
0x13ba   : > { %8135 = vmatpush1.bf16.msra.mxu0 %v7748_v24  ;;  %v7764_v24 = vunpack.c.l.s8.bf16 %v7380_v17 }
0x13bb   : > { %8147 = vmatprep.subr.bf16.mxu0 %v7765_v23 }
0x13bc   : > { %7172 = vadd.xlane.f32.xlu0 %v7171_v49  ;;  %8049 = vmatpush1.bf16.msra.mxu1 %v7746_v40  ;;  %v7762_v40 = vunpack.c.l.s8.bf16 %v7378_v31 }
0x13bd   : > { %8061 = vmatprep.subr.bf16.mxu1 %v7763_v47 }
0x1445   : > { %v7168_v49 = vpop.xlane.xlu0 %7167 }
0x1446   : > { %v7174_v48 = vmul.f32 0.001953125, %v7168_v49  ;;  %v7779_v49 = vunpack.c.h.s8.bf16 %v16428_v52 }
0x1448   : > { %v7176_v33 = vadd.f32 1e-05, %v7174_v48  ;;  %v7781_v48 = vunpack.c.h.s8.bf16 %v16431_v57 }
0x1449   : > { %v7173_v51 = vpop.xlane.xlu0 %7172 }
0x144a   : > { %13650 = vrsqrt.f32 %v7176_v33  ;;  %v7175_v53 = vmul.f32 0.001953125, %v7173_v51  ;;  %v7395_v33 = vld [vmem:[%s15538_s30 + $0x488] sm:$0xff]  ;;  %v7397_v51 = vld [vmem:[%s15538_s30 + $0x498] sm:$0xff] }
0x144b   : > { %v7795_v52 = vunpack.c.l.s8.bf16 %v7395_v33  ;;  %v7797_v57 = vunpack.c.l.s8.bf16 %v7397_v51 }
0x144c   : > { %v7177_v56 = vadd.f32 1e-05, %v7175_v53 }
0x144e   : > { %13652 = vrsqrt.f32 %v7177_v56  ;;  %v7778_v56 = vunpack.c.h.s8.bf16 %v7378_v31  ;;  %v7426_v31 = vld [vmem:[%s15538_s30 + $0x580] sm:$0xff] }
0x1454   : > { %v13651_v60 = vpop.eup %13650 }
0x1455   : > { %v7181_v62 = vmul.f32 %v13651_v60, %v16379_v3  ;;  %v7180_v63 = vmul.f32 %v13651_v60, %v16376_v16  ;;  %v7182_v35 = vmul.f32 %v13651_v60, %v16382_v30  ;;  %v7183_v15 = vmul.f32 %v13651_v60, %v16391_v42 }
0x1456   : > { %v7204_v3 = vrot.slane %v7134_v59, %v15727_v22  ;;  %v7233_v42 = vrot.slane %v7135_v26, %v15727_v22  ;;  %v7780_v59 = vunpack.c.h.s8.bf16 %v7380_v17  ;;  %v7394_v26 = vld [vmem:[%s15538_s30 + $0x480] sm:$0xff]  ;;  %v7428_v17 = vld [vmem:[%s15538_s30 + $0x590] sm:$0xff] }
0x1457   : > { %v7211_v36 = vmul.f32 %v7200_v25, %v7182_v35  ;;  %v7210_v55 = vmul.f32 %v7196_v61, %v7181_v62  ;;  %v7209_v30 = vmul.f32 %v7192_v54, %v7180_v63  ;;  %v7794_v60 = vunpack.c.l.s8.bf16 %v7394_v26  ;;  %v7413_v35 = vld [vmem:[%s15538_s30 + $0x518] sm:$0xff] }
0x1458   : > { %v13653_v32 = vpop.eup %13652  ;;  %v7212_v43 = vmul.f32 %v7204_v3, %v7183_v15  ;;  %v7811_v62 = vunpack.c.h.s8.bf16 %v7395_v33  ;;  %v7813_v63 = vunpack.c.h.s8.bf16 %v7397_v51  ;;  %v7412_v15 = vld [vmem:[%s15538_s30 + $0x510] sm:$0xff]  ;;  %v7459_v51 = vld [vmem:[%s15538_s30 + $0x688] sm:$0xff] }
0x1459   : > { %v7185_v16 = vmul.f32 %v13653_v32, %v16388_v6  ;;  %v7184_v2 = vmul.f32 %v13653_v32, %v16385_v21  ;;  %v7187_v38 = vmul.f32 %v13653_v32, %v16409_v41  ;;  %v7186_v14 = vmul.f32 %v13653_v32, %v16398_v44 }
0x145a   : > { %v7240_v4 = vadd.f32 %v7229_v7, %v7211_v36  ;;  %v7239_v28 = vadd.f32 %v7225_v37, %v7210_v55  ;;  %v7238_v21 = vadd.f32 %v7221_v58, %v7209_v30  ;;  %v7241_v47 = vadd.f32 %v7233_v42, %v7212_v43  ;;  %v7427_v30 = vld [vmem:[%s15538_s30 + $0x588] sm:$0xff] }
0x145b   : > { %v7214_v27 = vmul.f32 %v7196_v61, %v7185_v16  ;;  %v7213_v39 = vmul.f32 %v7192_v54, %v7184_v2  ;;  %v7216_v9 = vmul.f32 %v7204_v3, %v7187_v38  ;;  %v7215_v45 = vmul.f32 %v7200_v25, %v7186_v14  ;;  %v7396_v25 = vld [vmem:[%s15538_s30 + $0x490] sm:$0xff]  ;;  %v7411_v54 = vld [vmem:[%s15538_s30 + $0x508] sm:$0xff]  ;;  %v7429_v38 = vld [vmem:[%s15538_s30 + $0x598] sm:$0xff] }
0x145c   : > { %v7796_v61 = vunpack.c.l.s8.bf16 %v7396_v25  ;;  %v7812_v36 = vunpack.c.h.s8.bf16 %v7396_v25  ;;  %v7827_v32 = vunpack.c.l.s8.bf16 %v7411_v54  ;;  %v7828_v16 = vunpack.c.l.s8.bf16 %v7412_v15  ;;  %v7458_v25 = vld [vmem:[%s15538_s30 + $0x680] sm:$0xff] }
0x145d   : > { %v7243_v6 = vadd.f32 %v7225_v37, %v7214_v27  ;;  %v7242_v50 = vadd.f32 %v7221_v58, %v7213_v39  ;;  %v7245_v18 = vadd.f32 %v7233_v42, %v7216_v9  ;;  %v7244_v41 = vadd.f32 %v7229_v7, %v7215_v45  ;;  %v7410_v58 = vld [vmem:[%s15538_s30 + $0x500] sm:$0xff] }
0x145e   : > { %v7810_v7 = vunpack.c.h.s8.bf16 %v7394_v26  ;;  %v7829_v37 = vunpack.c.l.s8.bf16 %v7413_v35  ;;  %v7826_v3 = vunpack.c.l.s8.bf16 %v7410_v58  ;;  %v7843_v55 = vunpack.c.h.s8.bf16 %v7411_v54 }
0x145f   : > { %v16457_v46 = vpack.c.bf16 %v7243_v6, %v7239_v28  ;;  %v16459_v44 = vpack.c.bf16 %v7242_v50, %v7238_v21  ;;  %v16461_v23 = vpack.c.bf16 %v7244_v41, %v7240_v4  ;;  %v16471_v53 = vpack.c.bf16 %v7245_v18, %v7241_v47  ;;  %v7443_v28 = vld [vmem:[%s15538_s30 + $0x608] sm:$0xff]  ;;  %v7445_v6 = vld [vmem:[%s15538_s30 + $0x618] sm:$0xff] }
0x1460   : > { %v7845_v2 = vunpack.c.h.s8.bf16 %v7413_v35  ;;  %v7842_v14 = vunpack.c.h.s8.bf16 %v7410_v58  ;;  %v7844_v4 = vunpack.c.h.s8.bf16 %v7412_v15  ;;  %v7859_v27 = vunpack.c.l.s8.bf16 %v7427_v30  ;;  %v7475_v35 = vld [vmem:[%s15538_s30 + $0x708] sm:$0xff]  ;;  %v7474_v15 = vld [vmem:[%s15538_s30 + $0x700] sm:$0xff] }
0x1461   : > { %8050 = vmatprep.mubr.bf16.mxu1 %v16457_v46  ;;  %8136 = vmatprep.mubr.bf16.mxu0 %v16457_v46  ;;  %v7861_v39 = vunpack.c.l.s8.bf16 %v7429_v38  ;;  %v7858_v43 = vunpack.c.l.s8.bf16 %v7426_v31  ;;  %v7860_v9 = vunpack.c.l.s8.bf16 %v7428_v17  ;;  %v7875_v42 = vunpack.c.h.s8.bf16 %v7427_v30 }
0x1462   : > { %8051 = vmatmul.mubr.bf16.vlgmr.msra.gmra.mrb[44].mxu1 %v16459_v44  ;;  %8137 = vmatmul.mubr.bf16.vlgmr.msra.gmra.mrb[20].mxu0 %v16459_v44  ;;  %v7877_v45 = vunpack.c.h.s8.bf16 %v7429_v38  ;;  %v7874_v21 = vunpack.c.h.s8.bf16 %v7426_v31  ;;  %v7876_v50 = vunpack.c.h.s8.bf16 %v7428_v17  ;;  %v7891_v18 = vunpack.c.l.s8.bf16 %v7443_v28  ;;  %v7491_v38 = vld [vmem:[%s15538_s30 + $0x788] sm:$0xff]  ;;  %v7490_v17 = vld [vmem:[%s15538_s30 + $0x780] sm:$0xff] }
0x1463   : > { %8062 = vmatpush1.bf16.msra.mxu1 %v7762_v40  ;;  %8148 = vmatpush1.bf16.msra.mxu0 %v7764_v24  ;;  %v7893_v41 = vunpack.c.l.s8.bf16 %v7445_v6  ;;  %v7442_v40 = vld [vmem:[%s15538_s30 + $0x600] sm:$0xff]  ;;  %v7444_v24 = vld [vmem:[%s15538_s30 + $0x610] sm:$0xff]  ;;  %v7909_v33 = vunpack.c.h.s8.bf16 %v7445_v6  ;;  %v7255_v6 = vld [vmem:[%s15538_s30 + $0x28] sm:$0xff] }
0x1464   : > { %8093 = vmatprep.mubr.bf16.mxu1 %v16471_v53  ;;  %8179 = vmatprep.mubr.bf16.mxu0 %v16471_v53  ;;  %v7890_v47 = vunpack.c.l.s8.bf16 %v7442_v40 }
0x1465   : > { %8063 = vmatprep.subr.bf16.mxu1 %v7779_v49  ;;  %8149 = vmatprep.subr.bf16.mxu0 %v7781_v48  ;;  %v7892_v49 = vunpack.c.l.s8.bf16 %v7444_v24  ;;  %v7907_v48 = vunpack.c.h.s8.bf16 %v7443_v28 }
0x1467   : > { %8064 = vmatpush1.bf16.msra.mxu1 %v7778_v56  ;;  %8150 = vmatpush1.bf16.msra.mxu0 %v7780_v59  ;;  %v7461_v56 = vld [vmem:[%s15538_s30 + $0x698] sm:$0xff]  ;;  %v7906_v59 = vunpack.c.h.s8.bf16 %v7442_v40 }
0x1468   : > { %8065 = vmatprep.subr.bf16.mxu1 %v7795_v52  ;;  %8151 = vmatprep.subr.bf16.mxu0 %v7797_v57  ;;  %v7908_v52 = vunpack.c.h.s8.bf16 %v7444_v24  ;;  %v7923_v57 = vunpack.c.l.s8.bf16 %v7459_v51  ;;  %v7925_v26 = vunpack.c.l.s8.bf16 %v7461_v56  ;;  %v7941_v54 = vunpack.c.h.s8.bf16 %v7461_v56  ;;  %v7254_v24 = vld [vmem:[%s15538_s30 + $0x20] sm:$0xff]  ;;  %v7271_v56 = vld [vmem:[%s15538_s30 + $0xa8] sm:$0xff] }
0x146b   : > { %8066 = vmatpush1.bf16.msra.mxu1 %v7794_v60  ;;  %8152 = vmatpush1.bf16.msra.mxu0 %v7796_v61  ;;  %v7460_v60 = vld [vmem:[%s15538_s30 + $0x690] sm:$0xff]  ;;  %v7922_v61 = vunpack.c.l.s8.bf16 %v7458_v25 }
0x146c   : > { %8067 = vmatprep.subr.bf16.mxu1 %v7811_v62  ;;  %8153 = vmatprep.subr.bf16.mxu0 %v7813_v63  ;;  %v7924_v62 = vunpack.c.l.s8.bf16 %v7460_v60  ;;  %v7939_v63 = vunpack.c.h.s8.bf16 %v7459_v51 }
0x146f   : > { %8068 = vmatpush1.bf16.msra.mxu1 %v7810_v7  ;;  %8154 = vmatpush1.bf16.msra.mxu0 %v7812_v36  ;;  %v7477_v7 = vld [vmem:[%s15538_s30 + $0x718] sm:$0xff]  ;;  %v7938_v36 = vunpack.c.h.s8.bf16 %v7458_v25  ;;  %v7270_v25 = vld [vmem:[%s15538_s30 + $0xa0] sm:$0xff] }
0x1470   : > { %8069 = vmatprep.subr.bf16.mxu1 %v7827_v32  ;;  %8155 = vmatprep.subr.bf16.mxu0 %v7829_v37  ;;  %v7940_v32 = vunpack.c.h.s8.bf16 %v7460_v60  ;;  %v7955_v37 = vunpack.c.l.s8.bf16 %v7475_v35  ;;  %v7957_v58 = vunpack.c.l.s8.bf16 %v7477_v7  ;;  %v7973_v30 = vunpack.c.h.s8.bf16 %v7477_v7  ;;  %v7287_v7 = vld [vmem:[%s15538_s30 + $0x128] sm:$0xff] }
0x1473   : > { %8070 = vmatpush1.bf16.msra.mxu1 %v7826_v3  ;;  %8156 = vmatpush1.bf16.msra.mxu0 %v7828_v16  ;;  %v7476_v3 = vld [vmem:[%s15538_s30 + $0x710] sm:$0xff]  ;;  %v7954_v16 = vunpack.c.l.s8.bf16 %v7474_v15 }
0x1474   : > { %8071 = vmatprep.subr.bf16.mxu1 %v7843_v55  ;;  %8157 = vmatprep.subr.bf16.mxu0 %v7845_v2  ;;  %v7956_v55 = vunpack.c.l.s8.bf16 %v7476_v3  ;;  %v7971_v2 = vunpack.c.h.s8.bf16 %v7475_v35 }
0x1477   : > { %8072 = vmatpush1.bf16.msra.mxu1 %v7842_v14  ;;  %8158 = vmatpush1.bf16.msra.mxu0 %v7844_v4  ;;  %v7493_v14 = vld [vmem:[%s15538_s30 + $0x798] sm:$0xff]  ;;  %v7970_v4 = vunpack.c.h.s8.bf16 %v7474_v15  ;;  %v7286_v15 = vld [vmem:[%s15538_s30 + $0x120] sm:$0xff] }
0x1478   : > { %8073 = vmatprep.subr.bf16.mxu1 %v7859_v27  ;;  %8159 = vmatprep.subr.bf16.mxu0 %v7861_v39  ;;  %v7972_v27 = vunpack.c.h.s8.bf16 %v7476_v3  ;;  %v7987_v39 = vunpack.c.l.s8.bf16 %v7491_v38  ;;  %v7989_v31 = vunpack.c.l.s8.bf16 %v7493_v14  ;;  %v8005_v28 = vunpack.c.h.s8.bf16 %v7493_v14  ;;  %v7303_v14 = vld [vmem:[%s15538_s30 + $0x1a8] sm:$0xff] }
0x147b   : > { %8074 = vmatpush1.bf16.msra.mxu1 %v7858_v43  ;;  %8160 = vmatpush1.bf16.msra.mxu0 %v7860_v9  ;;  %v7492_v43 = vld [vmem:[%s15538_s30 + $0x790] sm:$0xff]  ;;  %v7986_v9 = vunpack.c.l.s8.bf16 %v7490_v17 }
0x147c   : > { %8075 = vmatprep.subr.bf16.mxu1 %v7875_v42  ;;  %8161 = vmatprep.subr.bf16.mxu0 %v7877_v45  ;;  %v7988_v42 = vunpack.c.l.s8.bf16 %v7492_v43  ;;  %v8003_v45 = vunpack.c.h.s8.bf16 %v7491_v38 }
0x147f   : > { %8076 = vmatpush1.bf16.msra.mxu1 %v7874_v21  ;;  %8162 = vmatpush1.bf16.msra.mxu0 %v7876_v50  ;;  %v7257_v21 = vld [vmem:[%s15538_s30 + $0x38] sm:$0xff]  ;;  %v8002_v50 = vunpack.c.h.s8.bf16 %v7490_v17  ;;  %v7302_v17 = vld [vmem:[%s15538_s30 + $0x1a0] sm:$0xff] }
0x1480   : > { %8077 = vmatprep.subr.bf16.mxu1 %v7891_v18  ;;  %8163 = vmatprep.subr.bf16.mxu0 %v7893_v41  ;;  %v8004_v18 = vunpack.c.h.s8.bf16 %v7492_v43  ;;  %v7511_v41 = vunpack.c.l.s8.bf16 %v7255_v6  ;;  %v7513_v40 = vunpack.c.l.s8.bf16 %v7257_v21  ;;  %v7529_v51 = vunpack.c.h.s8.bf16 %v7257_v21  ;;  %v7319_v21 = vld [vmem:[%s15538_s30 + $0x228] sm:$0xff] }
0x1483   : > { %8078 = vmatpush1.bf16.msra.mxu1 %v7890_v47  ;;  %8164 = vmatpush1.bf16.msra.mxu0 %v7892_v49  ;;  %v7256_v47 = vld [vmem:[%s15538_s30 + $0x30] sm:$0xff]  ;;  %v7510_v49 = vunpack.c.l.s8.bf16 %v7254_v24 }
0x1484   : > { %8079 = vmatprep.subr.bf16.mxu1 %v7907_v48  ;;  %8165 = vmatprep.subr.bf16.mxu0 %v7909_v33  ;;  %v7512_v48 = vunpack.c.l.s8.bf16 %v7256_v47  ;;  %v7527_v33 = vunpack.c.h.s8.bf16 %v7255_v6 }
0x1487   : > { %8080 = vmatpush1.bf16.msra.mxu1 %v7906_v59  ;;  %8166 = vmatpush1.bf16.msra.mxu0 %v7908_v52  ;;  %v7273_v59 = vld [vmem:[%s15538_s30 + $0xb8] sm:$0xff]  ;;  %v7526_v52 = vunpack.c.h.s8.bf16 %v7254_v24  ;;  %v7318_v24 = vld [vmem:[%s15538_s30 + $0x220] sm:$0xff] }
0x1488   : > { %8081 = vmatprep.subr.bf16.mxu1 %v7923_v57  ;;  %8167 = vmatprep.subr.bf16.mxu0 %v7925_v26  ;;  %v7528_v57 = vunpack.c.h.s8.bf16 %v7256_v47  ;;  %v7543_v26 = vunpack.c.l.s8.bf16 %v7271_v56  ;;  %v7545_v60 = vunpack.c.l.s8.bf16 %v7273_v59  ;;  %v7561_v35 = vunpack.c.h.s8.bf16 %v7273_v59  ;;  %v7335_v59 = vld [vmem:[%s15538_s30 + $0x2a8] sm:$0xff] }
0x148b   : > { %8082 = vmatpush1.bf16.msra.mxu1 %v7922_v61  ;;  %8168 = vmatpush1.bf16.msra.mxu0 %v7924_v62  ;;  %v7272_v61 = vld [vmem:[%s15538_s30 + $0xb0] sm:$0xff]  ;;  %v7542_v62 = vunpack.c.l.s8.bf16 %v7270_v25 }
0x148c   : > { %8083 = vmatprep.subr.bf16.mxu1 %v7939_v63  ;;  %8169 = vmatprep.subr.bf16.mxu0 %v7941_v54  ;;  %v7544_v63 = vunpack.c.l.s8.bf16 %v7272_v61  ;;  %v7559_v54 = vunpack.c.h.s8.bf16 %v7271_v56 }
0x148f   : > { %8084 = vmatpush1.bf16.msra.mxu1 %v7938_v36  ;;  %8170 = vmatpush1.bf16.msra.mxu0 %v7940_v32  ;;  %v7289_v36 = vld [vmem:[%s15538_s30 + $0x138] sm:$0xff]  ;;  %v7558_v32 = vunpack.c.h.s8.bf16 %v7270_v25  ;;  %v7671_v25 = vunpack.c.l.s8.bf16 %v7335_v59 }
0x1490   : > { %8085 = vmatprep.subr.bf16.mxu1 %v7955_v37  ;;  %8171 = vmatprep.subr.bf16.mxu0 %v7957_v58  ;;  %v7560_v37 = vunpack.c.h.s8.bf16 %v7272_v61  ;;  %v7575_v58 = vunpack.c.l.s8.bf16 %v7287_v7  ;;  %v7577_v3 = vunpack.c.l.s8.bf16 %v7289_v36  ;;  %v7593_v38 = vunpack.c.h.s8.bf16 %v7289_v36  ;;  %v7351_v36 = vld [vmem:[%s15538_s30 + $0x328] sm:$0xff] }
0x1493   : > { %8086 = vmatpush1.bf16.msra.mxu1 %v7954_v16  ;;  %8172 = vmatpush1.bf16.msra.mxu0 %v7956_v55  ;;  %v7288_v16 = vld [vmem:[%s15538_s30 + $0x130] sm:$0xff]  ;;  %v7574_v55 = vunpack.c.l.s8.bf16 %v7286_v15 }
0x1494   : > { %8087 = vmatprep.subr.bf16.mxu1 %v7971_v2  ;;  %8173 = vmatprep.subr.bf16.mxu0 %v7973_v30  ;;  %v7576_v2 = vunpack.c.l.s8.bf16 %v7288_v16  ;;  %v7591_v30 = vunpack.c.h.s8.bf16 %v7287_v7 }
0x1497   : > { %8088 = vmatpush1.bf16.msra.mxu1 %v7970_v4  ;;  %8174 = vmatpush1.bf16.msra.mxu0 %v7972_v27  ;;  %v7305_v4 = vld [vmem:[%s15538_s30 + $0x1b8] sm:$0xff]  ;;  %v7590_v27 = vunpack.c.h.s8.bf16 %v7286_v15  ;;  %v7703_v15 = vunpack.c.l.s8.bf16 %v7351_v36 }
0x1498   : > { %8089 = vmatprep.subr.bf16.mxu1 %v7987_v39  ;;  %8175 = vmatprep.subr.bf16.mxu0 %v7989_v31  ;;  %v7592_v39 = vunpack.c.h.s8.bf16 %v7288_v16  ;;  %v7607_v31 = vunpack.c.l.s8.bf16 %v7303_v14  ;;  %v7609_v43 = vunpack.c.l.s8.bf16 %v7305_v4  ;;  %v7625_v6 = vunpack.c.h.s8.bf16 %v7305_v4  ;;  %v7367_v4 = vld [vmem:[%s15538_s30 + $0x3a8] sm:$0xff] }
0x149b   : > { %8090 = vmatpush1.bf16.msra.mxu1 %v7986_v9  ;;  %8176 = vmatpush1.bf16.msra.mxu0 %v7988_v42  ;;  %v7304_v9 = vld [vmem:[%s15538_s30 + $0x1b0] sm:$0xff]  ;;  %v7606_v42 = vunpack.c.l.s8.bf16 %v7302_v17 }
0x149c   : > { %8091 = vmatprep.subr.bf16.mxu1 %v8003_v45  ;;  %8177 = vmatprep.subr.bf16.mxu0 %v8005_v28  ;;  %v7608_v45 = vunpack.c.l.s8.bf16 %v7304_v9  ;;  %v7623_v28 = vunpack.c.h.s8.bf16 %v7303_v14 }
0x149f   : > { %8092 = vmatpush1.bf16.msra.mxu1 %v8002_v50  ;;  %8178 = vmatpush1.bf16.msra.mxu0 %v8004_v18  ;;  %v7321_v50 = vld [vmem:[%s15538_s30 + $0x238] sm:$0xff]  ;;  %v7622_v18 = vunpack.c.h.s8.bf16 %v7302_v17  ;;  %v7735_v17 = vunpack.c.l.s8.bf16 %v7367_v4 }
0x14a0   : > { %8190 = vmatprep.subr.bf16.mxu1 %v7511_v41  ;;  %8276 = vmatprep.subr.bf16.mxu0 %v7513_v40  ;;  %v7624_v41 = vunpack.c.h.s8.bf16 %v7304_v9  ;;  %v7639_v40 = vunpack.c.l.s8.bf16 %v7319_v21  ;;  %v7641_v47 = vunpack.c.l.s8.bf16 %v7321_v50  ;;  %v7657_v56 = vunpack.c.h.s8.bf16 %v7321_v50  ;;  %v7383_v50 = vld [vmem:[%s15538_s30 + $0x428] sm:$0xff] }
0x14a2   : > { %8094 = vmatmul.mubr.bf16.vlgmr.msra.gmra.mrb[44].mxu1 %v16461_v23  ;;  %8180 = vmatmul.mubr.bf16.vlgmr.msra.gmra.mrb[20].mxu0 %v16461_v23 }
0x14a3   : > { %8191 = vmatpush1.bf16.msra.mxu1 %v7510_v49  ;;  %8222 = vmatprep.mubr.bf16.mxu1 %v16457_v46  ;;  %v7320_v49 = vld [vmem:[%s15538_s30 + $0x230] sm:$0xff] }
0x14a4   : > { %8277 = vmatpush1.bf16.msra.mxu0 %v7512_v48  ;;  %8308 = vmatprep.mubr.bf16.mxu0 %v16457_v46  ;;  %v7638_v48 = vunpack.c.l.s8.bf16 %v7318_v24 }
0x14a5   : > { %8192 = vmatprep.subr.bf16.mxu1 %v7527_v33  ;;  %8278 = vmatprep.subr.bf16.mxu0 %v7529_v51  ;;  %v7640_v33 = vunpack.c.l.s8.bf16 %v7320_v49  ;;  %v7655_v51 = vunpack.c.h.s8.bf16 %v7319_v21 }
0x14a7   : > { %8193 = vmatpush1.bf16.msra.mxu1 %v7526_v52  ;;  %v7337_v52 = vld [vmem:[%s15538_s30 + $0x2b8] sm:$0xff] }
0x14a8   : > { %8279 = vmatpush1.bf16.msra.mxu0 %v7528_v57  ;;  %8194 = vmatprep.subr.bf16.mxu1 %v7543_v26  ;;  %v7654_v57 = vunpack.c.h.s8.bf16 %v7318_v24  ;;  %v7656_v26 = vunpack.c.h.s8.bf16 %v7320_v49  ;;  %v7673_v61 = vunpack.c.l.s8.bf16 %v7337_v52  ;;  %v7689_v7 = vunpack.c.h.s8.bf16 %v7337_v52 }
0x14a9   : > { %8280 = vmatprep.subr.bf16.mxu0 %v7545_v60  ;;  %v7334_v60 = vld [vmem:[%s15538_s30 + $0x2a0] sm:$0xff]  ;;  %v7767_v24 = vunpack.c.l.s8.bf16 %v7383_v50 }
0x14ab   : > { %8195 = vmatpush1.bf16.msra.mxu1 %v7542_v62  ;;  %v7336_v62 = vld [vmem:[%s15538_s30 + $0x2b0] sm:$0xff] }
0x14ac   : > { %8281 = vmatpush1.bf16.msra.mxu0 %v7544_v63  ;;  %8196 = vmatprep.subr.bf16.mxu1 %v7559_v54  ;;  %v7670_v63 = vunpack.c.l.s8.bf16 %v7334_v60  ;;  %v7672_v54 = vunpack.c.l.s8.bf16 %v7336_v62 }
0x14ad   : > { %8282 = vmatprep.subr.bf16.mxu0 %v7561_v35  ;;  %v7687_v35 = vunpack.c.h.s8.bf16 %v7335_v59  ;;  %v7399_v59 = vld [vmem:[%s15538_s30 + $0x4a8] sm:$0xff] }
0x14af   : > { %8197 = vmatpush1.bf16.msra.mxu1 %v7558_v32  ;;  %v7353_v32 = vld [vmem:[%s15538_s30 + $0x338] sm:$0xff] }
0x14b0   : > { %8283 = vmatpush1.bf16.msra.mxu0 %v7560_v37  ;;  %8198 = vmatprep.subr.bf16.mxu1 %v7575_v58  ;;  %v7686_v37 = vunpack.c.h.s8.bf16 %v7334_v60  ;;  %v7688_v58 = vunpack.c.h.s8.bf16 %v7336_v62  ;;  %v7705_v16 = vunpack.c.l.s8.bf16 %v7353_v32  ;;  %v7721_v14 = vunpack.c.h.s8.bf16 %v7353_v32  ;;  %v7415_v32 = vld [vmem:[%s15538_s30 + $0x528] sm:$0xff] }
0x14b1   : > { %8284 = vmatprep.subr.bf16.mxu0 %v7577_v3  ;;  %v7350_v3 = vld [vmem:[%s15538_s30 + $0x320] sm:$0xff]  ;;  %v7799_v60 = vunpack.c.l.s8.bf16 %v7399_v59 }
0x14b3   : > { %8199 = vmatpush1.bf16.msra.mxu1 %v7574_v55  ;;  %v7352_v55 = vld [vmem:[%s15538_s30 + $0x330] sm:$0xff] }
0x14b4   : > { %8285 = vmatpush1.bf16.msra.mxu0 %v7576_v2  ;;  %8200 = vmatprep.subr.bf16.mxu1 %v7591_v30  ;;  %v7702_v2 = vunpack.c.l.s8.bf16 %v7350_v3  ;;  %v7704_v30 = vunpack.c.l.s8.bf16 %v7352_v55 }
0x14b5   : > { %8286 = vmatprep.subr.bf16.mxu0 %v7593_v38  ;;  %v7719_v38 = vunpack.c.h.s8.bf16 %v7351_v36 }
0x14b7   : > { %8201 = vmatpush1.bf16.msra.mxu1 %v7590_v27  ;;  %v7369_v27 = vld [vmem:[%s15538_s30 + $0x3b8] sm:$0xff] }
0x14b8   : > { %8287 = vmatpush1.bf16.msra.mxu0 %v7592_v39  ;;  %8202 = vmatprep.subr.bf16.mxu1 %v7607_v31  ;;  %v7718_v39 = vunpack.c.h.s8.bf16 %v7350_v3  ;;  %v7720_v31 = vunpack.c.h.s8.bf16 %v7352_v55  ;;  %v7737_v9 = vunpack.c.l.s8.bf16 %v7369_v27  ;;  %v7753_v21 = vunpack.c.h.s8.bf16 %v7369_v27  ;;  %v7431_v27 = vld [vmem:[%s15538_s30 + $0x5a8] sm:$0xff] }
0x14b9   : > { %8288 = vmatprep.subr.bf16.mxu0 %v7609_v43  ;;  %v7366_v43 = vld [vmem:[%s15538_s30 + $0x3a0] sm:$0xff]  ;;  %v7831_v3 = vunpack.c.l.s8.bf16 %v7415_v32 }
0x14bb   : > { %8203 = vmatpush1.bf16.msra.mxu1 %v7606_v42  ;;  %v7368_v42 = vld [vmem:[%s15538_s30 + $0x3b0] sm:$0xff] }
0x14bc   : > { %8289 = vmatpush1.bf16.msra.mxu0 %v7608_v45  ;;  %8204 = vmatprep.subr.bf16.mxu1 %v7623_v28  ;;  %v7734_v45 = vunpack.c.l.s8.bf16 %v7366_v43  ;;  %v7736_v28 = vunpack.c.l.s8.bf16 %v7368_v42 }
0x14bd   : > { %8290 = vmatprep.subr.bf16.mxu0 %v7625_v6  ;;  %v7751_v6 = vunpack.c.h.s8.bf16 %v7367_v4 }
0x14bf   : > { %8205 = vmatpush1.bf16.msra.mxu1 %v7622_v18  ;;  %v7385_v18 = vld [vmem:[%s15538_s30 + $0x438] sm:$0xff] }
0x14c0   : > { %8291 = vmatpush1.bf16.msra.mxu0 %v7624_v41  ;;  %8206 = vmatprep.subr.bf16.mxu1 %v7639_v40  ;;  %v7750_v41 = vunpack.c.h.s8.bf16 %v7366_v43  ;;  %v7752_v40 = vunpack.c.h.s8.bf16 %v7368_v42  ;;  %v7769_v49 = vunpack.c.l.s8.bf16 %v7385_v18  ;;  %v7785_v52 = vunpack.c.h.s8.bf16 %v7385_v18  ;;  %v7447_v18 = vld [vmem:[%s15538_s30 + $0x628] sm:$0xff] }
0x14c1   : > { %8292 = vmatprep.subr.bf16.mxu0 %v7641_v47  ;;  %v7382_v47 = vld [vmem:[%s15538_s30 + $0x420] sm:$0xff]  ;;  %v7863_v43 = vunpack.c.l.s8.bf16 %v7431_v27 }
0x14c3   : > { %8207 = vmatpush1.bf16.msra.mxu1 %v7638_v48  ;;  %v7384_v48 = vld [vmem:[%s15538_s30 + $0x430] sm:$0xff] }
0x14c4   : > { %8293 = vmatpush1.bf16.msra.mxu0 %v7640_v33  ;;  %8208 = vmatprep.subr.bf16.mxu1 %v7655_v51  ;;  %v7766_v33 = vunpack.c.l.s8.bf16 %v7382_v47  ;;  %v7768_v51 = vunpack.c.l.s8.bf16 %v7384_v48 }
0x14c5   : > { %8294 = vmatprep.subr.bf16.mxu0 %v7657_v56  ;;  %v7783_v56 = vunpack.c.h.s8.bf16 %v7383_v50 }
0x14c7   : > { %8209 = vmatpush1.bf16.msra.mxu1 %v7654_v57  ;;  %v7401_v57 = vld [vmem:[%s15538_s30 + $0x4b8] sm:$0xff] }
0x14c8   : > { %8295 = vmatpush1.bf16.msra.mxu0 %v7656_v26  ;;  %8210 = vmatprep.subr.bf16.mxu1 %v7671_v25  ;;  %v7782_v26 = vunpack.c.h.s8.bf16 %v7382_v47  ;;  %v7784_v25 = vunpack.c.h.s8.bf16 %v7384_v48  ;;  %v7801_v62 = vunpack.c.l.s8.bf16 %v7401_v57  ;;  %v7817_v36 = vunpack.c.h.s8.bf16 %v7401_v57  ;;  %v7463_v57 = vld [vmem:[%s15538_s30 + $0x6a8] sm:$0xff] }
0x14c9   : > { %8296 = vmatprep.subr.bf16.mxu0 %v7673_v61  ;;  %v7398_v61 = vld [vmem:[%s15538_s30 + $0x4a0] sm:$0xff]  ;;  %v7895_v47 = vunpack.c.l.s8.bf16 %v7447_v18 }
0x14cb   : > { %8211 = vmatpush1.bf16.msra.mxu1 %v7670_v63  ;;  %v7400_v63 = vld [vmem:[%s15538_s30 + $0x4b0] sm:$0xff] }
0x14cc   : > { %8297 = vmatpush1.bf16.msra.mxu0 %v7672_v54  ;;  %8212 = vmatprep.subr.bf16.mxu1 %v7687_v35  ;;  %v7798_v54 = vunpack.c.l.s8.bf16 %v7398_v61  ;;  %v7800_v35 = vunpack.c.l.s8.bf16 %v7400_v63 }
0x14cd   : > { %8298 = vmatprep.subr.bf16.mxu0 %v7689_v7  ;;  %v7815_v7 = vunpack.c.h.s8.bf16 %v7399_v59  ;;  %v7911_v59 = vunpack.c.h.s8.bf16 %v7447_v18 }
0x14cf   : > { %8213 = vmatpush1.bf16.msra.mxu1 %v7686_v37  ;;  %v7417_v37 = vld [vmem:[%s15538_s30 + $0x538] sm:$0xff] }
0x14d0   : > { %8299 = vmatpush1.bf16.msra.mxu0 %v7688_v58  ;;  %8214 = vmatprep.subr.bf16.mxu1 %v7703_v15  ;;  %v7814_v58 = vunpack.c.h.s8.bf16 %v7398_v61  ;;  %v7816_v15 = vunpack.c.h.s8.bf16 %v7400_v63  ;;  %v7833_v55 = vunpack.c.l.s8.bf16 %v7417_v37  ;;  %v7849_v4 = vunpack.c.h.s8.bf16 %v7417_v37  ;;  %v7479_v37 = vld [vmem:[%s15538_s30 + $0x728] sm:$0xff] }
0x14d1   : > { %8300 = vmatprep.subr.bf16.mxu0 %v7705_v16  ;;  %v7414_v16 = vld [vmem:[%s15538_s30 + $0x520] sm:$0xff]  ;;  %v7927_v61 = vunpack.c.l.s8.bf16 %v7463_v57 }
0x14d3   : > { %8215 = vmatpush1.bf16.msra.mxu1 %v7702_v2  ;;  %v7416_v2 = vld [vmem:[%s15538_s30 + $0x530] sm:$0xff] }
0x14d4   : > { %8301 = vmatpush1.bf16.msra.mxu0 %v7704_v30  ;;  %8216 = vmatprep.subr.bf16.mxu1 %v7719_v38  ;;  %v7830_v30 = vunpack.c.l.s8.bf16 %v7414_v16  ;;  %v7832_v38 = vunpack.c.l.s8.bf16 %v7416_v2 }
0x14d5   : > { %8302 = vmatprep.subr.bf16.mxu0 %v7721_v14  ;;  %v7847_v14 = vunpack.c.h.s8.bf16 %v7415_v32 }
0x14d7   : > { %8217 = vmatpush1.bf16.msra.mxu1 %v7718_v39  ;;  %v7433_v39 = vld [vmem:[%s15538_s30 + $0x5b8] sm:$0xff] }
0x14d8   : > { %8303 = vmatpush1.bf16.msra.mxu0 %v7720_v31  ;;  %8218 = vmatprep.subr.bf16.mxu1 %v7735_v17  ;;  %v7846_v31 = vunpack.c.h.s8.bf16 %v7414_v16  ;;  %v7848_v17 = vunpack.c.h.s8.bf16 %v7416_v2  ;;  %v7865_v42 = vunpack.c.l.s8.bf16 %v7433_v39  ;;  %v7881_v50 = vunpack.c.h.s8.bf16 %v7433_v39  ;;  %v7495_v39 = vld [vmem:[%s15538_s30 + $0x7a8] sm:$0xff] }
0x14d9   : > { %8304 = vmatprep.subr.bf16.mxu0 %v7737_v9  ;;  %v7430_v9 = vld [vmem:[%s15538_s30 + $0x5a0] sm:$0xff]  ;;  %v7959_v16 = vunpack.c.l.s8.bf16 %v7479_v37 }
0x14db   : > { %8219 = vmatpush1.bf16.msra.mxu1 %v7734_v45  ;;  %v7432_v45 = vld [vmem:[%s15538_s30 + $0x5b0] sm:$0xff] }
0x14dc   : > { %8305 = vmatpush1.bf16.msra.mxu0 %v7736_v28  ;;  %8220 = vmatprep.subr.bf16.mxu1 %v7751_v6  ;;  %v7862_v28 = vunpack.c.l.s8.bf16 %v7430_v9  ;;  %v7864_v6 = vunpack.c.l.s8.bf16 %v7432_v45 }
0x14dd   : > { %8306 = vmatprep.subr.bf16.mxu0 %v7753_v21  ;;  %v7879_v21 = vunpack.c.h.s8.bf16 %v7431_v27 }
0x14df   : > { %8221 = vmatpush1.bf16.msra.mxu1 %v7750_v41  ;;  %v7449_v41 = vld [vmem:[%s15538_s30 + $0x638] sm:$0xff] }
0x14e0   : > { %8307 = vmatpush1.bf16.msra.mxu0 %v7752_v40  ;;  %8233 = vmatprep.subr.bf16.mxu1 %v7767_v24  ;;  %v7878_v40 = vunpack.c.h.s8.bf16 %v7430_v9  ;;  %v7880_v24 = vunpack.c.h.s8.bf16 %v7432_v45  ;;  %v7897_v48 = vunpack.c.l.s8.bf16 %v7449_v41  ;;  %v7991_v9 = vunpack.c.l.s8.bf16 %v7495_v39 }
0x14e1   : > { %8319 = vmatprep.subr.bf16.mxu0 %v7769_v49  ;;  %v7446_v49 = vld [vmem:[%s15538_s30 + $0x620] sm:$0xff] }
0x14e2   : > { %8223 = vmatmul.mubr.bf16.vlgmr.msra.gmra.mrb[48].mxu1 %v16459_v44 }
0x14e3   : > { %8309 = vmatmul.mubr.bf16.vlgmr.msra.gmra.mrb[24].mxu0 %v16459_v44  ;;  %8234 = vmatpush1.bf16.msra.mxu1 %v7766_v33  ;;  %v7448_v33 = vld [vmem:[%s15538_s30 + $0x630] sm:$0xff] }
0x14e4   : > { %8265 = vmatprep.mubr.bf16.mxu1 %v16471_v53  ;;  %8320 = vmatpush1.bf16.msra.mxu0 %v7768_v51  ;;  %v7894_v51 = vunpack.c.l.s8.bf16 %v7446_v49 }
0x14e5   : > { %8351 = vmatprep.mubr.bf16.mxu0 %v16471_v53  ;;  %8235 = vmatprep.subr.bf16.mxu1 %v7783_v56  ;;  %v7896_v56 = vunpack.c.l.s8.bf16 %v7448_v33 }
0x14e6   : > { %8321 = vmatprep.subr.bf16.mxu0 %v7785_v52  ;;  %v7913_v52 = vunpack.c.h.s8.bf16 %v7449_v41  ;;  %v7259_v41 = vld [vmem:[%s15538_s30 + $0x48] sm:$0xff] }
0x14e7   : > { %8236 = vmatpush1.bf16.msra.mxu1 %v7782_v26  ;;  %v7465_v26 = vld [vmem:[%s15538_s30 + $0x6b8] sm:$0xff] }
0x14e8   : > { %8322 = vmatpush1.bf16.msra.mxu0 %v7784_v25  ;;  %8237 = vmatprep.subr.bf16.mxu1 %v7799_v60  ;;  %v7910_v25 = vunpack.c.h.s8.bf16 %v7446_v49  ;;  %v7912_v60 = vunpack.c.h.s8.bf16 %v7448_v33  ;;  %v7929_v63 = vunpack.c.l.s8.bf16 %v7465_v26  ;;  %v7945_v32 = vunpack.c.h.s8.bf16 %v7465_v26 }
0x14e9   : > { %8323 = vmatprep.subr.bf16.mxu0 %v7801_v62  ;;  %v7462_v62 = vld [vmem:[%s15538_s30 + $0x6a0] sm:$0xff]  ;;  %v7515_v49 = vunpack.c.l.s8.bf16 %v7259_v41 }
0x14eb   : > { %8238 = vmatpush1.bf16.msra.mxu1 %v7798_v54  ;;  %v7464_v54 = vld [vmem:[%s15538_s30 + $0x6b0] sm:$0xff] }
0x14ec   : > { %8324 = vmatpush1.bf16.msra.mxu0 %v7800_v35  ;;  %8239 = vmatprep.subr.bf16.mxu1 %v7815_v7  ;;  %v7926_v35 = vunpack.c.l.s8.bf16 %v7462_v62  ;;  %v7928_v7 = vunpack.c.l.s8.bf16 %v7464_v54 }
0x14ed   : > { %8325 = vmatprep.subr.bf16.mxu0 %v7817_v36  ;;  %v7943_v36 = vunpack.c.h.s8.bf16 %v7463_v57  ;;  %v7275_v57 = vld [vmem:[%s15538_s30 + $0xc8] sm:$0xff] }
0x14ef   : > { %8240 = vmatpush1.bf16.msra.mxu1 %v7814_v58  ;;  %v7481_v58 = vld [vmem:[%s15538_s30 + $0x738] sm:$0xff] }
0x14f0   : > { %8326 = vmatpush1.bf16.msra.mxu0 %v7816_v15  ;;  %8241 = vmatprep.subr.bf16.mxu1 %v7831_v3  ;;  %v7942_v15 = vunpack.c.h.s8.bf16 %v7462_v62  ;;  %v7944_v3 = vunpack.c.h.s8.bf16 %v7464_v54  ;;  %v7961_v2 = vunpack.c.l.s8.bf16 %v7481_v58  ;;  %v7977_v27 = vunpack.c.h.s8.bf16 %v7481_v58  ;;  %v7291_v58 = vld [vmem:[%s15538_s30 + $0x148] sm:$0xff] }
0x14f1   : > { %8327 = vmatprep.subr.bf16.mxu0 %v7833_v55  ;;  %v7478_v55 = vld [vmem:[%s15538_s30 + $0x720] sm:$0xff]  ;;  %v7547_v62 = vunpack.c.l.s8.bf16 %v7275_v57 }
0x14f3   : > { %8242 = vmatpush1.bf16.msra.mxu1 %v7830_v30  ;;  %v7480_v30 = vld [vmem:[%s15538_s30 + $0x730] sm:$0xff] }
0x14f4   : > { %8328 = vmatpush1.bf16.msra.mxu0 %v7832_v38  ;;  %8243 = vmatprep.subr.bf16.mxu1 %v7847_v14  ;;  %v7958_v38 = vunpack.c.l.s8.bf16 %v7478_v55  ;;  %v7960_v14 = vunpack.c.l.s8.bf16 %v7480_v30 }
0x14f5   : > { %8329 = vmatprep.subr.bf16.mxu0 %v7849_v4  ;;  %v7975_v4 = vunpack.c.h.s8.bf16 %v7479_v37 }
0x14f7   : > { %8244 = vmatpush1.bf16.msra.mxu1 %v7846_v31  ;;  %v7497_v31 = vld [vmem:[%s15538_s30 + $0x7b8] sm:$0xff] }
0x14f8   : > { %8330 = vmatpush1.bf16.msra.mxu0 %v7848_v17  ;;  %8245 = vmatprep.subr.bf16.mxu1 %v7863_v43  ;;  %v7974_v17 = vunpack.c.h.s8.bf16 %v7478_v55  ;;  %v7976_v43 = vunpack.c.h.s8.bf16 %v7480_v30  ;;  %v7993_v45 = vunpack.c.l.s8.bf16 %v7497_v31  ;;  %v8009_v18 = vunpack.c.h.s8.bf16 %v7497_v31  ;;  %v7307_v31 = vld [vmem:[%s15538_s30 + $0x1c8] sm:$0xff] }
0x14f9   : > { %8331 = vmatprep.subr.bf16.mxu0 %v7865_v42  ;;  %v7494_v42 = vld [vmem:[%s15538_s30 + $0x7a0] sm:$0xff]  ;;  %v7579_v55 = vunpack.c.l.s8.bf16 %v7291_v58 }
0x14fb   : > { %8246 = vmatpush1.bf16.msra.mxu1 %v7862_v28  ;;  %v7496_v28 = vld [vmem:[%s15538_s30 + $0x7b0] sm:$0xff] }
0x14fc   : > { %8332 = vmatpush1.bf16.msra.mxu0 %v7864_v6  ;;  %8247 = vmatprep.subr.bf16.mxu1 %v7879_v21  ;;  %v7990_v6 = vunpack.c.l.s8.bf16 %v7494_v42  ;;  %v7992_v21 = vunpack.c.l.s8.bf16 %v7496_v28 }
0x14fd   : > { %8333 = vmatprep.subr.bf16.mxu0 %v7881_v50  ;;  %v8007_v50 = vunpack.c.h.s8.bf16 %v7495_v39 }
0x14ff   : > { %8248 = vmatpush1.bf16.msra.mxu1 %v7878_v40  ;;  %v7261_v40 = vld [vmem:[%s15538_s30 + $0x58] sm:$0xff] }
0x1500   : > { %8334 = vmatpush1.bf16.msra.mxu0 %v7880_v24  ;;  %8249 = vmatprep.subr.bf16.mxu1 %v7895_v47  ;;  %v8006_v24 = vunpack.c.h.s8.bf16 %v7494_v42  ;;  %v8008_v47 = vunpack.c.h.s8.bf16 %v7496_v28  ;;  %v7517_v33 = vunpack.c.l.s8.bf16 %v7261_v40  ;;  %v7533_v26 = vunpack.c.h.s8.bf16 %v7261_v40  ;;  %v7323_v40 = vld [vmem:[%s15538_s30 + $0x248] sm:$0xff] }
0x1501   : > { %8335 = vmatprep.subr.bf16.mxu0 %v7897_v48  ;;  %v7258_v48 = vld [vmem:[%s15538_s30 + $0x40] sm:$0xff]  ;;  %v7611_v42 = vunpack.c.l.s8.bf16 %v7307_v31 }
0x1503   : > { %8250 = vmatpush1.bf16.msra.mxu1 %v7894_v51  ;;  %v7260_v51 = vld [vmem:[%s15538_s30 + $0x50] sm:$0xff] }
0x1504   : > { %8336 = vmatpush1.bf16.msra.mxu0 %v7896_v56  ;;  %8251 = vmatprep.subr.bf16.mxu1 %v7911_v59  ;;  %v7514_v56 = vunpack.c.l.s8.bf16 %v7258_v48  ;;  %v7516_v59 = vunpack.c.l.s8.bf16 %v7260_v51 }
0x1505   : > { %8337 = vmatprep.subr.bf16.mxu0 %v7913_v52  ;;  %v7531_v52 = vunpack.c.h.s8.bf16 %v7259_v41 }
0x1507   : > { %8252 = vmatpush1.bf16.msra.mxu1 %v7910_v25  ;;  %v7277_v25 = vld [vmem:[%s15538_s30 + $0xd8] sm:$0xff] }
0x1508   : > { %8338 = vmatpush1.bf16.msra.mxu0 %v7912_v60  ;;  %8253 = vmatprep.subr.bf16.mxu1 %v7927_v61  ;;  %v7530_v60 = vunpack.c.h.s8.bf16 %v7258_v48  ;;  %v7532_v61 = vunpack.c.h.s8.bf16 %v7260_v51  ;;  %v7549_v54 = vunpack.c.l.s8.bf16 %v7277_v25  ;;  %v7565_v37 = vunpack.c.h.s8.bf16 %v7277_v25  ;;  %v7339_v25 = vld [vmem:[%s15538_s30 + $0x2c8] sm:$0xff] }
0x1509   : > { %8339 = vmatprep.subr.bf16.mxu0 %v7929_v63  ;;  %v7274_v63 = vld [vmem:[%s15538_s30 + $0xc0] sm:$0xff]  ;;  %v7643_v48 = vunpack.c.l.s8.bf16 %v7323_v40 }
0x150b   : > { %8254 = vmatpush1.bf16.msra.mxu1 %v7926_v35  ;;  %v7276_v35 = vld [vmem:[%s15538_s30 + $0xd0] sm:$0xff] }
0x150c   : > { %8340 = vmatpush1.bf16.msra.mxu0 %v7928_v7  ;;  %8255 = vmatprep.subr.bf16.mxu1 %v7943_v36  ;;  %v7546_v7 = vunpack.c.l.s8.bf16 %v7274_v63  ;;  %v7548_v36 = vunpack.c.l.s8.bf16 %v7276_v35 }
0x150d   : > { %8341 = vmatprep.subr.bf16.mxu0 %v7945_v32  ;;  %v7563_v32 = vunpack.c.h.s8.bf16 %v7275_v57  ;;  %v7659_v57 = vunpack.c.h.s8.bf16 %v7323_v40 }
0x150f   : > { %8256 = vmatpush1.bf16.msra.mxu1 %v7942_v15  ;;  %v7293_v15 = vld [vmem:[%s15538_s30 + $0x158] sm:$0xff] }
0x1510   : > { %8342 = vmatpush1.bf16.msra.mxu0 %v7944_v3  ;;  %8257 = vmatprep.subr.bf16.mxu1 %v7959_v16  ;;  %v7562_v3 = vunpack.c.h.s8.bf16 %v7274_v63  ;;  %v7564_v16 = vunpack.c.h.s8.bf16 %v7276_v35  ;;  %v7581_v30 = vunpack.c.l.s8.bf16 %v7293_v15  ;;  %v7597_v39 = vunpack.c.h.s8.bf16 %v7293_v15  ;;  %v7355_v15 = vld [vmem:[%s15538_s30 + $0x348] sm:$0xff] }
0x1511   : > { %8343 = vmatprep.subr.bf16.mxu0 %v7961_v2  ;;  %v7290_v2 = vld [vmem:[%s15538_s30 + $0x140] sm:$0xff]  ;;  %v7675_v63 = vunpack.c.l.s8.bf16 %v7339_v25 }
0x1513   : > { %8258 = vmatpush1.bf16.msra.mxu1 %v7958_v38  ;;  %v7292_v38 = vld [vmem:[%s15538_s30 + $0x150] sm:$0xff] }
0x1514   : > { %8344 = vmatpush1.bf16.msra.mxu0 %v7960_v14  ;;  %8259 = vmatprep.subr.bf16.mxu1 %v7975_v4  ;;  %v7578_v14 = vunpack.c.l.s8.bf16 %v7290_v2  ;;  %v7580_v4 = vunpack.c.l.s8.bf16 %v7292_v38 }
0x1515   : > { %8345 = vmatprep.subr.bf16.mxu0 %v7977_v27  ;;  %v7595_v27 = vunpack.c.h.s8.bf16 %v7291_v58 }
0x1517   : > { %8260 = vmatpush1.bf16.msra.mxu1 %v7974_v17  ;;  %v7309_v17 = vld [vmem:[%s15538_s30 + $0x1d8] sm:$0xff] }
0x1518   : > { %8346 = vmatpush1.bf16.msra.mxu0 %v7976_v43  ;;  %8261 = vmatprep.subr.bf16.mxu1 %v7991_v9  ;;  %v7594_v43 = vunpack.c.h.s8.bf16 %v7290_v2  ;;  %v7596_v9 = vunpack.c.h.s8.bf16 %v7292_v38  ;;  %v7613_v28 = vunpack.c.l.s8.bf16 %v7309_v17  ;;  %v7629_v41 = vunpack.c.h.s8.bf16 %v7309_v17  ;;  %v7371_v17 = vld [vmem:[%s15538_s30 + $0x3c8] sm:$0xff] }
0x1519   : > { %8347 = vmatprep.subr.bf16.mxu0 %v7993_v45  ;;  %v7306_v45 = vld [vmem:[%s15538_s30 + $0x1c0] sm:$0xff]  ;;  %v7707_v2 = vunpack.c.l.s8.bf16 %v7355_v15 }
0x151b   : > { %8262 = vmatpush1.bf16.msra.mxu1 %v7990_v6  ;;  %v7308_v6 = vld [vmem:[%s15538_s30 + $0x1d0] sm:$0xff] }
0x151c   : > { %8348 = vmatpush1.bf16.msra.mxu0 %v7992_v21  ;;  %8263 = vmatprep.subr.bf16.mxu1 %v8007_v50  ;;  %v7610_v21 = vunpack.c.l.s8.bf16 %v7306_v45  ;;  %v7612_v50 = vunpack.c.l.s8.bf16 %v7308_v6 }
0x151d   : > { %8349 = vmatprep.subr.bf16.mxu0 %v8009_v18  ;;  %v7627_v18 = vunpack.c.h.s8.bf16 %v7307_v31 }
0x151f   : > { %8264 = vmatpush1.bf16.msra.mxu1 %v8006_v24  ;;  %v7325_v24 = vld [vmem:[%s15538_s30 + $0x258] sm:$0xff] }
0x1520   : > { %8350 = vmatpush1.bf16.msra.mxu0 %v8008_v47  ;;  %8362 = vmatprep.subr.bf16.mxu1 %v7515_v49  ;;  %v7626_v47 = vunpack.c.h.s8.bf16 %v7306_v45  ;;  %v7628_v49 = vunpack.c.h.s8.bf16 %v7308_v6  ;;  %v7645_v51 = vunpack.c.l.s8.bf16 %v7325_v24  ;;  %v7739_v45 = vunpack.c.l.s8.bf16 %v7371_v17 }
0x1521   : > { %8448 = vmatprep.subr.bf16.mxu0 %v7517_v33  ;;  %v7322_v33 = vld [vmem:[%s15538_s30 + $0x240] sm:$0xff] }
0x1522   : > { %8266 = vmatmul.mubr.bf16.vlgmr.msra.gmra.mrb[48].mxu1 %v16461_v23 }
0x1523   : > { %8352 = vmatmul.mubr.bf16.vlgmr.msra.gmra.mrb[24].mxu0 %v16461_v23  ;;  %8363 = vmatpush1.bf16.msra.mxu1 %v7514_v56  ;;  %v7324_v56 = vld [vmem:[%s15538_s30 + $0x250] sm:$0xff] }
0x1524   : > { %8394 = vmatprep.mubr.bf16.mxu1 %v16457_v46  ;;  %8449 = vmatpush1.bf16.msra.mxu0 %v7516_v59  ;;  %v7642_v59 = vunpack.c.l.s8.bf16 %v7322_v33 }
0x1525   : > { %8480 = vmatprep.mubr.bf16.mxu0 %v16457_v46  ;;  %8364 = vmatprep.subr.bf16.mxu1 %v7531_v52  ;;  %v7644_v52 = vunpack.c.l.s8.bf16 %v7324_v56 }
0x1526   : > { %8450 = vmatprep.subr.bf16.mxu0 %v7533_v26  ;;  %v7661_v26 = vunpack.c.h.s8.bf16 %v7325_v24  ;;  %v7387_v24 = vld [vmem:[%s15538_s30 + $0x448] sm:$0xff] }
0x1527   : > { %8365 = vmatpush1.bf16.msra.mxu1 %v7530_v60  ;;  %v7341_v60 = vld [vmem:[%s15538_s30 + $0x2d8] sm:$0xff] }
0x1528   : > { %8451 = vmatpush1.bf16.msra.mxu0 %v7532_v61  ;;  %8366 = vmatprep.subr.bf16.mxu1 %v7547_v62  ;;  %v7658_v61 = vunpack.c.h.s8.bf16 %v7322_v33  ;;  %v7660_v62 = vunpack.c.h.s8.bf16 %v7324_v56  ;;  %v7677_v35 = vunpack.c.l.s8.bf16 %v7341_v60  ;;  %v7693_v58 = vunpack.c.h.s8.bf16 %v7341_v60 }
0x1529   : > { %8452 = vmatprep.subr.bf16.mxu0 %v7549_v54  ;;  %v7338_v54 = vld [vmem:[%s15538_s30 + $0x2c0] sm:$0xff]  ;;  %v7771_v33 = vunpack.c.l.s8.bf16 %v7387_v24 }
0x152b   : > { %8367 = vmatpush1.bf16.msra.mxu1 %v7546_v7  ;;  %v7340_v7 = vld [vmem:[%s15538_s30 + $0x2d0] sm:$0xff] }
0x152c   : > { %8453 = vmatpush1.bf16.msra.mxu0 %v7548_v36  ;;  %8368 = vmatprep.subr.bf16.mxu1 %v7563_v32  ;;  %v7674_v36 = vunpack.c.l.s8.bf16 %v7338_v54  ;;  %v7676_v32 = vunpack.c.l.s8.bf16 %v7340_v7 }
0x152d   : > { %8454 = vmatprep.subr.bf16.mxu0 %v7565_v37  ;;  %v7691_v37 = vunpack.c.h.s8.bf16 %v7339_v25  ;;  %v7403_v25 = vld [vmem:[%s15538_s30 + $0x4c8] sm:$0xff] }
0x152f   : > { %8369 = vmatpush1.bf16.msra.mxu1 %v7562_v3  ;;  %v7357_v3 = vld [vmem:[%s15538_s30 + $0x358] sm:$0xff] }
0x1530   : > { %8455 = vmatpush1.bf16.msra.mxu0 %v7564_v16  ;;  %8370 = vmatprep.subr.bf16.mxu1 %v7579_v55  ;;  %v7690_v16 = vunpack.c.h.s8.bf16 %v7338_v54  ;;  %v7692_v55 = vunpack.c.h.s8.bf16 %v7340_v7  ;;  %v7709_v38 = vunpack.c.l.s8.bf16 %v7357_v3  ;;  %v7725_v31 = vunpack.c.h.s8.bf16 %v7357_v3  ;;  %v7419_v3 = vld [vmem:[%s15538_s30 + $0x548] sm:$0xff] }
0x1531   : > { %8456 = vmatprep.subr.bf16.mxu0 %v7581_v30  ;;  %v7354_v30 = vld [vmem:[%s15538_s30 + $0x340] sm:$0xff]  ;;  %v7803_v54 = vunpack.c.l.s8.bf16 %v7403_v25 }
0x1533   : > { %8371 = vmatpush1.bf16.msra.mxu1 %v7578_v14  ;;  %v7356_v14 = vld [vmem:[%s15538_s30 + $0x350] sm:$0xff] }
0x1534   : > { %8457 = vmatpush1.bf16.msra.mxu0 %v7580_v4  ;;  %8372 = vmatprep.subr.bf16.mxu1 %v7595_v27  ;;  %v7706_v4 = vunpack.c.l.s8.bf16 %v7354_v30  ;;  %v7708_v27 = vunpack.c.l.s8.bf16 %v7356_v14 }
0x1535   : > { %8458 = vmatprep.subr.bf16.mxu0 %v7597_v39  ;;  %v7723_v39 = vunpack.c.h.s8.bf16 %v7355_v15 }
0x1537   : > { %8373 = vmatpush1.bf16.msra.mxu1 %v7594_v43  ;;  %v7373_v43 = vld [vmem:[%s15538_s30 + $0x3d8] sm:$0xff] }
0x1538   : > { %8459 = vmatpush1.bf16.msra.mxu0 %v7596_v9  ;;  %8374 = vmatprep.subr.bf16.mxu1 %v7611_v42  ;;  %v7722_v9 = vunpack.c.h.s8.bf16 %v7354_v30  ;;  %v7724_v42 = vunpack.c.h.s8.bf16 %v7356_v14  ;;  %v7741_v6 = vunpack.c.l.s8.bf16 %v7373_v43  ;;  %v7757_v40 = vunpack.c.h.s8.bf16 %v7373_v43  ;;  %v16629_v43 = vld [vmem:[%s15542_s2] sm:$0xff] }
0x1539   : > { %8460 = vmatprep.subr.bf16.mxu0 %v7613_v28  ;;  %v7370_v28 = vld [vmem:[%s15538_s30 + $0x3c0] sm:$0xff]  ;;  %v7835_v30 = vunpack.c.l.s8.bf16 %v7419_v3 }
0x153b   : > { %8375 = vmatpush1.bf16.msra.mxu1 %v7610_v21  ;;  %v7372_v21 = vld [vmem:[%s15538_s30 + $0x3d0] sm:$0xff] }
0x153c   : > { %8461 = vmatpush1.bf16.msra.mxu0 %v7612_v50  ;;  %8376 = vmatprep.subr.bf16.mxu1 %v7627_v18  ;;  %v7738_v50 = vunpack.c.l.s8.bf16 %v7370_v28  ;;  %v7740_v18 = vunpack.c.l.s8.bf16 %v7372_v21 }
0x153d   : > { %8462 = vmatprep.subr.bf16.mxu0 %v7629_v41  ;;  %v7755_v41 = vunpack.c.h.s8.bf16 %v7371_v17  ;;  %v7851_v17 = vunpack.c.h.s8.bf16 %v7419_v3  ;;  %v8841_v3 = vrot.slane %v16629_v43, %v15727_v22 }
0x153f   : > { %8377 = vmatpush1.bf16.msra.mxu1 %v7626_v47  ;;  %v7389_v47 = vld [vmem:[%s15538_s30 + $0x458] sm:$0xff] }
0x1540   : > { %8463 = vmatpush1.bf16.msra.mxu0 %v7628_v49  ;;  %8378 = vmatprep.subr.bf16.mxu1 %v7643_v48  ;;  %v7754_v49 = vunpack.c.h.s8.bf16 %v7370_v28  ;;  %v7756_v48 = vunpack.c.h.s8.bf16 %v7372_v21  ;;  %v7773_v56 = vunpack.c.l.s8.bf16 %v7389_v47  ;;  %v7789_v60 = vunpack.c.h.s8.bf16 %v7389_v47  ;;  %v7435_v28 = vld [vmem:[%s15538_s30 + $0x5c8] sm:$0xff] }
0x1541   : > { %8464 = vmatprep.subr.bf16.mxu0 %v7645_v51  ;;  %v7386_v51 = vld [vmem:[%s15538_s30 + $0x440] sm:$0xff] }
0x1543   : > { %8379 = vmatpush1.bf16.msra.mxu1 %v7642_v59  ;;  %v7388_v59 = vld [vmem:[%s15538_s30 + $0x450] sm:$0xff] }
0x1544   : > { %8465 = vmatpush1.bf16.msra.mxu0 %v7644_v52  ;;  %8380 = vmatprep.subr.bf16.mxu1 %v7659_v57  ;;  %v7770_v52 = vunpack.c.l.s8.bf16 %v7386_v51  ;;  %v7772_v57 = vunpack.c.l.s8.bf16 %v7388_v59 }
0x1545   : > { %8466 = vmatprep.subr.bf16.mxu0 %v7661_v26  ;;  %v7787_v26 = vunpack.c.h.s8.bf16 %v7387_v24  ;;  %v16643_v24 = vld [vmem:[%s15538_s30 + $0x5d0] sm:$0xff] }
0x1547   : > { %8381 = vmatpush1.bf16.msra.mxu1 %v7658_v61  ;;  %v7405_v61 = vld [vmem:[%s15538_s30 + $0x4d8] sm:$0xff] }
0x1548   : > { %8467 = vmatpush1.bf16.msra.mxu0 %v7660_v62  ;;  %8382 = vmatprep.subr.bf16.mxu1 %v7675_v63  ;;  %v7786_v62 = vunpack.c.h.s8.bf16 %v7386_v51  ;;  %v7788_v63 = vunpack.c.h.s8.bf16 %v7388_v59  ;;  %v7805_v7 = vunpack.c.l.s8.bf16 %v7405_v61  ;;  %v7821_v15 = vunpack.c.h.s8.bf16 %v7405_v61 }
0x1549   : > { %8468 = vmatprep.subr.bf16.mxu0 %v7677_v35  ;;  %v7402_v35 = vld [vmem:[%s15538_s30 + $0x4c0] sm:$0xff]  ;;  %v8837_v59 = vrot.slane %v16629_v43, %v15712_v10 }
0x154b   : > { %8383 = vmatpush1.bf16.msra.mxu1 %v7674_v36  ;;  %v7404_v36 = vld [vmem:[%s15538_s30 + $0x4d0] sm:$0xff] }
0x154c   : > { %8469 = vmatpush1.bf16.msra.mxu0 %v7676_v32  ;;  %8384 = vmatprep.subr.bf16.mxu1 %v7691_v37  ;;  %v7802_v32 = vunpack.c.l.s8.bf16 %v7402_v35  ;;  %v7804_v37 = vunpack.c.l.s8.bf16 %v7404_v36 }
0x154d   : > { %8470 = vmatprep.subr.bf16.mxu0 %v7693_v58  ;;  %v7819_v58 = vunpack.c.h.s8.bf16 %v7403_v25 }
0x154f   : > { %8385 = vmatpush1.bf16.msra.mxu1 %v7690_v16  ;;  %v7421_v16 = vld [vmem:[%s15538_s30 + $0x558] sm:$0xff] }
0x1550   : > { %8471 = vmatpush1.bf16.msra.mxu0 %v7692_v55  ;;  %8386 = vmatprep.subr.bf16.mxu1 %v7707_v2  ;;  %v7818_v55 = vunpack.c.h.s8.bf16 %v7402_v35  ;;  %v7820_v2 = vunpack.c.h.s8.bf16 %v7404_v36  ;;  %v7837_v14 = vunpack.c.l.s8.bf16 %v7421_v16 }
0x1551   : > { %8472 = vmatprep.subr.bf16.mxu0 %v7709_v38  ;;  %v7418_v38 = vld [vmem:[%s15538_s30 + $0x540] sm:$0xff] }
0x1552   : > { %v7850_v21 = vunpack.c.h.s8.bf16 %v7418_v38 }
0x1553   : > { %8387 = vmatpush1.bf16.msra.mxu1 %v7706_v4  ;;  %v7420_v4 = vld [vmem:[%s15538_s30 + $0x550] sm:$0xff] }
0x1554   : > { %8473 = vmatpush1.bf16.msra.mxu0 %v7708_v27  ;;  %8388 = vmatprep.subr.bf16.mxu1 %v7723_v39  ;;  %v7834_v27 = vunpack.c.l.s8.bf16 %v7418_v38  ;;  %v16626_v39 = vld [vmem:[%s15540_s6] sm:$0xff] }
0x1555   : > { %8474 = vmatprep.subr.bf16.mxu0 %v7725_v31  ;;  %v7836_v31 = vunpack.c.l.s8.bf16 %v7420_v4 }
0x1557   : > { %8389 = vmatpush1.bf16.msra.mxu1 %v7722_v9  ;;  %v7853_v9 = vunpack.c.h.s8.bf16 %v7421_v16 }
0x1558   : > { %8475 = vmatpush1.bf16.msra.mxu0 %v7724_v42  ;;  %8390 = vmatprep.subr.bf16.mxu1 %v7739_v45  ;;  %v8713_v42 = vrot.slane %v16626_v39, %v15720_v13  ;;  %v8721_v45 = vrot.slane %v16626_v39, %v15712_v10 }
0x1559   : > { %8476 = vmatprep.subr.bf16.mxu0 %v7741_v6  ;;  %v8717_v6 = vrot.slane %v16626_v39, %v15717_v12 }
0x155b   : > { %8391 = vmatpush1.bf16.msra.mxu1 %v7738_v50  ;;  %v7437_v50 = vld [vmem:[%s15538_s30 + $0x5d8] sm:$0xff] }
0x155c   : > { %8477 = vmatpush1.bf16.msra.mxu0 %v7740_v18  ;;  %8392 = vmatprep.subr.bf16.mxu1 %v7755_v41  ;;  %v8829_v18 = vrot.slane %v16629_v43, %v15720_v13  ;;  %v7852_v41 = vunpack.c.h.s8.bf16 %v7420_v4  ;;  %v7453_v4 = vld [vmem:[%s15538_s30 + $0x658] sm:$0xff] }
0x155d   : > { %8478 = vmatprep.subr.bf16.mxu0 %v7757_v40  ;;  %v7434_v40 = vld [vmem:[%s15538_s30 + $0x5c0] sm:$0xff] }
0x155f   : > { %8393 = vmatpush1.bf16.msra.mxu1 %v7754_v49 }
0x1560   : > { %8479 = vmatpush1.bf16.msra.mxu0 %v7756_v48  ;;  %8405 = vmatprep.subr.bf16.mxu1 %v7771_v33  ;;  %v8725_v48 = vrot.slane %v16626_v39, %v15727_v22  ;;  %v7867_v33 = vunpack.c.l.s8.bf16 %v7435_v28 }
0x1561   : > { %8491 = vmatprep.subr.bf16.mxu0 %v7773_v56 }
0x1562   : > { %8395 = vmatmul.mubr.bf16.vlgmr.msra.gmra.mrb[52].mxu1 %v16459_v44 }
0x1563   : > { %8481 = vmatmul.mubr.bf16.vlgmr.msra.gmra.mrb[28].mxu0 %v16459_v44  ;;  %8406 = vmatpush1.bf16.msra.mxu1 %v7770_v52 }
0x1564   : > { %8437 = vmatprep.mubr.bf16.mxu1 %v16471_v53  ;;  %8492 = vmatpush1.bf16.msra.mxu0 %v7772_v57 }
0x1565   : > { %8523 = vmatprep.mubr.bf16.mxu0 %v16471_v53  ;;  %8407 = vmatprep.subr.bf16.mxu1 %v7787_v26  ;;  %v7869_v26 = vunpack.c.l.s8.bf16 %v7437_v50 }
0x1566   : > { %8493 = vmatprep.subr.bf16.mxu0 %v7789_v60  ;;  %v8833_v60 = vrot.slane %v16629_v43, %v15717_v12 }
0x1567   : > { %8408 = vmatpush1.bf16.msra.mxu1 %v7786_v62 }
0x1568   : > { %8494 = vmatpush1.bf16.msra.mxu0 %v7788_v63  ;;  %8409 = vmatprep.subr.bf16.mxu1 %v7803_v54  ;;  %v7866_v63 = vunpack.c.l.s8.bf16 %v7434_v40  ;;  %v7868_v54 = vunpack.c.l.s8.bf16 %v16643_v24 }
0x1569   : > { %8495 = vmatprep.subr.bf16.mxu0 %v7805_v7 }
0x156b   : > { %8410 = vmatpush1.bf16.msra.mxu1 %v7802_v32 }
0x156c   : > { %8496 = vmatpush1.bf16.msra.mxu0 %v7804_v37  ;;  %8411 = vmatprep.subr.bf16.mxu1 %v7819_v58  ;;  %v7883_v58 = vunpack.c.h.s8.bf16 %v7435_v28 }
0x156d   : > { %8497 = vmatprep.subr.bf16.mxu0 %v7821_v15 }
0x156f   : > { %8412 = vmatpush1.bf16.msra.mxu1 %v7818_v55  ;;  %v7885_v55 = vunpack.c.h.s8.bf16 %v7437_v50 }
0x1570   : > { %8498 = vmatpush1.bf16.msra.mxu0 %v7820_v2  ;;  %8413 = vmatprep.subr.bf16.mxu1 %v7835_v30 }
0x1571   : > { %8499 = vmatprep.subr.bf16.mxu0 %v7837_v14  ;;  %v7451_v14 = vld [vmem:[%s15538_s30 + $0x648] sm:$0xff] }
0x1573   : > { %8414 = vmatpush1.bf16.msra.mxu1 %v7834_v27 }
0x1574   : > { %8500 = vmatpush1.bf16.msra.mxu0 %v7836_v31  ;;  %8415 = vmatprep.subr.bf16.mxu1 %v7851_v17 }
0x1575   : > { %v8095_v47 = vpop.f32.mrb[44].mxu1  ;;  %v8181_v49 = vpop.f32.mrb[20].mxu0  ;;  %8501 = vmatprep.subr.bf16.mxu0 %v7853_v9  ;;  %v7882_v9 = vunpack.c.h.s8.bf16 %v7434_v40 }
0x1576   : > { %v8790_v51 = vmul.f32 %v8713_v42, %v8095_v47  ;;  %v8792_v56 = vmul.f32 %v8721_v45, %v8181_v49  ;;  %v8097_v52 = vpop.f32.mrb[45].mxu1  ;;  %v8183_v57 = vpop.f32.mrb[21].mxu0  ;;  %v7452_v47 = vld [vmem:[%s15538_s30 + $0x650] sm:$0xff] }
0x1577   : > { %v8791_v25 = vmul.f32 %v8717_v6, %v8097_v52  ;;  %v8099_v61 = vpop.f32.mrb[46].mxu1  ;;  %v8185_v62 = vpop.f32.mrb[22].mxu0  ;;  %8416 = vmatpush1.bf16.msra.mxu1 %v7850_v21  ;;  %v8793_v15 = vmul.f32 %v8725_v48, %v8183_v57  ;;  %v7450_v21 = vld [vmem:[%s15538_s30 + $0x640] sm:$0xff]  ;;  %v7900_v52 = vunpack.c.l.s8.bf16 %v7452_v47  ;;  %v7915_v57 = vunpack.c.h.s8.bf16 %v7451_v14 }
0x1578   : > { %v16652_v35 = vadd.f32 %v8829_v18, %v8790_v51  ;;  %v8806_v7 = vmul.f32 %v8713_v42, %v8099_v61  ;;  %v8808_v36 = vmul.f32 %v8721_v45, %v8185_v62  ;;  %8502 = vmatpush1.bf16.msra.mxu0 %v7852_v41  ;;  %v8101_v32 = vpop.f32.mrb[47].mxu1  ;;  %v8187_v37 = vpop.f32.mrb[23].mxu0  ;;  %8417 = vmatprep.subr.bf16.mxu1 %v7867_v33  ;;  %v7901_v41 = vunpack.c.l.s8.bf16 %v7453_v4 }
0x1579   : > { %v8807_v16 = vmul.f32 %v8717_v6, %v8101_v32  ;;  %v16657_v30 = vadd.f32 %v8837_v59, %v8792_v56  ;;  %8503 = vmatprep.subr.bf16.mxu0 %v7869_v26  ;;  %v16663_v27 = vadd.f32 %v8833_v60, %v8791_v25  ;;  %v8809_v28 = vmul.f32 %v8725_v48, %v8187_v37 }
0x157a   : > { %v8970_v2 = vmul.f32 0.044715, %v16652_v35  ;;  %v16659_v38 = vadd.f32 %v8829_v18, %v8806_v7  ;;  %v16665_v31 = vadd.f32 %v8837_v59, %v8808_v36  ;;  %v7884_v6 = vunpack.c.h.s8.bf16 %v16643_v24 }
0x157b   : > { %v16667_v17 = vadd.f32 %v8833_v60, %v8807_v16  ;;  %8418 = vmatpush1.bf16.msra.mxu1 %v7866_v63  ;;  %v16673_v50 = vadd.f32 %v8841_v3, %v8793_v15  ;;  %v7899_v18 = vunpack.c.l.s8.bf16 %v7451_v14  ;;  %v8972_v49 = vmul.f32 0.044715, %v16657_v30  ;;  %v7467_v60 = vld [vmem:[%s15538_s30 + $0x6c8] sm:$0xff]  ;;  %v7469_v63 = vld [vmem:[%s15538_s30 + $0x6d8] sm:$0xff]  ;;  %v7466_v16 = vld [vmem:[%s15538_s30 + $0x6c0] sm:$0xff] }
0x157c   : > { %v9002_v42 = vmul.f32 %v8970_v2, %v16652_v35  ;;  %v8986_v45 = vmul.f32 0.044715, %v16659_v38  ;;  %8504 = vmatpush1.bf16.msra.mxu0 %v7868_v54  ;;  %8419 = vmatprep.subr.bf16.mxu1 %v7883_v58  ;;  %v8971_v33 = vmul.f32 0.044715, %v16663_v27  ;;  %v8988_v48 = vmul.f32 0.044715, %v16665_v31 }
0x157d   : > { %8505 = vmatprep.subr.bf16.mxu0 %v7885_v55  ;;  %v8987_v51 = vmul.f32 0.044715, %v16667_v17  ;;  %v7898_v24 = vunpack.c.l.s8.bf16 %v7450_v21  ;;  %v16682_v59 = vadd.f32 %v8841_v3, %v8809_v28  ;;  %v8973_v26 = vmul.f32 0.044715, %v16673_v50  ;;  %v7468_v14 = vld [vmem:[%s15538_s30 + $0x6d0] sm:$0xff] }
0x157e   : > { %v9018_v40 = vmul.f32 %v8986_v45, %v16659_v38  ;;  %v9034_v56 = vmul.f32 %v9002_v42, %v16652_v35  ;;  %v7917_v25 = vunpack.c.h.s8.bf16 %v7453_v4  ;;  %v9004_v61 = vmul.f32 %v8972_v49, %v16657_v30 }
0x157f   : > { %8420 = vmatpush1.bf16.msra.mxu1 %v7882_v9  ;;  %v9003_v54 = vmul.f32 %v8971_v33, %v16663_v27  ;;  %v9020_v7 = vmul.f32 %v8988_v48, %v16665_v31  ;;  %v9019_v36 = vmul.f32 %v8987_v51, %v16667_v17  ;;  %v7914_v32 = vunpack.c.h.s8.bf16 %v7450_v21 }
0x1580   : > { %8506 = vmatpush1.bf16.msra.mxu0 %v7884_v6  ;;  %8421 = vmatprep.subr.bf16.mxu1 %v7899_v18  ;;  %v9050_v62 = vmul.f32 %v9018_v40, %v16659_v38  ;;  %v9066_v37 = vadd.f32 %v9034_v56, %v16652_v35  ;;  %v8989_v58 = vmul.f32 0.044715, %v16682_v59  ;;  %v7916_v15 = vunpack.c.h.s8.bf16 %v7452_v47  ;;  %v7483_v40 = vld [vmem:[%s15538_s30 + $0x748] sm:$0xff]  ;;  %v7485_v56 = vld [vmem:[%s15538_s30 + $0x758] sm:$0xff] }
0x1581   : > { %8507 = vmatprep.subr.bf16.mxu0 %v7901_v41  ;;  %v7931_v3 = vunpack.c.l.s8.bf16 %v7467_v60  ;;  %v9005_v55 = vmul.f32 %v8973_v26, %v16673_v50  ;;  %v7933_v2 = vunpack.c.l.s8.bf16 %v7469_v63  ;;  %v9036_v4 = vmul.f32 %v9004_v61, %v16657_v30 }
0x1582   : > { %v9082_v9 = vadd.f32 %v9050_v62, %v16659_v38  ;;  %v9052_v42 = vmul.f32 %v9020_v7, %v16665_v31  ;;  %v7930_v45 = vunpack.c.l.s8.bf16 %v7466_v16  ;;  %v9035_v28 = vmul.f32 %v9003_v54, %v16663_v27 }
0x1583   : > { %8422 = vmatpush1.bf16.msra.mxu1 %v7898_v24  ;;  %v9051_v6 = vmul.f32 %v9019_v36, %v16667_v17  ;;  %v9021_v21 = vmul.f32 %v8989_v58, %v16682_v59  ;;  %v7932_v18 = vunpack.c.l.s8.bf16 %v7468_v14  ;;  %v7947_v41 = vunpack.c.h.s8.bf16 %v7467_v60  ;;  %v7484_v36 = vld [vmem:[%s15538_s30 + $0x750] sm:$0xff] }
0x1584   : > { %8508 = vmatpush1.bf16.msra.mxu0 %v7900_v52  ;;  %8423 = vmatprep.subr.bf16.mxu1 %v7915_v57  ;;  %v9098_v47 = vmul.f32 0.7978846, %v9066_v37  ;;  %v7949_v49 = vunpack.c.h.s8.bf16 %v7469_v63  ;;  %v9067_v33 = vadd.f32 %v9035_v28, %v16663_v27  ;;  %v9037_v51 = vmul.f32 %v9005_v55, %v16673_v50  ;;  %v7482_v63 = vld [vmem:[%s15538_s30 + $0x740] sm:$0xff] }
0x1585   : > { %8509 = vmatprep.subr.bf16.mxu0 %v7917_v25  ;;  %v9083_v48 = vadd.f32 %v9051_v6, %v16667_v17  ;;  %v9068_v24 = vadd.f32 %v9036_v4, %v16657_v30  ;;  %v9114_v52 = vmul.f32 0.7978846, %v9082_v9  ;;  %v9084_v57 = vadd.f32 %v9052_v42, %v16665_v31  ;;  %v7499_v9 = vld [vmem:[%s15538_s30 + $0x7c8] sm:$0xff]  ;;  %v7501_v42 = vld [vmem:[%s15538_s30 + $0x7d8] sm:$0xff]  ;;  %v7498_v28 = vld [vmem:[%s15538_s30 + $0x7c0] sm:$0xff] }
0x1586   : > { %13654 = vtanh.f32 %v9098_v47  ;;  %v7946_v26 = vunpack.c.h.s8.bf16 %v7466_v16  ;;  %v9099_v25 = vmul.f32 0.7978846, %v9067_v33  ;;  %v7948_v61 = vunpack.c.h.s8.bf16 %v7468_v14 }
0x1587   : > { %8424 = vmatpush1.bf16.msra.mxu1 %v7914_v32  ;;  %v9115_v60 = vmul.f32 0.7978846, %v9083_v48  ;;  %v7963_v62 = vunpack.c.l.s8.bf16 %v7483_v40  ;;  %13656 = vtanh.f32 %v9114_v52  ;;  %v9053_v54 = vmul.f32 %v9021_v21, %v16682_v59 }
0x1588   : > { %8510 = vmatpush1.bf16.msra.mxu0 %v7916_v15  ;;  %8425 = vmatprep.subr.bf16.mxu1 %v7931_v3  ;;  %v7965_v7 = vunpack.c.l.s8.bf16 %v7485_v56  ;;  %13658 = vtanh.f32 %v9099_v25  ;;  %v9069_v32 = vadd.f32 %v9037_v51, %v16673_v50  ;;  %v9100_v58 = vmul.f32 0.7978846, %v9068_v24 }
0x1589   : > { %8511 = vmatprep.subr.bf16.mxu0 %v7933_v2  ;;  %13660 = vtanh.f32 %v9115_v60  ;;  %v9085_v37 = vadd.f32 %v9053_v54, %v16682_v59  ;;  %v7962_v15 = vunpack.c.l.s8.bf16 %v7482_v63  ;;  %v9116_v16 = vmul.f32 0.7978846, %v9084_v57 }
0x158a   : > { %v9101_v3 = vmul.f32 0.7978846, %v9069_v32  ;;  %v7964_v55 = vunpack.c.l.s8.bf16 %v7484_v36  ;;  %v7979_v2 = vunpack.c.h.s8.bf16 %v7483_v40  ;;  %13662 = vtanh.f32 %v9100_v58 }
0x158b   : > { %8426 = vmatpush1.bf16.msra.mxu1 %v7930_v45  ;;  %v9117_v14 = vmul.f32 0.7978846, %v9085_v37  ;;  %v7981_v4 = vunpack.c.h.s8.bf16 %v7485_v56  ;;  %v7978_v45 = vunpack.c.h.s8.bf16 %v7482_v63  ;;  %v7980_v21 = vunpack.c.h.s8.bf16 %v7484_v36  ;;  %v7265_v63 = vld [vmem:[%s15538_s30 + $0x78] sm:$0xff] }
0x158c   : > { %8512 = vmatpush1.bf16.msra.mxu0 %v7932_v18  ;;  %8427 = vmatprep.subr.bf16.mxu1 %v7947_v41  ;;  %13664 = vtanh.f32 %v9101_v3  ;;  %v7995_v18 = vunpack.c.l.s8.bf16 %v7499_v9  ;;  %v7500_v41 = vld [vmem:[%s15538_s30 + $0x7d0] sm:$0xff]  ;;  %v7997_v47 = vunpack.c.l.s8.bf16 %v7501_v42  ;;  %v7994_v33 = vunpack.c.l.s8.bf16 %v7498_v28 }
0x158d   : > { %8513 = vmatprep.subr.bf16.mxu0 %v7949_v49  ;;  %13666 = vtanh.f32 %v9117_v14  ;;  %v7996_v51 = vunpack.c.l.s8.bf16 %v7500_v41  ;;  %v8938_v24 = vmul.f32 0.5, %v16652_v35  ;;  %v8954_v56 = vmul.f32 0.5, %v16659_v38 }
0x158e   : > { %13668 = vtanh.f32 %v9116_v16  ;;  %v8013_v25 = vunpack.c.h.s8.bf16 %v7501_v42  ;;  %v8939_v60 = vmul.f32 0.5, %v16663_v27  ;;  %v8955_v54 = vmul.f32 0.5, %v16667_v17  ;;  %v7262_v17 = vld [vmem:[%s15538_s30 + $0x60] sm:$0xff]  ;;  %v7264_v42 = vld [vmem:[%s15538_s30 + $0x70] sm:$0xff] }
0x158f   : > { %8428 = vmatpush1.bf16.msra.mxu1 %v7946_v26  ;;  %v8011_v26 = vunpack.c.h.s8.bf16 %v7499_v9  ;;  %v8010_v38 = vunpack.c.h.s8.bf16 %v7498_v28  ;;  %v8012_v58 = vunpack.c.h.s8.bf16 %v7500_v41  ;;  %v8941_v28 = vmul.f32 0.5, %v16673_v50 }
0x1590   : > { %8514 = vmatpush1.bf16.msra.mxu0 %v7948_v61  ;;  %8429 = vmatprep.subr.bf16.mxu1 %v7963_v62  ;;  %v13655_v6 = vpop.eup %13654  ;;  %v7263_v62 = vld [vmem:[%s15538_s30 + $0x68] sm:$0xff]  ;;  %v8956_v41 = vmul.f32 0.5, %v16665_v31  ;;  %v7281_v31 = vld [vmem:[%s15538_s30 + $0xf8] sm:$0xff] }
0x1591   : > { %8515 = vmatprep.subr.bf16.mxu0 %v7965_v7  ;;  %v9162_v49 = vadd.f32 1.0, %v13655_v6  ;;  %v13657_v40 = vpop.eup %13656  ;;  %v8957_v6 = vmul.f32 0.5, %v16682_v59  ;;  %v7535_v50 = vunpack.c.h.s8.bf16 %v7263_v62  ;;  %v7279_v59 = vld [vmem:[%s15538_s30 + $0xe8] sm:$0xff] }
0x1592   : > { %v13659_v48 = vpop.eup %13658  ;;  %v9178_v52 = vadd.f32 1.0, %v13657_v40 }
0x1593   : > { %8430 = vmatpush1.bf16.msra.mxu1 %v7962_v15  ;;  %v13661_v57 = vpop.eup %13660  ;;  %v9163_v61 = vadd.f32 1.0, %v13659_v48  ;;  %v9194_v36 = vmul.f32 %v9162_v49, %v8938_v24  ;;  %v7518_v49 = vunpack.c.l.s8.bf16 %v7262_v17  ;;  %v7520_v48 = vunpack.c.l.s8.bf16 %v7264_v42 }
0x1594   : > { %8516 = vmatpush1.bf16.msra.mxu0 %v7964_v55  ;;  %8431 = vmatprep.subr.bf16.mxu1 %v7979_v2  ;;  %v9179_v7 = vadd.f32 1.0, %v13661_v57  ;;  %v9210_v35 = vmul.f32 %v9178_v52, %v8954_v56  ;;  %v13663_v32 = vpop.eup %13662  ;;  %v7519_v55 = vunpack.c.l.s8.bf16 %v7263_v62  ;;  %v7521_v2 = vunpack.c.l.s8.bf16 %v7265_v63  ;;  %v7280_v62 = vld [vmem:[%s15538_s30 + $0xf0] sm:$0xff] }
0x1595   : > { %8517 = vmatprep.subr.bf16.mxu0 %v7981_v4  ;;  %v9195_v15 = vmul.f32 %v9163_v61, %v8939_v60  ;;  %v9164_v4 = vadd.f32 1.0, %v13663_v32  ;;  %v7534_v57 = vunpack.c.h.s8.bf16 %v7262_v17  ;;  %v7278_v60 = vld [vmem:[%s15538_s30 + $0xe0] sm:$0xff]  ;;  %v7553_v61 = vunpack.c.l.s8.bf16 %v7281_v31  ;;  %v7297_v32 = vld [vmem:[%s15538_s30 + $0x178] sm:$0xff] }
0x1596   : > { %v13665_v37 = vpop.eup %13664  ;;  %v9211_v3 = vmul.f32 %v9179_v7, %v8955_v54  ;;  %v16725_v16 = vpack.c.bf16 %v9210_v35, %v9194_v36  ;;  %v7552_v54 = vunpack.c.l.s8.bf16 %v7280_v62  ;;  %v7567_v7 = vunpack.c.h.s8.bf16 %v7279_v59  ;;  %v7295_v35 = vld [vmem:[%s15538_s30 + $0x168] sm:$0xff] }
0x1597   : > { %8432 = vmatpush1.bf16.msra.mxu1 %v7978_v45  ;;  %v13667_v27 = vpop.eup %13666  ;;  %v9165_v14 = vadd.f32 1.0, %v13665_v37  ;;  %v7569_v36 = vunpack.c.h.s8.bf16 %v7281_v31  ;;  %v7583_v37 = vunpack.c.l.s8.bf16 %v7295_v35  ;;  %v7601_v17 = vunpack.c.h.s8.bf16 %v7297_v32  ;;  %v7328_v31 = vld [vmem:[%s15538_s30 + $0x270] sm:$0xff] }
0x1598   : > { %8518 = vmatpush1.bf16.msra.mxu0 %v7980_v21  ;;  %8433 = vmatprep.subr.bf16.mxu1 %v7995_v18  ;;  %v13669_v9 = vpop.eup %13668  ;;  %v16729_v45 = vpack.c.bf16 %v9211_v3, %v9195_v15  ;;  %v9181_v21 = vadd.f32 1.0, %v13667_v27  ;;  %v8940_v18 = vmul.f32 0.5, %v16657_v30  ;;  %v7537_v30 = vunpack.c.h.s8.bf16 %v7265_v63  ;;  %v7296_v3 = vld [vmem:[%s15538_s30 + $0x170] sm:$0xff] }
0x1599   : > { %8519 = vmatprep.subr.bf16.mxu0 %v7997_v47  ;;  %v9180_v47 = vadd.f32 1.0, %v13669_v9  ;;  %v9197_v40 = vmul.f32 %v9165_v14, %v8941_v28  ;;  %v7550_v63 = vunpack.c.l.s8.bf16 %v7278_v60  ;;  %v7585_v15 = vunpack.c.l.s8.bf16 %v7297_v32  ;;  %v7311_v14 = vld [vmem:[%s15538_s30 + $0x1e8] sm:$0xff]  ;;  %v7344_v32 = vld [vmem:[%s15538_s30 + $0x2f0] sm:$0xff] }
0x159a   : > { %v7615_v28 = vunpack.c.l.s8.bf16 %v7311_v14 }
0x159b   : > { %8434 = vmatpush1.bf16.msra.mxu1 %v7994_v33  ;;  %v9213_v33 = vmul.f32 %v9181_v21, %v8957_v6  ;;  %v9212_v24 = vmul.f32 %v9180_v47, %v8956_v41  ;;  %v7310_v6 = vld [vmem:[%s15538_s30 + $0x1e0] sm:$0xff] }
0x159c   : > { %8520 = vmatpush1.bf16.msra.mxu0 %v7996_v51  ;;  %8435 = vmatprep.subr.bf16.mxu1 %v8011_v26  ;;  %v9196_v51 = vmul.f32 %v9164_v4, %v8940_v18  ;;  %v7536_v26 = vunpack.c.h.s8.bf16 %v7264_v42  ;;  %v7313_v4 = vld [vmem:[%s15538_s30 + $0x1f8] sm:$0xff]  ;;  %v7600_v42 = vunpack.c.h.s8.bf16 %v7296_v3  ;;  %v7312_v18 = vld [vmem:[%s15538_s30 + $0x1f0] sm:$0xff]  ;;  %v7614_v41 = vunpack.c.l.s8.bf16 %v7310_v6 }
0x159d   : > { %8521 = vmatprep.subr.bf16.mxu0 %v8013_v25  ;;  %v16736_v56 = vpack.c.bf16 %v9213_v33, %v9197_v40  ;;  %v7551_v25 = vunpack.c.l.s8.bf16 %v7279_v59  ;;  %v7617_v21 = vunpack.c.l.s8.bf16 %v7313_v4  ;;  %v7616_v47 = vunpack.c.l.s8.bf16 %v7312_v18  ;;  %v7327_v33 = vld [vmem:[%s15538_s30 + $0x268] sm:$0xff]  ;;  %v7326_v59 = vld [vmem:[%s15538_s30 + $0x260] sm:$0xff] }
0x159e   : > { %v16740_v52 = vpack.c.bf16 %v9212_v24, %v9196_v51  ;;  %v7633_v40 = vunpack.c.h.s8.bf16 %v7313_v4  ;;  %v7630_v51 = vunpack.c.h.s8.bf16 %v7310_v6  ;;  %v7632_v24 = vunpack.c.h.s8.bf16 %v7312_v18  ;;  %v7360_v4 = vld [vmem:[%s15538_s30 + $0x370] sm:$0xff]  ;;  %v7377_v18 = vld [vmem:[%s15538_s30 + $0x3f8] sm:$0xff] }
0x159f   : > { %8436 = vmatpush1.bf16.msra.mxu1 %v8010_v38  ;;  %v7566_v38 = vunpack.c.h.s8.bf16 %v7278_v60 }
0x15a0   : > { %8522 = vmatpush1.bf16.msra.mxu0 %v8012_v58  ;;  %8534 = vmatprep.subr.bf16.mxu1 %v7519_v55  ;;  %v7294_v58 = vld [vmem:[%s15538_s30 + $0x160] sm:$0xff]  ;;  %v7584_v55 = vunpack.c.l.s8.bf16 %v7296_v3  ;;  %v7361_v3 = vld [vmem:[%s15538_s30 + $0x378] sm:$0xff] }
0x15a1   : > { %8620 = vmatprep.subr.bf16.mxu0 %v7521_v2  ;;  %v7582_v27 = vunpack.c.l.s8.bf16 %v7294_v58  ;;  %v7599_v2 = vunpack.c.h.s8.bf16 %v7295_v35  ;;  %v7598_v9 = vunpack.c.h.s8.bf16 %v7294_v58  ;;  %v7729_v6 = vunpack.c.h.s8.bf16 %v7361_v3 }
0x15a2   : > { %8438 = vmatmul.mubr.bf16.vlgmr.msra.gmra.mrb[52].mxu1 %v16461_v23 }
0x15a3   : > { %8524 = vmatmul.mubr.bf16.vlgmr.msra.gmra.mrb[28].mxu0 %v16461_v23  ;;  %8535 = vmatpush1.bf16.msra.mxu1 %v7518_v49  ;;  %v7631_v49 = vunpack.c.h.s8.bf16 %v7311_v14  ;;  %v7713_v14 = vunpack.c.l.s8.bf16 %v7361_v3  ;;  %v7408_v3 = vld [vmem:[%s15538_s30 + $0x4f0] sm:$0xff] }
0x15a4   : > { %8566 = vmatprep.mubr.bf16.mxu1 %v16457_v46  ;;  %8621 = vmatpush1.bf16.msra.mxu0 %v7520_v48  ;;  %v7329_v48 = vld [vmem:[%s15538_s30 + $0x278] sm:$0xff] }
0x15a5   : > { %8652 = vmatprep.mubr.bf16.mxu0 %v16457_v46  ;;  %8536 = vmatprep.subr.bf16.mxu1 %v7535_v50  ;;  %v7568_v46 = vunpack.c.h.s8.bf16 %v7280_v62  ;;  %v7647_v50 = vunpack.c.l.s8.bf16 %v7327_v33  ;;  %v7665_v60 = vunpack.c.h.s8.bf16 %v7329_v48  ;;  %v7345_v62 = vld [vmem:[%s15538_s30 + $0x2f8] sm:$0xff] }
0x15a6   : > { %8622 = vmatprep.subr.bf16.mxu0 %v7537_v30  ;;  %v7649_v30 = vunpack.c.l.s8.bf16 %v7329_v48  ;;  %v7681_v35 = vunpack.c.l.s8.bf16 %v7345_v62  ;;  %v7697_v58 = vunpack.c.h.s8.bf16 %v7345_v62  ;;  %v7376_v48 = vld [vmem:[%s15538_s30 + $0x3f0] sm:$0xff] }
0x15a7   : > { %8537 = vmatpush1.bf16.msra.mxu1 %v7534_v57  ;;  %v7646_v57 = vunpack.c.l.s8.bf16 %v7326_v59  ;;  %v7392_v62 = vld [vmem:[%s15538_s30 + $0x470] sm:$0xff] }
0x15a8   : > { %8623 = vmatpush1.bf16.msra.mxu0 %v7536_v26  ;;  %8538 = vmatprep.subr.bf16.mxu1 %v7551_v25  ;;  %v7648_v26 = vunpack.c.l.s8.bf16 %v7328_v31  ;;  %v7663_v25 = vunpack.c.h.s8.bf16 %v7327_v33  ;;  %v7745_v33 = vunpack.c.l.s8.bf16 %v7377_v18 }
0x15a9   : > { %8624 = vmatprep.subr.bf16.mxu0 %v7553_v61  ;;  %v7343_v61 = vld [vmem:[%s15538_s30 + $0x2e8] sm:$0xff] }
0x15ab   : > { %8539 = vmatpush1.bf16.msra.mxu1 %v7550_v63  ;;  %v7662_v63 = vunpack.c.h.s8.bf16 %v7326_v59  ;;  %v7761_v59 = vunpack.c.h.s8.bf16 %v7377_v18 }
0x15ac   : > { %8625 = vmatpush1.bf16.msra.mxu0 %v7552_v54  ;;  %8540 = vmatprep.subr.bf16.mxu1 %v7567_v7  ;;  %v7664_v54 = vunpack.c.h.s8.bf16 %v7328_v31  ;;  %v7679_v7 = vunpack.c.l.s8.bf16 %v7343_v61  ;;  %v7393_v31 = vld [vmem:[%s15538_s30 + $0x478] sm:$0xff] }
0x15ad   : > { %8626 = vmatprep.subr.bf16.mxu0 %v7569_v36  ;;  %v7342_v36 = vld [vmem:[%s15538_s30 + $0x2e0] sm:$0xff] }
0x15af   : > { %8541 = vmatpush1.bf16.msra.mxu1 %v7566_v38  ;;  %v7678_v38 = vunpack.c.l.s8.bf16 %v7342_v36 }
0x15b0   : > { %8627 = vmatpush1.bf16.msra.mxu0 %v7568_v46  ;;  %8542 = vmatprep.subr.bf16.mxu1 %v7583_v37  ;;  %v7680_v46 = vunpack.c.l.s8.bf16 %v7344_v32  ;;  %v7695_v37 = vunpack.c.h.s8.bf16 %v7343_v61  ;;  %v7777_v61 = vunpack.c.l.s8.bf16 %v7393_v31 }
0x15b1   : > { %8628 = vmatprep.subr.bf16.mxu0 %v7585_v15  ;;  %v7359_v15 = vld [vmem:[%s15538_s30 + $0x368] sm:$0xff] }
0x15b3   : > { %8543 = vmatpush1.bf16.msra.mxu1 %v7582_v27  ;;  %v7694_v27 = vunpack.c.h.s8.bf16 %v7342_v36  ;;  %v7407_v36 = vld [vmem:[%s15538_s30 + $0x4e8] sm:$0xff] }
0x15b4   : > { %8629 = vmatpush1.bf16.msra.mxu0 %v7584_v55  ;;  %8544 = vmatprep.subr.bf16.mxu1 %v7599_v2  ;;  %v7696_v55 = vunpack.c.h.s8.bf16 %v7344_v32  ;;  %v7711_v2 = vunpack.c.l.s8.bf16 %v7359_v15  ;;  %v7409_v32 = vld [vmem:[%s15538_s30 + $0x4f8] sm:$0xff] }
0x15b5   : > { %8630 = vmatprep.subr.bf16.mxu0 %v7601_v17  ;;  %v7358_v17 = vld [vmem:[%s15538_s30 + $0x360] sm:$0xff] }
0x15b7   : > { %8545 = vmatpush1.bf16.msra.mxu1 %v7598_v9  ;;  %v7710_v9 = vunpack.c.l.s8.bf16 %v7358_v17 }
0x15b8   : > { %8631 = vmatpush1.bf16.msra.mxu0 %v7600_v42  ;;  %8546 = vmatprep.subr.bf16.mxu1 %v7615_v28  ;;  %v7712_v42 = vunpack.c.l.s8.bf16 %v7360_v4  ;;  %v7727_v28 = vunpack.c.h.s8.bf16 %v7359_v15  ;;  %v7809_v15 = vunpack.c.l.s8.bf16 %v7409_v32 }
0x15b9   : > { %8632 = vmatprep.subr.bf16.mxu0 %v7617_v21  ;;  %v7375_v21 = vld [vmem:[%s15538_s30 + $0x3e8] sm:$0xff] }
0x15bb   : > { %8547 = vmatpush1.bf16.msra.mxu1 %v7614_v41  ;;  %v7726_v41 = vunpack.c.h.s8.bf16 %v7358_v17  ;;  %v7423_v17 = vld [vmem:[%s15538_s30 + $0x568] sm:$0xff] }
0x15bc   : > { %8633 = vmatpush1.bf16.msra.mxu0 %v7616_v47  ;;  %8548 = vmatprep.subr.bf16.mxu1 %v7631_v49  ;;  %v7728_v47 = vunpack.c.h.s8.bf16 %v7360_v4  ;;  %v7743_v49 = vunpack.c.l.s8.bf16 %v7375_v21 }
0x15bd   : > { %8634 = vmatprep.subr.bf16.mxu0 %v7633_v40  ;;  %v7374_v40 = vld [vmem:[%s15538_s30 + $0x3e0] sm:$0xff] }
0x15bf   : > { %8549 = vmatpush1.bf16.msra.mxu1 %v7630_v51  ;;  %v7742_v51 = vunpack.c.l.s8.bf16 %v7374_v40 }
0x15c0   : > { %8635 = vmatpush1.bf16.msra.mxu0 %v7632_v24  ;;  %8550 = vmatprep.subr.bf16.mxu1 %v7647_v50  ;;  %v7744_v24 = vunpack.c.l.s8.bf16 %v7376_v48  ;;  %v7759_v50 = vunpack.c.h.s8.bf16 %v7375_v21  ;;  %v16788_v21 = vsub.s32 4, %v15709_v8 }
0x15c1   : > { %8636 = vmatprep.subr.bf16.mxu0 %v7649_v30  ;;  %v7391_v30 = vld [vmem:[%s15538_s30 + $0x468] sm:$0xff] }
0x15c3   : > { %8551 = vmatpush1.bf16.msra.mxu1 %v7646_v57  ;;  %v7758_v57 = vunpack.c.h.s8.bf16 %v7374_v40  ;;  %v7855_v40 = vunpack.c.h.s8.bf16 %v7423_v17 }
0x15c4   : > { %8637 = vmatpush1.bf16.msra.mxu0 %v7648_v26  ;;  %8552 = vmatprep.subr.bf16.mxu1 %v7663_v25  ;;  %v7760_v26 = vunpack.c.h.s8.bf16 %v7376_v48  ;;  %v7775_v25 = vunpack.c.l.s8.bf16 %v7391_v30  ;;  %v7439_v48 = vld [vmem:[%s15538_s30 + $0x5e8] sm:$0xff] }
0x15c5   : > { %8638 = vmatprep.subr.bf16.mxu0 %v7665_v60  ;;  %v7390_v60 = vld [vmem:[%s15538_s30 + $0x460] sm:$0xff] }
0x15c7   : > { %8553 = vmatpush1.bf16.msra.mxu1 %v7662_v63  ;;  %v7774_v63 = vunpack.c.l.s8.bf16 %v7390_v60 }
0x15c8   : > { %8639 = vmatpush1.bf16.msra.mxu0 %v7664_v54  ;;  %8554 = vmatprep.subr.bf16.mxu1 %v7679_v7  ;;  %v7776_v54 = vunpack.c.l.s8.bf16 %v7392_v62  ;;  %v7791_v7 = vunpack.c.h.s8.bf16 %v7391_v30 }
0x15c9   : > { %8640 = vmatprep.subr.bf16.mxu0 %v7681_v35  ;;  %v7793_v35 = vunpack.c.h.s8.bf16 %v7393_v31  ;;  %v8845_v31 = vrot.slane %v16629_v43, %v16788_v21 }
0x15cb   : > { %8555 = vmatpush1.bf16.msra.mxu1 %v7678_v38  ;;  %v7790_v38 = vunpack.c.h.s8.bf16 %v7390_v60  ;;  %v7438_v60 = vld [vmem:[%s15538_s30 + $0x5e0] sm:$0xff] }
0x15cc   : > { %8641 = vmatpush1.bf16.msra.mxu0 %v7680_v46  ;;  %8556 = vmatprep.subr.bf16.mxu1 %v7695_v37  ;;  %v7792_v46 = vunpack.c.h.s8.bf16 %v7392_v62  ;;  %v7807_v37 = vunpack.c.l.s8.bf16 %v7407_v36 }
0x15cd   : > { %8642 = vmatprep.subr.bf16.mxu0 %v7697_v58  ;;  %v7406_v58 = vld [vmem:[%s15538_s30 + $0x4e0] sm:$0xff] }
0x15ce   : > { %v7822_v4 = vunpack.c.h.s8.bf16 %v7406_v58 }
0x15cf   : > { %8557 = vmatpush1.bf16.msra.mxu1 %v7694_v27  ;;  %v7806_v27 = vunpack.c.l.s8.bf16 %v7406_v58  ;;  %v7870_v58 = vunpack.c.l.s8.bf16 %v7438_v60 }
0x15d0   : > { %8643 = vmatpush1.bf16.msra.mxu0 %v7696_v55  ;;  %8558 = vmatprep.subr.bf16.mxu1 %v7711_v2  ;;  %v7823_v55 = vunpack.c.h.s8.bf16 %v7407_v36  ;;  %v7825_v2 = vunpack.c.h.s8.bf16 %v7409_v32 }
0x15d1   : > { %8644 = vmatprep.subr.bf16.mxu0 %v7713_v14  ;;  %v7425_v14 = vld [vmem:[%s15538_s30 + $0x578] sm:$0xff] }
0x15d3   : > { %8559 = vmatpush1.bf16.msra.mxu1 %v7710_v9  ;;  %v7839_v9 = vunpack.c.l.s8.bf16 %v7423_v17  ;;  %v7887_v17 = vunpack.c.h.s8.bf16 %v7439_v48 }
0x15d4   : > { %8645 = vmatpush1.bf16.msra.mxu0 %v7712_v42  ;;  %8560 = vmatprep.subr.bf16.mxu1 %v7727_v28  ;;  %v7422_v42 = vld [vmem:[%s15538_s30 + $0x560] sm:$0xff]  ;;  %v7841_v28 = vunpack.c.l.s8.bf16 %v7425_v14 }
0x15d5   : > { %8646 = vmatprep.subr.bf16.mxu0 %v7729_v6  ;;  %v7424_v6 = vld [vmem:[%s15538_s30 + $0x570] sm:$0xff]  ;;  %v7838_v18 = vunpack.c.l.s8.bf16 %v7422_v42  ;;  %v7854_v30 = vunpack.c.h.s8.bf16 %v7422_v42 }
0x15d7   : > { %8561 = vmatpush1.bf16.msra.mxu1 %v7726_v41  ;;  %v16791_v41 = vsub.s32 6, %v15709_v8 }
0x15d8   : > { %8647 = vmatpush1.bf16.msra.mxu0 %v7728_v47  ;;  %8562 = vmatprep.subr.bf16.mxu1 %v7743_v49  ;;  %v7840_v47 = vunpack.c.l.s8.bf16 %v7424_v6  ;;  %v16794_v49 = vsub.s32 5, %v15709_v8 }
0x15d9   : > { %8648 = vmatprep.subr.bf16.mxu0 %v7745_v33  ;;  %v7857_v33 = vunpack.c.h.s8.bf16 %v7425_v14 }
0x15db   : > { %8563 = vmatpush1.bf16.msra.mxu1 %v7742_v51  ;;  %v8729_v51 = vrot.slane %v16626_v39, %v16788_v21 }
0x15dc   : > { %8649 = vmatpush1.bf16.msra.mxu0 %v7744_v24  ;;  %8564 = vmatprep.subr.bf16.mxu1 %v7759_v50  ;;  %v7441_v24 = vld [vmem:[%s15538_s30 + $0x5f8] sm:$0xff]  ;;  %v8737_v50 = vrot.slane %v16626_v39, %v16791_v41 }
0x15dd   : > { %8650 = vmatprep.subr.bf16.mxu0 %v7761_v59  ;;  %v16803_v59 = vsub.s32 7, %v15709_v8  ;;  %v8853_v8 = vrot.slane %v16629_v43, %v16791_v41 }
0x15df   : > { %8565 = vmatpush1.bf16.msra.mxu1 %v7758_v57  ;;  %v8733_v57 = vrot.slane %v16626_v39, %v16794_v49 }
0x15e0   : > { %8651 = vmatpush1.bf16.msra.mxu0 %v7760_v26  ;;  %8577 = vmatprep.subr.bf16.mxu1 %v7775_v25  ;;  %v7856_v26 = vunpack.c.h.s8.bf16 %v7424_v6  ;;  %v7871_v25 = vunpack.c.l.s8.bf16 %v7439_v48 }
0x15e1   : > { %8663 = vmatprep.subr.bf16.mxu0 %v7777_v61  ;;  %v7440_v61 = vld [vmem:[%s15538_s30 + $0x5f0] sm:$0xff] }
0x15e2   : > { %8567 = vmatmul.mubr.bf16.vlgmr.msra.gmra.mrb[56].mxu1 %v16459_v44 }
0x15e3   : > { %8653 = vmatmul.mubr.bf16.vlgmr.msra.gmra.mrb[32].mxu0 %v16459_v44  ;;  %8578 = vmatpush1.bf16.msra.mxu1 %v7774_v63  ;;  %v7808_v44 = vunpack.c.l.s8.bf16 %v7408_v3  ;;  %v7873_v63 = vunpack.c.l.s8.bf16 %v7441_v24 }
0x15e4   : > { %8609 = vmatprep.mubr.bf16.mxu1 %v16471_v53  ;;  %8664 = vmatpush1.bf16.msra.mxu0 %v7776_v54 }
0x15e5   : > { %8695 = vmatprep.mubr.bf16.mxu0 %v16471_v53  ;;  %8579 = vmatprep.subr.bf16.mxu1 %v7791_v7  ;;  %v7824_v53 = vunpack.c.h.s8.bf16 %v7408_v3 }
0x15e6   : > { %8665 = vmatprep.subr.bf16.mxu0 %v7793_v35  ;;  %v8849_v35 = vrot.slane %v16629_v43, %v16794_v49 }
0x15e7   : > { %8580 = vmatpush1.bf16.msra.mxu1 %v7790_v38 }
0x15e8   : > { %8666 = vmatpush1.bf16.msra.mxu0 %v7792_v46  ;;  %8581 = vmatprep.subr.bf16.mxu1 %v7807_v37  ;;  %v8741_v46 = vrot.slane %v16626_v39, %v16803_v59  ;;  %v7889_v39 = vunpack.c.h.s8.bf16 %v7441_v24 }
0x15e9   : > { %8667 = vmatprep.subr.bf16.mxu0 %v7809_v15  ;;  %v7872_v15 = vunpack.c.l.s8.bf16 %v7440_v61 }
0x15eb   : > { %8582 = vmatpush1.bf16.msra.mxu1 %v7806_v27 }
0x15ec   : > { %8668 = vmatpush1.bf16.msra.mxu0 %v7808_v44  ;;  %8583 = vmatprep.subr.bf16.mxu1 %v7823_v55 }
0x15ed   : > { %8669 = vmatprep.subr.bf16.mxu0 %v7825_v2 }
0x15ef   : > { %8584 = vmatpush1.bf16.msra.mxu1 %v7822_v4 }
0x15f0   : > { %8670 = vmatpush1.bf16.msra.mxu0 %v7824_v53  ;;  %8585 = vmatprep.subr.bf16.mxu1 %v7839_v9  ;;  %v7455_v9 = vld [vmem:[%s15538_s30 + $0x668] sm:$0xff] }
0x15f1   : > { %8671 = vmatprep.subr.bf16.mxu0 %v7841_v28  ;;  %v8857_v28 = vrot.slane %v16629_v43, %v16803_v59  ;;  %v7903_v43 = vunpack.c.l.s8.bf16 %v7455_v9 }
0x15f3   : > { %8586 = vmatpush1.bf16.msra.mxu1 %v7838_v18  ;;  %v7886_v18 = vunpack.c.h.s8.bf16 %v7438_v60 }
0x15f4   : > { %8672 = vmatpush1.bf16.msra.mxu0 %v7840_v47  ;;  %8587 = vmatprep.subr.bf16.mxu1 %v7855_v40  ;;  %v7457_v47 = vld [vmem:[%s15538_s30 + $0x678] sm:$0xff] }
0x15f5   : > { %v8267_v62 = vpop.f32.mrb[48].mxu1  ;;  %8673 = vmatprep.subr.bf16.mxu0 %v7857_v33 }
0x15f6   : > { %v8794_v54 = vmul.f32 %v8729_v51, %v8267_v62  ;;  %v8353_v7 = vpop.f32.mrb[24].mxu0  ;;  %v8269_v36 = vpop.f32.mrb[49].mxu1 }
0x15f7   : > { %v8796_v32 = vmul.f32 %v8737_v50, %v8353_v7  ;;  %v8355_v38 = vpop.f32.mrb[25].mxu0  ;;  %v8271_v37 = vpop.f32.mrb[50].mxu1  ;;  %8588 = vmatpush1.bf16.msra.mxu1 %v7854_v30  ;;  %v8795_v27 = vmul.f32 %v8733_v57, %v8269_v36 }
0x15f8   : > { %v16817_v3 = vadd.f32 %v8845_v31, %v8794_v54  ;;  %v8810_v44 = vmul.f32 %v8729_v51, %v8271_v37  ;;  %v8357_v55 = vpop.f32.mrb[26].mxu0  ;;  %8674 = vmatpush1.bf16.msra.mxu0 %v7856_v26  ;;  %v8273_v2 = vpop.f32.mrb[51].mxu1  ;;  %8589 = vmatprep.subr.bf16.mxu1 %v7871_v25  ;;  %v8797_v33 = vmul.f32 %v8741_v46, %v8355_v38  ;;  %v7888_v51 = vunpack.c.h.s8.bf16 %v7440_v61  ;;  %v7471_v37 = vld [vmem:[%s15538_s30 + $0x6e8] sm:$0xff] }
0x15f9   : > { %v8812_v14 = vmul.f32 %v8737_v50, %v8357_v55  ;;  %v8811_v4 = vmul.f32 %v8733_v57, %v8273_v2  ;;  %v8359_v53 = vpop.f32.mrb[27].mxu0  ;;  %8675 = vmatprep.subr.bf16.mxu0 %v7873_v63  ;;  %v16826_v40 = vadd.f32 %v8853_v8, %v8796_v32  ;;  %v7454_v50 = vld [vmem:[%s15538_s30 + $0x660] sm:$0xff]  ;;  %v16831_v24 = vadd.f32 %v8849_v35, %v8795_v27  ;;  %v7473_v27 = vld [vmem:[%s15538_s30 + $0x6f8] sm:$0xff] }
0x15fa   : > { %v8974_v42 = vmul.f32 0.044715, %v16817_v3  ;;  %v16823_v6 = vadd.f32 %v8845_v31, %v8810_v44  ;;  %v7456_v31 = vld [vmem:[%s15538_s30 + $0x670] sm:$0xff]  ;;  %v8813_v26 = vmul.f32 %v8741_v46, %v8359_v53  ;;  %v7905_v25 = vunpack.c.l.s8.bf16 %v7457_v47 }
0x15fb   : > { %v16828_v48 = vadd.f32 %v8853_v8, %v8812_v14  ;;  %8590 = vmatpush1.bf16.msra.mxu1 %v7870_v58  ;;  %v16834_v57 = vadd.f32 %v8849_v35, %v8811_v4  ;;  %v7902_v62 = vunpack.c.l.s8.bf16 %v7454_v50  ;;  %v8976_v61 = vmul.f32 0.044715, %v16826_v40  ;;  %v7470_v14 = vld [vmem:[%s15538_s30 + $0x6e0] sm:$0xff] }
0x15fc   : > { %v8990_v30 = vmul.f32 0.044715, %v16823_v6  ;;  %8676 = vmatpush1.bf16.msra.mxu0 %v7872_v15  ;;  %8591 = vmatprep.subr.bf16.mxu1 %v7887_v17  ;;  %v9006_v60 = vmul.f32 %v8974_v42, %v16817_v3  ;;  %v16839_v63 = vadd.f32 %v8857_v28, %v8797_v33  ;;  %v7904_v7 = vunpack.c.l.s8.bf16 %v7456_v31  ;;  %v7472_v42 = vld [vmem:[%s15538_s30 + $0x6f0] sm:$0xff] }
0x15fd   : > { %8677 = vmatprep.subr.bf16.mxu0 %v7889_v39  ;;  %v8992_v54 = vmul.f32 0.044715, %v16828_v48  ;;  %v8975_v8 = vmul.f32 0.044715, %v16831_v24  ;;  %v8991_v35 = vmul.f32 0.044715, %v16834_v57  ;;  %v7919_v32 = vunpack.c.h.s8.bf16 %v7455_v9 }
0x15fe   : > { %v9022_v36 = vmul.f32 %v8990_v30, %v16823_v6  ;;  %v16845_v38 = vadd.f32 %v8857_v28, %v8813_v26  ;;  %v7921_v46 = vunpack.c.h.s8.bf16 %v7457_v47  ;;  %v9038_v58 = vmul.f32 %v9006_v60, %v16817_v3 }
0x15ff   : > { %8592 = vmatpush1.bf16.msra.mxu1 %v7886_v18  ;;  %v7918_v15 = vunpack.c.h.s8.bf16 %v7454_v50  ;;  %v9008_v44 = vmul.f32 %v8976_v61, %v16826_v40  ;;  %v8977_v55 = vmul.f32 0.044715, %v16839_v63  ;;  %v9024_v2 = vmul.f32 %v8992_v54, %v16828_v48  ;;  %v7487_v54 = vld [vmem:[%s15538_s30 + $0x768] sm:$0xff] }
0x1600   : > { %8678 = vmatpush1.bf16.msra.mxu0 %v7888_v51  ;;  %8593 = vmatprep.subr.bf16.mxu1 %v7903_v43  ;;  %v7920_v17 = vunpack.c.h.s8.bf16 %v7456_v31  ;;  %v9007_v4 = vmul.f32 %v8975_v8, %v16831_v24  ;;  %v9054_v53 = vmul.f32 %v9022_v36, %v16823_v6  ;;  %v9023_v39 = vmul.f32 %v8991_v35, %v16834_v57 }
0x1601   : > { %8679 = vmatprep.subr.bf16.mxu0 %v7905_v25  ;;  %v7935_v9 = vunpack.c.l.s8.bf16 %v7471_v37  ;;  %v8993_v28 = vmul.f32 0.044715, %v16845_v38  ;;  %v7937_v18 = vunpack.c.l.s8.bf16 %v7473_v27  ;;  %v9070_v47 = vadd.f32 %v9038_v58, %v16817_v3  ;;  %v7486_v58 = vld [vmem:[%s15538_s30 + $0x760] sm:$0xff] }
0x1602   : > { %v7934_v33 = vunpack.c.l.s8.bf16 %v7470_v14  ;;  %v9040_v51 = vmul.f32 %v9008_v44, %v16826_v40  ;;  %v9009_v50 = vmul.f32 %v8977_v55, %v16839_v63  ;;  %v9056_v30 = vmul.f32 %v9024_v2, %v16828_v48  ;;  %v7488_v55 = vld [vmem:[%s15538_s30 + $0x770] sm:$0xff] }
0x1603   : > { %8594 = vmatpush1.bf16.msra.mxu1 %v7902_v62  ;;  %v7936_v43 = vunpack.c.l.s8.bf16 %v7472_v42  ;;  %v9086_v31 = vadd.f32 %v9054_v53, %v16823_v6  ;;  %v7951_v26 = vunpack.c.h.s8.bf16 %v7471_v37  ;;  %v9039_v25 = vmul.f32 %v9007_v4, %v16831_v24 }
0x1604   : > { %8680 = vmatpush1.bf16.msra.mxu0 %v7904_v7  ;;  %8595 = vmatprep.subr.bf16.mxu1 %v7919_v32  ;;  %v9055_v60 = vmul.f32 %v9023_v39, %v16834_v57  ;;  %v9025_v62 = vmul.f32 %v8993_v28, %v16845_v38  ;;  %v7953_v61 = vunpack.c.h.s8.bf16 %v7473_v27  ;;  %v7489_v7 = vld [vmem:[%s15538_s30 + $0x778] sm:$0xff]  ;;  %v9102_v35 = vmul.f32 0.7978846, %v9070_v47 }
0x1605   : > { %8681 = vmatprep.subr.bf16.mxu0 %v7921_v46  ;;  %v9071_v8 = vadd.f32 %v9039_v25, %v16831_v24  ;;  %v9072_v32 = vadd.f32 %v9040_v51, %v16826_v40  ;;  %v7950_v46 = vunpack.c.h.s8.bf16 %v7470_v14  ;;  %v7952_v37 = vunpack.c.h.s8.bf16 %v7472_v42 }
0x1606   : > { %v9087_v36 = vadd.f32 %v9055_v60, %v16834_v57  ;;  %v9088_v44 = vadd.f32 %v9056_v30, %v16828_v48  ;;  %v7967_v27 = vunpack.c.l.s8.bf16 %v7487_v54  ;;  %v7969_v4 = vunpack.c.l.s8.bf16 %v7489_v7  ;;  %v7503_v30 = vld [vmem:[%s15538_s30 + $0x7e8] sm:$0xff] }
0x1607   : > { %8596 = vmatpush1.bf16.msra.mxu1 %v7918_v15  ;;  %v9041_v15 = vmul.f32 %v9009_v50, %v16839_v63  ;;  %v9103_v2 = vmul.f32 0.7978846, %v9071_v8  ;;  %13670 = vtanh.f32 %v9102_v35  ;;  %v9057_v39 = vmul.f32 %v9025_v62, %v16845_v38  ;;  %v7502_v62 = vld [vmem:[%s15538_s30 + $0x7e0] sm:$0xff] }
0x1608   : > { %8682 = vmatpush1.bf16.msra.mxu0 %v7920_v17  ;;  %8597 = vmatprep.subr.bf16.mxu1 %v7935_v9  ;;  %v9118_v17 = vmul.f32 0.7978846, %v9086_v31  ;;  %v9119_v53 = vmul.f32 0.7978846, %v9087_v36  ;;  %v7966_v9 = vunpack.c.l.s8.bf16 %v7486_v58  ;;  %v7968_v42 = vunpack.c.l.s8.bf16 %v7488_v55  ;;  %v7505_v31 = vld [vmem:[%s15538_s30 + $0x7f8] sm:$0xff] }
0x1609   : > { %8683 = vmatprep.subr.bf16.mxu0 %v7937_v18  ;;  %13672 = vtanh.f32 %v9103_v2  ;;  %v9073_v14 = vadd.f32 %v9041_v15, %v16839_v63  ;;  %v9089_v28 = vadd.f32 %v9057_v39, %v16845_v38  ;;  %v9104_v18 = vmul.f32 0.7978846, %v9072_v32 }
0x160a   : > { %13674 = vtanh.f32 %v9119_v53  ;;  %v7983_v47 = vunpack.c.h.s8.bf16 %v7487_v54  ;;  %v9120_v51 = vmul.f32 0.7978846, %v9088_v44  ;;  %v7985_v50 = vunpack.c.h.s8.bf16 %v7489_v7  ;;  %v7504_v54 = vld [vmem:[%s15538_s30 + $0x7f0] sm:$0xff]  ;;  %v16887_v44 = vld [vmem:[%s15544_s22 + $0x18] sm:$0xff] }
0x160b   : > { %8598 = vmatpush1.bf16.msra.mxu1 %v7934_v33  ;;  %13676 = vtanh.f32 %v9118_v17  ;;  %v9105_v33 = vmul.f32 0.7978846, %v9073_v14  ;;  %v7984_v25 = vunpack.c.h.s8.bf16 %v7488_v55  ;;  %v7999_v60 = vunpack.c.l.s8.bf16 %v7503_v30 }
0x160c   : > { %8684 = vmatpush1.bf16.msra.mxu0 %v7936_v43  ;;  %8599 = vmatprep.subr.bf16.mxu1 %v7951_v26  ;;  %v9121_v43 = vmul.f32 0.7978846, %v9089_v28  ;;  %13678 = vtanh.f32 %v9104_v18  ;;  %v7982_v26 = vunpack.c.h.s8.bf16 %v7486_v58  ;;  %v7998_v8 = vunpack.c.l.s8.bf16 %v7502_v62 }
0x160d   : > { %8685 = vmatprep.subr.bf16.mxu0 %v7953_v61  ;;  %13680 = vtanh.f32 %v9105_v33  ;;  %v8001_v61 = vunpack.c.l.s8.bf16 %v7505_v31  ;;  %v8000_v35 = vunpack.c.l.s8.bf16 %v7504_v54  ;;  %v8015_v32 = vunpack.c.h.s8.bf16 %v7503_v30 }
0x160e   : > { %13682 = vtanh.f32 %v9121_v43  ;;  %v8017_v58 = vunpack.c.h.s8.bf16 %v7505_v31  ;;  %v8014_v15 = vunpack.c.h.s8.bf16 %v7502_v62  ;;  %v8943_v53 = vmul.f32 0.5, %v16831_v24  ;;  %v9244_v43 = vld [vmem:[%s15544_s22 + $0x10] sm:$0xff] }
0x160f   : > { %8600 = vmatpush1.bf16.msra.mxu1 %v7950_v46  ;;  %13684 = vtanh.f32 %v9120_v51  ;;  %v16884_v46 = vld [vmem:[%s15544_s22 + $0x8] sm:$0xff]  ;;  %v8959_v39 = vmul.f32 0.5, %v16834_v57  ;;  %v8942_v28 = vmul.f32 0.5, %v16817_v3  ;;  %v8958_v18 = vmul.f32 0.5, %v16823_v6 }
0x1610   : > { %8686 = vmatpush1.bf16.msra.mxu0 %v7952_v37  ;;  %8601 = vmatprep.subr.bf16.mxu1 %v7967_v27  ;;  %v16890_v27 = vld [vmem:[%s15544_s22] sm:$0xff]  ;;  %v9501_v51 = vunpack.c.l.s8.bf16 %v16887_v44  ;;  %v8945_v6 = vmul.f32 0.5, %v16839_v63  ;;  %v9503_v63 = vunpack.c.h.s8.bf16 %v16884_v46 }
0x1611   : > { %8687 = vmatprep.subr.bf16.mxu0 %v7969_v4  ;;  %v13671_v7 = vpop.eup %13670  ;;  %v8016_v4 = vunpack.c.h.s8.bf16 %v7504_v54  ;;  %v9498_v24 = vunpack.c.l.s8.bf16 %v16890_v27 }
0x1612   : > { %v9166_v2 = vadd.f32 1.0, %v13671_v7 }
0x1613   : > { %8602 = vmatpush1.bf16.msra.mxu1 %v7966_v9  ;;  %v13673_v36 = vpop.eup %13672 }
0x1614   : > { %8688 = vmatpush1.bf16.msra.mxu0 %v7968_v42  ;;  %8603 = vmatprep.subr.bf16.mxu1 %v7983_v47  ;;  %v13675_v37 = vpop.eup %13674  ;;  %v9167_v55 = vadd.f32 1.0, %v13673_v36  ;;  %v9499_v42 = vunpack.c.l.s8.bf16 %v16884_v46  ;;  %v9198_v31 = vmul.f32 %v9166_v2, %v8942_v28  ;;  %v8960_v36 = vmul.f32 0.5, %v16828_v48  ;;  %v9249_v2 = vld [vmem:[%s15544_s22 + $0x38] sm:$0xff]  ;;  %v9251_v28 = vld [vmem:[%s15544_s22 + $0x48] sm:$0xff] }
0x1615   : > { %8689 = vmatprep.subr.bf16.mxu0 %v7985_v50  ;;  %v13677_v17 = vpop.eup %13676  ;;  %v9183_v9 = vadd.f32 1.0, %v13675_v37  ;;  %v9504_v46 = vunpack.c.h.s8.bf16 %v9244_v43 }
0x1616   : > { %v13679_v14 = vpop.eup %13678  ;;  %v9182_v47 = vadd.f32 1.0, %v13677_v17  ;;  %v9199_v50 = vmul.f32 %v9167_v55, %v8943_v53  ;;  %v9502_v17 = vunpack.c.h.s8.bf16 %v16890_v27 }
0x1617   : > { %8604 = vmatpush1.bf16.msra.mxu1 %v7982_v26  ;;  %v13681_v33 = vpop.eup %13680  ;;  %v9215_v57 = vmul.f32 %v9183_v9, %v8959_v39  ;;  %v9246_v39 = vld [vmem:[%s15544_s22 + $0x20] sm:$0xff]  ;;  %v9248_v9 = vld [vmem:[%s15544_s22 + $0x30] sm:$0xff] }
0x1618   : > { %8690 = vmatpush1.bf16.msra.mxu0 %v7984_v25  ;;  %8605 = vmatprep.subr.bf16.mxu1 %v7999_v60  ;;  %v13683_v30 = vpop.eup %13682  ;;  %v9214_v26 = vmul.f32 %v9182_v47, %v8958_v18  ;;  %v9169_v25 = vadd.f32 1.0, %v13681_v33  ;;  %v9168_v60 = vadd.f32 1.0, %v13679_v14  ;;  %v9508_v27 = vunpack.c.l.s8.bf16 %v9248_v9  ;;  %v9253_v18 = vld [vmem:[%s15544_s22 + $0x58] sm:$0xff] }
0x1619   : > { %8691 = vmatprep.subr.bf16.mxu0 %v8001_v61  ;;  %v13685_v3 = vpop.eup %13684  ;;  %v16900_v62 = vpack.c.bf16 %v9215_v57, %v9199_v50  ;;  %v8961_v61 = vmul.f32 0.5, %v16845_v38  ;;  %v9185_v54 = vadd.f32 1.0, %v13683_v30  ;;  %v9247_v38 = vld [vmem:[%s15544_s22 + $0x28] sm:$0xff]  ;;  %v9510_v47 = vunpack.c.h.s8.bf16 %v9246_v39  ;;  %v9252_v50 = vld [vmem:[%s15544_s22 + $0x50] sm:$0xff] }
0x161a   : > { %v16904_v7 = vpack.c.bf16 %v9214_v26, %v9198_v31  ;;  %v9201_v37 = vmul.f32 %v9169_v25, %v8945_v6  ;;  %v9507_v53 = vunpack.c.l.s8.bf16 %v9247_v38  ;;  %v9511_v14 = vunpack.c.h.s8.bf16 %v9247_v38  ;;  %v9255_v26 = vld [vmem:[%s15544_s22 + $0x68] sm:$0xff]  ;;  %v9257_v25 = vld [vmem:[%s15544_s22 + $0x78] sm:$0xff] }
0x161b   : > { %8606 = vmatpush1.bf16.msra.mxu1 %v7998_v8  ;;  %v8944_v8 = vmul.f32 0.5, %v16826_v40  ;;  %v9505_v40 = vunpack.c.h.s8.bf16 %v16887_v44  ;;  %v9509_v44 = vunpack.c.l.s8.bf16 %v9249_v2  ;;  %v9515_v33 = vunpack.c.l.s8.bf16 %v9251_v28 }
0x161c   : > { %8692 = vmatpush1.bf16.msra.mxu0 %v8000_v35  ;;  %8607 = vmatprep.subr.bf16.mxu1 %v8015_v32  ;;  %v9184_v35 = vadd.f32 1.0, %v13685_v3  ;;  %v9500_v32 = vunpack.c.l.s8.bf16 %v9244_v43  ;;  %v9516_v30 = vunpack.c.l.s8.bf16 %v9252_v50  ;;  %v9519_v43 = vunpack.c.h.s8.bf16 %v9251_v28  ;;  %v9262_v28 = vld [vmem:[%s15544_s22 + $0xa0] sm:$0xff] }
0x161d   : > { %8693 = vmatprep.subr.bf16.mxu0 %v8017_v58  ;;  %v9217_v58 = vmul.f32 %v9185_v54, %v8961_v61  ;;  %v9200_v55 = vmul.f32 %v9168_v60, %v8944_v8  ;;  %v9521_v31 = vunpack.c.h.s8.bf16 %v9253_v18  ;;  %v9520_v3 = vunpack.c.h.s8.bf16 %v9252_v50  ;;  %v9254_v61 = vld [vmem:[%s15544_s22 + $0x60] sm:$0xff]  ;;  %v9256_v8 = vld [vmem:[%s15544_s22 + $0x70] sm:$0xff]  ;;  %v9267_v50 = vld [vmem:[%s15544_s22 + $0xc8] sm:$0xff] }
0x161e   : > { %v9523_v6 = vunpack.c.l.s8.bf16 %v9255_v26  ;;  %v9525_v54 = vunpack.c.l.s8.bf16 %v9257_v25  ;;  %v9526_v38 = vunpack.c.h.s8.bf16 %v9254_v61 }
0x161f   : > { %8608 = vmatpush1.bf16.msra.mxu1 %v8014_v15  ;;  %v9216_v15 = vmul.f32 %v9184_v35, %v8960_v36  ;;  %v16913_v48 = vpack.c.bf16 %v9217_v58, %v9201_v37  ;;  %v9522_v36 = vunpack.c.l.s8.bf16 %v9254_v61  ;;  %v9524_v35 = vunpack.c.l.s8.bf16 %v9256_v8  ;;  %v9259_v58 = vld [vmem:[%s15544_s22 + $0x88] sm:$0xff] }
0x1620   : > { %8694 = vmatpush1.bf16.msra.mxu0 %v8016_v4  ;;  %10010 = vmatprep.subr.bf16.mxu1 %v9499_v42  ;;  %v9513_v42 = vunpack.c.h.s8.bf16 %v9249_v2  ;;  %v9529_v37 = vunpack.c.h.s8.bf16 %v9257_v25  ;;  %v9551_v61 = vunpack.c.h.s8.bf16 %v9267_v50 }
0x1621   : > { %10354 = vmatprep.subr.bf16.mxu0 %v9501_v51  ;;  %v16917_v4 = vpack.c.bf16 %v9216_v15, %v9200_v55  ;;  %v9250_v51 = vld [vmem:[%s15544_s22 + $0x40] sm:$0xff]  ;;  %v9528_v55 = vunpack.c.h.s8.bf16 %v9256_v8  ;;  %v9531_v15 = vunpack.c.l.s8.bf16 %v9259_v58  ;;  %v9271_v8 = vld [vmem:[%s15544_s22 + $0xe8] sm:$0xff] }
0x1622   : > { %8610 = vmatmul.mubr.bf16.vlgmr.msra.gmra.mrb[56].mxu1 %v16461_v23  ;;  %v9514_v57 = vunpack.c.l.s8.bf16 %v9250_v51  ;;  %v9518_v60 = vunpack.c.h.s8.bf16 %v9250_v51 }
0x1623   : > { %8696 = vmatmul.mubr.bf16.vlgmr.msra.gmra.mrb[32].mxu0 %v16461_v23  ;;  %10011 = vmatpush1.bf16.msra.mxu1 %v9498_v24  ;;  %v9506_v23 = vunpack.c.l.s8.bf16 %v9246_v39  ;;  %v9517_v24 = vunpack.c.l.s8.bf16 %v9253_v18  ;;  %v9535_v39 = vunpack.c.h.s8.bf16 %v9259_v58  ;;  %v9270_v58 = vld [vmem:[%s15544_s22 + $0xe0] sm:$0xff] }
0x1624   : > { %10042 = vmatprep.mubr.bf16.mxu1 %v16729_v45  ;;  %10355 = vmatpush1.bf16.msra.mxu0 %v9500_v32  ;;  %v9527_v32 = vunpack.c.h.s8.bf16 %v9255_v26  ;;  %v9266_v26 = vld [vmem:[%s15544_s22 + $0xc0] sm:$0xff] }
0x1625   : > { %10386 = vmatprep.mubr.bf16.mxu0 %v16729_v45  ;;  %10012 = vmatprep.subr.bf16.mxu1 %v9503_v63  ;;  %v9512_v45 = vunpack.c.h.s8.bf16 %v9248_v9  ;;  %v9261_v63 = vld [vmem:[%s15544_s22 + $0x98] sm:$0xff]  ;;  %v9263_v9 = vld [vmem:[%s15544_s22 + $0xa8] sm:$0xff] }
0x1626   : > { %10356 = vmatprep.subr.bf16.mxu0 %v9505_v40  ;;  %v9258_v40 = vld [vmem:[%s15544_s22 + $0x80] sm:$0xff]  ;;  %v9533_v2 = vunpack.c.l.s8.bf16 %v9261_v63  ;;  %v9543_v51 = vunpack.c.h.s8.bf16 %v9263_v9 }
0x1627   : > { %10013 = vmatpush1.bf16.msra.mxu1 %v9502_v17  ;;  %v9260_v17 = vld [vmem:[%s15544_s22 + $0x90] sm:$0xff] }
0x1628   : > { %10357 = vmatpush1.bf16.msra.mxu0 %v9504_v46  ;;  %10014 = vmatprep.subr.bf16.mxu1 %v9507_v53  ;;  %v9530_v46 = vunpack.c.l.s8.bf16 %v9258_v40  ;;  %v9532_v53 = vunpack.c.l.s8.bf16 %v9260_v17 }
0x1629   : > { %10358 = vmatprep.subr.bf16.mxu0 %v9509_v44  ;;  %v9537_v44 = vunpack.c.h.s8.bf16 %v9261_v63 }
0x162b   : > { %10015 = vmatpush1.bf16.msra.mxu1 %v9506_v23  ;;  %v9265_v23 = vld [vmem:[%s15544_s22 + $0xb8] sm:$0xff] }
0x162c   : > { %10359 = vmatpush1.bf16.msra.mxu0 %v9508_v27  ;;  %10016 = vmatprep.subr.bf16.mxu1 %v9511_v14  ;;  %v9534_v27 = vunpack.c.h.s8.bf16 %v9258_v40  ;;  %v9536_v14 = vunpack.c.h.s8.bf16 %v9260_v17  ;;  %v9541_v18 = vunpack.c.l.s8.bf16 %v9265_v23  ;;  %v9559_v40 = vunpack.c.h.s8.bf16 %v9271_v8  ;;  %v9275_v17 = vld [vmem:[%s15544_s22 + $0x108] sm:$0xff] }
0x162d   : > { %10360 = vmatprep.subr.bf16.mxu0 %v9513_v42  ;;  %v9539_v42 = vunpack.c.l.s8.bf16 %v9263_v9  ;;  %v9274_v9 = vld [vmem:[%s15544_s22 + $0x100] sm:$0xff] }
0x162f   : > { %10017 = vmatpush1.bf16.msra.mxu1 %v9510_v47  ;;  %v9264_v47 = vld [vmem:[%s15544_s22 + $0xb0] sm:$0xff] }
0x1630   : > { %10361 = vmatpush1.bf16.msra.mxu0 %v9512_v45  ;;  %10018 = vmatprep.subr.bf16.mxu1 %v9515_v33  ;;  %v9538_v45 = vunpack.c.l.s8.bf16 %v9262_v28  ;;  %v9540_v33 = vunpack.c.l.s8.bf16 %v9264_v47 }
0x1631   : > { %10362 = vmatprep.subr.bf16.mxu0 %v9517_v24  ;;  %v9545_v24 = vunpack.c.h.s8.bf16 %v9265_v23 }
0x1633   : > { %10019 = vmatpush1.bf16.msra.mxu1 %v9514_v57  ;;  %v9269_v57 = vld [vmem:[%s15544_s22 + $0xd8] sm:$0xff] }
0x1634   : > { %10363 = vmatpush1.bf16.msra.mxu0 %v9516_v30  ;;  %10020 = vmatprep.subr.bf16.mxu1 %v9519_v43  ;;  %v9542_v30 = vunpack.c.h.s8.bf16 %v9262_v28  ;;  %v9544_v43 = vunpack.c.h.s8.bf16 %v9264_v47  ;;  %v9549_v25 = vunpack.c.l.s8.bf16 %v9269_v57  ;;  %v9567_v28 = vunpack.c.h.s8.bf16 %v9275_v17 }
0x1635   : > { %10364 = vmatprep.subr.bf16.mxu0 %v9521_v31  ;;  %v9547_v31 = vunpack.c.l.s8.bf16 %v9267_v50  ;;  %v9278_v50 = vld [vmem:[%s15544_s22 + $0x120] sm:$0xff] }
0x1637   : > { %10021 = vmatpush1.bf16.msra.mxu1 %v9518_v60  ;;  %v9268_v60 = vld [vmem:[%s15544_s22 + $0xd0] sm:$0xff] }
0x1638   : > { %10365 = vmatpush1.bf16.msra.mxu0 %v9520_v3  ;;  %10022 = vmatprep.subr.bf16.mxu1 %v9523_v6  ;;  %v9546_v3 = vunpack.c.l.s8.bf16 %v9266_v26  ;;  %v9548_v6 = vunpack.c.l.s8.bf16 %v9268_v60 }
0x1639   : > { %10366 = vmatprep.subr.bf16.mxu0 %v9525_v54  ;;  %v9553_v54 = vunpack.c.h.s8.bf16 %v9269_v57 }
0x163b   : > { %10023 = vmatpush1.bf16.msra.mxu1 %v9522_v36  ;;  %v9273_v36 = vld [vmem:[%s15544_s22 + $0xf8] sm:$0xff] }
0x163c   : > { %10367 = vmatpush1.bf16.msra.mxu0 %v9524_v35  ;;  %10024 = vmatprep.subr.bf16.mxu1 %v9527_v32  ;;  %v9550_v35 = vunpack.c.h.s8.bf16 %v9266_v26  ;;  %v9552_v32 = vunpack.c.h.s8.bf16 %v9268_v60  ;;  %v9557_v63 = vunpack.c.l.s8.bf16 %v9273_v36  ;;  %v9285_v60 = vld [vmem:[%s15544_s22 + $0x158] sm:$0xff] }
0x163d   : > { %10368 = vmatprep.subr.bf16.mxu0 %v9529_v37  ;;  %v9555_v37 = vunpack.c.l.s8.bf16 %v9271_v8  ;;  %v9284_v8 = vld [vmem:[%s15544_s22 + $0x150] sm:$0xff] }
0x163f   : > { %10025 = vmatpush1.bf16.msra.mxu1 %v9526_v38  ;;  %v9272_v38 = vld [vmem:[%s15544_s22 + $0xf0] sm:$0xff] }
0x1640   : > { %10369 = vmatpush1.bf16.msra.mxu0 %v9528_v55  ;;  %10026 = vmatprep.subr.bf16.mxu1 %v9531_v15  ;;  %v9554_v55 = vunpack.c.l.s8.bf16 %v9270_v58  ;;  %v9556_v15 = vunpack.c.l.s8.bf16 %v9272_v38 }
0x1641   : > { %10370 = vmatprep.subr.bf16.mxu0 %v9533_v2  ;;  %v9561_v2 = vunpack.c.h.s8.bf16 %v9273_v36 }
0x1643   : > { %10027 = vmatpush1.bf16.msra.mxu1 %v9530_v46  ;;  %v9277_v46 = vld [vmem:[%s15544_s22 + $0x118] sm:$0xff] }
0x1644   : > { %10371 = vmatpush1.bf16.msra.mxu0 %v9532_v53  ;;  %10028 = vmatprep.subr.bf16.mxu1 %v9535_v39  ;;  %v9558_v53 = vunpack.c.h.s8.bf16 %v9270_v58  ;;  %v9560_v39 = vunpack.c.h.s8.bf16 %v9272_v38  ;;  %v9565_v23 = vunpack.c.l.s8.bf16 %v9277_v46  ;;  %v9569_v47 = vunpack.c.h.s8.bf16 %v9277_v46  ;;  %v16967_v58 = vld [vmem:[%s15542_s2 + $0x8] sm:$0xff]  ;;  %s17649_s2 = scalar_lea.vmem [#allocation28], %s15518_s20 }
0x1645   : > { %10372 = vmatprep.subr.bf16.mxu0 %v9537_v44  ;;  %v9563_v44 = vunpack.c.l.s8.bf16 %v9275_v17  ;;  %v9287_v38 = vld [vmem:[%s15544_s22 + $0x168] sm:$0xff]  ;;  %v8861_v17 = vrot.slane %v16967_v58, %v15720_v13 }
0x1647   : > { %10029 = vmatpush1.bf16.msra.mxu1 %v9534_v27  ;;  %v9276_v27 = vld [vmem:[%s15544_s22 + $0x110] sm:$0xff] }
0x1648   : > { %10373 = vmatpush1.bf16.msra.mxu0 %v9536_v14  ;;  %10030 = vmatprep.subr.bf16.mxu1 %v9539_v42  ;;  %v9562_v14 = vunpack.c.l.s8.bf16 %v9274_v9  ;;  %v9564_v42 = vunpack.c.l.s8.bf16 %v9276_v27 }
0x1649   : > { %10374 = vmatprep.subr.bf16.mxu0 %v9541_v18  ;;  %v9279_v18 = vld [vmem:[%s15544_s22 + $0x128] sm:$0xff] }
0x164b   : > { %10031 = vmatpush1.bf16.msra.mxu1 %v9538_v45  ;;  %v9281_v45 = vld [vmem:[%s15544_s22 + $0x138] sm:$0xff] }
0x164c   : > { %10375 = vmatpush1.bf16.msra.mxu0 %v9540_v33  ;;  %10032 = vmatprep.subr.bf16.mxu1 %v9543_v51  ;;  %v9566_v33 = vunpack.c.h.s8.bf16 %v9274_v9  ;;  %v9568_v51 = vunpack.c.h.s8.bf16 %v9276_v27  ;;  %v9573_v57 = vunpack.c.l.s8.bf16 %v9281_v45  ;;  %v9577_v26 = vunpack.c.h.s8.bf16 %v9281_v45  ;;  %v9288_v9 = vld [vmem:[%s15544_s22 + $0x170] sm:$0xff] }
0x164d   : > { %10376 = vmatprep.subr.bf16.mxu0 %v9545_v24  ;;  %v9571_v24 = vunpack.c.l.s8.bf16 %v9279_v18 }
0x164f   : > { %10033 = vmatpush1.bf16.msra.mxu1 %v9542_v30  ;;  %v9280_v30 = vld [vmem:[%s15544_s22 + $0x130] sm:$0xff] }
0x1650   : > { %10377 = vmatpush1.bf16.msra.mxu0 %v9544_v43  ;;  %10034 = vmatprep.subr.bf16.mxu1 %v9547_v31  ;;  %v9570_v43 = vunpack.c.l.s8.bf16 %v9278_v50  ;;  %v9575_v31 = vunpack.c.h.s8.bf16 %v9279_v18 }
0x1651   : > { %10378 = vmatprep.subr.bf16.mxu0 %v9549_v25  ;;  %v9283_v25 = vld [vmem:[%s15544_s22 + $0x148] sm:$0xff] }
0x1653   : > { %10035 = vmatpush1.bf16.msra.mxu1 %v9546_v3  ;;  %v9574_v3 = vunpack.c.h.s8.bf16 %v9278_v50 }
0x1654   : > { %10379 = vmatpush1.bf16.msra.mxu0 %v9548_v6  ;;  %10036 = vmatprep.subr.bf16.mxu1 %v9551_v61  ;;  %v9579_v6 = vunpack.c.l.s8.bf16 %v9283_v25  ;;  %v9282_v61 = vld [vmem:[%s15544_s22 + $0x140] sm:$0xff] }
0x1655   : > { %10380 = vmatprep.subr.bf16.mxu0 %v9553_v54  ;;  %v9581_v54 = vunpack.c.l.s8.bf16 %v9285_v60  ;;  %v9578_v36 = vunpack.c.l.s8.bf16 %v9282_v61 }
0x1657   : > { %10037 = vmatpush1.bf16.msra.mxu1 %v9550_v35  ;;  %v16964_v35 = vld [vmem:[%s15540_s6 + $0x8] sm:$0xff]  ;;  %s17650_s6 = scalar_lea.vmem [#allocation29], %s15518_s20  ;;  %s17651_s20 = sld [smem:[#allocation45_spill]] }
0x1658   : > { %10381 = vmatpush1.bf16.msra.mxu0 %v9552_v32  ;;  %10038 = vmatprep.subr.bf16.mxu1 %v9555_v37  ;;  %v9580_v32 = vunpack.c.l.s8.bf16 %v9284_v8  ;;  %v9583_v37 = vunpack.c.h.s8.bf16 %v9283_v25  ;;  %v8749_v46 = vrot.slane %v16964_v35, %v15717_v12  ;;  %v9591_v25 = vunpack.c.h.s8.bf16 %v9287_v38 }
0x1659   : > { %10382 = vmatprep.subr.bf16.mxu0 %v9557_v63  ;;  %v9585_v63 = vunpack.c.h.s8.bf16 %v9285_v60 }
0x165b   : > { %10039 = vmatpush1.bf16.msra.mxu1 %v9554_v55  ;;  %v8745_v55 = vrot.slane %v16964_v35, %v15720_v13 }
0x165c   : > { %10383 = vmatpush1.bf16.msra.mxu0 %v9556_v15  ;;  %10040 = vmatprep.subr.bf16.mxu1 %v9559_v40  ;;  %v9289_v15 = vld [vmem:[%s15544_s22 + $0x178] sm:$0xff]  ;;  %v8753_v40 = vrot.slane %v16964_v35, %v15712_v10 }
0x165d   : > { %10384 = vmatprep.subr.bf16.mxu0 %v9561_v2  ;;  %v9582_v2 = vunpack.c.h.s8.bf16 %v9282_v61  ;;  %v9589_v27 = vunpack.c.l.s8.bf16 %v9289_v15  ;;  %v9291_v61 = vld [vmem:[%s15544_s22 + $0x188] sm:$0xff]  ;;  %p12306_p12 = scmp.ne.s32.totalorder %s17651_s20, 3 }
0x165e   : > { %s17652_s11 = sld [smem:[#allocation72_spill]] (!%p12306_p12) }
0x165f   : > { %10041 = vmatpush1.bf16.msra.mxu1 %v9558_v53  ;;  %v9584_v53 = vunpack.c.h.s8.bf16 %v9284_v8  ;;  %v8873_v8 = vrot.slane %v16967_v58, %v15727_v22 }
0x1660   : > { %10385 = vmatpush1.bf16.msra.mxu0 %v9560_v39  ;;  %10053 = vmatprep.subr.bf16.mxu1 %v9563_v44  ;;  %v9587_v39 = vunpack.c.l.s8.bf16 %v9287_v38  ;;  %v9286_v44 = vld [vmem:[%s15544_s22 + $0x160] sm:$0xff] }
0x1661   : > { %10397 = vmatprep.subr.bf16.mxu0 %v9565_v23  ;;  %v9586_v50 = vunpack.c.l.s8.bf16 %v9286_v44 }
0x1662   : > { %10043 = vmatmul.mubr.bf16.vlgmr.msra.gmra.mrb[60].mxu1 %v16725_v16 }
0x1663   : > { %10387 = vmatmul.mubr.bf16.vlgmr.msra.gmra.mrb[36].mxu0 %v16725_v16  ;;  %10054 = vmatpush1.bf16.msra.mxu1 %v9562_v14  ;;  %v9572_v16 = vunpack.c.l.s8.bf16 %v9280_v30 }
0x1664   : > { %10085 = vmatprep.mubr.bf16.mxu1 %v16736_v56  ;;  %10398 = vmatpush1.bf16.msra.mxu0 %v9564_v42 }
0x1665   : > { %10429 = vmatprep.mubr.bf16.mxu0 %v16736_v56  ;;  %10055 = vmatprep.subr.bf16.mxu1 %v9567_v28  ;;  %v9576_v56 = vunpack.c.h.s8.bf16 %v9280_v30  ;;  %v8869_v28 = vrot.slane %v16967_v58, %v15712_v10 }
0x1666   : > { %10399 = vmatprep.subr.bf16.mxu0 %v9569_v47  ;;  %v8865_v47 = vrot.slane %v16967_v58, %v15717_v12 }
0x1667   : > { %10056 = vmatpush1.bf16.msra.mxu1 %v9566_v33 }
0x1668   : > { %10400 = vmatpush1.bf16.msra.mxu0 %v9568_v51  ;;  %10057 = vmatprep.subr.bf16.mxu1 %v9571_v24  ;;  %v8757_v51 = vrot.slane %v16964_v35, %v15727_v22 }
0x1669   : > { %10401 = vmatprep.subr.bf16.mxu0 %v9573_v57  ;;  %v9588_v57 = vunpack.c.l.s8.bf16 %v9288_v9 }
0x166b   : > { %10058 = vmatpush1.bf16.msra.mxu1 %v9570_v43 }
0x166c   : > { %10402 = vmatpush1.bf16.msra.mxu0 %v9572_v16  ;;  %10059 = vmatprep.subr.bf16.mxu1 %v9575_v31 }
0x166d   : > { %10403 = vmatprep.subr.bf16.mxu0 %v9577_v26 }
0x166f   : > { %10060 = vmatpush1.bf16.msra.mxu1 %v9574_v3 }
0x1670   : > { %10404 = vmatpush1.bf16.msra.mxu0 %v9576_v56  ;;  %10061 = vmatprep.subr.bf16.mxu1 %v9579_v6  ;;  %v9593_v6 = vunpack.c.h.s8.bf16 %v9289_v15 }
0x1671   : > { %10405 = vmatprep.subr.bf16.mxu0 %v9581_v54 }
0x1673   : > { %10062 = vmatpush1.bf16.msra.mxu1 %v9578_v36 }
0x1674   : > { %10406 = vmatpush1.bf16.msra.mxu0 %v9580_v32  ;;  %10063 = vmatprep.subr.bf16.mxu1 %v9583_v37  ;;  %v9590_v32 = vunpack.c.h.s8.bf16 %v9286_v44  ;;  %v9293_v37 = vld [vmem:[%s15544_s22 + $0x198] sm:$0xff] }
0x1675   : > { %v8439_v23 = vpop.f32.mrb[52].mxu1  ;;  %10407 = vmatprep.subr.bf16.mxu0 %v9585_v63 }
0x1676   : > { %v8798_v14 = vmul.f32 %v8745_v55, %v8439_v23  ;;  %v8525_v42 = vpop.f32.mrb[28].mxu0  ;;  %v8441_v18 = vpop.f32.mrb[53].mxu1  ;;  %v9597_v23 = vunpack.c.l.s8.bf16 %v9293_v37 }
0x1677   : > { %v8800_v45 = vmul.f32 %v8753_v40, %v8525_v42  ;;  %v8527_v33 = vpop.f32.mrb[29].mxu0  ;;  %v8443_v24 = vpop.f32.mrb[54].mxu1  ;;  %10064 = vmatpush1.bf16.msra.mxu1 %v9582_v2  ;;  %v8799_v43 = vmul.f32 %v8749_v46, %v8441_v18  ;;  %v9290_v2 = vld [vmem:[%s15544_s22 + $0x180] sm:$0xff] }
0x1678   : > { %v16987_v30 = vadd.f32 %v8861_v17, %v8798_v14  ;;  %v8814_v16 = vmul.f32 %v8745_v55, %v8443_v24  ;;  %v8529_v31 = vpop.f32.mrb[30].mxu0  ;;  %10408 = vmatpush1.bf16.msra.mxu0 %v9584_v53  ;;  %v8445_v26 = vpop.f32.mrb[55].mxu1  ;;  %10065 = vmatprep.subr.bf16.mxu1 %v9587_v39  ;;  %v8801_v38 = vmul.f32 %v8757_v51, %v8527_v33  ;;  %v9292_v39 = vld [vmem:[%s15544_s22 + $0x190] sm:$0xff]  ;;  %v9594_v14 = vunpack.c.l.s8.bf16 %v9290_v2 }
0x1679   : > { %v8816_v60 = vmul.f32 %v8753_v40, %v8529_v31  ;;  %v8815_v3 = vmul.f32 %v8749_v46, %v8445_v26  ;;  %v8531_v56 = vpop.f32.mrb[31].mxu0  ;;  %10409 = vmatprep.subr.bf16.mxu0 %v9589_v27  ;;  %v16996_v63 = vadd.f32 %v8869_v28, %v8800_v45  ;;  %v9592_v40 = vunpack.c.h.s8.bf16 %v9288_v9  ;;  %v9297_v31 = vld [vmem:[%s15544_s22 + $0x1b8] sm:$0xff] }
0x167a   : > { %v8978_v54 = vmul.f32 0.044715, %v16987_v30  ;;  %v16993_v36 = vadd.f32 %v8861_v17, %v8814_v16  ;;  %v17001_v15 = vadd.f32 %v8865_v47, %v8799_v43  ;;  %v9595_v17 = vunpack.c.l.s8.bf16 %v9291_v61 }
0x167b   : > { %v16998_v55 = vadd.f32 %v8869_v28, %v8816_v60  ;;  %10066 = vmatpush1.bf16.msra.mxu1 %v9586_v50  ;;  %v17004_v53 = vadd.f32 %v8865_v47, %v8815_v3  ;;  %v8817_v44 = vmul.f32 %v8757_v51, %v8531_v56  ;;  %v8980_v9 = vmul.f32 0.044715, %v16996_v63  ;;  %v9294_v56 = vld [vmem:[%s15544_s22 + $0x1a0] sm:$0xff] }
0x167c   : > { %v8994_v46 = vmul.f32 0.044715, %v16993_v36  ;;  %10410 = vmatpush1.bf16.msra.mxu0 %v9588_v57  ;;  %10067 = vmatprep.subr.bf16.mxu1 %v9591_v25  ;;  %v9010_v27 = vmul.f32 %v8978_v54, %v16987_v30  ;;  %v17009_v42 = vadd.f32 %v8873_v8, %v8801_v38  ;;  %v9596_v18 = vunpack.c.l.s8.bf16 %v9292_v39  ;;  %v9295_v57 = vld [vmem:[%s15544_s22 + $0x1a8] sm:$0xff] }
0x167d   : > { %10411 = vmatprep.subr.bf16.mxu0 %v9593_v6  ;;  %v8996_v28 = vmul.f32 0.044715, %v16998_v55  ;;  %v8979_v47 = vmul.f32 0.044715, %v17001_v15  ;;  %v8995_v33 = vmul.f32 0.044715, %v17004_v53  ;;  %v9599_v51 = vunpack.c.h.s8.bf16 %v9291_v61 }
0x167e   : > { %v9026_v45 = vmul.f32 %v8994_v46, %v16993_v36  ;;  %v17015_v24 = vadd.f32 %v8873_v8, %v8817_v44  ;;  %v9601_v50 = vunpack.c.h.s8.bf16 %v9293_v37  ;;  %v9042_v43 = vmul.f32 %v9010_v27, %v16987_v30 }
0x167f   : > { %10068 = vmatpush1.bf16.msra.mxu1 %v9590_v32  ;;  %v9598_v16 = vunpack.c.h.s8.bf16 %v9290_v2  ;;  %v9012_v26 = vmul.f32 %v8980_v9, %v16996_v63  ;;  %v8981_v25 = vmul.f32 0.044715, %v17009_v42  ;;  %v9028_v60 = vmul.f32 %v8996_v28, %v16998_v55  ;;  %v9296_v32 = vld [vmem:[%s15544_s22 + $0x1b0] sm:$0xff] }
0x1680   : > { %10412 = vmatpush1.bf16.msra.mxu0 %v9592_v40  ;;  %10069 = vmatprep.subr.bf16.mxu1 %v9595_v17  ;;  %v9600_v3 = vunpack.c.h.s8.bf16 %v9292_v39  ;;  %v9011_v6 = vmul.f32 %v8979_v47, %v17001_v15  ;;  %v9058_v61 = vmul.f32 %v9026_v45, %v16993_v36  ;;  %v9027_v54 = vmul.f32 %v8995_v33, %v17004_v53  ;;  %v9299_v47 = vld [vmem:[%s15544_s22 + $0x1c8] sm:$0xff]  ;;  %v9301_v45 = vld [vmem:[%s15544_s22 + $0x1d8] sm:$0xff] }
0x1681   : > { %10413 = vmatprep.subr.bf16.mxu0 %v9597_v23  ;;  %v9603_v8 = vunpack.c.l.s8.bf16 %v9295_v57  ;;  %v8997_v37 = vmul.f32 0.044715, %v17015_v24  ;;  %v9605_v38 = vunpack.c.l.s8.bf16 %v9297_v31  ;;  %v9074_v40 = vadd.f32 %v9042_v43, %v16987_v30 }
0x1682   : > { %v9602_v2 = vunpack.c.l.s8.bf16 %v9294_v56  ;;  %v9044_v46 = vmul.f32 %v9012_v26, %v16996_v63  ;;  %v9013_v17 = vmul.f32 %v8981_v25, %v17009_v42  ;;  %v9060_v39 = vmul.f32 %v9028_v60, %v16998_v55  ;;  %v9298_v26 = vld [vmem:[%s15544_s22 + $0x1c0] sm:$0xff] }
0x1683   : > { %10070 = vmatpush1.bf16.msra.mxu1 %v9594_v14  ;;  %v9604_v44 = vunpack.c.l.s8.bf16 %v9296_v32  ;;  %v9090_v23 = vadd.f32 %v9058_v61, %v16993_v36  ;;  %v9607_v27 = vunpack.c.h.s8.bf16 %v9295_v57  ;;  %v9043_v14 = vmul.f32 %v9011_v6, %v17001_v15 }
0x1684   : > { %10414 = vmatpush1.bf16.msra.mxu0 %v9596_v18  ;;  %10071 = vmatprep.subr.bf16.mxu1 %v9599_v51  ;;  %v9059_v9 = vmul.f32 %v9027_v54, %v17004_v53  ;;  %v9029_v28 = vmul.f32 %v8997_v37, %v17015_v24  ;;  %v9609_v18 = vunpack.c.h.s8.bf16 %v9297_v31  ;;  %v9076_v43 = vadd.f32 %v9044_v46, %v16996_v63 }
0x1685   : > { %10415 = vmatprep.subr.bf16.mxu0 %v9601_v50  ;;  %v9075_v33 = vadd.f32 %v9043_v14, %v17001_v15  ;;  %v9106_v50 = vmul.f32 0.7978846, %v9074_v40  ;;  %v9606_v57 = vunpack.c.h.s8.bf16 %v9294_v56  ;;  %v9045_v25 = vmul.f32 %v9013_v17, %v17009_v42  ;;  %v9305_v14 = vld [vmem:[%s15544_s22 + $0x1f8] sm:$0xff] }
0x1686   : > { %v9091_v51 = vadd.f32 %v9059_v9, %v17004_v53  ;;  %v9092_v60 = vadd.f32 %v9060_v39, %v16998_v55  ;;  %v9611_v31 = vunpack.c.l.s8.bf16 %v9299_v47  ;;  %v9122_v61 = vmul.f32 0.7978846, %v9090_v23  ;;  %v9303_v23 = vld [vmem:[%s15544_s22 + $0x1e8] sm:$0xff] }
0x1687   : > { %10072 = vmatpush1.bf16.msra.mxu1 %v9598_v16  ;;  %v9608_v16 = vunpack.c.h.s8.bf16 %v9296_v32  ;;  %v9107_v6 = vmul.f32 0.7978846, %v9075_v33  ;;  %v9613_v54 = vunpack.c.l.s8.bf16 %v9301_v45  ;;  %13686 = vtanh.f32 %v9106_v50 }
0x1688   : > { %10416 = vmatpush1.bf16.msra.mxu0 %v9600_v3  ;;  %10073 = vmatprep.subr.bf16.mxu1 %v9603_v8  ;;  %v9300_v3 = vld [vmem:[%s15544_s22 + $0x1d0] sm:$0xff]  ;;  %v9123_v8 = vmul.f32 0.7978846, %v9091_v51  ;;  %v9061_v37 = vmul.f32 %v9029_v28, %v17015_v24  ;;  %v9077_v56 = vadd.f32 %v9045_v25, %v17009_v42  ;;  %v9615_v46 = vunpack.c.h.s8.bf16 %v9299_v47  ;;  %v9302_v47 = vld [vmem:[%s15544_s22 + $0x1e0] sm:$0xff] }
0x1689   : > { %10417 = vmatprep.subr.bf16.mxu0 %v9605_v38  ;;  %v9610_v38 = vunpack.c.l.s8.bf16 %v9298_v26  ;;  %13688 = vtanh.f32 %v9107_v6  ;;  %v9612_v32 = vunpack.c.l.s8.bf16 %v9300_v3  ;;  %v9124_v39 = vmul.f32 0.7978846, %v9092_v60  ;;  %v17060_v6 = vld [vmem:[%s15544_s22 + $0x200] sm:$0xff] }
0x168a   : > { %13690 = vtanh.f32 %v9123_v8  ;;  %v9093_v40 = vadd.f32 %v9061_v37, %v17015_v24  ;;  %v9109_v17 = vmul.f32 0.7978846, %v9077_v56  ;;  %v9614_v9 = vunpack.c.h.s8.bf16 %v9298_v26  ;;  %v17054_v26 = vld [vmem:[%s15544_s22 + $0x208] sm:$0xff] }
0x168b   : > { %10074 = vmatpush1.bf16.msra.mxu1 %v9602_v2  ;;  %v9108_v2 = vmul.f32 0.7978846, %v9076_v43  ;;  %13692 = vtanh.f32 %v9122_v61  ;;  %v9616_v28 = vunpack.c.h.s8.bf16 %v9300_v3  ;;  %v9621_v33 = vunpack.c.l.s8.bf16 %v9305_v14  ;;  %v17057_v3 = vld [vmem:[%s15544_s22 + $0x218] sm:$0xff] }
0x168c   : > { %10418 = vmatpush1.bf16.msra.mxu0 %v9604_v44  ;;  %10075 = vmatprep.subr.bf16.mxu1 %v9607_v27  ;;  %v9617_v44 = vunpack.c.h.s8.bf16 %v9301_v45  ;;  %v9125_v27 = vmul.f32 0.7978846, %v9093_v40  ;;  %v9304_v45 = vld [vmem:[%s15544_s22 + $0x1f0] sm:$0xff]  ;;  %v9618_v50 = vunpack.c.l.s8.bf16 %v9302_v47  ;;  %v9625_v60 = vunpack.c.h.s8.bf16 %v9305_v14 }
0x168d   : > { %10419 = vmatprep.subr.bf16.mxu0 %v9609_v18  ;;  %13694 = vtanh.f32 %v9108_v2  ;;  %v9619_v18 = vunpack.c.l.s8.bf16 %v9303_v23  ;;  %v9624_v37 = vunpack.c.h.s8.bf16 %v9304_v45  ;;  %v8963_v56 = vmul.f32 0.5, %v17004_v53 }
0x168e   : > { %13696 = vtanh.f32 %v9109_v17  ;;  %v9627_v2 = vunpack.c.l.s8.bf16 %v17054_v26  ;;  %v8962_v17 = vmul.f32 0.5, %v16993_v36  ;;  %v8949_v36 = vmul.f32 0.5, %v17009_v42 }
0x168f   : > { %10076 = vmatpush1.bf16.msra.mxu1 %v9606_v57  ;;  %13698 = vtanh.f32 %v9125_v27  ;;  %v9620_v57 = vunpack.c.l.s8.bf16 %v9304_v45  ;;  %v9631_v42 = vunpack.c.h.s8.bf16 %v17054_v26 }
0x1690   : > { %10420 = vmatpush1.bf16.msra.mxu0 %v9608_v16  ;;  %10077 = vmatprep.subr.bf16.mxu1 %v9611_v31  ;;  %13700 = vtanh.f32 %v9124_v39  ;;  %v9623_v16 = vunpack.c.h.s8.bf16 %v9303_v23  ;;  %v9622_v31 = vunpack.c.h.s8.bf16 %v9302_v47  ;;  %v9629_v23 = vunpack.c.l.s8.bf16 %v17057_v3 }
0x1691   : > { %10421 = vmatprep.subr.bf16.mxu0 %v9613_v54  ;;  %v13687_v51 = vpop.eup %13686 }
0x1692   : > { %v9170_v54 = vadd.f32 1.0, %v13687_v51  ;;  %v8965_v51 = vmul.f32 0.5, %v17015_v24  ;;  %v9311_v24 = vld [vmem:[%s15544_s22 + $0x228] sm:$0xff] }
0x1693   : > { %10078 = vmatpush1.bf16.msra.mxu1 %v9610_v38  ;;  %v13689_v43 = vpop.eup %13688  ;;  %v8947_v38 = vmul.f32 0.5, %v17001_v15  ;;  %v9626_v15 = vunpack.c.l.s8.bf16 %v17060_v6 }
0x1694   : > { %10422 = vmatpush1.bf16.msra.mxu0 %v9612_v32  ;;  %10079 = vmatprep.subr.bf16.mxu1 %v9615_v46  ;;  %v13691_v25 = vpop.eup %13690  ;;  %v9171_v61 = vadd.f32 1.0, %v13689_v43  ;;  %v8946_v46 = vmul.f32 0.5, %v16987_v30 }
0x1695   : > { %10423 = vmatprep.subr.bf16.mxu0 %v9617_v44  ;;  %v13693_v8 = vpop.eup %13692  ;;  %v9187_v32 = vadd.f32 1.0, %v13691_v25 }
0x1696   : > { %v9186_v39 = vadd.f32 1.0, %v13693_v8  ;;  %v9203_v27 = vmul.f32 %v9171_v61, %v8947_v38  ;;  %v9313_v38 = vld [vmem:[%s15544_s22 + $0x238] sm:$0xff] }
0x1697   : > { %10080 = vmatpush1.bf16.msra.mxu1 %v9614_v9  ;;  %v13695_v40 = vpop.eup %13694  ;;  %v9219_v53 = vmul.f32 %v9187_v32, %v8963_v56  ;;  %v9308_v9 = vld [vmem:[%s15544_s22 + $0x210] sm:$0xff]  ;;  %v9635_v32 = vunpack.c.l.s8.bf16 %v9311_v24 }
0x1698   : > { %10424 = vmatpush1.bf16.msra.mxu0 %v9616_v28  ;;  %10081 = vmatprep.subr.bf16.mxu1 %v9619_v18  ;;  %v13697_v44 = vpop.eup %13696  ;;  %v9202_v28 = vmul.f32 %v9170_v54, %v8946_v46  ;;  %v9218_v18 = vmul.f32 %v9186_v39, %v8962_v17  ;;  %v9632_v26 = vunpack.c.h.s8.bf16 %v9308_v9  ;;  %v9639_v46 = vunpack.c.h.s8.bf16 %v9311_v24  ;;  %v9315_v39 = vld [vmem:[%s15544_s22 + $0x248] sm:$0xff] }
0x1699   : > { %10425 = vmatprep.subr.bf16.mxu0 %v9621_v33  ;;  %v13699_v14 = vpop.eup %13698  ;;  %v9173_v47 = vadd.f32 1.0, %v13697_v44  ;;  %v9172_v33 = vadd.f32 1.0, %v13695_v40  ;;  %v17070_v45 = vpack.c.bf16 %v9219_v53, %v9203_v27  ;;  %v9310_v40 = vld [vmem:[%s15544_s22 + $0x220] sm:$0xff]  ;;  %v9641_v17 = vunpack.c.h.s8.bf16 %v9313_v38  ;;  %v9317_v44 = vld [vmem:[%s15544_s22 + $0x258] sm:$0xff]  ;;  %v9323_v24 = vld [vmem:[%s15544_s22 + $0x288] sm:$0xff] }
0x169a   : > { %v13701_v30 = vpop.eup %13700  ;;  %v17074_v43 = vpack.c.bf16 %v9218_v18, %v9202_v28  ;;  %v9314_v27 = vld [vmem:[%s15544_s22 + $0x240] sm:$0xff]  ;;  %v9645_v53 = vunpack.c.l.s8.bf16 %v9317_v44  ;;  %v9647_v18 = vunpack.c.h.s8.bf16 %v9315_v39 }
0x169b   : > { %10082 = vmatpush1.bf16.msra.mxu1 %v9618_v50  ;;  %v9189_v50 = vadd.f32 1.0, %v13699_v14  ;;  %v9188_v25 = vadd.f32 1.0, %v13701_v30  ;;  %v9205_v61 = vmul.f32 %v9173_v47, %v8949_v36  ;;  %v9316_v14 = vld [vmem:[%s15544_s22 + $0x250] sm:$0xff]  ;;  %v9649_v47 = vunpack.c.h.s8.bf16 %v9317_v44  ;;  %v9321_v30 = vld [vmem:[%s15544_s22 + $0x278] sm:$0xff] }
0x169c   : > { %10426 = vmatpush1.bf16.msra.mxu0 %v9620_v57  ;;  %10083 = vmatprep.subr.bf16.mxu1 %v9623_v16  ;;  %v8948_v57 = vmul.f32 0.5, %v16996_v63  ;;  %v8964_v16 = vmul.f32 0.5, %v16998_v55  ;;  %v9633_v63 = vunpack.c.h.s8.bf16 %v17057_v3  ;;  %v9637_v3 = vunpack.c.l.s8.bf16 %v9313_v38 }
0x169d   : > { %10427 = vmatprep.subr.bf16.mxu0 %v9625_v60  ;;  %v9628_v60 = vunpack.c.l.s8.bf16 %v9308_v9  ;;  %v9221_v54 = vmul.f32 %v9189_v50, %v8965_v51  ;;  %v9642_v9 = vunpack.c.l.s8.bf16 %v9314_v27  ;;  %v9644_v28 = vunpack.c.l.s8.bf16 %v9316_v14 }
0x169e   : > { %v9204_v8 = vmul.f32 %v9172_v33, %v8948_v57  ;;  %v9319_v33 = vld [vmem:[%s15544_s22 + $0x268] sm:$0xff]  ;;  %v9646_v36 = vunpack.c.h.s8.bf16 %v9314_v27  ;;  %v9648_v51 = vunpack.c.h.s8.bf16 %v9316_v14  ;;  %v9318_v57 = vld [vmem:[%s15544_s22 + $0x260] sm:$0xff]  ;;  %v9659_v38 = vunpack.c.l.s8.bf16 %v9323_v24 }
0x169f   : > { %10084 = vmatpush1.bf16.msra.mxu1 %v9622_v31  ;;  %v9220_v31 = vmul.f32 %v9188_v25, %v8964_v16  ;;  %v17083_v55 = vpack.c.bf16 %v9221_v54, %v9205_v61  ;;  %v9651_v50 = vunpack.c.l.s8.bf16 %v9319_v33  ;;  %v9653_v16 = vunpack.c.l.s8.bf16 %v9321_v30  ;;  %v9320_v25 = vld [vmem:[%s15544_s22 + $0x270] sm:$0xff] }
0x16a0   : > { %10428 = vmatpush1.bf16.msra.mxu0 %v9624_v37  ;;  %10096 = vmatprep.subr.bf16.mxu1 %v9627_v2  ;;  %v9630_v37 = vunpack.c.h.s8.bf16 %v17060_v6  ;;  %v9312_v2 = vld [vmem:[%s15544_s22 + $0x230] sm:$0xff]  ;;  %v9652_v61 = vunpack.c.l.s8.bf16 %v9320_v25  ;;  %v9655_v54 = vunpack.c.h.s8.bf16 %v9319_v33 }
0x16a1   : > { %10440 = vmatprep.subr.bf16.mxu0 %v9629_v23  ;;  %v17087_v56 = vpack.c.bf16 %v9220_v31, %v9204_v8  ;;  %v9636_v6 = vunpack.c.l.s8.bf16 %v9312_v2  ;;  %v9638_v23 = vunpack.c.h.s8.bf16 %v9310_v40  ;;  %v9325_v8 = vld [vmem:[%s15544_s22 + $0x298] sm:$0xff]  ;;  %v9654_v31 = vunpack.c.h.s8.bf16 %v9318_v57 }
0x16a2   : > { %10086 = vmatmul.mubr.bf16.vlgmr.msra.gmra.mrb[60].mxu1 %v16740_v52 }
0x16a3   : > { %10430 = vmatmul.mubr.bf16.vlgmr.msra.gmra.mrb[36].mxu0 %v16740_v52  ;;  %10097 = vmatpush1.bf16.msra.mxu1 %v9626_v15  ;;  %v9634_v52 = vunpack.c.l.s8.bf16 %v9310_v40  ;;  %v9643_v15 = vunpack.c.l.s8.bf16 %v9315_v39 }
0x16a4   : > { %10128 = vmatprep.mubr.bf16.mxu1 %v16900_v62  ;;  %10441 = vmatpush1.bf16.msra.mxu0 %v9628_v60  ;;  %v9650_v60 = vunpack.c.l.s8.bf16 %v9318_v57 }
0x16a5   : > { %10472 = vmatprep.mubr.bf16.mxu0 %v16900_v62  ;;  %10098 = vmatprep.subr.bf16.mxu1 %v9631_v42  ;;  %v9640_v62 = vunpack.c.h.s8.bf16 %v9312_v2  ;;  %v9657_v42 = vunpack.c.h.s8.bf16 %v9321_v30  ;;  %v9663_v2 = vunpack.c.h.s8.bf16 %v9323_v24 }
0x16a6   : > { %10442 = vmatprep.subr.bf16.mxu0 %v9633_v63  ;;  %v9656_v63 = vunpack.c.h.s8.bf16 %v9320_v25 }
0x16a7   : > { %10099 = vmatpush1.bf16.msra.mxu1 %v9630_v37  ;;  %v9322_v37 = vld [vmem:[%s15544_s22 + $0x280] sm:$0xff] }
0x16a8   : > { %10443 = vmatpush1.bf16.msra.mxu0 %v9632_v26  ;;  %10100 = vmatprep.subr.bf16.mxu1 %v9635_v32  ;;  %v9661_v26 = vunpack.c.l.s8.bf16 %v9325_v8  ;;  %v9324_v32 = vld [vmem:[%s15544_s22 + $0x290] sm:$0xff]  ;;  %v9658_v40 = vunpack.c.l.s8.bf16 %v9322_v37 }
0x16a9   : > { %10444 = vmatprep.subr.bf16.mxu0 %v9637_v3  ;;  %v9660_v3 = vunpack.c.l.s8.bf16 %v9324_v32  ;;  %v9664_v39 = vunpack.c.h.s8.bf16 %v9324_v32 }
0x16ab   : > { %10101 = vmatpush1.bf16.msra.mxu1 %v9634_v52  ;;  %v9665_v52 = vunpack.c.h.s8.bf16 %v9325_v8 }
0x16ac   : > { %10445 = vmatpush1.bf16.msra.mxu0 %v9636_v6  ;;  %10102 = vmatprep.subr.bf16.mxu1 %v9639_v46  ;;  %v9327_v6 = vld [vmem:[%s15544_s22 + $0x2a8] sm:$0xff]  ;;  %v9329_v46 = vld [vmem:[%s15544_s22 + $0x2b8] sm:$0xff] }
0x16ad   : > { %10446 = vmatprep.subr.bf16.mxu0 %v9641_v17  ;;  %v9662_v17 = vunpack.c.h.s8.bf16 %v9322_v37  ;;  %v9667_v44 = vunpack.c.l.s8.bf16 %v9327_v6  ;;  %v9671_v14 = vunpack.c.h.s8.bf16 %v9327_v6 }
0x16af   : > { %10103 = vmatpush1.bf16.msra.mxu1 %v9638_v23  ;;  %v9326_v23 = vld [vmem:[%s15544_s22 + $0x2a0] sm:$0xff] }
0x16b0   : > { %10447 = vmatpush1.bf16.msra.mxu0 %v9640_v62  ;;  %10104 = vmatprep.subr.bf16.mxu1 %v9643_v15  ;;  %v9669_v62 = vunpack.c.l.s8.bf16 %v9329_v46  ;;  %v9328_v15 = vld [vmem:[%s15544_s22 + $0x2b0] sm:$0xff]  ;;  %v9666_v27 = vunpack.c.l.s8.bf16 %v9326_v23 }
0x16b1   : > { %10448 = vmatprep.subr.bf16.mxu0 %v9645_v53  ;;  %v9668_v53 = vunpack.c.l.s8.bf16 %v9328_v15  ;;  %v9672_v33 = vunpack.c.h.s8.bf16 %v9328_v15 }
0x16b3   : > { %10105 = vmatpush1.bf16.msra.mxu1 %v9642_v9  ;;  %v9673_v9 = vunpack.c.h.s8.bf16 %v9329_v46 }
0x16b4   : > { %10449 = vmatpush1.bf16.msra.mxu0 %v9644_v28  ;;  %10106 = vmatprep.subr.bf16.mxu1 %v9647_v18  ;;  %v9331_v28 = vld [vmem:[%s15544_s22 + $0x2c8] sm:$0xff]  ;;  %v9333_v18 = vld [vmem:[%s15544_s22 + $0x2d8] sm:$0xff] }
0x16b5   : > { %10450 = vmatprep.subr.bf16.mxu0 %v9649_v47  ;;  %v9670_v47 = vunpack.c.h.s8.bf16 %v9326_v23  ;;  %v9675_v30 = vunpack.c.l.s8.bf16 %v9331_v28  ;;  %v9679_v25 = vunpack.c.h.s8.bf16 %v9331_v28 }
0x16b7   : > { %10107 = vmatpush1.bf16.msra.mxu1 %v9646_v36  ;;  %v9330_v36 = vld [vmem:[%s15544_s22 + $0x2c0] sm:$0xff] }
0x16b8   : > { %10451 = vmatpush1.bf16.msra.mxu0 %v9648_v51  ;;  %10108 = vmatprep.subr.bf16.mxu1 %v9651_v50  ;;  %v9677_v51 = vunpack.c.l.s8.bf16 %v9333_v18  ;;  %v9332_v50 = vld [vmem:[%s15544_s22 + $0x2d0] sm:$0xff]  ;;  %v9674_v57 = vunpack.c.l.s8.bf16 %v9330_v36 }
0x16b9   : > { %10452 = vmatprep.subr.bf16.mxu0 %v9653_v16  ;;  %v9676_v16 = vunpack.c.l.s8.bf16 %v9332_v50  ;;  %v9680_v24 = vunpack.c.h.s8.bf16 %v9332_v50 }
0x16bb   : > { %10109 = vmatpush1.bf16.msra.mxu1 %v9650_v60  ;;  %v9681_v60 = vunpack.c.h.s8.bf16 %v9333_v18 }
0x16bc   : > { %10453 = vmatpush1.bf16.msra.mxu0 %v9652_v61  ;;  %10110 = vmatprep.subr.bf16.mxu1 %v9655_v54  ;;  %v9335_v61 = vld [vmem:[%s15544_s22 + $0x2e8] sm:$0xff]  ;;  %v9337_v54 = vld [vmem:[%s15544_s22 + $0x2f8] sm:$0xff] }
0x16bd   : > { %10454 = vmatprep.subr.bf16.mxu0 %v9657_v42  ;;  %v9678_v42 = vunpack.c.h.s8.bf16 %v9330_v36  ;;  %v9683_v8 = vunpack.c.l.s8.bf16 %v9335_v61  ;;  %v9687_v32 = vunpack.c.h.s8.bf16 %v9335_v61  ;;  %v9346_v61 = vld [vmem:[%s15544_s22 + $0x340] sm:$0xff] }
0x16bf   : > { %10111 = vmatpush1.bf16.msra.mxu1 %v9654_v31  ;;  %v9334_v31 = vld [vmem:[%s15544_s22 + $0x2e0] sm:$0xff] }
0x16c0   : > { %10455 = vmatpush1.bf16.msra.mxu0 %v9656_v63  ;;  %10112 = vmatprep.subr.bf16.mxu1 %v9659_v38  ;;  %v9685_v63 = vunpack.c.l.s8.bf16 %v9337_v54  ;;  %v9336_v38 = vld [vmem:[%s15544_s22 + $0x2f0] sm:$0xff]  ;;  %v9682_v37 = vunpack.c.l.s8.bf16 %v9334_v31 }
0x16c1   : > { %10456 = vmatprep.subr.bf16.mxu0 %v9661_v26  ;;  %v9684_v26 = vunpack.c.l.s8.bf16 %v9336_v38  ;;  %v9688_v6 = vunpack.c.h.s8.bf16 %v9336_v38  ;;  %v9351_v38 = vld [vmem:[%s15544_s22 + $0x368] sm:$0xff] }
0x16c3   : > { %10113 = vmatpush1.bf16.msra.mxu1 %v9658_v40  ;;  %v9689_v40 = vunpack.c.h.s8.bf16 %v9337_v54 }
0x16c4   : > { %10457 = vmatpush1.bf16.msra.mxu0 %v9660_v3  ;;  %10114 = vmatprep.subr.bf16.mxu1 %v9663_v2  ;;  %v9339_v3 = vld [vmem:[%s15544_s22 + $0x308] sm:$0xff]  ;;  %v9341_v2 = vld [vmem:[%s15544_s22 + $0x318] sm:$0xff] }
0x16c5   : > { %10458 = vmatprep.subr.bf16.mxu0 %v9665_v52  ;;  %v9686_v52 = vunpack.c.h.s8.bf16 %v9334_v31  ;;  %v9691_v46 = vunpack.c.l.s8.bf16 %v9339_v3  ;;  %v9695_v15 = vunpack.c.h.s8.bf16 %v9339_v3  ;;  %v9710_v3 = vunpack.c.h.s8.bf16 %v9346_v61 }
0x16c7   : > { %10115 = vmatpush1.bf16.msra.mxu1 %v9662_v17  ;;  %v9338_v17 = vld [vmem:[%s15544_s22 + $0x300] sm:$0xff] }
0x16c8   : > { %10459 = vmatpush1.bf16.msra.mxu0 %v9664_v39  ;;  %10116 = vmatprep.subr.bf16.mxu1 %v9667_v44  ;;  %v9693_v39 = vunpack.c.l.s8.bf16 %v9341_v2  ;;  %v9340_v44 = vld [vmem:[%s15544_s22 + $0x310] sm:$0xff]  ;;  %v9690_v23 = vunpack.c.l.s8.bf16 %v9338_v17 }
0x16c9   : > { %10460 = vmatprep.subr.bf16.mxu0 %v9669_v62  ;;  %v9692_v62 = vunpack.c.l.s8.bf16 %v9340_v44  ;;  %v9696_v28 = vunpack.c.h.s8.bf16 %v9340_v44 }
0x16cb   : > { %10117 = vmatpush1.bf16.msra.mxu1 %v9666_v27  ;;  %v9343_v27 = vld [vmem:[%s15544_s22 + $0x328] sm:$0xff] }
0x16cc   : > { %10461 = vmatpush1.bf16.msra.mxu0 %v9668_v53  ;;  %10118 = vmatprep.subr.bf16.mxu1 %v9671_v14  ;;  %v9697_v53 = vunpack.c.h.s8.bf16 %v9341_v2  ;;  %v9345_v14 = vld [vmem:[%s15544_s22 + $0x338] sm:$0xff]  ;;  %v9699_v18 = vunpack.c.l.s8.bf16 %v9343_v27  ;;  %v17144_v2 = vld [vmem:[%s15544_s22 + $0x360] sm:$0xff] }
0x16cd   : > { %10462 = vmatprep.subr.bf16.mxu0 %v9673_v9  ;;  %v9694_v9 = vunpack.c.h.s8.bf16 %v9338_v17  ;;  %v9705_v50 = vunpack.c.h.s8.bf16 %v9345_v14  ;;  %v9715_v17 = vunpack.c.l.s8.bf16 %v9351_v38 }
0x16cf   : > { %10119 = vmatpush1.bf16.msra.mxu1 %v9670_v47  ;;  %v9342_v47 = vld [vmem:[%s15544_s22 + $0x320] sm:$0xff] }
0x16d0   : > { %10463 = vmatpush1.bf16.msra.mxu0 %v9672_v33  ;;  %10120 = vmatprep.subr.bf16.mxu1 %v9675_v30  ;;  %v9701_v33 = vunpack.c.l.s8.bf16 %v9345_v14  ;;  %v9344_v30 = vld [vmem:[%s15544_s22 + $0x330] sm:$0xff]  ;;  %v9698_v36 = vunpack.c.l.s8.bf16 %v9342_v47  ;;  %v9714_v14 = vunpack.c.l.s8.bf16 %v17144_v2 }
0x16d1   : > { %10464 = vmatprep.subr.bf16.mxu0 %v9677_v51  ;;  %v9703_v51 = vunpack.c.h.s8.bf16 %v9343_v27 }
0x16d3   : > { %10121 = vmatpush1.bf16.msra.mxu1 %v9674_v57  ;;  %v9347_v57 = vld [vmem:[%s15544_s22 + $0x348] sm:$0xff] }
0x16d4   : > { %10465 = vmatpush1.bf16.msra.mxu0 %v9676_v16  ;;  %10122 = vmatprep.subr.bf16.mxu1 %v9679_v25  ;;  %v9349_v16 = vld [vmem:[%s15544_s22 + $0x358] sm:$0xff]  ;;  %v9702_v25 = vunpack.c.h.s8.bf16 %v9342_v47  ;;  %v9711_v31 = vunpack.c.h.s8.bf16 %v9347_v57 }
0x16d5   : > { %10466 = vmatprep.subr.bf16.mxu0 %v9681_v60  ;;  %v9707_v60 = vunpack.c.l.s8.bf16 %v9347_v57  ;;  %v9709_v54 = vunpack.c.l.s8.bf16 %v9349_v16 }
0x16d7   : > { %10123 = vmatpush1.bf16.msra.mxu1 %v9678_v42  ;;  %v9348_v42 = vld [vmem:[%s15544_s22 + $0x350] sm:$0xff] }
0x16d8   : > { %10467 = vmatpush1.bf16.msra.mxu0 %v9680_v24  ;;  %10124 = vmatprep.subr.bf16.mxu1 %v9683_v8  ;;  %v9706_v24 = vunpack.c.l.s8.bf16 %v9346_v61  ;;  %v9708_v8 = vunpack.c.l.s8.bf16 %v9348_v42 }
0x16d9   : > { %10468 = vmatprep.subr.bf16.mxu0 %v9685_v63  ;;  %v9713_v63 = vunpack.c.h.s8.bf16 %v9349_v16 }
0x16db   : > { %10125 = vmatpush1.bf16.msra.mxu1 %v9682_v37  ;;  %v8761_v37 = vrot.slane %v16964_v35, %v16788_v21 }
0x16dc   : > { %10469 = vmatpush1.bf16.msra.mxu0 %v9684_v26  ;;  %10126 = vmatprep.subr.bf16.mxu1 %v9687_v32  ;;  %v17137_v26 = vld [vmem:[%s15544_s22 + $0x378] sm:$0xff]  ;;  %v8769_v32 = vrot.slane %v16964_v35, %v16791_v41 }
0x16dd   : > { %10470 = vmatprep.subr.bf16.mxu0 %v9689_v40  ;;  %v8765_v40 = vrot.slane %v16964_v35, %v16794_v49 }
0x16df   : > { %10127 = vmatpush1.bf16.msra.mxu1 %v9686_v52  ;;  %v8877_v52 = vrot.slane %v16967_v58, %v16788_v21 }
0x16e0   : > { %10471 = vmatpush1.bf16.msra.mxu0 %v9688_v6  ;;  %10139 = vmatprep.subr.bf16.mxu1 %v9691_v46  ;;  %v8773_v6 = vrot.slane %v16964_v35, %v16803_v59  ;;  %v9712_v46 = vunpack.c.h.s8.bf16 %v9348_v42  ;;  %v8889_v35 = vrot.slane %v16967_v58, %v16803_v59  ;;  %v9721_v59 = vunpack.c.h.s8.bf16 %v17137_v26 }
0x16e1   : > { %10483 = vmatprep.subr.bf16.mxu0 %v9693_v39  ;;  %v17151_v39 = vld [vmem:[%s15544_s22 + $0x370] sm:$0xff]  ;;  %v9718_v42 = vunpack.c.h.s8.bf16 %v17144_v2 }
0x16e2   : > { %10129 = vmatmul.mubr.bf16.vlgmr.msra.gmra.mrb[60].mxu1 %v16904_v7 }
0x16e3   : > { %10473 = vmatmul.mubr.bf16.vlgmr.msra.gmra.mrb[36].mxu0 %v16904_v7  ;;  %10140 = vmatpush1.bf16.msra.mxu1 %v9690_v23  ;;  %v9700_v7 = vunpack.c.l.s8.bf16 %v9344_v30  ;;  %v8885_v23 = vrot.slane %v16967_v58, %v16791_v41  ;;  %v9716_v41 = vunpack.c.l.s8.bf16 %v17151_v39 }
0x16e4   : > { %10171 = vmatprep.mubr.bf16.mxu1 %v16913_v48  ;;  %10484 = vmatpush1.bf16.msra.mxu0 %v9692_v62  ;;  %v8881_v62 = vrot.slane %v16967_v58, %v16794_v49  ;;  %v9719_v49 = vunpack.c.h.s8.bf16 %v9351_v38  ;;  %v9720_v38 = vunpack.c.h.s8.bf16 %v17151_v39 }
0x16e5   : > { %10515 = vmatprep.mubr.bf16.mxu0 %v16913_v48  ;;  %10141 = vmatprep.subr.bf16.mxu1 %v9695_v15  ;;  %v9704_v48 = vunpack.c.h.s8.bf16 %v9344_v30  ;;  %v9717_v15 = vunpack.c.l.s8.bf16 %v17137_v26 }
0x16e6   : > { %10485 = vmatprep.subr.bf16.mxu0 %v9697_v53 }
0x16e7   : > { %10142 = vmatpush1.bf16.msra.mxu1 %v9694_v9 }
0x16e8   : > { %10486 = vmatpush1.bf16.msra.mxu0 %v9696_v28  ;;  %10143 = vmatprep.subr.bf16.mxu1 %v9699_v18 }
0x16e9   : > { %10487 = vmatprep.subr.bf16.mxu0 %v9701_v33 }
0x16eb   : > { %10144 = vmatpush1.bf16.msra.mxu1 %v9698_v36 }
0x16ec   : > { %10488 = vmatpush1.bf16.msra.mxu0 %v9700_v7  ;;  %10145 = vmatprep.subr.bf16.mxu1 %v9703_v51 }
0x16ed   : > { %10489 = vmatprep.subr.bf16.mxu0 %v9705_v50 }
0x16ef   : > { %10146 = vmatpush1.bf16.msra.mxu1 %v9702_v25 }
0x16f0   : > { %10490 = vmatpush1.bf16.msra.mxu0 %v9704_v48  ;;  %10147 = vmatprep.subr.bf16.mxu1 %v9707_v60  ;;  %v9355_v48 = vld [vmem:[%s15544_s22 + $0x388] sm:$0xff] }
0x16f1   : > { %10491 = vmatprep.subr.bf16.mxu0 %v9709_v54 }
0x16f3   : > { %10148 = vmatpush1.bf16.msra.mxu1 %v9706_v24  ;;  %v9357_v24 = vld [vmem:[%s15544_s22 + $0x398] sm:$0xff] }
0x16f4   : > { %10492 = vmatpush1.bf16.msra.mxu0 %v9708_v8  ;;  %10149 = vmatprep.subr.bf16.mxu1 %v9711_v31 }
0x16f5   : > { %v8611_v44 = vpop.f32.mrb[56].mxu1  ;;  %10493 = vmatprep.subr.bf16.mxu0 %v9713_v63 }
0x16f6   : > { %v8802_v27 = vmul.f32 %v8761_v37, %v8611_v44  ;;  %v8697_v21 = vpop.f32.mrb[32].mxu0  ;;  %v8613_v53 = vpop.f32.mrb[57].mxu1 }
0x16f7   : > { %v8804_v9 = vmul.f32 %v8769_v32, %v8697_v21  ;;  %v8803_v28 = vmul.f32 %v8765_v40, %v8613_v53  ;;  %v8699_v18 = vpop.f32.mrb[33].mxu0  ;;  %v8615_v47 = vpop.f32.mrb[58].mxu1  ;;  %10150 = vmatpush1.bf16.msra.mxu1 %v9710_v3  ;;  %v9354_v3 = vld [vmem:[%s15544_s22 + $0x380] sm:$0xff] }
0x16f8   : > { %v17162_v33 = vadd.f32 %v8877_v52, %v8802_v27  ;;  %v8805_v30 = vmul.f32 %v8773_v6, %v8699_v18  ;;  %v8818_v36 = vmul.f32 %v8761_v37, %v8615_v47  ;;  %v8701_v7 = vpop.f32.mrb[34].mxu0  ;;  %10494 = vmatpush1.bf16.msra.mxu0 %v9712_v46  ;;  %v8617_v51 = vpop.f32.mrb[59].mxu1  ;;  %10151 = vmatprep.subr.bf16.mxu1 %v9715_v17  ;;  %v9356_v46 = vld [vmem:[%s15544_s22 + $0x390] sm:$0xff]  ;;  %v9359_v18 = vld [vmem:[%s15544_s22 + $0x3a8] sm:$0xff] }
0x16f9   : > { %v17165_v58 = vadd.f32 %v8885_v23, %v8804_v9  ;;  %v17167_v50 = vadd.f32 %v8881_v62, %v8803_v28  ;;  %v8820_v57 = vmul.f32 %v8769_v32, %v8701_v7  ;;  %v8819_v16 = vmul.f32 %v8765_v40, %v8617_v51  ;;  %v8703_v25 = vpop.f32.mrb[35].mxu0  ;;  %10495 = vmatprep.subr.bf16.mxu0 %v9717_v15 }
0x16fa   : > { %v8982_v60 = vmul.f32 0.044715, %v17162_v33  ;;  %v17171_v61 = vadd.f32 %v8877_v52, %v8818_v36  ;;  %v8821_v54 = vmul.f32 %v8773_v6, %v8703_v25  ;;  %v17182_v26 = vadd.f32 %v8889_v35, %v8805_v30  ;;  %v9361_v30 = vld [vmem:[%s15544_s22 + $0x3b8] sm:$0xff] }
0x16fb   : > { %v8984_v8 = vmul.f32 0.044715, %v17165_v58  ;;  %v17176_v31 = vadd.f32 %v8885_v23, %v8820_v57  ;;  %v17178_v63 = vadd.f32 %v8881_v62, %v8819_v16  ;;  %10152 = vmatpush1.bf16.msra.mxu1 %v9714_v14  ;;  %v9723_v40 = vunpack.c.l.s8.bf16 %v9355_v48 }
0x16fc   : > { %v9014_v37 = vmul.f32 %v8982_v60, %v17162_v33  ;;  %v8998_v32 = vmul.f32 0.044715, %v17171_v61  ;;  %10496 = vmatpush1.bf16.msra.mxu0 %v9716_v41  ;;  %10153 = vmatprep.subr.bf16.mxu1 %v9719_v49  ;;  %v8983_v2 = vmul.f32 0.044715, %v17167_v50  ;;  %v9725_v6 = vunpack.c.l.s8.bf16 %v9357_v24 }
0x16fd   : > { %v9000_v52 = vmul.f32 0.044715, %v17176_v31  ;;  %10497 = vmatprep.subr.bf16.mxu0 %v9721_v59  ;;  %v8999_v44 = vmul.f32 0.044715, %v17178_v63  ;;  %v17192_v23 = vadd.f32 %v8889_v35, %v8821_v54  ;;  %v9016_v62 = vmul.f32 %v8984_v8, %v17165_v58  ;;  %v9358_v59 = vld [vmem:[%s15544_s22 + $0x3a0] sm:$0xff] }
0x16fe   : > { %v9046_v17 = vmul.f32 %v9014_v37, %v17162_v33  ;;  %v9030_v39 = vmul.f32 %v8998_v32, %v17171_v61  ;;  %v9722_v15 = vunpack.c.l.s8.bf16 %v9354_v3  ;;  %v8985_v27 = vmul.f32 0.044715, %v17182_v26 }
0x16ff   : > { %10154 = vmatpush1.bf16.msra.mxu1 %v9718_v42  ;;  %v9724_v53 = vunpack.c.l.s8.bf16 %v9356_v46  ;;  %v9727_v14 = vunpack.c.h.s8.bf16 %v9355_v48  ;;  %v9015_v9 = vmul.f32 %v8983_v2, %v17167_v50  ;;  %v9032_v28 = vmul.f32 %v9000_v52, %v17176_v31  ;;  %v9360_v48 = vld [vmem:[%s15544_s22 + $0x3b0] sm:$0xff] }
0x1700   : > { %v9062_v21 = vmul.f32 %v9030_v39, %v17171_v61  ;;  %10498 = vmatpush1.bf16.msra.mxu0 %v9720_v38  ;;  %10155 = vmatprep.subr.bf16.mxu1 %v9723_v40  ;;  %v9729_v35 = vunpack.c.h.s8.bf16 %v9357_v24  ;;  %v9078_v47 = vadd.f32 %v9046_v17, %v17162_v33  ;;  %v9031_v41 = vmul.f32 %v8999_v44, %v17178_v63  ;;  %v9363_v44 = vld [vmem:[%s15544_s22 + $0x3c8] sm:$0xff] }
0x1701   : > { %10499 = vmatprep.subr.bf16.mxu0 %v9725_v6  ;;  %v9001_v49 = vmul.f32 0.044715, %v17192_v23  ;;  %v9048_v36 = vmul.f32 %v9016_v62, %v17165_v58  ;;  %v9726_v51 = vunpack.c.h.s8.bf16 %v9354_v3  ;;  %v9017_v57 = vmul.f32 %v8985_v27, %v17182_v26 }
0x1702   : > { %v9094_v7 = vadd.f32 %v9062_v21, %v17171_v61  ;;  %v9728_v16 = vunpack.c.h.s8.bf16 %v9356_v46  ;;  %v9731_v25 = vunpack.c.l.s8.bf16 %v9359_v18  ;;  %v9064_v60 = vmul.f32 %v9032_v28, %v17176_v31 }
0x1703   : > { %10156 = vmatpush1.bf16.msra.mxu1 %v9722_v15  ;;  %v9733_v54 = vunpack.c.l.s8.bf16 %v9361_v30  ;;  %v9047_v42 = vmul.f32 %v9015_v9, %v17167_v50  ;;  %v9033_v24 = vmul.f32 %v9001_v49, %v17192_v23  ;;  %v9730_v8 = vunpack.c.l.s8.bf16 %v9358_v59  ;;  %v9365_v15 = vld [vmem:[%s15544_s22 + $0x3d8] sm:$0xff] }
0x1704   : > { %10500 = vmatpush1.bf16.msra.mxu0 %v9724_v53  ;;  %10157 = vmatprep.subr.bf16.mxu1 %v9727_v14  ;;  %v9063_v38 = vmul.f32 %v9031_v41, %v17178_v63  ;;  %v9110_v37 = vmul.f32 0.7978846, %v9078_v47  ;;  %v9080_v32 = vadd.f32 %v9048_v36, %v17165_v58  ;;  %v9732_v40 = vunpack.c.l.s8.bf16 %v9360_v48  ;;  %v9364_v41 = vld [vmem:[%s15544_s22 + $0x3d0] sm:$0xff] }
0x1705   : > { %10501 = vmatprep.subr.bf16.mxu0 %v9729_v35  ;;  %v9079_v3 = vadd.f32 %v9047_v42, %v17167_v50  ;;  %v9126_v2 = vmul.f32 0.7978846, %v9094_v7  ;;  %v9735_v52 = vunpack.c.h.s8.bf16 %v9359_v18  ;;  %v9049_v46 = vmul.f32 %v9017_v57, %v17182_v26  ;;  %v9362_v18 = vld [vmem:[%s15544_s22 + $0x3c0] sm:$0xff] }
0x1706   : > { %v9095_v6 = vadd.f32 %v9063_v38, %v17178_v63  ;;  %13702 = vtanh.f32 %v9110_v37  ;;  %v9096_v17 = vadd.f32 %v9064_v60, %v17176_v31  ;;  %v9737_v39 = vunpack.c.h.s8.bf16 %v9361_v30  ;;  %v9369_v60 = vld [vmem:[%s15544_s22 + $0x3f8] sm:$0xff]  ;;  %v9366_v37 = vld [vmem:[%s15544_s22 + $0x3e0] sm:$0xff] }
0x1707   : > { %10158 = vmatpush1.bf16.msra.mxu1 %v9726_v51  ;;  %v9111_v62 = vmul.f32 0.7978846, %v9079_v3  ;;  %13704 = vtanh.f32 %v9126_v2  ;;  %v9065_v21 = vmul.f32 %v9033_v24, %v17192_v23  ;;  %v9081_v53 = vadd.f32 %v9049_v46, %v17182_v26 }
0x1708   : > { %10502 = vmatpush1.bf16.msra.mxu0 %v9728_v16  ;;  %10159 = vmatprep.subr.bf16.mxu1 %v9731_v25  ;;  %v9127_v27 = vmul.f32 0.7978846, %v9095_v6  ;;  %v9734_v14 = vunpack.c.h.s8.bf16 %v9358_v59  ;;  %v9112_v9 = vmul.f32 0.7978846, %v9080_v32  ;;  %v9736_v28 = vunpack.c.h.s8.bf16 %v9360_v48  ;;  %v9367_v25 = vld [vmem:[%s15544_s22 + $0x3e8] sm:$0xff]  ;;  %v9368_v6 = vld [vmem:[%s15544_s22 + $0x3f0] sm:$0xff] }
0x1709   : > { %10503 = vmatprep.subr.bf16.mxu0 %v9733_v54  ;;  %13706 = vtanh.f32 %v9111_v62  ;;  %v9739_v35 = vunpack.c.l.s8.bf16 %v9363_v44  ;;  %v9741_v47 = vunpack.c.l.s8.bf16 %v9365_v15  ;;  %v9097_v49 = vadd.f32 %v9065_v21, %v17192_v23 }
0x170a   : > { %13708 = vtanh.f32 %v9127_v27  ;;  %v9113_v30 = vmul.f32 0.7978846, %v9081_v53  ;;  %v9128_v36 = vmul.f32 0.7978846, %v9096_v17  ;;  %v9738_v7 = vunpack.c.l.s8.bf16 %v9362_v18 }
0x170b   : > { %10160 = vmatpush1.bf16.msra.mxu1 %v9730_v8  ;;  %13710 = vtanh.f32 %v9112_v9  ;;  %v9129_v51 = vmul.f32 0.7978846, %v9097_v49  ;;  %v9740_v59 = vunpack.c.l.s8.bf16 %v9364_v41  ;;  %v9743_v57 = vunpack.c.h.s8.bf16 %v9363_v44 }
0x170c   : > { %10504 = vmatpush1.bf16.msra.mxu0 %v9732_v40  ;;  %10161 = vmatprep.subr.bf16.mxu1 %v9735_v52  ;;  %13712 = vtanh.f32 %v9113_v30  ;;  %v9745_v16 = vunpack.c.h.s8.bf16 %v9365_v15  ;;  %v9742_v42 = vunpack.c.h.s8.bf16 %v9362_v18  ;;  %v9744_v24 = vunpack.c.h.s8.bf16 %v9364_v41  ;;  %v9373_v30 = vld [vmem:[%s15544_s22 + $0x418] sm:$0xff] }
0x170d   : > { %10505 = vmatprep.subr.bf16.mxu0 %v9737_v39  ;;  %13714 = vtanh.f32 %v9128_v36  ;;  %v9747_v38 = vunpack.c.l.s8.bf16 %v9367_v25  ;;  %v8950_v32 = vmul.f32 0.5, %v17162_v33  ;;  %v8966_v40 = vmul.f32 0.5, %v17171_v61 }
0x170e   : > { %13716 = vtanh.f32 %v9129_v51  ;;  %v9749_v52 = vunpack.c.l.s8.bf16 %v9369_v60  ;;  %v9746_v62 = vunpack.c.l.s8.bf16 %v9366_v37  ;;  %v8951_v15 = vmul.f32 0.5, %v17167_v50 }
0x170f   : > { %10162 = vmatpush1.bf16.msra.mxu1 %v9734_v14  ;;  %v8967_v27 = vmul.f32 0.5, %v17178_v63  ;;  %v9748_v61 = vunpack.c.l.s8.bf16 %v9368_v6  ;;  %v9751_v53 = vunpack.c.h.s8.bf16 %v9367_v25  ;;  %v9750_v49 = vunpack.c.h.s8.bf16 %v9366_v37 }
0x1710   : > { %10506 = vmatpush1.bf16.msra.mxu0 %v9736_v28  ;;  %10163 = vmatprep.subr.bf16.mxu1 %v9739_v35  ;;  %v13703_v48 = vpop.eup %13702  ;;  %v9753_v28 = vunpack.c.h.s8.bf16 %v9369_v60  ;;  %v9371_v35 = vld [vmem:[%s15544_s22 + $0x408] sm:$0xff]  ;;  %v9752_v63 = vunpack.c.h.s8.bf16 %v9368_v6  ;;  %v8953_v60 = vmul.f32 0.5, %v17182_v26  ;;  %v9377_v6 = vld [vmem:[%s15544_s22 + $0x438] sm:$0xff] }
0x1711   : > { %10507 = vmatprep.subr.bf16.mxu0 %v9741_v47  ;;  %v13705_v54 = vpop.eup %13704  ;;  %v9174_v8 = vadd.f32 1.0, %v13703_v48  ;;  %v9755_v25 = vunpack.c.l.s8.bf16 %v9371_v35  ;;  %v9370_v48 = vld [vmem:[%s15544_s22 + $0x400] sm:$0xff] }
0x1712   : > { %v9190_v3 = vadd.f32 1.0, %v13705_v54  ;;  %v8969_v54 = vmul.f32 0.5, %v17192_v23  ;;  %v9759_v23 = vunpack.c.h.s8.bf16 %v9371_v35  ;;  %v9378_v35 = vld [vmem:[%s15544_s22 + $0x440] sm:$0xff] }
0x1713   : > { %10164 = vmatpush1.bf16.msra.mxu1 %v9738_v7  ;;  %v13707_v2 = vpop.eup %13706  ;;  %v9206_v39 = vmul.f32 %v9174_v8, %v8950_v32  ;;  %v9372_v8 = vld [vmem:[%s15544_s22 + $0x410] sm:$0xff] }
0x1714   : > { %10508 = vmatpush1.bf16.msra.mxu0 %v9740_v59  ;;  %10165 = vmatprep.subr.bf16.mxu1 %v9743_v57  ;;  %v13709_v46 = vpop.eup %13708  ;;  %v9175_v17 = vadd.f32 1.0, %v13707_v2  ;;  %v9222_v44 = vmul.f32 %v9190_v3, %v8966_v40  ;;  %v8952_v59 = vmul.f32 0.5, %v17165_v58  ;;  %v8968_v57 = vmul.f32 0.5, %v17176_v31  ;;  %v9375_v2 = vld [vmem:[%s15544_s22 + $0x428] sm:$0xff] }
0x1715   : > { %10509 = vmatprep.subr.bf16.mxu0 %v9745_v16  ;;  %v9191_v21 = vadd.f32 1.0, %v13709_v46  ;;  %v13711_v33 = vpop.eup %13710  ;;  %v9754_v31 = vunpack.c.l.s8.bf16 %v9370_v48  ;;  %v9756_v26 = vunpack.c.l.s8.bf16 %v9372_v8  ;;  %v9758_v46 = vunpack.c.h.s8.bf16 %v9370_v48  ;;  %v9384_v48 = vld [vmem:[%s15544_s22 + $0x470] sm:$0xff] }
0x1716   : > { %v17233_v14 = vpack.c.bf16 %v9222_v44, %v9206_v39  ;;  %v13713_v9 = vpop.eup %13712  ;;  %v9207_v18 = vmul.f32 %v9175_v17, %v8951_v15  ;;  %v9176_v41 = vadd.f32 1.0, %v13711_v33  ;;  %v9760_v17 = vunpack.c.h.s8.bf16 %v9372_v8  ;;  %v9374_v44 = vld [vmem:[%s15544_s22 + $0x420] sm:$0xff]  ;;  %v9376_v15 = vld [vmem:[%s15544_s22 + $0x430] sm:$0xff]  ;;  %v9387_v8 = vld [vmem:[%s15544_s22 + $0x488] sm:$0xff] }
0x1717   : > { %10166 = vmatpush1.bf16.msra.mxu1 %v9742_v42  ;;  %v9223_v47 = vmul.f32 %v9191_v21, %v8967_v27  ;;  %v13715_v50 = vpop.eup %13714  ;;  %v9177_v36 = vadd.f32 1.0, %v13713_v9  ;;  %v9763_v39 = vunpack.c.l.s8.bf16 %v9375_v2  ;;  %v9762_v27 = vunpack.c.l.s8.bf16 %v9374_v44 }
0x1718   : > { %10510 = vmatpush1.bf16.msra.mxu0 %v9744_v24  ;;  %10167 = vmatprep.subr.bf16.mxu1 %v9747_v38  ;;  %v13717_v7 = vpop.eup %13716  ;;  %v9192_v16 = vadd.f32 1.0, %v13715_v50  ;;  %v9757_v24 = vunpack.c.l.s8.bf16 %v9373_v30  ;;  %v9208_v38 = vmul.f32 %v9176_v41, %v8952_v59  ;;  %v9767_v21 = vunpack.c.h.s8.bf16 %v9375_v2 }
0x1719   : > { %10511 = vmatprep.subr.bf16.mxu0 %v9749_v52  ;;  %v17237_v51 = vpack.c.bf16 %v9223_v47, %v9207_v18  ;;  %v9193_v42 = vadd.f32 1.0, %v13717_v7  ;;  %v9209_v58 = vmul.f32 %v9177_v36, %v8953_v60  ;;  %v9761_v52 = vunpack.c.h.s8.bf16 %v9373_v30  ;;  %v9380_v47 = vld [vmem:[%s15544_s22 + $0x450] sm:$0xff]  ;;  %v9383_v30 = vld [vmem:[%s15544_s22 + $0x468] sm:$0xff]  ;;  %v9385_v36 = vld [vmem:[%s15544_s22 + $0x478] sm:$0xff] }
0x171a   : > { %v9224_v37 = vmul.f32 %v9192_v16, %v8968_v57  ;;  %v9769_v33 = vunpack.c.h.s8.bf16 %v9377_v6  ;;  %v9766_v9 = vunpack.c.h.s8.bf16 %v9374_v44  ;;  %v9770_v41 = vunpack.c.l.s8.bf16 %v9378_v35  ;;  %v9382_v16 = vld [vmem:[%s15544_s22 + $0x460] sm:$0xff] }
0x171b   : > { %10168 = vmatpush1.bf16.msra.mxu1 %v9746_v62  ;;  %v9225_v32 = vmul.f32 %v9193_v42, %v8969_v54  ;;  %v9765_v62 = vunpack.c.l.s8.bf16 %v9377_v6  ;;  %v9772_v50 = vunpack.c.l.s8.bf16 %v9380_v47  ;;  %v9774_v7 = vunpack.c.h.s8.bf16 %v9378_v35 }
0x171c   : > { %10512 = vmatpush1.bf16.msra.mxu0 %v9748_v61  ;;  %10169 = vmatprep.subr.bf16.mxu1 %v9751_v53  ;;  %v17245_v40 = vpack.c.bf16 %v9224_v37, %v9208_v38  ;;  %v9379_v61 = vld [vmem:[%s15544_s22 + $0x448] sm:$0xff]  ;;  %v9381_v53 = vld [vmem:[%s15544_s22 + $0x458] sm:$0xff]  ;;  %v9776_v59 = vunpack.c.h.s8.bf16 %v9380_v47  ;;  %v9779_v57 = vunpack.c.l.s8.bf16 %v9383_v30  ;;  %v9778_v60 = vunpack.c.l.s8.bf16 %v9382_v16 }
0x171d   : > { %10513 = vmatprep.subr.bf16.mxu0 %v9753_v28  ;;  %v17247_v3 = vpack.c.bf16 %v9225_v32, %v9209_v58  ;;  %v9771_v28 = vunpack.c.l.s8.bf16 %v9379_v61  ;;  %v9773_v18 = vunpack.c.l.s8.bf16 %v9381_v53  ;;  %v9780_v54 = vunpack.c.l.s8.bf16 %v9384_v48  ;;  %v9389_v38 = vld [vmem:[%s15544_s22 + $0x498] sm:$0xff] }
0x171e   : > { %v9783_v42 = vunpack.c.h.s8.bf16 %v9383_v30  ;;  %v9782_v37 = vunpack.c.h.s8.bf16 %v9382_v16  ;;  %v9784_v58 = vunpack.c.h.s8.bf16 %v9384_v48  ;;  %v9787_v32 = vunpack.c.l.s8.bf16 %v9387_v8 }
0x171f   : > { %10170 = vmatpush1.bf16.msra.mxu1 %v9750_v49  ;;  %v9775_v49 = vunpack.c.h.s8.bf16 %v9379_v61  ;;  %v9791_v6 = vunpack.c.h.s8.bf16 %v9387_v8 }
0x1720   : > { %10514 = vmatpush1.bf16.msra.mxu0 %v9752_v63  ;;  %10182 = vmatprep.subr.bf16.mxu1 %v9755_v25  ;;  %v9777_v63 = vunpack.c.h.s8.bf16 %v9381_v53  ;;  %v9781_v25 = vunpack.c.l.s8.bf16 %v9385_v36 }
0x1721   : > { %10526 = vmatprep.subr.bf16.mxu0 %v9757_v24  ;;  %v9785_v24 = vunpack.c.h.s8.bf16 %v9385_v36 }
0x1722   : > { %10172 = vmatmul.mubr.bf16.vlgmr.msra.gmra.mrb[60].mxu1 %v16917_v4 }
0x1723   : > { %10516 = vmatmul.mubr.bf16.vlgmr.msra.gmra.mrb[36].mxu0 %v16917_v4  ;;  %10183 = vmatpush1.bf16.msra.mxu1 %v9754_v31  ;;  %v9764_v4 = vunpack.c.l.s8.bf16 %v9376_v15  ;;  %v9386_v31 = vld [vmem:[%s15544_s22 + $0x480] sm:$0xff] }
0x1724   : > { %10214 = vmatprep.mubr.bf16.mxu1 %v17070_v45  ;;  %10527 = vmatpush1.bf16.msra.mxu0 %v9756_v26  ;;  %v9789_v26 = vunpack.c.l.s8.bf16 %v9389_v38  ;;  %v9786_v2 = vunpack.c.l.s8.bf16 %v9386_v31  ;;  %v9790_v44 = vunpack.c.h.s8.bf16 %v9386_v31 }
0x1725   : > { %10558 = vmatprep.mubr.bf16.mxu0 %v17070_v45  ;;  %10184 = vmatprep.subr.bf16.mxu1 %v9759_v23  ;;  %v9768_v45 = vunpack.c.h.s8.bf16 %v9376_v15  ;;  %v9388_v23 = vld [vmem:[%s15544_s22 + $0x490] sm:$0xff] }
0x1726   : > { %10528 = vmatprep.subr.bf16.mxu0 %v9761_v52  ;;  %v9788_v52 = vunpack.c.l.s8.bf16 %v9388_v23 }
0x1727   : > { %10185 = vmatpush1.bf16.msra.mxu1 %v9758_v46  ;;  %v9793_v46 = vunpack.c.h.s8.bf16 %v9389_v38 }
0x1728   : > { %10529 = vmatpush1.bf16.msra.mxu0 %v9760_v17  ;;  %10186 = vmatprep.subr.bf16.mxu1 %v9763_v39  ;;  %v9391_v17 = vld [vmem:[%s15544_s22 + $0x4a8] sm:$0xff]  ;;  %v9393_v39 = vld [vmem:[%s15544_s22 + $0x4b8] sm:$0xff] }
0x1729   : > { %10530 = vmatprep.subr.bf16.mxu0 %v9765_v62  ;;  %v9792_v62 = vunpack.c.h.s8.bf16 %v9388_v23  ;;  %v9795_v15 = vunpack.c.l.s8.bf16 %v9391_v17  ;;  %v9799_v53 = vunpack.c.h.s8.bf16 %v9391_v17 }
0x172b   : > { %10187 = vmatpush1.bf16.msra.mxu1 %v9762_v27  ;;  %v9390_v27 = vld [vmem:[%s15544_s22 + $0x4a0] sm:$0xff] }
0x172c   : > { %10531 = vmatpush1.bf16.msra.mxu0 %v9764_v4  ;;  %10188 = vmatprep.subr.bf16.mxu1 %v9767_v21  ;;  %v9797_v4 = vunpack.c.l.s8.bf16 %v9393_v39  ;;  %v9392_v21 = vld [vmem:[%s15544_s22 + $0x4b0] sm:$0xff]  ;;  %v9798_v35 = vunpack.c.h.s8.bf16 %v9390_v27 }
0x172d   : > { %10532 = vmatprep.subr.bf16.mxu0 %v9769_v33  ;;  %v9794_v33 = vunpack.c.l.s8.bf16 %v9390_v27  ;;  %v9796_v61 = vunpack.c.l.s8.bf16 %v9392_v21 }
0x172f   : > { %10189 = vmatpush1.bf16.msra.mxu1 %v9766_v9  ;;  %v9801_v9 = vunpack.c.h.s8.bf16 %v9393_v39 }
0x1730   : > { %10533 = vmatpush1.bf16.msra.mxu0 %v9768_v45  ;;  %10190 = vmatprep.subr.bf16.mxu1 %v9771_v28  ;;  %v9395_v45 = vld [vmem:[%s15544_s22 + $0x4c8] sm:$0xff]  ;;  %v9397_v28 = vld [vmem:[%s15544_s22 + $0x4d8] sm:$0xff] }
0x1731   : > { %10534 = vmatprep.subr.bf16.mxu0 %v9773_v18  ;;  %v9800_v18 = vunpack.c.h.s8.bf16 %v9392_v21  ;;  %v9803_v47 = vunpack.c.l.s8.bf16 %v9395_v45  ;;  %v9807_v36 = vunpack.c.h.s8.bf16 %v9395_v45 }
0x1733   : > { %10191 = vmatpush1.bf16.msra.mxu1 %v9770_v41  ;;  %v9394_v41 = vld [vmem:[%s15544_s22 + $0x4c0] sm:$0xff] }
0x1734   : > { %10535 = vmatpush1.bf16.msra.mxu0 %v9772_v50  ;;  %10192 = vmatprep.subr.bf16.mxu1 %v9775_v49  ;;  %v9805_v50 = vunpack.c.l.s8.bf16 %v9397_v28  ;;  %v9396_v49 = vld [vmem:[%s15544_s22 + $0x4d0] sm:$0xff]  ;;  %v9806_v16 = vunpack.c.h.s8.bf16 %v9394_v41 }
0x1735   : > { %10536 = vmatprep.subr.bf16.mxu0 %v9777_v63  ;;  %v9802_v63 = vunpack.c.l.s8.bf16 %v9394_v41  ;;  %v9804_v30 = vunpack.c.l.s8.bf16 %v9396_v49 }
0x1737   : > { %10193 = vmatpush1.bf16.msra.mxu1 %v9774_v7  ;;  %v9809_v7 = vunpack.c.h.s8.bf16 %v9397_v28 }
0x1738   : > { %10537 = vmatpush1.bf16.msra.mxu0 %v9776_v59  ;;  %10194 = vmatprep.subr.bf16.mxu1 %v9779_v57  ;;  %v9399_v59 = vld [vmem:[%s15544_s22 + $0x4e8] sm:$0xff]  ;;  %v9401_v57 = vld [vmem:[%s15544_s22 + $0x4f8] sm:$0xff] }
0x1739   : > { %10538 = vmatprep.subr.bf16.mxu0 %v9781_v25  ;;  %v9808_v25 = vunpack.c.h.s8.bf16 %v9396_v49  ;;  %v9811_v48 = vunpack.c.l.s8.bf16 %v9399_v59  ;;  %v9815_v38 = vunpack.c.h.s8.bf16 %v9399_v59 }
0x173b   : > { %10195 = vmatpush1.bf16.msra.mxu1 %v9778_v60  ;;  %v9398_v60 = vld [vmem:[%s15544_s22 + $0x4e0] sm:$0xff] }
0x173c   : > { %10539 = vmatpush1.bf16.msra.mxu0 %v9780_v54  ;;  %10196 = vmatprep.subr.bf16.mxu1 %v9783_v42  ;;  %v9813_v54 = vunpack.c.l.s8.bf16 %v9401_v57  ;;  %v9400_v42 = vld [vmem:[%s15544_s22 + $0x4f0] sm:$0xff]  ;;  %v9814_v31 = vunpack.c.h.s8.bf16 %v9398_v60 }
0x173d   : > { %10540 = vmatprep.subr.bf16.mxu0 %v9785_v24  ;;  %v9810_v24 = vunpack.c.l.s8.bf16 %v9398_v60  ;;  %v9812_v8 = vunpack.c.l.s8.bf16 %v9400_v42 }
0x173f   : > { %10197 = vmatpush1.bf16.msra.mxu1 %v9782_v37  ;;  %v9817_v37 = vunpack.c.h.s8.bf16 %v9401_v57  ;;  %v9415_v57 = vld [vmem:[%s15544_s22 + $0x568] sm:$0xff] }
0x1740   : > { %10541 = vmatpush1.bf16.msra.mxu0 %v9784_v58  ;;  %10198 = vmatprep.subr.bf16.mxu1 %v9787_v32  ;;  %v9403_v58 = vld [vmem:[%s15544_s22 + $0x508] sm:$0xff]  ;;  %v9405_v32 = vld [vmem:[%s15544_s22 + $0x518] sm:$0xff]  ;;  %v9843_v60 = vunpack.c.l.s8.bf16 %v9415_v57 }
0x1741   : > { %10542 = vmatprep.subr.bf16.mxu0 %v9789_v26  ;;  %v9816_v26 = vunpack.c.h.s8.bf16 %v9400_v42  ;;  %v9819_v23 = vunpack.c.l.s8.bf16 %v9403_v58  ;;  %v9823_v39 = vunpack.c.h.s8.bf16 %v9403_v58 }
0x1743   : > { %10199 = vmatpush1.bf16.msra.mxu1 %v9786_v2  ;;  %v9402_v2 = vld [vmem:[%s15544_s22 + $0x500] sm:$0xff] }
0x1744   : > { %10543 = vmatpush1.bf16.msra.mxu0 %v9788_v52  ;;  %10200 = vmatprep.subr.bf16.mxu1 %v9791_v6  ;;  %v9821_v52 = vunpack.c.l.s8.bf16 %v9405_v32  ;;  %v9404_v6 = vld [vmem:[%s15544_s22 + $0x510] sm:$0xff]  ;;  %v9822_v27 = vunpack.c.h.s8.bf16 %v9402_v2 }
0x1745   : > { %10544 = vmatprep.subr.bf16.mxu0 %v9793_v46  ;;  %v9818_v46 = vunpack.c.l.s8.bf16 %v9402_v2  ;;  %v9820_v17 = vunpack.c.l.s8.bf16 %v9404_v6 }
0x1747   : > { %10201 = vmatpush1.bf16.msra.mxu1 %v9790_v44  ;;  %v9407_v44 = vld [vmem:[%s15544_s22 + $0x528] sm:$0xff] }
0x1748   : > { %10545 = vmatpush1.bf16.msra.mxu0 %v9792_v62  ;;  %10202 = vmatprep.subr.bf16.mxu1 %v9795_v15  ;;  %v9825_v62 = vunpack.c.h.s8.bf16 %v9405_v32  ;;  %v9409_v15 = vld [vmem:[%s15544_s22 + $0x538] sm:$0xff]  ;;  %v9827_v21 = vunpack.c.l.s8.bf16 %v9407_v44  ;;  %v9831_v45 = vunpack.c.h.s8.bf16 %v9407_v44  ;;  %v9419_v32 = vld [vmem:[%s15544_s22 + $0x588] sm:$0xff] }
0x1749   : > { %10546 = vmatprep.subr.bf16.mxu0 %v9797_v4  ;;  %v9824_v4 = vunpack.c.h.s8.bf16 %v9404_v6  ;;  %v9833_v28 = vunpack.c.h.s8.bf16 %v9409_v15  ;;  %v9851_v2 = vunpack.c.l.s8.bf16 %v9419_v32  ;;  %v9855_v44 = vunpack.c.h.s8.bf16 %v9419_v32 }
0x174b   : > { %10203 = vmatpush1.bf16.msra.mxu1 %v9794_v33  ;;  %v9406_v33 = vld [vmem:[%s15544_s22 + $0x520] sm:$0xff] }
0x174c   : > { %10547 = vmatpush1.bf16.msra.mxu0 %v9796_v61  ;;  %10204 = vmatprep.subr.bf16.mxu1 %v9799_v53  ;;  %v9829_v61 = vunpack.c.l.s8.bf16 %v9409_v15  ;;  %v9408_v53 = vld [vmem:[%s15544_s22 + $0x530] sm:$0xff]  ;;  %v9423_v15 = vld [vmem:[%s15544_s22 + $0x5a8] sm:$0xff] }
0x174d   : > { %10548 = vmatprep.subr.bf16.mxu0 %v9801_v9  ;;  %v9826_v9 = vunpack.c.l.s8.bf16 %v9406_v33 }
0x174f   : > { %10205 = vmatpush1.bf16.msra.mxu1 %v9798_v35  ;;  %v9411_v35 = vld [vmem:[%s15544_s22 + $0x548] sm:$0xff] }
0x1750   : > { %10549 = vmatpush1.bf16.msra.mxu0 %v9800_v18  ;;  %10206 = vmatprep.subr.bf16.mxu1 %v9803_v47  ;;  %v9413_v18 = vld [vmem:[%s15544_s22 + $0x558] sm:$0xff]  ;;  %v9830_v47 = vunpack.c.h.s8.bf16 %v9406_v33  ;;  %v9835_v41 = vunpack.c.l.s8.bf16 %v9411_v35  ;;  %v9859_v33 = vunpack.c.l.s8.bf16 %v9423_v15 }
0x1751   : > { %10550 = vmatprep.subr.bf16.mxu0 %v9805_v50  ;;  %v9410_v50 = vld [vmem:[%s15544_s22 + $0x540] sm:$0xff]  ;;  %v9837_v49 = vunpack.c.l.s8.bf16 %v9413_v18  ;;  %v9841_v59 = vunpack.c.h.s8.bf16 %v9413_v18  ;;  %v9427_v18 = vld [vmem:[%s15544_s22 + $0x5c8] sm:$0xff] }
0x1753   : > { %10207 = vmatpush1.bf16.msra.mxu1 %v9802_v63  ;;  %v9412_v63 = vld [vmem:[%s15544_s22 + $0x550] sm:$0xff] }
0x1754   : > { %10551 = vmatpush1.bf16.msra.mxu0 %v9804_v30  ;;  %10208 = vmatprep.subr.bf16.mxu1 %v9807_v36  ;;  %v9834_v30 = vunpack.c.l.s8.bf16 %v9410_v50  ;;  %v9836_v36 = vunpack.c.l.s8.bf16 %v9412_v63 }
0x1755   : > { %10552 = vmatprep.subr.bf16.mxu0 %v9809_v7  ;;  %v9839_v7 = vunpack.c.h.s8.bf16 %v9411_v35 }
0x1757   : > { %10209 = vmatpush1.bf16.msra.mxu1 %v9806_v16  ;;  %v9417_v16 = vld [vmem:[%s15544_s22 + $0x578] sm:$0xff] }
0x1758   : > { %10553 = vmatpush1.bf16.msra.mxu0 %v9808_v25  ;;  %10210 = vmatprep.subr.bf16.mxu1 %v9811_v48  ;;  %v9838_v25 = vunpack.c.h.s8.bf16 %v9410_v50  ;;  %v9840_v48 = vunpack.c.h.s8.bf16 %v9412_v63  ;;  %v9845_v42 = vunpack.c.l.s8.bf16 %v9417_v16  ;;  %v9849_v58 = vunpack.c.h.s8.bf16 %v9417_v16  ;;  %v9431_v16 = vld [vmem:[%s15544_s22 + $0x5e8] sm:$0xff] }
0x1759   : > { %10554 = vmatprep.subr.bf16.mxu0 %v9813_v54  ;;  %v9414_v54 = vld [vmem:[%s15544_s22 + $0x560] sm:$0xff]  ;;  %v9867_v50 = vunpack.c.l.s8.bf16 %v9427_v18 }
0x175b   : > { %10211 = vmatpush1.bf16.msra.mxu1 %v9810_v24  ;;  %v9416_v24 = vld [vmem:[%s15544_s22 + $0x570] sm:$0xff] }
0x175c   : > { %10555 = vmatpush1.bf16.msra.mxu0 %v9812_v8  ;;  %10212 = vmatprep.subr.bf16.mxu1 %v9815_v38  ;;  %v9842_v8 = vunpack.c.l.s8.bf16 %v9414_v54  ;;  %v9844_v38 = vunpack.c.l.s8.bf16 %v9416_v24 }
0x175d   : > { %10556 = vmatprep.subr.bf16.mxu0 %v9817_v37  ;;  %v9847_v37 = vunpack.c.h.s8.bf16 %v9415_v57 }
0x175f   : > { %10213 = vmatpush1.bf16.msra.mxu1 %v9814_v31  ;;  %v9421_v31 = vld [vmem:[%s15544_s22 + $0x598] sm:$0xff] }
0x1760   : > { %10557 = vmatpush1.bf16.msra.mxu0 %v9816_v26  ;;  %10225 = vmatprep.subr.bf16.mxu1 %v9819_v23  ;;  %v9846_v26 = vunpack.c.h.s8.bf16 %v9414_v54  ;;  %v9848_v23 = vunpack.c.h.s8.bf16 %v9416_v24  ;;  %v9853_v6 = vunpack.c.l.s8.bf16 %v9421_v31  ;;  %v9875_v54 = vunpack.c.l.s8.bf16 %v9431_v16 }
0x1761   : > { %10569 = vmatprep.subr.bf16.mxu0 %v9821_v52  ;;  %v9418_v52 = vld [vmem:[%s15544_s22 + $0x580] sm:$0xff] }
0x1762   : > { %10215 = vmatmul.mubr.bf16.vlgmr.msra.gmra.mrb[60].mxu1 %v17074_v43 }
0x1763   : > { %10559 = vmatmul.mubr.bf16.vlgmr.msra.gmra.mrb[36].mxu0 %v17074_v43  ;;  %10226 = vmatpush1.bf16.msra.mxu1 %v9818_v46  ;;  %v9828_v43 = vunpack.c.l.s8.bf16 %v9408_v53  ;;  %v9420_v46 = vld [vmem:[%s15544_s22 + $0x590] sm:$0xff] }
0x1764   : > { %10257 = vmatprep.mubr.bf16.mxu1 %v17083_v55  ;;  %10570 = vmatpush1.bf16.msra.mxu0 %v9820_v17  ;;  %v9850_v17 = vunpack.c.l.s8.bf16 %v9418_v52 }
0x1765   : > { %10601 = vmatprep.mubr.bf16.mxu0 %v17083_v55  ;;  %10227 = vmatprep.subr.bf16.mxu1 %v9823_v39  ;;  %v9832_v55 = vunpack.c.h.s8.bf16 %v9408_v53  ;;  %v9852_v39 = vunpack.c.l.s8.bf16 %v9420_v46 }
0x1766   : > { %10571 = vmatprep.subr.bf16.mxu0 %v9825_v62  ;;  %v9857_v62 = vunpack.c.h.s8.bf16 %v9421_v31  ;;  %v9435_v31 = vld [vmem:[%s15544_s22 + $0x608] sm:$0xff] }
0x1767   : > { %10228 = vmatpush1.bf16.msra.mxu1 %v9822_v27  ;;  %v9425_v27 = vld [vmem:[%s15544_s22 + $0x5b8] sm:$0xff] }
0x1768   : > { %10572 = vmatpush1.bf16.msra.mxu0 %v9824_v4  ;;  %10229 = vmatprep.subr.bf16.mxu1 %v9827_v21  ;;  %v9854_v4 = vunpack.c.h.s8.bf16 %v9418_v52  ;;  %v9856_v21 = vunpack.c.h.s8.bf16 %v9420_v46  ;;  %v9861_v53 = vunpack.c.l.s8.bf16 %v9425_v27  ;;  %v9865_v35 = vunpack.c.h.s8.bf16 %v9425_v27 }
0x1769   : > { %10573 = vmatprep.subr.bf16.mxu0 %v9829_v61  ;;  %v9422_v61 = vld [vmem:[%s15544_s22 + $0x5a0] sm:$0xff]  ;;  %v9883_v52 = vunpack.c.l.s8.bf16 %v9435_v31 }
0x176b   : > { %10230 = vmatpush1.bf16.msra.mxu1 %v9826_v9  ;;  %v9424_v9 = vld [vmem:[%s15544_s22 + $0x5b0] sm:$0xff] }
0x176c   : > { %10574 = vmatpush1.bf16.msra.mxu0 %v9828_v43  ;;  %10231 = vmatprep.subr.bf16.mxu1 %v9831_v45  ;;  %v9858_v43 = vunpack.c.l.s8.bf16 %v9422_v61  ;;  %v9860_v45 = vunpack.c.l.s8.bf16 %v9424_v9 }
0x176d   : > { %10575 = vmatprep.subr.bf16.mxu0 %v9833_v28  ;;  %v9863_v28 = vunpack.c.h.s8.bf16 %v9423_v15  ;;  %v9439_v15 = vld [vmem:[%s15544_s22 + $0x628] sm:$0xff] }
0x176f   : > { %10232 = vmatpush1.bf16.msra.mxu1 %v9830_v47  ;;  %v9429_v47 = vld [vmem:[%s15544_s22 + $0x5d8] sm:$0xff] }
0x1770   : > { %10576 = vmatpush1.bf16.msra.mxu0 %v9832_v55  ;;  %10233 = vmatprep.subr.bf16.mxu1 %v9835_v41  ;;  %v9862_v55 = vunpack.c.h.s8.bf16 %v9422_v61  ;;  %v9864_v41 = vunpack.c.h.s8.bf16 %v9424_v9  ;;  %v9869_v63 = vunpack.c.l.s8.bf16 %v9429_v47  ;;  %v9873_v57 = vunpack.c.h.s8.bf16 %v9429_v47  ;;  %v9445_v47 = vld [vmem:[%s15544_s22 + $0x658] sm:$0xff] }
0x1771   : > { %10577 = vmatprep.subr.bf16.mxu0 %v9837_v49  ;;  %v9426_v49 = vld [vmem:[%s15544_s22 + $0x5c0] sm:$0xff]  ;;  %v9891_v61 = vunpack.c.l.s8.bf16 %v9439_v15 }
0x1773   : > { %10234 = vmatpush1.bf16.msra.mxu1 %v9834_v30  ;;  %v9428_v30 = vld [vmem:[%s15544_s22 + $0x5d0] sm:$0xff] }
0x1774   : > { %10578 = vmatpush1.bf16.msra.mxu0 %v9836_v36  ;;  %10235 = vmatprep.subr.bf16.mxu1 %v9839_v7  ;;  %v9866_v36 = vunpack.c.l.s8.bf16 %v9426_v49  ;;  %v9868_v7 = vunpack.c.l.s8.bf16 %v9428_v30 }
0x1775   : > { %10579 = vmatprep.subr.bf16.mxu0 %v9841_v59  ;;  %v9871_v59 = vunpack.c.h.s8.bf16 %v9427_v18  ;;  %v9443_v18 = vld [vmem:[%s15544_s22 + $0x648] sm:$0xff] }
0x1777   : > { %10236 = vmatpush1.bf16.msra.mxu1 %v9838_v25  ;;  %v9433_v25 = vld [vmem:[%s15544_s22 + $0x5f8] sm:$0xff] }
0x1778   : > { %10580 = vmatpush1.bf16.msra.mxu0 %v9840_v48  ;;  %10237 = vmatprep.subr.bf16.mxu1 %v9843_v60  ;;  %v9870_v48 = vunpack.c.h.s8.bf16 %v9426_v49  ;;  %v9872_v60 = vunpack.c.h.s8.bf16 %v9428_v30  ;;  %v9877_v24 = vunpack.c.l.s8.bf16 %v9433_v25  ;;  %v9881_v32 = vunpack.c.h.s8.bf16 %v9433_v25 }
0x1779   : > { %10581 = vmatprep.subr.bf16.mxu0 %v9845_v42  ;;  %v9430_v42 = vld [vmem:[%s15544_s22 + $0x5e0] sm:$0xff]  ;;  %v9901_v49 = vunpack.c.l.s8.bf16 %v9445_v47 }
0x177b   : > { %10238 = vmatpush1.bf16.msra.mxu1 %v9842_v8  ;;  %v9432_v8 = vld [vmem:[%s15544_s22 + $0x5f0] sm:$0xff] }
0x177c   : > { %10582 = vmatpush1.bf16.msra.mxu0 %v9844_v38  ;;  %10239 = vmatprep.subr.bf16.mxu1 %v9847_v37  ;;  %v9874_v38 = vunpack.c.l.s8.bf16 %v9430_v42  ;;  %v9876_v37 = vunpack.c.l.s8.bf16 %v9432_v8 }
0x177d   : > { %10583 = vmatprep.subr.bf16.mxu0 %v9849_v58  ;;  %v9879_v58 = vunpack.c.h.s8.bf16 %v9431_v16  ;;  %v9449_v16 = vld [vmem:[%s15544_s22 + $0x678] sm:$0xff] }
0x177f   : > { %10240 = vmatpush1.bf16.msra.mxu1 %v9846_v26  ;;  %v9437_v26 = vld [vmem:[%s15544_s22 + $0x618] sm:$0xff] }
0x1780   : > { %10584 = vmatpush1.bf16.msra.mxu0 %v9848_v23  ;;  %10241 = vmatprep.subr.bf16.mxu1 %v9851_v2  ;;  %v9878_v23 = vunpack.c.h.s8.bf16 %v9430_v42  ;;  %v9880_v2 = vunpack.c.h.s8.bf16 %v9432_v8  ;;  %v9885_v46 = vunpack.c.l.s8.bf16 %v9437_v26  ;;  %v9889_v27 = vunpack.c.h.s8.bf16 %v9437_v26 }
0x1781   : > { %10585 = vmatprep.subr.bf16.mxu0 %v9853_v6  ;;  %v9434_v6 = vld [vmem:[%s15544_s22 + $0x600] sm:$0xff]  ;;  %v9909_v42 = vunpack.c.l.s8.bf16 %v9449_v16 }
0x1783   : > { %10242 = vmatpush1.bf16.msra.mxu1 %v9850_v17  ;;  %v9436_v17 = vld [vmem:[%s15544_s22 + $0x610] sm:$0xff] }
0x1784   : > { %10586 = vmatpush1.bf16.msra.mxu0 %v9852_v39  ;;  %10243 = vmatprep.subr.bf16.mxu1 %v9855_v44  ;;  %v9882_v39 = vunpack.c.l.s8.bf16 %v9434_v6  ;;  %v9884_v44 = vunpack.c.l.s8.bf16 %v9436_v17 }
0x1785   : > { %10587 = vmatprep.subr.bf16.mxu0 %v9857_v62  ;;  %v9887_v62 = vunpack.c.h.s8.bf16 %v9435_v31  ;;  %v9453_v31 = vld [vmem:[%s15544_s22 + $0x698] sm:$0xff] }
0x1787   : > { %10244 = vmatpush1.bf16.msra.mxu1 %v9854_v4  ;;  %v9441_v4 = vld [vmem:[%s15544_s22 + $0x638] sm:$0xff] }
0x1788   : > { %10588 = vmatpush1.bf16.msra.mxu0 %v9856_v21  ;;  %10245 = vmatprep.subr.bf16.mxu1 %v9859_v33  ;;  %v9886_v21 = vunpack.c.h.s8.bf16 %v9434_v6  ;;  %v9888_v33 = vunpack.c.h.s8.bf16 %v9436_v17  ;;  %v9893_v9 = vunpack.c.l.s8.bf16 %v9441_v4  ;;  %v9917_v6 = vunpack.c.l.s8.bf16 %v9453_v31 }
0x1789   : > { %10589 = vmatprep.subr.bf16.mxu0 %v9861_v53  ;;  %v9438_v53 = vld [vmem:[%s15544_s22 + $0x620] sm:$0xff] }
0x178b   : > { %10246 = vmatpush1.bf16.msra.mxu1 %v9858_v43  ;;  %v9440_v43 = vld [vmem:[%s15544_s22 + $0x630] sm:$0xff] }
0x178c   : > { %10590 = vmatpush1.bf16.msra.mxu0 %v9860_v45  ;;  %10247 = vmatprep.subr.bf16.mxu1 %v9863_v28  ;;  %v9890_v45 = vunpack.c.l.s8.bf16 %v9438_v53  ;;  %v9895_v28 = vunpack.c.h.s8.bf16 %v9439_v15  ;;  %v9455_v15 = vld [vmem:[%s15544_s22 + $0x6a8] sm:$0xff] }
0x178d   : > { %10591 = vmatprep.subr.bf16.mxu0 %v9865_v35  ;;  %v9897_v35 = vunpack.c.h.s8.bf16 %v9441_v4 }
0x178f   : > { %10248 = vmatpush1.bf16.msra.mxu1 %v9862_v55  ;;  %v9894_v55 = vunpack.c.h.s8.bf16 %v9438_v53 }
0x1790   : > { %10592 = vmatpush1.bf16.msra.mxu0 %v9864_v41  ;;  %10249 = vmatprep.subr.bf16.mxu1 %v9867_v50  ;;  %v9899_v41 = vunpack.c.l.s8.bf16 %v9443_v18  ;;  %v9442_v50 = vld [vmem:[%s15544_s22 + $0x640] sm:$0xff] }
0x1791   : > { %10593 = vmatprep.subr.bf16.mxu0 %v9869_v63  ;;  %v9444_v63 = vld [vmem:[%s15544_s22 + $0x650] sm:$0xff]  ;;  %v9898_v30 = vunpack.c.l.s8.bf16 %v9442_v50  ;;  %v9902_v25 = vunpack.c.h.s8.bf16 %v9442_v50 }
0x1793   : > { %10250 = vmatpush1.bf16.msra.mxu1 %v9866_v36  ;;  %v9900_v36 = vunpack.c.l.s8.bf16 %v9444_v63 }
0x1794   : > { %10594 = vmatpush1.bf16.msra.mxu0 %v9868_v7  ;;  %10251 = vmatprep.subr.bf16.mxu1 %v9871_v59  ;;  %v9903_v7 = vunpack.c.h.s8.bf16 %v9443_v18  ;;  %v9905_v59 = vunpack.c.h.s8.bf16 %v9445_v47  ;;  %v9461_v18 = vld [vmem:[%s15544_s22 + $0x6d8] sm:$0xff] }
0x1795   : > { %10595 = vmatprep.subr.bf16.mxu0 %v9873_v57  ;;  %v9447_v57 = vld [vmem:[%s15544_s22 + $0x668] sm:$0xff]  ;;  %v9933_v50 = vunpack.c.l.s8.bf16 %v9461_v18 }
0x1797   : > { %10252 = vmatpush1.bf16.msra.mxu1 %v9870_v48  ;;  %v9904_v48 = vunpack.c.h.s8.bf16 %v9444_v63 }
0x1798   : > { %10596 = vmatpush1.bf16.msra.mxu0 %v9872_v60  ;;  %10253 = vmatprep.subr.bf16.mxu1 %v9875_v54  ;;  %v9907_v60 = vunpack.c.l.s8.bf16 %v9447_v57  ;;  %v9446_v54 = vld [vmem:[%s15544_s22 + $0x660] sm:$0xff] }
0x1799   : > { %10597 = vmatprep.subr.bf16.mxu0 %v9877_v24  ;;  %v9448_v24 = vld [vmem:[%s15544_s22 + $0x670] sm:$0xff]  ;;  %v9906_v8 = vunpack.c.l.s8.bf16 %v9446_v54  ;;  %v9910_v26 = vunpack.c.h.s8.bf16 %v9446_v54 }
0x179b   : > { %10254 = vmatpush1.bf16.msra.mxu1 %v9874_v38  ;;  %v9908_v38 = vunpack.c.l.s8.bf16 %v9448_v24 }
0x179c   : > { %10598 = vmatpush1.bf16.msra.mxu0 %v9876_v37  ;;  %10255 = vmatprep.subr.bf16.mxu1 %v9879_v58  ;;  %v9911_v37 = vunpack.c.h.s8.bf16 %v9447_v57  ;;  %v9913_v58 = vunpack.c.h.s8.bf16 %v9449_v16  ;;  %v9465_v57 = vld [vmem:[%s15544_s22 + $0x6f8] sm:$0xff] }
0x179d   : > { %10599 = vmatprep.subr.bf16.mxu0 %v9881_v32  ;;  %v9451_v32 = vld [vmem:[%s15544_s22 + $0x688] sm:$0xff]  ;;  %v9941_v54 = vunpack.c.l.s8.bf16 %v9465_v57 }
0x179f   : > { %10256 = vmatpush1.bf16.msra.mxu1 %v9878_v23  ;;  %v9912_v23 = vunpack.c.h.s8.bf16 %v9448_v24 }
0x17a0   : > { %10600 = vmatpush1.bf16.msra.mxu0 %v9880_v2  ;;  %10268 = vmatprep.subr.bf16.mxu1 %v9883_v52  ;;  %v9915_v2 = vunpack.c.l.s8.bf16 %v9451_v32  ;;  %v9450_v52 = vld [vmem:[%s15544_s22 + $0x680] sm:$0xff] }
0x17a1   : > { %10612 = vmatprep.subr.bf16.mxu0 %v9885_v46  ;;  %v9452_v46 = vld [vmem:[%s15544_s22 + $0x690] sm:$0xff]  ;;  %v9914_v17 = vunpack.c.l.s8.bf16 %v9450_v52  ;;  %v9918_v4 = vunpack.c.h.s8.bf16 %v9450_v52 }
0x17a2   : > { %10258 = vmatmul.mubr.bf16.vlgmr.msra.gmra.mrb[60].mxu1 %v17087_v56 }
0x17a3   : > { %10602 = vmatmul.mubr.bf16.vlgmr.msra.gmra.mrb[36].mxu0 %v17087_v56  ;;  %10269 = vmatpush1.bf16.msra.mxu1 %v9882_v39  ;;  %v9892_v56 = vunpack.c.l.s8.bf16 %v9440_v43  ;;  %v9916_v39 = vunpack.c.l.s8.bf16 %v9452_v46 }
0x17a4   : > { %10300 = vmatprep.mubr.bf16.mxu1 %v17237_v51  ;;  %10613 = vmatpush1.bf16.msra.mxu0 %v9884_v44  ;;  %v9919_v44 = vunpack.c.h.s8.bf16 %v9451_v32  ;;  %v9469_v32 = vld [vmem:[%s15544_s22 + $0x718] sm:$0xff] }
0x17a5   : > { %10644 = vmatprep.mubr.bf16.mxu0 %v17237_v51  ;;  %10270 = vmatprep.subr.bf16.mxu1 %v9887_v62  ;;  %v9896_v51 = vunpack.c.h.s8.bf16 %v9440_v43  ;;  %v9921_v62 = vunpack.c.h.s8.bf16 %v9453_v31  ;;  %v9949_v52 = vunpack.c.l.s8.bf16 %v9469_v32 }
0x17a6   : > { %10614 = vmatprep.subr.bf16.mxu0 %v9889_v27  ;;  %v9457_v27 = vld [vmem:[%s15544_s22 + $0x6b8] sm:$0xff] }
0x17a7   : > { %10271 = vmatpush1.bf16.msra.mxu1 %v9886_v21  ;;  %v9920_v21 = vunpack.c.h.s8.bf16 %v9452_v46  ;;  %v9925_v53 = vunpack.c.l.s8.bf16 %v9457_v27 }
0x17a8   : > { %10615 = vmatpush1.bf16.msra.mxu0 %v9888_v33  ;;  %10272 = vmatprep.subr.bf16.mxu1 %v9891_v61  ;;  %v9923_v33 = vunpack.c.l.s8.bf16 %v9455_v15  ;;  %v9454_v61 = vld [vmem:[%s15544_s22 + $0x6a0] sm:$0xff] }
0x17a9   : > { %10616 = vmatprep.subr.bf16.mxu0 %v9893_v9  ;;  %v9456_v9 = vld [vmem:[%s15544_s22 + $0x6b0] sm:$0xff]  ;;  %v9922_v43 = vunpack.c.l.s8.bf16 %v9454_v61  ;;  %v9926_v47 = vunpack.c.h.s8.bf16 %v9454_v61 }
0x17ab   : > { %10273 = vmatpush1.bf16.msra.mxu1 %v9890_v45  ;;  %v9924_v45 = vunpack.c.l.s8.bf16 %v9456_v9 }
0x17ac   : > { %10617 = vmatpush1.bf16.msra.mxu0 %v9892_v56  ;;  %10274 = vmatprep.subr.bf16.mxu1 %v9895_v28  ;;  %v9927_v56 = vunpack.c.h.s8.bf16 %v9455_v15  ;;  %v9929_v28 = vunpack.c.h.s8.bf16 %v9457_v27  ;;  %v9473_v15 = vld [vmem:[%s15544_s22 + $0x738] sm:$0xff] }
0x17ad   : > { %10618 = vmatprep.subr.bf16.mxu0 %v9897_v35  ;;  %v9459_v35 = vld [vmem:[%s15544_s22 + $0x6c8] sm:$0xff]  ;;  %v9957_v61 = vunpack.c.l.s8.bf16 %v9473_v15 }
0x17af   : > { %10275 = vmatpush1.bf16.msra.mxu1 %v9894_v55  ;;  %v9928_v55 = vunpack.c.h.s8.bf16 %v9456_v9 }
0x17b0   : > { %10619 = vmatpush1.bf16.msra.mxu0 %v9896_v51  ;;  %10276 = vmatprep.subr.bf16.mxu1 %v9899_v41  ;;  %v9931_v51 = vunpack.c.l.s8.bf16 %v9459_v35  ;;  %v9458_v41 = vld [vmem:[%s15544_s22 + $0x6c0] sm:$0xff] }
0x17b1   : > { %10620 = vmatprep.subr.bf16.mxu0 %v9901_v49  ;;  %v9460_v49 = vld [vmem:[%s15544_s22 + $0x6d0] sm:$0xff]  ;;  %v9930_v63 = vunpack.c.l.s8.bf16 %v9458_v41  ;;  %v9934_v16 = vunpack.c.h.s8.bf16 %v9458_v41 }
0x17b3   : > { %10277 = vmatpush1.bf16.msra.mxu1 %v9898_v30  ;;  %v9932_v30 = vunpack.c.l.s8.bf16 %v9460_v49 }
0x17b4   : > { %10621 = vmatpush1.bf16.msra.mxu0 %v9900_v36  ;;  %10278 = vmatprep.subr.bf16.mxu1 %v9903_v7  ;;  %v9935_v36 = vunpack.c.h.s8.bf16 %v9459_v35  ;;  %v9937_v7 = vunpack.c.h.s8.bf16 %v9461_v18 }
0x17b5   : > { %10622 = vmatprep.subr.bf16.mxu0 %v9905_v59  ;;  %v9463_v59 = vld [vmem:[%s15544_s22 + $0x6e8] sm:$0xff] }
0x17b7   : > { %10279 = vmatpush1.bf16.msra.mxu1 %v9902_v25  ;;  %v9936_v25 = vunpack.c.h.s8.bf16 %v9460_v49 }
0x17b8   : > { %10623 = vmatpush1.bf16.msra.mxu0 %v9904_v48  ;;  %10280 = vmatprep.subr.bf16.mxu1 %v9907_v60  ;;  %v9939_v48 = vunpack.c.l.s8.bf16 %v9463_v59  ;;  %v9462_v60 = vld [vmem:[%s15544_s22 + $0x6e0] sm:$0xff] }
0x17b9   : > { %10624 = vmatprep.subr.bf16.mxu0 %v9909_v42  ;;  %v9464_v42 = vld [vmem:[%s15544_s22 + $0x6f0] sm:$0xff]  ;;  %v9938_v24 = vunpack.c.l.s8.bf16 %v9462_v60  ;;  %v9942_v31 = vunpack.c.h.s8.bf16 %v9462_v60 }
0x17bb   : > { %10281 = vmatpush1.bf16.msra.mxu1 %v9906_v8  ;;  %v9940_v8 = vunpack.c.l.s8.bf16 %v9464_v42 }
0x17bc   : > { %10625 = vmatpush1.bf16.msra.mxu0 %v9908_v38  ;;  %10282 = vmatprep.subr.bf16.mxu1 %v9911_v37  ;;  %v9943_v38 = vunpack.c.h.s8.bf16 %v9463_v59  ;;  %v9945_v37 = vunpack.c.h.s8.bf16 %v9465_v57 }
0x17bd   : > { %10626 = vmatprep.subr.bf16.mxu0 %v9913_v58  ;;  %v9467_v58 = vld [vmem:[%s15544_s22 + $0x708] sm:$0xff] }
0x17bf   : > { %10283 = vmatpush1.bf16.msra.mxu1 %v9910_v26  ;;  %v9944_v26 = vunpack.c.h.s8.bf16 %v9464_v42 }
0x17c0   : > { %10627 = vmatpush1.bf16.msra.mxu0 %v9912_v23  ;;  %10284 = vmatprep.subr.bf16.mxu1 %v9915_v2  ;;  %v9947_v23 = vunpack.c.l.s8.bf16 %v9467_v58  ;;  %v9466_v2 = vld [vmem:[%s15544_s22 + $0x700] sm:$0xff] }
0x17c1   : > { %10628 = vmatprep.subr.bf16.mxu0 %v9917_v6  ;;  %v9468_v6 = vld [vmem:[%s15544_s22 + $0x710] sm:$0xff]  ;;  %v9946_v46 = vunpack.c.l.s8.bf16 %v9466_v2  ;;  %v9950_v27 = vunpack.c.h.s8.bf16 %v9466_v2 }
0x17c3   : > { %10285 = vmatpush1.bf16.msra.mxu1 %v9914_v17  ;;  %v9948_v17 = vunpack.c.l.s8.bf16 %v9468_v6 }
0x17c4   : > { %10629 = vmatpush1.bf16.msra.mxu0 %v9916_v39  ;;  %10286 = vmatprep.subr.bf16.mxu1 %v9919_v44  ;;  %v9951_v39 = vunpack.c.h.s8.bf16 %v9467_v58  ;;  %v9471_v44 = vld [vmem:[%s15544_s22 + $0x728] sm:$0xff] }
0x17c5   : > { %10630 = vmatprep.subr.bf16.mxu0 %v9921_v62  ;;  %v9953_v62 = vunpack.c.h.s8.bf16 %v9469_v32 }
0x17c7   : > { %10287 = vmatpush1.bf16.msra.mxu1 %v9918_v4  ;;  %v9952_v4 = vunpack.c.h.s8.bf16 %v9468_v6 }
0x17c8   : > { %10631 = vmatpush1.bf16.msra.mxu0 %v9920_v21  ;;  %10288 = vmatprep.subr.bf16.mxu1 %v9923_v33  ;;  %v9955_v21 = vunpack.c.l.s8.bf16 %v9471_v44  ;;  %v9470_v33 = vld [vmem:[%s15544_s22 + $0x720] sm:$0xff] }
0x17c9   : > { %10632 = vmatprep.subr.bf16.mxu0 %v9925_v53  ;;  %v9472_v53 = vld [vmem:[%s15544_s22 + $0x730] sm:$0xff]  ;;  %v9954_v9 = vunpack.c.l.s8.bf16 %v9470_v33  ;;  %v9958_v35 = vunpack.c.h.s8.bf16 %v9470_v33 }
0x17cb   : > { %10289 = vmatpush1.bf16.msra.mxu1 %v9922_v43  ;;  %v9959_v43 = vunpack.c.h.s8.bf16 %v9471_v44 }
0x17cc   : > { %10633 = vmatpush1.bf16.msra.mxu0 %v9924_v45  ;;  %10290 = vmatprep.subr.bf16.mxu1 %v9927_v56  ;;  %v9961_v45 = vunpack.c.h.s8.bf16 %v9473_v15  ;;  %v9475_v56 = vld [vmem:[%s15544_s22 + $0x748] sm:$0xff] }
0x17cd   : > { %10634 = vmatprep.subr.bf16.mxu0 %v9929_v28  ;;  %v9477_v28 = vld [vmem:[%s15544_s22 + $0x758] sm:$0xff]  ;;  %v9963_v18 = vunpack.c.l.s8.bf16 %v9475_v56  ;;  %v9967_v49 = vunpack.c.h.s8.bf16 %v9475_v56 }
0x17cf   : > { %10291 = vmatpush1.bf16.msra.mxu1 %v9926_v47  ;;  %v9474_v47 = vld [vmem:[%s15544_s22 + $0x740] sm:$0xff] }
0x17d0   : > { %10635 = vmatpush1.bf16.msra.mxu0 %v9928_v55  ;;  %10292 = vmatprep.subr.bf16.mxu1 %v9931_v51  ;;  %v9965_v55 = vunpack.c.l.s8.bf16 %v9477_v28  ;;  %v9476_v51 = vld [vmem:[%s15544_s22 + $0x750] sm:$0xff]  ;;  %v9962_v41 = vunpack.c.l.s8.bf16 %v9474_v47 }
0x17d1   : > { %10636 = vmatprep.subr.bf16.mxu0 %v9933_v50  ;;  %v9964_v50 = vunpack.c.l.s8.bf16 %v9476_v51  ;;  %v9968_v59 = vunpack.c.h.s8.bf16 %v9476_v51 }
0x17d3   : > { %10293 = vmatpush1.bf16.msra.mxu1 %v9930_v63  ;;  %v9969_v63 = vunpack.c.h.s8.bf16 %v9477_v28 }
0x17d4   : > { %10637 = vmatpush1.bf16.msra.mxu0 %v9932_v30  ;;  %10294 = vmatprep.subr.bf16.mxu1 %v9935_v36  ;;  %v9479_v30 = vld [vmem:[%s15544_s22 + $0x768] sm:$0xff]  ;;  %v9481_v36 = vld [vmem:[%s15544_s22 + $0x778] sm:$0xff] }
0x17d5   : > { %10638 = vmatprep.subr.bf16.mxu0 %v9937_v7  ;;  %v9966_v7 = vunpack.c.h.s8.bf16 %v9474_v47  ;;  %v9971_v57 = vunpack.c.l.s8.bf16 %v9479_v30  ;;  %v9975_v42 = vunpack.c.h.s8.bf16 %v9479_v30 }
0x17d7   : > { %10295 = vmatpush1.bf16.msra.mxu1 %v9934_v16  ;;  %v9478_v16 = vld [vmem:[%s15544_s22 + $0x760] sm:$0xff] }
0x17d8   : > { %10639 = vmatpush1.bf16.msra.mxu0 %v9936_v25  ;;  %10296 = vmatprep.subr.bf16.mxu1 %v9939_v48  ;;  %v9973_v25 = vunpack.c.l.s8.bf16 %v9481_v36  ;;  %v9480_v48 = vld [vmem:[%s15544_s22 + $0x770] sm:$0xff]  ;;  %v9970_v60 = vunpack.c.l.s8.bf16 %v9478_v16 }
0x17d9   : > { %10640 = vmatprep.subr.bf16.mxu0 %v9941_v54  ;;  %v9972_v54 = vunpack.c.l.s8.bf16 %v9480_v48  ;;  %v9976_v58 = vunpack.c.h.s8.bf16 %v9480_v48 }
0x17db   : > { %10297 = vmatpush1.bf16.msra.mxu1 %v9938_v24  ;;  %v9977_v24 = vunpack.c.h.s8.bf16 %v9481_v36 }
0x17dc   : > { %10641 = vmatpush1.bf16.msra.mxu0 %v9940_v8  ;;  %10298 = vmatprep.subr.bf16.mxu1 %v9943_v38  ;;  %v9483_v8 = vld [vmem:[%s15544_s22 + $0x788] sm:$0xff]  ;;  %v9485_v38 = vld [vmem:[%s15544_s22 + $0x798] sm:$0xff] }
0x17dd   : > { %10642 = vmatprep.subr.bf16.mxu0 %v9945_v37  ;;  %v9974_v37 = vunpack.c.h.s8.bf16 %v9478_v16  ;;  %v9979_v32 = vunpack.c.l.s8.bf16 %v9483_v8  ;;  %v9983_v6 = vunpack.c.h.s8.bf16 %v9483_v8 }
0x17df   : > { %10299 = vmatpush1.bf16.msra.mxu1 %v9942_v31  ;;  %v9482_v31 = vld [vmem:[%s15544_s22 + $0x780] sm:$0xff] }
0x17e0   : > { %10643 = vmatpush1.bf16.msra.mxu0 %v9944_v26  ;;  %10311 = vmatprep.subr.bf16.mxu1 %v9947_v23  ;;  %v9981_v26 = vunpack.c.l.s8.bf16 %v9485_v38  ;;  %v9484_v23 = vld [vmem:[%s15544_s22 + $0x790] sm:$0xff]  ;;  %v9978_v2 = vunpack.c.l.s8.bf16 %v9482_v31  ;;  %v9982_v44 = vunpack.c.h.s8.bf16 %v9482_v31 }
0x17e1   : > { %10655 = vmatprep.subr.bf16.mxu0 %v9949_v52  ;;  %v9980_v52 = vunpack.c.l.s8.bf16 %v9484_v23 }
0x17e2   : > { %10301 = vmatmul.mubr.bf16.vlgmr.msra.gmra.mrb[60].mxu1 %v17233_v14 }
0x17e3   : > { %10645 = vmatmul.mubr.bf16.vlgmr.msra.gmra.mrb[36].mxu0 %v17233_v14  ;;  %10312 = vmatpush1.bf16.msra.mxu1 %v9946_v46  ;;  %v9956_v14 = vunpack.c.l.s8.bf16 %v9472_v53  ;;  %v9985_v46 = vunpack.c.h.s8.bf16 %v9485_v38  ;;  %v10736_v38 = vld [vmem:[%s17650_s6] sm:$0xf] }
0x17e4   : > { %10343 = vmatprep.mubr.bf16.mxu1 %v17247_v3  ;;  %10656 = vmatpush1.bf16.msra.mxu0 %v9948_v17  ;;  %v9487_v17 = vld [vmem:[%s15544_s22 + $0x7a8] sm:$0xff] }
0x17e5   : > { %10687 = vmatprep.mubr.bf16.mxu0 %v17247_v3  ;;  %10313 = vmatprep.subr.bf16.mxu1 %v9951_v39  ;;  %v9960_v3 = vunpack.c.h.s8.bf16 %v9472_v53  ;;  %v9489_v39 = vld [vmem:[%s15544_s22 + $0x7b8] sm:$0xff]  ;;  %v9987_v15 = vunpack.c.l.s8.bf16 %v9487_v17  ;;  %v9991_v53 = vunpack.c.h.s8.bf16 %v9487_v17  ;;  %v10745_v17 = vrot.slane %v10736_v38, %v15717_v12 }
0x17e6   : > { %10657 = vmatprep.subr.bf16.mxu0 %v9953_v62  ;;  %v9984_v62 = vunpack.c.h.s8.bf16 %v9484_v23  ;;  %v10741_v23 = vrot.slane %v10736_v38, %v15720_v13 }
0x17e7   : > { %10314 = vmatpush1.bf16.msra.mxu1 %v9950_v27  ;;  %v9486_v27 = vld [vmem:[%s15544_s22 + $0x7a0] sm:$0xff] }
0x17e8   : > { %10658 = vmatpush1.bf16.msra.mxu0 %v9952_v4  ;;  %10315 = vmatprep.subr.bf16.mxu1 %v9955_v21  ;;  %v9989_v4 = vunpack.c.l.s8.bf16 %v9489_v39  ;;  %v9488_v21 = vld [vmem:[%s15544_s22 + $0x7b0] sm:$0xff]  ;;  %v9986_v33 = vunpack.c.l.s8.bf16 %v9486_v27 }
0x17e9   : > { %10659 = vmatprep.subr.bf16.mxu0 %v9957_v61  ;;  %v9988_v61 = vunpack.c.l.s8.bf16 %v9488_v21  ;;  %v9992_v56 = vunpack.c.h.s8.bf16 %v9488_v21 }
0x17eb   : > { %10316 = vmatpush1.bf16.msra.mxu1 %v9954_v9  ;;  %v9993_v9 = vunpack.c.h.s8.bf16 %v9489_v39 }
0x17ec   : > { %10660 = vmatpush1.bf16.msra.mxu0 %v9956_v14  ;;  %10317 = vmatprep.subr.bf16.mxu1 %v9959_v43  ;;  %v9491_v14 = vld [vmem:[%s15544_s22 + $0x7c8] sm:$0xff]  ;;  %v9493_v43 = vld [vmem:[%s15544_s22 + $0x7d8] sm:$0xff] }
0x17ed   : > { %10661 = vmatprep.subr.bf16.mxu0 %v9961_v45  ;;  %v9990_v45 = vunpack.c.h.s8.bf16 %v9486_v27  ;;  %v9995_v28 = vunpack.c.l.s8.bf16 %v9491_v14  ;;  %v9999_v51 = vunpack.c.h.s8.bf16 %v9491_v14  ;;  %v10753_v27 = vrot.slane %v10736_v38, %v15727_v22 }
0x17ef   : > { %10318 = vmatpush1.bf16.msra.mxu1 %v9958_v35  ;;  %v9490_v35 = vld [vmem:[%s15544_s22 + $0x7c0] sm:$0xff] }
0x17f0   : > { %10662 = vmatpush1.bf16.msra.mxu0 %v9960_v3  ;;  %10319 = vmatprep.subr.bf16.mxu1 %v9963_v18  ;;  %v9997_v3 = vunpack.c.l.s8.bf16 %v9493_v43  ;;  %v9492_v18 = vld [vmem:[%s15544_s22 + $0x7d0] sm:$0xff]  ;;  %v9994_v47 = vunpack.c.l.s8.bf16 %v9490_v35 }
0x17f1   : > { %10663 = vmatprep.subr.bf16.mxu0 %v9965_v55  ;;  %v9996_v55 = vunpack.c.l.s8.bf16 %v9492_v18  ;;  %v10000_v30 = vunpack.c.h.s8.bf16 %v9492_v18 }
0x17f3   : > { %10320 = vmatpush1.bf16.msra.mxu1 %v9962_v41  ;;  %v10001_v41 = vunpack.c.h.s8.bf16 %v9493_v43 }
0x17f4   : > { %10664 = vmatpush1.bf16.msra.mxu0 %v9964_v50  ;;  %10321 = vmatprep.subr.bf16.mxu1 %v9967_v49  ;;  %v9495_v50 = vld [vmem:[%s15544_s22 + $0x7e8] sm:$0xff]  ;;  %v9497_v49 = vld [vmem:[%s15544_s22 + $0x7f8] sm:$0xff] }
0x17f5   : > { %10665 = vmatprep.subr.bf16.mxu0 %v9969_v63  ;;  %v9998_v63 = vunpack.c.h.s8.bf16 %v9490_v35  ;;  %v10003_v36 = vunpack.c.l.s8.bf16 %v9495_v50  ;;  %v10007_v48 = vunpack.c.h.s8.bf16 %v9495_v50 }
0x17f7   : > { %10322 = vmatpush1.bf16.msra.mxu1 %v9966_v7  ;;  %v9494_v7 = vld [vmem:[%s15544_s22 + $0x7e0] sm:$0xff] }
0x17f8   : > { %10666 = vmatpush1.bf16.msra.mxu0 %v9968_v59  ;;  %10323 = vmatprep.subr.bf16.mxu1 %v9971_v57  ;;  %v10005_v59 = vunpack.c.l.s8.bf16 %v9497_v49  ;;  %v9496_v57 = vld [vmem:[%s15544_s22 + $0x7f0] sm:$0xff]  ;;  %v10002_v16 = vunpack.c.l.s8.bf16 %v9494_v7 }
0x17f9   : > { %10667 = vmatprep.subr.bf16.mxu0 %v9973_v25  ;;  %v10004_v25 = vunpack.c.l.s8.bf16 %v9496_v57 }
0x17fb   : > { %10324 = vmatpush1.bf16.msra.mxu1 %v9970_v60  ;;  %v10009_v60 = vunpack.c.h.s8.bf16 %v9497_v49 }
0x17fc   : > { %10668 = vmatpush1.bf16.msra.mxu0 %v9972_v54  ;;  %10325 = vmatprep.subr.bf16.mxu1 %v9975_v42  ;;  %v10006_v54 = vunpack.c.h.s8.bf16 %v9494_v7  ;;  %v10008_v42 = vunpack.c.h.s8.bf16 %v9496_v57  ;;  %v13729_v7 = vld [vmem:[#allocation32 + $0x80] sm:$0xff] (!%p12306_p12)  }
0x17fd   : > { %10669 = vmatprep.subr.bf16.mxu0 %v9977_v24  ;;  %v10698_v24 = vld [vmem:[%s17649_s2] sm:$0xf] }
0x17fe   : > { %v10703_v8 = vrot.slane %v10698_v24, %v15720_v13 }
0x17ff   : > { %10326 = vmatpush1.bf16.msra.mxu1 %v9974_v37  ;;  %v10711_v37 = vrot.slane %v10698_v24, %v15712_v10 }
0x1800   : > { %10670 = vmatpush1.bf16.msra.mxu0 %v9976_v58  ;;  %10327 = vmatprep.subr.bf16.mxu1 %v9979_v32  ;;  %v10707_v58 = vrot.slane %v10698_v24, %v15717_v12  ;;  %v10715_v32 = vrot.slane %v10698_v24, %v15727_v22 }
0x1801   : > { %10671 = vmatprep.subr.bf16.mxu0 %v9981_v26 }
0x1803   : > { %10328 = vmatpush1.bf16.msra.mxu1 %v9978_v2 }
0x1804   : > { %10672 = vmatpush1.bf16.msra.mxu0 %v9980_v52  ;;  %10329 = vmatprep.subr.bf16.mxu1 %v9983_v6 }
0x1805   : > { %10673 = vmatprep.subr.bf16.mxu0 %v9985_v46 }
0x1807   : > { %10330 = vmatpush1.bf16.msra.mxu1 %v9982_v44 }
0x1808   : > { %10674 = vmatpush1.bf16.msra.mxu0 %v9984_v62  ;;  %10331 = vmatprep.subr.bf16.mxu1 %v9987_v15 }
0x1809   : > { %10675 = vmatprep.subr.bf16.mxu0 %v9989_v4 }
0x180b   : > { %10332 = vmatpush1.bf16.msra.mxu1 %v9986_v33 }
0x180c   : > { %10676 = vmatpush1.bf16.msra.mxu0 %v9988_v61  ;;  %10333 = vmatprep.subr.bf16.mxu1 %v9991_v53 }
0x180d   : > { %10677 = vmatprep.subr.bf16.mxu0 %v9993_v9 }
0x180f   : > { %10334 = vmatpush1.bf16.msra.mxu1 %v9990_v45 }
0x1810   : > { %10678 = vmatpush1.bf16.msra.mxu0 %v9992_v56  ;;  %10335 = vmatprep.subr.bf16.mxu1 %v9995_v28 }
0x1811   : > { %10679 = vmatprep.subr.bf16.mxu0 %v9997_v3 }
0x1813   : > { %10336 = vmatpush1.bf16.msra.mxu1 %v9994_v47 }
0x1814   : > { %10680 = vmatpush1.bf16.msra.mxu0 %v9996_v55  ;;  %10337 = vmatprep.subr.bf16.mxu1 %v9999_v51 }
0x1815   : > { %10681 = vmatprep.subr.bf16.mxu0 %v10001_v41 }
0x1817   : > { %10338 = vmatpush1.bf16.msra.mxu1 %v9998_v63  ;;  %v13726_v63 = vld [vmem:[#allocation32 + $0x40] sm:$0xff] (!%p12306_p12)  }
0x1818   : > { %10682 = vmatpush1.bf16.msra.mxu0 %v10000_v30  ;;  %10339 = vmatprep.subr.bf16.mxu1 %v10003_v36  ;;  %v13727_v30 = vld [vmem:[#allocation32 + $0xc0] sm:$0xff] (!%p12306_p12)  }
0x1819   : > { %10683 = vmatprep.subr.bf16.mxu0 %v10005_v59  ;;  %v13728_v36 = vld [vmem:[#allocation32] sm:$0xff] (!%p12306_p12)  }
0x181b   : > { %10340 = vmatpush1.bf16.msra.mxu1 %v10002_v16 }
0x181c   : > { %10684 = vmatpush1.bf16.msra.mxu0 %v10004_v25  ;;  %10341 = vmatprep.subr.bf16.mxu1 %v10007_v48 }
0x181d   : > { %10685 = vmatprep.subr.bf16.mxu0 %v10009_v60 }
0x181f   : > { %10342 = vmatpush1.bf16.msra.mxu1 %v10006_v54 }
0x1820   : > { %10686 = vmatpush1.bf16.msra.mxu0 %v10008_v42  ;;  %12411 = vmatprep.subr.bf16.mxu1 (!%p12306_p12), %v13727_v30 }
0x1821   : > { %12389 = vmatprep.subr.bf16.mxu0 (!%p12306_p12), %v13726_v63 }
0x1822   : > { %10344 = vmatmul.mubr.bf16.vlgmr.msra.gmra.mrb[60].mxu1 %v17245_v40 }
0x1823   : > { %10688 = vmatmul.mubr.bf16.vlgmr.msra.gmra.mrb[36].mxu0 %v17245_v40  ;;  %v10749_v40 = vrot.slane %v10736_v38, %v15712_v10  ;;  %12412 = vmatpush3.bf16.msra.mxu1 (!%p12306_p12), %v13729_v7 }
0x1824   : > { %12390 = vmatpush3.bf16.msra.mxu0 (!%p12306_p12), %v13728_v36 }
0x18f5   : > { %v10345_v31 = vpop.f32.mrb[60].mxu1 }
0x18f6   : > { %v10720_v26 = vmul.f32 %v10703_v8, %v10345_v31  ;;  %v10689_v2 = vpop.f32.mrb[36].mxu0  ;;  %v10347_v52 = vpop.f32.mrb[61].mxu1 }
0x18f7   : > { %v10722_v6 = vmul.f32 %v10711_v37, %v10689_v2  ;;  %v10721_v46 = vmul.f32 %v10707_v58, %v10347_v52  ;;  %v10691_v39 = vpop.f32.mrb[37].mxu0  ;;  %v10349_v44 = vpop.f32.mrb[62].mxu1 }
0x18f8   : > { %v10728_v62 = vadd.f32 %v10720_v26, %v16331_v0  ;;  %v10723_v15 = vmul.f32 %v10715_v32, %v10691_v39  ;;  %v10724_v4 = vmul.f32 %v10703_v8, %v10349_v44  ;;  %v10693_v21 = vpop.f32.mrb[38].mxu0  ;;  %v10351_v33 = vpop.f32.mrb[63].mxu1 }
0x18f9   : > { %v10730_v61 = vadd.f32 %v10722_v6, %v16339_v20  ;;  %v10729_v53 = vadd.f32 %v10721_v46, %v16333_v1  ;;  %v10726_v9 = vmul.f32 %v10711_v37, %v10693_v21  ;;  %v10725_v14 = vmul.f32 %v10707_v58, %v10351_v33  ;;  %v10695_v43 = vpop.f32.mrb[39].mxu0  ;;  %v13733_v21 = vld [vmem:[#allocation32 + $0x88] sm:$0xff] (!%p12306_p12)   ;;  %v13734_v33 = vld [vmem:[#allocation32 + $0x50] sm:$0xff] (!%p12306_p12)  }
0x18fa   : > { %v10758_v45 = vadd.f32 %v10741_v23, %v10728_v62  ;;  %v10731_v56 = vadd.f32 %v10723_v15, %v16347_v5  ;;  %v10732_v28 = vadd.f32 %v10724_v4, %v16335_v11  ;;  %v10727_v35 = vmul.f32 %v10715_v32, %v10695_v43  ;;  %10777 = sbr.rel (%p12306_p12) target bundleno = 6949 (0x1b25), region = 240  ;;  %v13730_v15 = vld [vmem:[#allocation32 + $0x48] sm:$0xff] (!%p12306_p12)   ;;  %v13739_v43 = vld [vmem:[#allocation32 + $0xd8] sm:$0xff] (!%p12306_p12)  }
0x18fb   : > { %v10760_v0 = vadd.f32 %v10749_v40, %v10730_v61  ;;  %v10759_v3 = vadd.f32 %v10745_v17, %v10729_v53  ;;  %v10734_v18 = vadd.f32 %v10726_v9, %v16343_v34  ;;  %v10733_v47 = vadd.f32 %v10725_v14, %v16337_v19  ;;  %v13732_v4 = vld [vmem:[#allocation32 + $0x8] sm:$0xff] (!%p12306_p12)   ;;  %12391 = vmatprep.subr.bf16.mxu0 (!%p12306_p12), %v13730_v15  ;;  %v13735_v61 = vld [vmem:[#allocation32 + $0xd0] sm:$0xff] (!%p12306_p12)   ;;  %v13738_v14 = vld [vmem:[#allocation32 + $0x58] sm:$0xff] (!%p12306_p12)  }
0x18fc   : > { %10766 = vst [vmem:[#allocation2] sm:$0xff] %v10758_v45  ;;  %v10761_v55 = vadd.f32 %v10753_v27, %v10731_v56  ;;  %v10762_v20 = vadd.f32 %v10741_v23, %v10732_v28  ;;  %v10735_v1 = vadd.f32 %v10727_v35, %v16350_v29  ;;  %12392 = vmatpush3.bf16.msra.mxu0 (!%p12306_p12), %v13732_v4  ;;  %v13736_v53 = vld [vmem:[#allocation32 + $0x10] sm:$0xff] (!%p12306_p12)   ;;  %v13741_v56 = vld [vmem:[#allocation32 + $0x98] sm:$0xff] (!%p12306_p12)   ;;  %v13742_v28 = vld [vmem:[#allocation32 + $0x60] sm:$0xff] (!%p12306_p12)  }
0x18fd   : > { %10768 = vst [vmem:[#allocation2 + $0x10] sm:$0xff] %v10760_v0  ;;  %10767 = vst [vmem:[#allocation2 + $0x8] sm:$0xff] %v10759_v3  ;;  %v10764_v51 = vadd.f32 %v10749_v40, %v10734_v18  ;;  %v10763_v41 = vadd.f32 %v10745_v17, %v10733_v47  ;;  %v10780_v11 = vadd.f32 (!%p12306_p12), %v10759_v3, %v10758_v45  ;;  %v13737_v9 = vld [vmem:[#allocation32 + $0x90] sm:$0xff] (!%p12306_p12)   ;;  %12393 = vmatprep.subr.bf16.mxu0 (!%p12306_p12), %v13734_v33  ;;  %v13743_v35 = vld [vmem:[#allocation32 + $0xe0] sm:$0xff] (!%p12306_p12)  }
0x18fe   : > { %10769 = vst [vmem:[#allocation2 + $0x18] sm:$0xff] %v10761_v55  ;;  %10770 = vst [vmem:[#allocation2 + $0x20] sm:$0xff] %v10762_v20  ;;  %v10765_v5 = vadd.f32 %v10753_v27, %v10735_v1  ;;  %v13731_v27 = vld [vmem:[#allocation32 + $0xc8] sm:$0xff] (!%p12306_p12)   ;;  %v13750_v1 = vld [vmem:[#allocation32 + $0x70] sm:$0xff] (!%p12306_p12)  }
0x18ff   : > { %10772 = vst [vmem:[#allocation2 + $0x30] sm:$0xff] %v10764_v51  ;;  %10771 = vst [vmem:[#allocation2 + $0x28] sm:$0xff] %v10763_v41  ;;  %v10785_v19 = vadd.f32 (!%p12306_p12), %v10763_v41, %v10762_v20  ;;  %v10781_v34 = vadd.f32 (!%p12306_p12), %v10780_v11, %v10760_v0  ;;  %12413 = vmatprep.subr.bf16.mxu1 (!%p12306_p12), %v13731_v27  ;;  %v13746_v18 = vld [vmem:[#allocation32 + $0x68] sm:$0xff] (!%p12306_p12)   ;;  %v13754_v11 = vld [vmem:[#allocation32 + $0x78] sm:$0xff] (!%p12306_p12)  }
0x1900   : > { %10773 = vst [vmem:[#allocation2 + $0x38] sm:$0xff] %v10765_v5  ;;  %12414 = vmatpush3.bf16.msra.mxu1 (!%p12306_p12), %v13733_v21  ;;  %12394 = vmatpush3.bf16.msra.mxu0 (!%p12306_p12), %v13736_v53  ;;  %v13747_v47 = vld [vmem:[#allocation32 + $0xe8] sm:$0xff] (!%p12306_p12)  }
0x1901   : > { %v10786_v50 = vadd.f32 %v10785_v19, %v10764_v51  ;;  %v10782_v49 = vadd.f32 %v10781_v34, %v10761_v55  ;;  %12415 = vmatprep.subr.bf16.mxu1 %v13735_v61  ;;  %12395 = vmatprep.subr.bf16.mxu0 %v13738_v14  ;;  %v13755_v19 = vld [vmem:[#allocation32 + $0xf8] sm:$0xff]  }
0x1902   : > { %v13756_v34 = vld [vmem:[#allocation32 + $0x38] sm:$0xff]  }
0x1903   : > { %10783 = vadd.xlane.f32.xlu0 %v10782_v49  ;;  %v10787_v29 = vadd.f32 %v10786_v50, %v10765_v5  ;;  %v13757_v50 = vld [vmem:[#allocation32 + $0xb8] sm:$0xff]  }
0x1904   : > { %12416 = vmatpush3.bf16.msra.mxu1 %v13737_v9 }
0x1905   : > { %12417 = vmatprep.subr.bf16.mxu1 %v13739_v43 }
0x1907   : > { %10788 = vadd.xlane.f32.xlu0 %v10787_v29 }
0x1908   : > { %12418 = vmatpush3.bf16.msra.mxu1 %v13741_v56 }
0x1909   : > { %12419 = vmatprep.subr.bf16.mxu1 %v13743_v35 }
0x1990   : > { %v10784_v59 = vpop.xlane.xlu0 %10783 }
0x1991   : > { %v10790_v57 = vmul.f32 0.001953125, %v10784_v59  ;;  %v10778_v59 = vld [vmem:[#allocation30] sm:$0xf] }
0x1993   : > { %v17412_v16 = vsub.f32 %v10758_v45, %v10790_v57  ;;  %v17414_v25 = vsub.f32 %v10759_v3, %v10790_v57  ;;  %v17416_v48 = vsub.f32 %v10760_v0, %v10790_v57  ;;  %v17418_v54 = vsub.f32 %v10761_v55, %v10790_v57  ;;  %v13740_v45 = vld [vmem:[#allocation32 + $0x18] sm:$0xff]   ;;  %v13744_v0 = vld [vmem:[#allocation32 + $0x20] sm:$0xff]   ;;  %v13748_v55 = vld [vmem:[#allocation32 + $0x28] sm:$0xff]  }
0x1994   : > { %v10789_v60 = vpop.xlane.xlu0 %10788  ;;  %12396 = vmatpush3.bf16.msra.mxu0 %v13740_v45  ;;  %v13745_v3 = vld [vmem:[#allocation32 + $0xa0] sm:$0xff]  }
0x1995   : > { %v10791_v42 = vmul.f32 0.001953125, %v10789_v60  ;;  %v10800_v24 = vmul.f32 %v17412_v16, %v17412_v16  ;;  %v10801_v8 = vmul.f32 %v17414_v25, %v17414_v25  ;;  %v10802_v38 = vmul.f32 %v17416_v48, %v17416_v48  ;;  %12397 = vmatprep.subr.bf16.mxu0 %v13742_v28  ;;  %12420 = vmatpush3.bf16.msra.mxu1 %v13745_v3  ;;  %v10779_v60 = vld [vmem:[#allocation31] sm:$0xf]  ;;  %v12307_v28 = vld [vmem:[#allocation33] ss:$0 sm:$0xff] }
0x1996   : > { %v10803_v26 = vmul.f32 %v17418_v54, %v17418_v54  ;;  %12421 = vmatprep.subr.bf16.mxu1 %v13747_v47 }
0x1997   : > { %v17426_v37 = vsub.f32 %v10762_v20, %v10791_v42  ;;  %v17428_v58 = vsub.f32 %v10763_v41, %v10791_v42  ;;  %v10808_v32 = vadd.f32 %v10801_v8, %v10800_v24  ;;  %v17430_v31 = vsub.f32 %v10764_v51, %v10791_v42  ;;  %v13749_v20 = vld [vmem:[#allocation32 + $0xa8] sm:$0xff]   ;;  %v13751_v51 = vld [vmem:[#allocation32 + $0xf0] sm:$0xff]  }
0x1998   : > { %v17434_v2 = vsub.f32 %v10765_v5, %v10791_v42  ;;  %12398 = vmatpush3.bf16.msra.mxu0 %v13744_v0  ;;  %v13752_v41 = vld [vmem:[#allocation32 + $0x30] sm:$0xff]   ;;  %v10840_v24 = vrot.slane %v10778_v59, %v15717_v12 }
0x1999   : > { %v10809_v23 = vadd.f32 %v10808_v32, %v10802_v38  ;;  %v10804_v52 = vmul.f32 %v17426_v37, %v17426_v37  ;;  %v10805_v6 = vmul.f32 %v17428_v58, %v17428_v58  ;;  %v10806_v46 = vmul.f32 %v17430_v31, %v17430_v31  ;;  %12399 = vmatprep.subr.bf16.mxu0 %v13746_v18  ;;  %v13753_v5 = vld [vmem:[#allocation32 + $0xb0] sm:$0xff]  }
0x199a   : > { %v10807_v39 = vmul.f32 %v17434_v2, %v17434_v2  ;;  %12422 = vmatpush3.bf16.msra.mxu1 %v13749_v20  ;;  %v10848_v38 = vrot.slane %v10778_v59, %v15727_v22 }
0x199b   : > { %v10810_v40 = vadd.f32 %v10809_v23, %v10803_v26  ;;  %v10813_v17 = vadd.f32 %v10805_v6, %v10804_v52  ;;  %12423 = vmatprep.subr.bf16.mxu1 %v13751_v51  ;;  %v10836_v26 = vrot.slane %v10778_v59, %v15720_v13  ;;  %v10844_v52 = vrot.slane %v10778_v59, %v15712_v10 }
0x199c   : > { %12400 = vmatpush3.bf16.msra.mxu0 %v13748_v55 }
0x199d   : > { %10811 = vadd.xlane.f32.xlu1 %v10810_v40  ;;  %v10814_v44 = vadd.f32 %v10813_v17, %v10806_v46  ;;  %12401 = vmatprep.subr.bf16.mxu0 %v13750_v1  ;;  %v10869_v40 = vrot.slane %v10779_v60, %v15717_v12  ;;  %v10877_v46 = vrot.slane %v10779_v60, %v15727_v22 }
0x199e   : > { %12424 = vmatpush3.bf16.msra.mxu1 %v13753_v5  ;;  %v10873_v17 = vrot.slane %v10779_v60, %v15712_v10 }
0x199f   : > { %v10815_v62 = vadd.f32 %v10814_v44, %v10807_v39  ;;  %12425 = vmatprep.subr.bf16.mxu1 %v13755_v19 }
0x19a0   : > { %12402 = vmatpush3.bf16.msra.mxu0 %v13752_v41 }
0x19a1   : > { %10816 = vadd.xlane.f32.xlu1 %v10815_v62  ;;  %12403 = vmatprep.subr.bf16.mxu0 %v13754_v11 }
0x19a2   : > { %12426 = vmatpush3.bf16.msra.mxu1 %v13757_v50 }
0x19a4   : > { %12404 = vmatpush3.bf16.msra.mxu0 %v13756_v34 }
0x1a2a   : > { %v10812_v49 = vpop.xlane.xlu1 %10811 }
0x1a2b   : > { %v10818_v29 = vmul.f32 0.001953125, %v10812_v49 }
0x1a2d   : > { %v10820_v63 = vadd.f32 1e-05, %v10818_v29 }
0x1a2e   : > { %v10817_v30 = vpop.xlane.xlu1 %10816 }
0x1a2f   : > { %13758 = vrsqrt.f32 %v10820_v63  ;;  %v10819_v36 = vmul.f32 0.001953125, %v10817_v30 }
0x1a31   : > { %v10821_v7 = vadd.f32 1e-05, %v10819_v36 }
0x1a33   : > { %13760 = vrsqrt.f32 %v10821_v7 }
0x1a39   : > { %v13759_v57 = vpop.eup %13758 }
0x1a3a   : > { %v10825_v42 = vmul.f32 %v13759_v57, %v17414_v25  ;;  %v10827_v8 = vmul.f32 %v13759_v57, %v17418_v54  ;;  %v10824_v32 = vmul.f32 %v13759_v57, %v17412_v16  ;;  %v10826_v23 = vmul.f32 %v13759_v57, %v17416_v48 }
0x1a3b   : > { %v10865_v25 = vrot.slane %v10779_v60, %v15720_v13 }
0x1a3c   : > { %v10854_v39 = vmul.f32 %v10840_v24, %v10825_v42  ;;  %v10856_v44 = vmul.f32 %v10848_v38, %v10827_v8  ;;  %v10853_v48 = vmul.f32 %v10836_v26, %v10824_v32  ;;  %v10855_v27 = vmul.f32 %v10844_v52, %v10826_v23 }
0x1a3d   : > { %v13761_v6 = vpop.eup %13760 }
0x1a3e   : > { %v10829_v54 = vmul.f32 %v13761_v6, %v17428_v58  ;;  %v10831_v16 = vmul.f32 %v13761_v6, %v17434_v2  ;;  %v10828_v62 = vmul.f32 %v13761_v6, %v17426_v37  ;;  %v10830_v15 = vmul.f32 %v13761_v6, %v17430_v31 }
0x1a3f   : > { %v10883_v33 = vadd.f32 %v10869_v40, %v10854_v39  ;;  %v10885_v61 = vadd.f32 %v10877_v46, %v10856_v44  ;;  %v10882_v53 = vadd.f32 %v10865_v25, %v10853_v48  ;;  %v10884_v9 = vadd.f32 %v10873_v17, %v10855_v27 }
0x1a40   : > { %v10858_v4 = vmul.f32 %v10840_v24, %v10829_v54  ;;  %v10860_v12 = vmul.f32 %v10848_v38, %v10831_v16  ;;  %v10857_v21 = vmul.f32 %v10836_v26, %v10828_v62  ;;  %v10859_v22 = vmul.f32 %v10844_v52, %v10830_v15 }
0x1a42   : > { %v10887_v13 = vadd.f32 %v10869_v40, %v10858_v4  ;;  %v10889_v10 = vadd.f32 %v10877_v46, %v10860_v12  ;;  %v10886_v58 = vadd.f32 %v10865_v25, %v10857_v21  ;;  %v10888_v14 = vadd.f32 %v10873_v17, %v10859_v22 }
0x1a44   : > { %v10891_v2 = vpack.c.bf16 %v10887_v13, %v10883_v33  ;;  %v10893_v43 = vpack.c.bf16 %v10889_v10, %v10885_v61  ;;  %v10890_v45 = vpack.c.bf16 %v10886_v58, %v10882_v53  ;;  %v10892_v37 = vpack.c.bf16 %v10888_v14, %v10884_v9 }
0x1a46   : > { %11189 = vmatprep.mubr.bf16.mxu0 %v10891_v2  ;;  %11230 = vmatprep.mubr.bf16.mxu1 %v10893_v43 }
0x1a47   : > { %11190 = vmatmul.mubr.bf16.vlgmr.msra.gmra.mrb[0].mxu0 %v10890_v45  ;;  %11231 = vmatmul.mubr.bf16.vlgmr.msra.gmra.mrb[0].mxu1 %v10892_v37 }
0x1b1a   : > { %v12405_v31 = vpop.f32.mrb[0].mxu0  ;;  %v12427_v56 = vpop.f32.mrb[0].mxu1 }
0x1b1b   : > { %v12406_v35 = vpop.f32.mrb[1].mxu0  ;;  %v12428_v0 = vpop.f32.mrb[1].mxu1 }
0x1b1c   : > { %v12407_v3 = vadd.f32 %v12406_v35, %v12405_v31  ;;  %v12429_v18 = vadd.f32 %v12428_v0, %v12427_v56  ;;  %v12408_v47 = vpop.f32.mrb[2].mxu0  ;;  %v12430_v55 = vpop.f32.mrb[2].mxu1 }
0x1b1d   : > { %v12409_v20 = vpop.f32.mrb[3].mxu0  ;;  %v12431_v1 = vpop.f32.mrb[3].mxu1 }
0x1b1e   : > { %v11192_v51 = vadd.f32 %v12407_v3, %v12307_v28  ;;  %v12410_v41 = vadd.f32 %v12409_v20, %v12408_v47  ;;  %v12432_v5 = vadd.f32 %v12431_v1, %v12430_v55 }
0x1b20   : > { %v11233_v11 = vadd.f32 %v12429_v18, %v11192_v51  ;;  %v11195_v19 = vadd.f32 %v12410_v41, %v12307_v28 }
0x1b22   : > { %11239 = vst [vmem:[%s17652_s11] sm:$0xff] %v11233_v11  ;;  %v11236_v34 = vadd.f32 %v12432_v5, %v11195_v19 }
0x1b24   : > { %11240 = vst [vmem:[%s17652_s11 + $0x8] sm:$0xff] %v11236_v34 }
0x1b25 PF: > { %s17653_s30 = sld [smem:[#allocation46_spill]]  ;;  %s17654_s7 = sld [smem:[#allocation44_spill]] }
0x1b26   : > { %s17655_s0 = sld [smem:[#allocation47_spill]]  ;;  %s17656_s4 = smov %s14552_s8 }
0x1b2b   : > { %p39_p0 = scmp.ge.s32.totalorder %s17653_s30, 6  }
0x1b2c   : > { %s17657_s8 = smov %s17655_s0 }
0x1b2d   :  { %41 = sbr.rel (!%p39_p0) target bundleno = 30 (0x1e), region = 376 }
0x1b34   :  { %11252 = vsyncpa [#allocation5], 1 }
0x1b35   :  { %11254 = vsyncpa [#allocation5 + $0x1], 1 }
0x1b36   :  { %11255 = vsyncpa [#allocation7], 1 }
0x1b37   :  { %11256 = vsyncpa [#allocation10], 1 }
0x1b38   :  { %11257 = vsyncpa [#allocation13], 1 }
0x1b39   :  { %11258 = vsyncpa [#allocation34], 1 }

</bundles_post_ra>
